<compile_context>
chip_gen: v7x
topology: tpu7x:2x2x1
jax: 0.10.0
libtpu: 0.0.40
codegen_flags: <defaults>
</compile_context>

<pallas_src>
import functools

import jax
import jax.numpy as jnp
from jax.experimental import pallas as pl
from jax.experimental.pallas import tpu as pltpu


_KEYS_ID = ("s1", "b1", "w1", "s2", "b2", "w2", "s3", "b3", "w3")
_KEYS_PROJ = _KEYS_ID + ("ss", "bs", "ws")


# ------------------------------ in-kernel building blocks ------------------------------

def _bottleneck(x2, pr, pad_ref, dims, has_proj):
    """Pre-activation bottleneck ResBlock on a (M, Cin) f32 activation.

    BN-ReLU-1x1x1 -> BN-ReLU-3x3x3(pad=1, ONE K=27*mid im2col matmul) -> BN-ReLU-1x1x1,
    plus (projected or identity) shortcut.  bf16 MXU operands, f32 accumulation.
    """
    d, h, w = dims
    m = d * h * w
    bf16, f32 = jnp.bfloat16, jnp.float32

    a1 = jnp.maximum(x2 * pr["s1"][...] + pr["b1"][...], 0.0)
    h1 = jnp.dot(a1.astype(bf16), pr["w1"][...], preferred_element_type=f32)   # (M, mid)
    mid = h1.shape[-1]

    a2 = jnp.maximum(h1 * pr["s2"][...] + pr["b2"][...], 0.0)
    # Stage into the zero-bordered halo scratch. The interior is fully overwritten
    # by every block, so the border zeros written at kernel start stay valid.
    pad_ref[1:1 + d, 1:1 + h, 1:1 + w, :] = a2.reshape(d, h, w, mid)

    # im2col: 27 shifted windows concatenated on the lane axis -> one
    # (M, 27*mid) x (27*mid, mid) matmul instead of 27 tiny (M,mid)x(mid,mid) matmuls.
    slab = jnp.concatenate(
        [pad_ref[kd:kd + d, kh:kh + h, kw:kw + w, :].reshape(m, mid)
         for kd in range(3) for kh in range(3) for kw in range(3)],
        axis=-1)                                                               # (M, 27*mid)
    h2 = jnp.dot(slab.astype(bf16), pr["w2"][...], preferred_element_type=f32)  # (M, mid)

    a3 = jnp.maximum(h2 * pr["s3"][...] + pr["b3"][...], 0.0)
    h4 = jnp.dot(a3.astype(bf16), pr["w3"][...], preferred_element_type=f32)   # (M, Cout)

    if has_proj:
        asc = jnp.maximum(x2 * pr["ss"][...] + pr["bs"][...], 0.0)
        sc = jnp.dot(asc.astype(bf16), pr["ws"][...], preferred_element_type=f32)
    else:
        sc = x2  # identity shortcut (Cin == Cout, asserted in the wrapper)
    return h4 + sc


def _maxpool2(y, dims):
    """MaxPool3d(kernel=2, stride=2) on a (D*H*W, C) channels-last activation."""
    d, h, w = dims
    m, c = y.shape
    y = y.reshape(m // 2, 2, c)                        # pool W
    y = jnp.maximum(y[:, 0, :], y[:, 1, :])
    y = y.reshape(d * (h // 2), 2, w // 2, c)          # pool H
    y = jnp.maximum(y[:, 0], y[:, 1])
    y = y.reshape(d // 2, 2, (h // 2) * (w // 2), c)   # pool D
    y = jnp.maximum(y[:, 0], y[:, 1])
    return y.reshape((d // 2) * (h // 2) * (w // 2), c)


# ------------------------------ fused FishHead kernel ------------------------------

def _fish_head_kernel(*refs, dims_x, dims_t, x_proj, t_proj):
    """Entire FishHead forward for one batch element (one grid step).

    refs = (x, t, <x-branch block params...>, <trans block params...>, out, pad_x, pad_t)
      x   : (1, Dx*Hx*Wx, Cin_x)  f32   channels-last
      t   : (1, Dt*Ht*Wt, Cin_t)  f32
      out : (1, 1, Do*Ho*Wo*(Cout_x+Cout_t))  f32  (lane-dense flat row)
      pad_x / pad_t : zero-bordered halo scratch for the 3x3x3 convs of each branch
    """
    x_ref, t_ref = refs[0], refs[1]
    pos = 2

    def take_block(has_proj):
        nonlocal pos
        keys = _KEYS_PROJ if has_proj else _KEYS_ID
        blk = dict(zip(keys, refs[pos:pos + len(keys)]))
        pos += len(keys)
        return blk

    x_blocks = [take_block(p) for p in x_proj]
    t_blocks = [take_block(p) for p in t_proj]
    o_ref, pad_x_ref, pad_t_ref = refs[pos], refs[pos + 1], refs[pos + 2]

    # Zero halo scratches once per grid step (tiny; megacore-safe since each core
    # re-zeroes its own scratch on every step it executes).
    pad_x_ref[...] = jnp.zeros_like(pad_x_ref)
    pad_t_ref[...] = jnp.zeros_like(pad_t_ref)

    # ---- x branch: ResBlocks, then fused MaxPool3d(2,2) ----
    dx, hx, wx = dims_x
    h = x_ref[...].reshape(dx * hx * wx, x_ref.shape[-1])
    for has_proj, pr in zip(x_proj, x_blocks):
        h = _bottleneck(h, pr, pad_x_ref, dims_x, has_proj)
    xo = _maxpool2(h, dims_x)                                   # (Mo, Cout_x)

    # ---- trans branch: TransferBlock (identity-channel ResBlocks) ----
    dt, ht, wt = dims_t
    t = t_ref[...].reshape(dt * ht * wt, t_ref.shape[-1])
    for has_proj, pr in zip(t_proj, t_blocks):
        t = _bottleneck(t, pr, pad_t_ref, dims_t, has_proj)     # (Mo, Cout_t)

    # ---- channel concat + lane-dense flat output store ----
    out = jnp.concatenate([xo, t], axis=-1)                     # (Mo, Ctot)
    flat = jnp.concatenate([out[i:i + 1, :] for i in range(out.shape[0])],
                           axis=-1)                             # (1, Mo*Ctot)
    o_ref[...] = flat.reshape(o_ref.shape)


# ------------------------------ pallas_call wrapper ------------------------------

def _const_map(ndim):
    return lambda i: (0,) * ndim


def fish_head_forward(params, x_ncdhw, trans_ncdhw):
    """FishHead forward; inputs/outputs are NCDHW like the torch module."""
    n, cx, dx, hx, wx = x_ncdhw.shape
    nt, ct, dt, ht, wt = trans_ncdhw.shape
    assert n == nt
    assert dx % 2 == 0 and hx % 2 == 0 and wx % 2 == 0, "MaxPool3d(2,2) needs even dims"
    assert (dx // 2, hx // 2, wx // 2) == (dt, ht, wt), "branch spatial mismatch for concat"

    x_blocks, t_blocks = params["blocks"], params["trans"]
    x_proj = tuple("ws" in p for p in x_blocks)
    t_proj = tuple("ws" in p for p in t_blocks)
    for p, hp in list(zip(x_blocks, x_proj)) + list(zip(t_blocks, t_proj)):
        assert hp or p["w1"].shape[0] == p["w3"].shape[1], "identity shortcut needs Cin==Cout"

    out_cx = x_blocks[-1]["w3"].shape[1]
    out_ct = t_blocks[-1]["w3"].shape[1]
    do, ho, wo = dx // 2, hx // 2, wx // 2
    out_c = out_cx + out_ct
    out_feat = do * ho * wo * out_c

    # channels-last (N, D*H*W, C) views for the kernel
    x_cl = jnp.transpose(x_ncdhw, (0, 2, 3, 4, 1)).reshape(n, dx * hx * wx, cx).astype(jnp.float32)
    t_cl = jnp.transpose(trans_ncdhw, (0, 2, 3, 4, 1)).reshape(n, dt * ht * wt, ct).astype(jnp.float32)

    arrays = [x_cl, t_cl]
    for p, hp in list(zip(x_blocks, x_proj)) + list(zip(t_blocks, t_proj)):
        keys = _KEYS_PROJ if hp else _KEYS_ID
        arrays += [p[k] for k in keys]

    in_specs = [pl.BlockSpec((1,) + x_cl.shape[1:], lambda i: (i, 0, 0)),
                pl.BlockSpec((1,) + t_cl.shape[1:], lambda i: (i, 0, 0))]
    in_specs += [pl.BlockSpec(a.shape, _const_map(a.ndim)) for a in arrays[2:]]

    mid_x = x_blocks[0]["w1"].shape[1]
    mid_t = t_blocks[0]["w1"].shape[1]

    kernel = functools.partial(
        _fish_head_kernel, dims_x=(dx, hx, wx), dims_t=(dt, ht, wt),
        x_proj=x_proj, t_proj=t_proj)

    out_flat = pl.pallas_call(
        kernel,
        out_shape=jax.ShapeDtypeStruct((n, 1, out_feat), jnp.float32),
        grid=(n,),
        in_specs=in_specs,
        out_specs=pl.BlockSpec((1, 1, out_feat), lambda i: (i, 0, 0)),
        scratch_shapes=[
            pltpu.VMEM((dx + 2, hx + 2, wx + 2, mid_x), jnp.float32),
            pltpu.VMEM((dt + 2, ht + 2, wt + 2, mid_t), jnp.float32),
        ],
        compiler_params=pltpu.CompilerParams(
            dimension_semantics=("parallel",),     # batch grid -> megacore on v7x
            vmem_limit_bytes=32 * 1024 * 1024,
        ),
    )(*arrays)

    out = out_flat.reshape(n, do, ho, wo, out_c)
    return jnp.transpose(out, (0, 4, 1, 2, 3))     # back to NCDHW (torch contract)


# ------------------------------ parameters ------------------------------

def _init_bn(key, c):
    k1, k2, k3, k4 = jax.random.split(key, 4)
    gamma = 1.0 + 0.1 * jax.random.normal(k1, (c,), jnp.float32)
    beta = 0.1 * jax.random.normal(k2, (c,), jnp.float32)
    mean = 0.1 * jax.random.normal(k3, (c,), jnp.float32)
    var = jnp.abs(1.0 + 0.1 * jax.random.normal(k4, (c,), jnp.float32))
    scale = gamma / jnp.sqrt(var + 1e-5)
    bias = beta - mean * scale
    return scale.reshape(1, c), bias.reshape(1, c)


def _init_resblock(key, in_c, out_c):
    mid = out_c // 4
    ks = jax.random.split(key, 8)
    p = {}
    p["s1"], p["b1"] = _init_bn(ks[0], in_c)
    p["w1"] = (0.1 * jax.random.normal(ks[1], (in_c, mid), jnp.float32)).astype(jnp.bfloat16)
    p["s2"], p["b2"] = _init_bn(ks[2], mid)
    # torch conv3d weight (O, C, kd, kh, kw) -> im2col-packed 2-D (27*C, O) so the
    # in-kernel 3x3x3 conv is a single K=27*mid matmul.
    w2 = 0.1 * jax.random.normal(ks[3], (mid, mid, 3, 3, 3), jnp.float32)
    p["w2"] = jnp.transpose(w2, (2, 3, 4, 1, 0)).reshape(27 * mid, mid).astype(jnp.bfloat16)
    p["s3"], p["b3"] = _init_bn(ks[4], mid)
    p["w3"] = (0.1 * jax.random.normal(ks[5], (mid, out_c), jnp.float32)).astype(jnp.bfloat16)
    if in_c != out_c:
        p["ss"], p["bs"] = _init_bn(ks[6], in_c)
        p["ws"] = (0.1 * jax.random.normal(ks[7], (in_c, out_c), jnp.float32)).astype(jnp.bfloat16)
    return p


def init_fish_head(key, in_c, out_c, num_blk, trans_in_c, num_trans):
    keys = jax.random.split(key, num_blk + num_trans)
    blocks = [_init_resblock(keys[0], in_c, out_c)]
    for i in range(1, num_blk):
        blocks.append(_init_resblock(keys[i], out_c, out_c))
    trans_blocks = [
        _init_resblock(keys[num_blk + i], trans_in_c, trans_in_c)
        for i in range(num_trans)
    ]
    return {"blocks": blocks, "trans": trans_blocks}


# ------------------------------ main ------------------------------

if __name__ == "__main__":
    in_c, out_c, num_blk = 8, 16, 2
    trans_in_c, num_trans = 16, 1

    key = jax.random.PRNGKey(0)
    kp, kx, kt = jax.random.split(key, 3)

    params = init_fish_head(kp, in_c, out_c, num_blk, trans_in_c, num_trans)

    # x: (N, C, D, H, W); trans_x has half the spatial extent so the concat matches.
    x = jax.random.normal(kx, (2, in_c, 4, 4, 4), jnp.float32)
    trans_x = jax.random.normal(kt, (2, trans_in_c, 2, 2, 2), jnp.float32)

    fwd = jax.jit(functools.partial(fish_head_forward, params))
    out = jax.block_until_ready(fwd(x, trans_x))

    assert out.shape == (2, out_c + trans_in_c, 2, 2, 2), out.shape
    assert bool(jnp.all(jnp.isfinite(out)))
    print("KERNEL_OK")
</pallas_src>

<mosaic_0001>
module attributes {stable_mosaic.version = 11 : i64} {
  func.func @_fish_head_kernel(%arg0: i32, %arg1: memref<1x64x8xf32, #tpu.memory_space<vmem>>, %arg2: memref<1x8x16xf32, #tpu.memory_space<vmem>>, %arg3: memref<1x8xf32, #tpu.memory_space<vmem>>, %arg4: memref<1x8xf32, #tpu.memory_space<vmem>>, %arg5: memref<8x4xbf16, #tpu.memory_space<vmem>>, %arg6: memref<1x4xf32, #tpu.memory_space<vmem>>, %arg7: memref<1x4xf32, #tpu.memory_space<vmem>>, %arg8: memref<108x4xbf16, #tpu.memory_space<vmem>>, %arg9: memref<1x4xf32, #tpu.memory_space<vmem>>, %arg10: memref<1x4xf32, #tpu.memory_space<vmem>>, %arg11: memref<4x16xbf16, #tpu.memory_space<vmem>>, %arg12: memref<1x8xf32, #tpu.memory_space<vmem>>, %arg13: memref<1x8xf32, #tpu.memory_space<vmem>>, %arg14: memref<8x16xbf16, #tpu.memory_space<vmem>>, %arg15: memref<1x16xf32, #tpu.memory_space<vmem>>, %arg16: memref<1x16xf32, #tpu.memory_space<vmem>>, %arg17: memref<16x4xbf16, #tpu.memory_space<vmem>>, %arg18: memref<1x4xf32, #tpu.memory_space<vmem>>, %arg19: memref<1x4xf32, #tpu.memory_space<vmem>>, %arg20: memref<108x4xbf16, #tpu.memory_space<vmem>>, %arg21: memref<1x4xf32, #tpu.memory_space<vmem>>, %arg22: memref<1x4xf32, #tpu.memory_space<vmem>>, %arg23: memref<4x16xbf16, #tpu.memory_space<vmem>>, %arg24: memref<1x16xf32, #tpu.memory_space<vmem>>, %arg25: memref<1x16xf32, #tpu.memory_space<vmem>>, %arg26: memref<16x4xbf16, #tpu.memory_space<vmem>>, %arg27: memref<1x4xf32, #tpu.memory_space<vmem>>, %arg28: memref<1x4xf32, #tpu.memory_space<vmem>>, %arg29: memref<108x4xbf16, #tpu.memory_space<vmem>>, %arg30: memref<1x4xf32, #tpu.memory_space<vmem>>, %arg31: memref<1x4xf32, #tpu.memory_space<vmem>>, %arg32: memref<4x16xbf16, #tpu.memory_space<vmem>>, %arg33: memref<1x1x256xf32, #tpu.memory_space<vmem>>, %arg34: memref<6x6x6x4xf32, #tpu.memory_space<vmem>>, %arg35: memref<4x4x4x4xf32, #tpu.memory_space<vmem>>) attributes {dimension_semantics = [#tpu.dimension_semantics<parallel>], iteration_bounds = array<i64: 2>, scalar_prefetch = 0 : i64, scratch_operands = 2 : i64, tpu.core_type = #tpu.core_type<tc>, window_params = [{transform_indices = @transform_0, window_bounds = array<i64: 1, 64, 8>}, {transform_indices = @transform_1, window_bounds = array<i64: 1, 8, 16>}, {pipeline_mode = #tpu.pipeline_mode<synchronous>, transform_indices = @transform_2, window_bounds = array<i64: 1, 8>}, {pipeline_mode = #tpu.pipeline_mode<synchronous>, transform_indices = @transform_3, window_bounds = array<i64: 1, 8>}, {pipeline_mode = #tpu.pipeline_mode<synchronous>, transform_indices = @transform_4, window_bounds = array<i64: 8, 4>}, {pipeline_mode = #tpu.pipeline_mode<synchronous>, transform_indices = @transform_5, window_bounds = array<i64: 1, 4>}, {pipeline_mode = #tpu.pipeline_mode<synchronous>, transform_indices = @transform_6, window_bounds = array<i64: 1, 4>}, {pipeline_mode = #tpu.pipeline_mode<synchronous>, transform_indices = @transform_7, window_bounds = array<i64: 108, 4>}, {pipeline_mode = #tpu.pipeline_mode<synchronous>, transform_indices = @transform_8, window_bounds = array<i64: 1, 4>}, {pipeline_mode = #tpu.pipeline_mode<synchronous>, transform_indices = @transform_9, window_bounds = array<i64: 1, 4>}, {pipeline_mode = #tpu.pipeline_mode<synchronous>, transform_indices = @transform_10, window_bounds = array<i64: 4, 16>}, {pipeline_mode = #tpu.pipeline_mode<synchronous>, transform_indices = @transform_11, window_bounds = array<i64: 1, 8>}, {pipeline_mode = #tpu.pipeline_mode<synchronous>, transform_indices = @transform_12, window_bounds = array<i64: 1, 8>}, {pipeline_mode = #tpu.pipeline_mode<synchronous>, transform_indices = @transform_13, window_bounds = array<i64: 8, 16>}, {pipeline_mode = #tpu.pipeline_mode<synchronous>, transform_indices = @transform_14, window_bounds = array<i64: 1, 16>}, {pipeline_mode = #tpu.pipeline_mode<synchronous>, transform_indices = @transform_15, window_bounds = array<i64: 1, 16>}, {pipeline_mode = #tpu.pipeline_mode<synchronous>, transform_indices = @transform_16, window_bounds = array<i64: 16, 4>}, {pipeline_mode = #tpu.pipeline_mode<synchronous>, transform_indices = @transform_17, window_bounds = array<i64: 1, 4>}, {pipeline_mode = #tpu.pipeline_mode<synchronous>, transform_indices = @transform_18, window_bounds = array<i64: 1, 4>}, {pipeline_mode = #tpu.pipeline_mode<synchronous>, transform_indices = @transform_19, window_bounds = array<i64: 108, 4>}, {pipeline_mode = #tpu.pipeline_mode<synchronous>, transform_indices = @transform_20, window_bounds = array<i64: 1, 4>}, {pipeline_mode = #tpu.pipeline_mode<synchronous>, transform_indices = @transform_21, window_bounds = array<i64: 1, 4>}, {pipeline_mode = #tpu.pipeline_mode<synchronous>, transform_indices = @transform_22, window_bounds = array<i64: 4, 16>}, {pipeline_mode = #tpu.pipeline_mode<synchronous>, transform_indices = @transform_23, window_bounds = array<i64: 1, 16>}, {pipeline_mode = #tpu.pipeline_mode<synchronous>, transform_indices = @transform_24, window_bounds = array<i64: 1, 16>}, {pipeline_mode = #tpu.pipeline_mode<synchronous>, transform_indices = @transform_25, window_bounds = array<i64: 16, 4>}, {pipeline_mode = #tpu.pipeline_mode<synchronous>, transform_indices = @transform_26, window_bounds = array<i64: 1, 4>}, {pipeline_mode = #tpu.pipeline_mode<synchronous>, transform_indices = @transform_27, window_bounds = array<i64: 1, 4>}, {pipeline_mode = #tpu.pipeline_mode<synchronous>, transform_indices = @transform_28, window_bounds = array<i64: 108, 4>}, {pipeline_mode = #tpu.pipeline_mode<synchronous>, transform_indices = @transform_29, window_bounds = array<i64: 1, 4>}, {pipeline_mode = #tpu.pipeline_mode<synchronous>, transform_indices = @transform_30, window_bounds = array<i64: 1, 4>}, {pipeline_mode = #tpu.pipeline_mode<synchronous>, transform_indices = @transform_31, window_bounds = array<i64: 4, 16>}, {transform_indices = @transform_32, window_bounds = array<i64: 1, 1, 256>}]} {
    %cst = arith.constant 0.000000e+00 : f32
    %0 = vector.broadcast %cst : f32 to vector<6x6x6x4xf32>
    %c0 = arith.constant 0 : index
    %c0_0 = arith.constant 0 : index
    %c0_1 = arith.constant 0 : index
    %c0_2 = arith.constant 0 : index
    %1 = vector.load %arg34[%c0, %c0_0, %c0_1, %c0_2] : memref<6x6x6x4xf32, #tpu.memory_space<vmem>>, vector<6x6x6x4xf32>
    tpu.vector_store %arg34[%c0, %c0_0, %c0_1, %c0_2], %0 {strides = array<i32>} : memref<6x6x6x4xf32, #tpu.memory_space<vmem>>, vector<6x6x6x4xf32>,
    %cst_3 = arith.constant 0.000000e+00 : f32
    %2 = vector.broadcast %cst_3 : f32 to vector<4x4x4x4xf32>
    %c0_4 = arith.constant 0 : index
    %c0_5 = arith.constant 0 : index
    %c0_6 = arith.constant 0 : index
    %c0_7 = arith.constant 0 : index
    %3 = vector.load %arg35[%c0_4, %c0_5, %c0_6, %c0_7] : memref<4x4x4x4xf32, #tpu.memory_space<vmem>>, vector<4x4x4x4xf32>
    tpu.vector_store %arg35[%c0_4, %c0_5, %c0_6, %c0_7], %2 {strides = array<i32>} : memref<4x4x4x4xf32, #tpu.memory_space<vmem>>, vector<4x4x4x4xf32>,
    %c0_8 = arith.constant 0 : index
    %c0_9 = arith.constant 0 : index
    %c0_10 = arith.constant 0 : index
    %4 = vector.load %arg1[%c0_8, %c0_9, %c0_10] : memref<1x64x8xf32, #tpu.memory_space<vmem>>, vector<1x64x8xf32>
    %5 = vector.shape_cast %4 : vector<1x64x8xf32> to vector<64x8xf32>
    %c0_11 = arith.constant 0 : index
    %c0_12 = arith.constant 0 : index
    %6 = vector.load %arg3[%c0_11, %c0_12] : memref<1x8xf32, #tpu.memory_space<vmem>>, vector<1x8xf32>
    %7 = vector.broadcast %6 : vector<1x8xf32> to vector<64x8xf32>
    %8 = arith.mulf %5, %7 : vector<64x8xf32>
    %c0_13 = arith.constant 0 : index
    %c0_14 = arith.constant 0 : index
    %9 = vector.load %arg4[%c0_13, %c0_14] : memref<1x8xf32, #tpu.memory_space<vmem>>, vector<1x8xf32>
    %10 = vector.broadcast %9 : vector<1x8xf32> to vector<64x8xf32>
    %11 = arith.addf %8, %10 : vector<64x8xf32>
    %cst_15 = arith.constant 0.000000e+00 : f32
    %12 = vector.broadcast %cst_15 : f32 to vector<64x8xf32>
    %13 = arith.maximumf %11, %12 : vector<64x8xf32>
    %14 = arith.truncf %13 : vector<64x8xf32> to vector<64x8xbf16>
    %c0_16 = arith.constant 0 : index
    %c0_17 = arith.constant 0 : index
    %15 = vector.load %arg5[%c0_16, %c0_17] : memref<8x4xbf16, #tpu.memory_space<vmem>>, vector<8x4xbf16>
    %cst_18 = arith.constant dense<0.000000e+00> : vector<64x4xf32>
    %16 = tpu.matmul %14, %15, %cst_18 {dimension_numbers = #tpu.dot_dimension_numbers<[1], [0], [0], [1], [0, 0, 1, 1], [], []>} : vector<64x8xbf16>, vector<8x4xbf16>, vector<64x4xf32> -> vector<64x4xf32>
    %c0_19 = arith.constant 0 : index
    %c0_20 = arith.constant 0 : index
    %17 = vector.load %arg6[%c0_19, %c0_20] : memref<1x4xf32, #tpu.memory_space<vmem>>, vector<1x4xf32>
    %18 = vector.broadcast %17 : vector<1x4xf32> to vector<64x4xf32>
    %19 = arith.mulf %16, %18 : vector<64x4xf32>
    %c0_21 = arith.constant 0 : index
    %c0_22 = arith.constant 0 : index
    %20 = vector.load %arg7[%c0_21, %c0_22] : memref<1x4xf32, #tpu.memory_space<vmem>>, vector<1x4xf32>
    %21 = vector.broadcast %20 : vector<1x4xf32> to vector<64x4xf32>
    %22 = arith.addf %19, %21 : vector<64x4xf32>
    %cst_23 = arith.constant 0.000000e+00 : f32
    %23 = vector.broadcast %cst_23 : f32 to vector<64x4xf32>
    %24 = arith.maximumf %22, %23 : vector<64x4xf32>
    %25 = vector.shape_cast %24 : vector<64x4xf32> to vector<4x4x4x4xf32>
    %c1 = arith.constant 1 : index
    %c1_24 = arith.constant 1 : index
    %c1_25 = arith.constant 1 : index
    %c0_26 = arith.constant 0 : index
    %26 = vector.load %arg34[%c1, %c1_24, %c1_25, %c0_26] : memref<6x6x6x4xf32, #tpu.memory_space<vmem>>, vector<4x4x4x4xf32>
    tpu.vector_store %arg34[%c1, %c1_24, %c1_25, %c0_26], %25 {strides = array<i32>} : memref<6x6x6x4xf32, #tpu.memory_space<vmem>>, vector<4x4x4x4xf32>,
    %c0_27 = arith.constant 0 : index
    %c0_28 = arith.constant 0 : index
    %c0_29 = arith.constant 0 : index
    %c0_30 = arith.constant 0 : index
    %27 = vector.load %arg34[%c0_27, %c0_28, %c0_29, %c0_30] : memref<6x6x6x4xf32, #tpu.memory_space<vmem>>, vector<4x4x4x4xf32>
    %28 = vector.shape_cast %27 : vector<4x4x4x4xf32> to vector<64x4xf32>
    %c0_31 = arith.constant 0 : index
    %c0_32 = arith.constant 0 : index
    %c1_33 = arith.constant 1 : index
    %c0_34 = arith.constant 0 : index
    %29 = vector.load %arg34[%c0_31, %c0_32, %c1_33, %c0_34] : memref<6x6x6x4xf32, #tpu.memory_space<vmem>>, vector<4x4x4x4xf32>
    %30 = vector.shape_cast %29 : vector<4x4x4x4xf32> to vector<64x4xf32>
    %c0_35 = arith.constant 0 : index
    %c0_36 = arith.constant 0 : index
    %c2 = arith.constant 2 : index
    %c0_37 = arith.constant 0 : index
    %31 = vector.load %arg34[%c0_35, %c0_36, %c2, %c0_37] : memref<6x6x6x4xf32, #tpu.memory_space<vmem>>, vector<4x4x4x4xf32>
    %32 = vector.shape_cast %31 : vector<4x4x4x4xf32> to vector<64x4xf32>
    %c0_38 = arith.constant 0 : index
    %c1_39 = arith.constant 1 : index
    %c0_40 = arith.constant 0 : index
    %c0_41 = arith.constant 0 : index
    %33 = vector.load %arg34[%c0_38, %c1_39, %c0_40, %c0_41] : memref<6x6x6x4xf32, #tpu.memory_space<vmem>>, vector<4x4x4x4xf32>
    %34 = vector.shape_cast %33 : vector<4x4x4x4xf32> to vector<64x4xf32>
    %c0_42 = arith.constant 0 : index
    %c1_43 = arith.constant 1 : index
    %c1_44 = arith.constant 1 : index
    %c0_45 = arith.constant 0 : index
    %35 = vector.load %arg34[%c0_42, %c1_43, %c1_44, %c0_45] : memref<6x6x6x4xf32, #tpu.memory_space<vmem>>, vector<4x4x4x4xf32>
    %36 = vector.shape_cast %35 : vector<4x4x4x4xf32> to vector<64x4xf32>
    %c0_46 = arith.constant 0 : index
    %c1_47 = arith.constant 1 : index
    %c2_48 = arith.constant 2 : index
    %c0_49 = arith.constant 0 : index
    %37 = vector.load %arg34[%c0_46, %c1_47, %c2_48, %c0_49] : memref<6x6x6x4xf32, #tpu.memory_space<vmem>>, vector<4x4x4x4xf32>
    %38 = vector.shape_cast %37 : vector<4x4x4x4xf32> to vector<64x4xf32>
    %c0_50 = arith.constant 0 : index
    %c2_51 = arith.constant 2 : index
    %c0_52 = arith.constant 0 : index
    %c0_53 = arith.constant 0 : index
    %39 = vector.load %arg34[%c0_50, %c2_51, %c0_52, %c0_53] : memref<6x6x6x4xf32, #tpu.memory_space<vmem>>, vector<4x4x4x4xf32>
    %40 = vector.shape_cast %39 : vector<4x4x4x4xf32> to vector<64x4xf32>
    %c0_54 = arith.constant 0 : index
    %c2_55 = arith.constant 2 : index
    %c1_56 = arith.constant 1 : index
    %c0_57 = arith.constant 0 : index
    %41 = vector.load %arg34[%c0_54, %c2_55, %c1_56, %c0_57] : memref<6x6x6x4xf32, #tpu.memory_space<vmem>>, vector<4x4x4x4xf32>
    %42 = vector.shape_cast %41 : vector<4x4x4x4xf32> to vector<64x4xf32>
    %c0_58 = arith.constant 0 : index
    %c2_59 = arith.constant 2 : index
    %c2_60 = arith.constant 2 : index
    %c0_61 = arith.constant 0 : index
    %43 = vector.load %arg34[%c0_58, %c2_59, %c2_60, %c0_61] : memref<6x6x6x4xf32, #tpu.memory_space<vmem>>, vector<4x4x4x4xf32>
    %44 = vector.shape_cast %43 : vector<4x4x4x4xf32> to vector<64x4xf32>
    %c1_62 = arith.constant 1 : index
    %c0_63 = arith.constant 0 : index
    %c0_64 = arith.constant 0 : index
    %c0_65 = arith.constant 0 : index
    %45 = vector.load %arg34[%c1_62, %c0_63, %c0_64, %c0_65] : memref<6x6x6x4xf32, #tpu.memory_space<vmem>>, vector<4x4x4x4xf32>
    %46 = vector.shape_cast %45 : vector<4x4x4x4xf32> to vector<64x4xf32>
    %c1_66 = arith.constant 1 : index
    %c0_67 = arith.constant 0 : index
    %c1_68 = arith.constant 1 : index
    %c0_69 = arith.constant 0 : index
    %47 = vector.load %arg34[%c1_66, %c0_67, %c1_68, %c0_69] : memref<6x6x6x4xf32, #tpu.memory_space<vmem>>, vector<4x4x4x4xf32>
    %48 = vector.shape_cast %47 : vector<4x4x4x4xf32> to vector<64x4xf32>
    %c1_70 = arith.constant 1 : index
    %c0_71 = arith.constant 0 : index
    %c2_72 = arith.constant 2 : index
    %c0_73 = arith.constant 0 : index
    %49 = vector.load %arg34[%c1_70, %c0_71, %c2_72, %c0_73] : memref<6x6x6x4xf32, #tpu.memory_space<vmem>>, vector<4x4x4x4xf32>
    %50 = vector.shape_cast %49 : vector<4x4x4x4xf32> to vector<64x4xf32>
    %c1_74 = arith.constant 1 : index
    %c1_75 = arith.constant 1 : index
    %c0_76 = arith.constant 0 : index
    %c0_77 = arith.constant 0 : index
    %51 = vector.load %arg34[%c1_74, %c1_75, %c0_76, %c0_77] : memref<6x6x6x4xf32, #tpu.memory_space<vmem>>, vector<4x4x4x4xf32>
    %52 = vector.shape_cast %51 : vector<4x4x4x4xf32> to vector<64x4xf32>
    %c1_78 = arith.constant 1 : index
    %c1_79 = arith.constant 1 : index
    %c1_80 = arith.constant 1 : index
    %c0_81 = arith.constant 0 : index
    %53 = vector.load %arg34[%c1_78, %c1_79, %c1_80, %c0_81] : memref<6x6x6x4xf32, #tpu.memory_space<vmem>>, vector<4x4x4x4xf32>
    %54 = vector.shape_cast %53 : vector<4x4x4x4xf32> to vector<64x4xf32>
    %c1_82 = arith.constant 1 : index
    %c1_83 = arith.constant 1 : index
    %c2_84 = arith.constant 2 : index
    %c0_85 = arith.constant 0 : index
    %55 = vector.load %arg34[%c1_82, %c1_83, %c2_84, %c0_85] : memref<6x6x6x4xf32, #tpu.memory_space<vmem>>, vector<4x4x4x4xf32>
    %56 = vector.shape_cast %55 : vector<4x4x4x4xf32> to vector<64x4xf32>
    %c1_86 = arith.constant 1 : index
    %c2_87 = arith.constant 2 : index
    %c0_88 = arith.constant 0 : index
    %c0_89 = arith.constant 0 : index
    %57 = vector.load %arg34[%c1_86, %c2_87, %c0_88, %c0_89] : memref<6x6x6x4xf32, #tpu.memory_space<vmem>>, vector<4x4x4x4xf32>
    %58 = vector.shape_cast %57 : vector<4x4x4x4xf32> to vector<64x4xf32>
    %c1_90 = arith.constant 1 : index
    %c2_91 = arith.constant 2 : index
    %c1_92 = arith.constant 1 : index
    %c0_93 = arith.constant 0 : index
    %59 = vector.load %arg34[%c1_90, %c2_91, %c1_92, %c0_93] : memref<6x6x6x4xf32, #tpu.memory_space<vmem>>, vector<4x4x4x4xf32>
    %60 = vector.shape_cast %59 : vector<4x4x4x4xf32> to vector<64x4xf32>
    %c1_94 = arith.constant 1 : index
    %c2_95 = arith.constant 2 : index
    %c2_96 = arith.constant 2 : index
    %c0_97 = arith.constant 0 : index
    %61 = vector.load %arg34[%c1_94, %c2_95, %c2_96, %c0_97] : memref<6x6x6x4xf32, #tpu.memory_space<vmem>>, vector<4x4x4x4xf32>
    %62 = vector.shape_cast %61 : vector<4x4x4x4xf32> to vector<64x4xf32>
    %c2_98 = arith.constant 2 : index
    %c0_99 = arith.constant 0 : index
    %c0_100 = arith.constant 0 : index
    %c0_101 = arith.constant 0 : index
    %63 = vector.load %arg34[%c2_98, %c0_99, %c0_100, %c0_101] : memref<6x6x6x4xf32, #tpu.memory_space<vmem>>, vector<4x4x4x4xf32>
    %64 = vector.shape_cast %63 : vector<4x4x4x4xf32> to vector<64x4xf32>
    %c2_102 = arith.constant 2 : index
    %c0_103 = arith.constant 0 : index
    %c1_104 = arith.constant 1 : index
    %c0_105 = arith.constant 0 : index
    %65 = vector.load %arg34[%c2_102, %c0_103, %c1_104, %c0_105] : memref<6x6x6x4xf32, #tpu.memory_space<vmem>>, vector<4x4x4x4xf32>
    %66 = vector.shape_cast %65 : vector<4x4x4x4xf32> to vector<64x4xf32>
    %c2_106 = arith.constant 2 : index
    %c0_107 = arith.constant 0 : index
    %c2_108 = arith.constant 2 : index
    %c0_109 = arith.constant 0 : index
    %67 = vector.load %arg34[%c2_106, %c0_107, %c2_108, %c0_109] : memref<6x6x6x4xf32, #tpu.memory_space<vmem>>, vector<4x4x4x4xf32>
    %68 = vector.shape_cast %67 : vector<4x4x4x4xf32> to vector<64x4xf32>
    %c2_110 = arith.constant 2 : index
    %c1_111 = arith.constant 1 : index
    %c0_112 = arith.constant 0 : index
    %c0_113 = arith.constant 0 : index
    %69 = vector.load %arg34[%c2_110, %c1_111, %c0_112, %c0_113] : memref<6x6x6x4xf32, #tpu.memory_space<vmem>>, vector<4x4x4x4xf32>
    %70 = vector.shape_cast %69 : vector<4x4x4x4xf32> to vector<64x4xf32>
    %c2_114 = arith.constant 2 : index
    %c1_115 = arith.constant 1 : index
    %c1_116 = arith.constant 1 : index
    %c0_117 = arith.constant 0 : index
    %71 = vector.load %arg34[%c2_114, %c1_115, %c1_116, %c0_117] : memref<6x6x6x4xf32, #tpu.memory_space<vmem>>, vector<4x4x4x4xf32>
    %72 = vector.shape_cast %71 : vector<4x4x4x4xf32> to vector<64x4xf32>
    %c2_118 = arith.constant 2 : index
    %c1_119 = arith.constant 1 : index
    %c2_120 = arith.constant 2 : index
    %c0_121 = arith.constant 0 : index
    %73 = vector.load %arg34[%c2_118, %c1_119, %c2_120, %c0_121] : memref<6x6x6x4xf32, #tpu.memory_space<vmem>>, vector<4x4x4x4xf32>
    %74 = vector.shape_cast %73 : vector<4x4x4x4xf32> to vector<64x4xf32>
    %c2_122 = arith.constant 2 : index
    %c2_123 = arith.constant 2 : index
    %c0_124 = arith.constant 0 : index
    %c0_125 = arith.constant 0 : index
    %75 = vector.load %arg34[%c2_122, %c2_123, %c0_124, %c0_125] : memref<6x6x6x4xf32, #tpu.memory_space<vmem>>, vector<4x4x4x4xf32>
    %76 = vector.shape_cast %75 : vector<4x4x4x4xf32> to vector<64x4xf32>
    %c2_126 = arith.constant 2 : index
    %c2_127 = arith.constant 2 : index
    %c1_128 = arith.constant 1 : index
    %c0_129 = arith.constant 0 : index
    %77 = vector.load %arg34[%c2_126, %c2_127, %c1_128, %c0_129] : memref<6x6x6x4xf32, #tpu.memory_space<vmem>>, vector<4x4x4x4xf32>
    %78 = vector.shape_cast %77 : vector<4x4x4x4xf32> to vector<64x4xf32>
    %c2_130 = arith.constant 2 : index
    %c2_131 = arith.constant 2 : index
    %c2_132 = arith.constant 2 : index
    %c0_133 = arith.constant 0 : index
    %79 = vector.load %arg34[%c2_130, %c2_131, %c2_132, %c0_133] : memref<6x6x6x4xf32, #tpu.memory_space<vmem>>, vector<4x4x4x4xf32>
    %80 = vector.shape_cast %79 : vector<4x4x4x4xf32> to vector<64x4xf32>
    %81 = tpu.concatenate %28, %30, %32, %34, %36, %38, %40, %42, %44, %46, %48, %50, %52, %54, %56, %58 in 1 : vector<64x4xf32>, vector<64x4xf32>, vector<64x4xf32>, vector<64x4xf32>, vector<64x4xf32>, vector<64x4xf32>, vector<64x4xf32>, vector<64x4xf32>, vector<64x4xf32>, vector<64x4xf32>, vector<64x4xf32>, vector<64x4xf32>, vector<64x4xf32>, vector<64x4xf32>, vector<64x4xf32>, vector<64x4xf32> -> vector<64x64xf32>
    %82 = tpu.concatenate %60, %62, %64, %66, %68, %70, %72, %74, %76, %78, %80 in 1 : vector<64x4xf32>, vector<64x4xf32>, vector<64x4xf32>, vector<64x4xf32>, vector<64x4xf32>, vector<64x4xf32>, vector<64x4xf32>, vector<64x4xf32>, vector<64x4xf32>, vector<64x4xf32>, vector<64x4xf32> -> vector<64x44xf32>
    %83 = tpu.concatenate %81, %82 in 1 : vector<64x64xf32>, vector<64x44xf32> -> vector<64x108xf32>
    %84 = arith.truncf %83 : vector<64x108xf32> to vector<64x108xbf16>
    %c0_134 = arith.constant 0 : index
    %c0_135 = arith.constant 0 : index
    %85 = vector.load %arg8[%c0_134, %c0_135] : memref<108x4xbf16, #tpu.memory_space<vmem>>, vector<108x4xbf16>
    %cst_136 = arith.constant dense<0.000000e+00> : vector<64x4xf32>
    %86 = tpu.matmul %84, %85, %cst_136 {dimension_numbers = #tpu.dot_dimension_numbers<[1], [0], [0], [1], [0, 0, 1, 1], [], []>} : vector<64x108xbf16>, vector<108x4xbf16>, vector<64x4xf32> -> vector<64x4xf32>
    %c0_137 = arith.constant 0 : index
    %c0_138 = arith.constant 0 : index
    %87 = vector.load %arg9[%c0_137, %c0_138] : memref<1x4xf32, #tpu.memory_space<vmem>>, vector<1x4xf32>
    %88 = vector.broadcast %87 : vector<1x4xf32> to vector<64x4xf32>
    %89 = arith.mulf %86, %88 : vector<64x4xf32>
    %c0_139 = arith.constant 0 : index
    %c0_140 = arith.constant 0 : index
    %90 = vector.load %arg10[%c0_139, %c0_140] : memref<1x4xf32, #tpu.memory_space<vmem>>, vector<1x4xf32>
    %91 = vector.broadcast %90 : vector<1x4xf32> to vector<64x4xf32>
    %92 = arith.addf %89, %91 : vector<64x4xf32>
    %cst_141 = arith.constant 0.000000e+00 : f32
    %93 = vector.broadcast %cst_141 : f32 to vector<64x4xf32>
    %94 = arith.maximumf %92, %93 : vector<64x4xf32>
    %95 = arith.truncf %94 : vector<64x4xf32> to vector<64x4xbf16>
    %c0_142 = arith.constant 0 : index
    %c0_143 = arith.constant 0 : index
    %96 = vector.load %arg11[%c0_142, %c0_143] : memref<4x16xbf16, #tpu.memory_space<vmem>>, vector<4x16xbf16>
    %cst_144 = arith.constant dense<0.000000e+00> : vector<64x16xf32>
    %97 = tpu.matmul %95, %96, %cst_144 {dimension_numbers = #tpu.dot_dimension_numbers<[1], [0], [0], [1], [0, 0, 1, 1], [], []>} : vector<64x4xbf16>, vector<4x16xbf16>, vector<64x16xf32> -> vector<64x16xf32>
    %c0_145 = arith.constant 0 : index
    %c0_146 = arith.constant 0 : index
    %98 = vector.load %arg12[%c0_145, %c0_146] : memref<1x8xf32, #tpu.memory_space<vmem>>, vector<1x8xf32>
    %99 = vector.broadcast %98 : vector<1x8xf32> to vector<64x8xf32>
    %100 = arith.mulf %5, %99 : vector<64x8xf32>
    %c0_147 = arith.constant 0 : index
    %c0_148 = arith.constant 0 : index
    %101 = vector.load %arg13[%c0_147, %c0_148] : memref<1x8xf32, #tpu.memory_space<vmem>>, vector<1x8xf32>
    %102 = vector.broadcast %101 : vector<1x8xf32> to vector<64x8xf32>
    %103 = arith.addf %100, %102 : vector<64x8xf32>
    %cst_149 = arith.constant 0.000000e+00 : f32
    %104 = vector.broadcast %cst_149 : f32 to vector<64x8xf32>
    %105 = arith.maximumf %103, %104 : vector<64x8xf32>
    %106 = arith.truncf %105 : vector<64x8xf32> to vector<64x8xbf16>
    %c0_150 = arith.constant 0 : index
    %c0_151 = arith.constant 0 : index
    %107 = vector.load %arg14[%c0_150, %c0_151] : memref<8x16xbf16, #tpu.memory_space<vmem>>, vector<8x16xbf16>
    %cst_152 = arith.constant dense<0.000000e+00> : vector<64x16xf32>
    %108 = tpu.matmul %106, %107, %cst_152 {dimension_numbers = #tpu.dot_dimension_numbers<[1], [0], [0], [1], [0, 0, 1, 1], [], []>} : vector<64x8xbf16>, vector<8x16xbf16>, vector<64x16xf32> -> vector<64x16xf32>
    %109 = arith.addf %97, %108 : vector<64x16xf32>
    %c0_153 = arith.constant 0 : index
    %c0_154 = arith.constant 0 : index
    %110 = vector.load %arg15[%c0_153, %c0_154] : memref<1x16xf32, #tpu.memory_space<vmem>>, vector<1x16xf32>
    %111 = vector.broadcast %110 : vector<1x16xf32> to vector<64x16xf32>
    %112 = arith.mulf %109, %111 : vector<64x16xf32>
    %c0_155 = arith.constant 0 : index
    %c0_156 = arith.constant 0 : index
    %113 = vector.load %arg16[%c0_155, %c0_156] : memref<1x16xf32, #tpu.memory_space<vmem>>, vector<1x16xf32>
    %114 = vector.broadcast %113 : vector<1x16xf32> to vector<64x16xf32>
    %115 = arith.addf %112, %114 : vector<64x16xf32>
    %cst_157 = arith.constant 0.000000e+00 : f32
    %116 = vector.broadcast %cst_157 : f32 to vector<64x16xf32>
    %117 = arith.maximumf %115, %116 : vector<64x16xf32>
    %118 = arith.truncf %117 : vector<64x16xf32> to vector<64x16xbf16>
    %c0_158 = arith.constant 0 : index
    %c0_159 = arith.constant 0 : index
    %119 = vector.load %arg17[%c0_158, %c0_159] : memref<16x4xbf16, #tpu.memory_space<vmem>>, vector<16x4xbf16>
    %cst_160 = arith.constant dense<0.000000e+00> : vector<64x4xf32>
    %120 = tpu.matmul %118, %119, %cst_160 {dimension_numbers = #tpu.dot_dimension_numbers<[1], [0], [0], [1], [0, 0, 1, 1], [], []>} : vector<64x16xbf16>, vector<16x4xbf16>, vector<64x4xf32> -> vector<64x4xf32>
    %c0_161 = arith.constant 0 : index
    %c0_162 = arith.constant 0 : index
    %121 = vector.load %arg18[%c0_161, %c0_162] : memref<1x4xf32, #tpu.memory_space<vmem>>, vector<1x4xf32>
    %122 = vector.broadcast %121 : vector<1x4xf32> to vector<64x4xf32>
    %123 = arith.mulf %120, %122 : vector<64x4xf32>
    %c0_163 = arith.constant 0 : index
    %c0_164 = arith.constant 0 : index
    %124 = vector.load %arg19[%c0_163, %c0_164] : memref<1x4xf32, #tpu.memory_space<vmem>>, vector<1x4xf32>
    %125 = vector.broadcast %124 : vector<1x4xf32> to vector<64x4xf32>
    %126 = arith.addf %123, %125 : vector<64x4xf32>
    %cst_165 = arith.constant 0.000000e+00 : f32
    %127 = vector.broadcast %cst_165 : f32 to vector<64x4xf32>
    %128 = arith.maximumf %126, %127 : vector<64x4xf32>
    %129 = vector.shape_cast %128 : vector<64x4xf32> to vector<4x4x4x4xf32>
    %c1_166 = arith.constant 1 : index
    %c1_167 = arith.constant 1 : index
    %c1_168 = arith.constant 1 : index
    %c0_169 = arith.constant 0 : index
    %130 = vector.load %arg34[%c1_166, %c1_167, %c1_168, %c0_169] : memref<6x6x6x4xf32, #tpu.memory_space<vmem>>, vector<4x4x4x4xf32>
    tpu.vector_store %arg34[%c1_166, %c1_167, %c1_168, %c0_169], %129 {strides = array<i32>} : memref<6x6x6x4xf32, #tpu.memory_space<vmem>>, vector<4x4x4x4xf32>,
    %c0_170 = arith.constant 0 : index
    %c0_171 = arith.constant 0 : index
    %c0_172 = arith.constant 0 : index
    %c0_173 = arith.constant 0 : index
    %131 = vector.load %arg34[%c0_170, %c0_171, %c0_172, %c0_173] : memref<6x6x6x4xf32, #tpu.memory_space<vmem>>, vector<4x4x4x4xf32>
    %132 = vector.shape_cast %131 : vector<4x4x4x4xf32> to vector<64x4xf32>
    %c0_174 = arith.constant 0 : index
    %c0_175 = arith.constant 0 : index
    %c1_176 = arith.constant 1 : index
    %c0_177 = arith.constant 0 : index
    %133 = vector.load %arg34[%c0_174, %c0_175, %c1_176, %c0_177] : memref<6x6x6x4xf32, #tpu.memory_space<vmem>>, vector<4x4x4x4xf32>
    %134 = vector.shape_cast %133 : vector<4x4x4x4xf32> to vector<64x4xf32>
    %c0_178 = arith.constant 0 : index
    %c0_179 = arith.constant 0 : index
    %c2_180 = arith.constant 2 : index
    %c0_181 = arith.constant 0 : index
    %135 = vector.load %arg34[%c0_178, %c0_179, %c2_180, %c0_181] : memref<6x6x6x4xf32, #tpu.memory_space<vmem>>, vector<4x4x4x4xf32>
    %136 = vector.shape_cast %135 : vector<4x4x4x4xf32> to vector<64x4xf32>
    %c0_182 = arith.constant 0 : index
    %c1_183 = arith.constant 1 : index
    %c0_184 = arith.constant 0 : index
    %c0_185 = arith.constant 0 : index
    %137 = vector.load %arg34[%c0_182, %c1_183, %c0_184, %c0_185] : memref<6x6x6x4xf32, #tpu.memory_space<vmem>>, vector<4x4x4x4xf32>
    %138 = vector.shape_cast %137 : vector<4x4x4x4xf32> to vector<64x4xf32>
    %c0_186 = arith.constant 0 : index
    %c1_187 = arith.constant 1 : index
    %c1_188 = arith.constant 1 : index
    %c0_189 = arith.constant 0 : index
    %139 = vector.load %arg34[%c0_186, %c1_187, %c1_188, %c0_189] : memref<6x6x6x4xf32, #tpu.memory_space<vmem>>, vector<4x4x4x4xf32>
    %140 = vector.shape_cast %139 : vector<4x4x4x4xf32> to vector<64x4xf32>
    %c0_190 = arith.constant 0 : index
    %c1_191 = arith.constant 1 : index
    %c2_192 = arith.constant 2 : index
    %c0_193 = arith.constant 0 : index
    %141 = vector.load %arg34[%c0_190, %c1_191, %c2_192, %c0_193] : memref<6x6x6x4xf32, #tpu.memory_space<vmem>>, vector<4x4x4x4xf32>
    %142 = vector.shape_cast %141 : vector<4x4x4x4xf32> to vector<64x4xf32>
    %c0_194 = arith.constant 0 : index
    %c2_195 = arith.constant 2 : index
    %c0_196 = arith.constant 0 : index
    %c0_197 = arith.constant 0 : index
    %143 = vector.load %arg34[%c0_194, %c2_195, %c0_196, %c0_197] : memref<6x6x6x4xf32, #tpu.memory_space<vmem>>, vector<4x4x4x4xf32>
    %144 = vector.shape_cast %143 : vector<4x4x4x4xf32> to vector<64x4xf32>
    %c0_198 = arith.constant 0 : index
    %c2_199 = arith.constant 2 : index
    %c1_200 = arith.constant 1 : index
    %c0_201 = arith.constant 0 : index
    %145 = vector.load %arg34[%c0_198, %c2_199, %c1_200, %c0_201] : memref<6x6x6x4xf32, #tpu.memory_space<vmem>>, vector<4x4x4x4xf32>
    %146 = vector.shape_cast %145 : vector<4x4x4x4xf32> to vector<64x4xf32>
    %c0_202 = arith.constant 0 : index
    %c2_203 = arith.constant 2 : index
    %c2_204 = arith.constant 2 : index
    %c0_205 = arith.constant 0 : index
    %147 = vector.load %arg34[%c0_202, %c2_203, %c2_204, %c0_205] : memref<6x6x6x4xf32, #tpu.memory_space<vmem>>, vector<4x4x4x4xf32>
    %148 = vector.shape_cast %147 : vector<4x4x4x4xf32> to vector<64x4xf32>
    %c1_206 = arith.constant 1 : index
    %c0_207 = arith.constant 0 : index
    %c0_208 = arith.constant 0 : index
    %c0_209 = arith.constant 0 : index
    %149 = vector.load %arg34[%c1_206, %c0_207, %c0_208, %c0_209] : memref<6x6x6x4xf32, #tpu.memory_space<vmem>>, vector<4x4x4x4xf32>
    %150 = vector.shape_cast %149 : vector<4x4x4x4xf32> to vector<64x4xf32>
    %c1_210 = arith.constant 1 : index
    %c0_211 = arith.constant 0 : index
    %c1_212 = arith.constant 1 : index
    %c0_213 = arith.constant 0 : index
    %151 = vector.load %arg34[%c1_210, %c0_211, %c1_212, %c0_213] : memref<6x6x6x4xf32, #tpu.memory_space<vmem>>, vector<4x4x4x4xf32>
    %152 = vector.shape_cast %151 : vector<4x4x4x4xf32> to vector<64x4xf32>
    %c1_214 = arith.constant 1 : index
    %c0_215 = arith.constant 0 : index
    %c2_216 = arith.constant 2 : index
    %c0_217 = arith.constant 0 : index
    %153 = vector.load %arg34[%c1_214, %c0_215, %c2_216, %c0_217] : memref<6x6x6x4xf32, #tpu.memory_space<vmem>>, vector<4x4x4x4xf32>
    %154 = vector.shape_cast %153 : vector<4x4x4x4xf32> to vector<64x4xf32>
    %c1_218 = arith.constant 1 : index
    %c1_219 = arith.constant 1 : index
    %c0_220 = arith.constant 0 : index
    %c0_221 = arith.constant 0 : index
    %155 = vector.load %arg34[%c1_218, %c1_219, %c0_220, %c0_221] : memref<6x6x6x4xf32, #tpu.memory_space<vmem>>, vector<4x4x4x4xf32>
    %156 = vector.shape_cast %155 : vector<4x4x4x4xf32> to vector<64x4xf32>
    %c1_222 = arith.constant 1 : index
    %c1_223 = arith.constant 1 : index
    %c1_224 = arith.constant 1 : index
    %c0_225 = arith.constant 0 : index
    %157 = vector.load %arg34[%c1_222, %c1_223, %c1_224, %c0_225] : memref<6x6x6x4xf32, #tpu.memory_space<vmem>>, vector<4x4x4x4xf32>
    %158 = vector.shape_cast %157 : vector<4x4x4x4xf32> to vector<64x4xf32>
    %c1_226 = arith.constant 1 : index
    %c1_227 = arith.constant 1 : index
    %c2_228 = arith.constant 2 : index
    %c0_229 = arith.constant 0 : index
    %159 = vector.load %arg34[%c1_226, %c1_227, %c2_228, %c0_229] : memref<6x6x6x4xf32, #tpu.memory_space<vmem>>, vector<4x4x4x4xf32>
    %160 = vector.shape_cast %159 : vector<4x4x4x4xf32> to vector<64x4xf32>
    %c1_230 = arith.constant 1 : index
    %c2_231 = arith.constant 2 : index
    %c0_232 = arith.constant 0 : index
    %c0_233 = arith.constant 0 : index
    %161 = vector.load %arg34[%c1_230, %c2_231, %c0_232, %c0_233] : memref<6x6x6x4xf32, #tpu.memory_space<vmem>>, vector<4x4x4x4xf32>
    %162 = vector.shape_cast %161 : vector<4x4x4x4xf32> to vector<64x4xf32>
    %c1_234 = arith.constant 1 : index
    %c2_235 = arith.constant 2 : index
    %c1_236 = arith.constant 1 : index
    %c0_237 = arith.constant 0 : index
    %163 = vector.load %arg34[%c1_234, %c2_235, %c1_236, %c0_237] : memref<6x6x6x4xf32, #tpu.memory_space<vmem>>, vector<4x4x4x4xf32>
    %164 = vector.shape_cast %163 : vector<4x4x4x4xf32> to vector<64x4xf32>
    %c1_238 = arith.constant 1 : index
    %c2_239 = arith.constant 2 : index
    %c2_240 = arith.constant 2 : index
    %c0_241 = arith.constant 0 : index
    %165 = vector.load %arg34[%c1_238, %c2_239, %c2_240, %c0_241] : memref<6x6x6x4xf32, #tpu.memory_space<vmem>>, vector<4x4x4x4xf32>
    %166 = vector.shape_cast %165 : vector<4x4x4x4xf32> to vector<64x4xf32>
    %c2_242 = arith.constant 2 : index
    %c0_243 = arith.constant 0 : index
    %c0_244 = arith.constant 0 : index
    %c0_245 = arith.constant 0 : index
    %167 = vector.load %arg34[%c2_242, %c0_243, %c0_244, %c0_245] : memref<6x6x6x4xf32, #tpu.memory_space<vmem>>, vector<4x4x4x4xf32>
    %168 = vector.shape_cast %167 : vector<4x4x4x4xf32> to vector<64x4xf32>
    %c2_246 = arith.constant 2 : index
    %c0_247 = arith.constant 0 : index
    %c1_248 = arith.constant 1 : index
    %c0_249 = arith.constant 0 : index
    %169 = vector.load %arg34[%c2_246, %c0_247, %c1_248, %c0_249] : memref<6x6x6x4xf32, #tpu.memory_space<vmem>>, vector<4x4x4x4xf32>
    %170 = vector.shape_cast %169 : vector<4x4x4x4xf32> to vector<64x4xf32>
    %c2_250 = arith.constant 2 : index
    %c0_251 = arith.constant 0 : index
    %c2_252 = arith.constant 2 : index
    %c0_253 = arith.constant 0 : index
    %171 = vector.load %arg34[%c2_250, %c0_251, %c2_252, %c0_253] : memref<6x6x6x4xf32, #tpu.memory_space<vmem>>, vector<4x4x4x4xf32>
    %172 = vector.shape_cast %171 : vector<4x4x4x4xf32> to vector<64x4xf32>
    %c2_254 = arith.constant 2 : index
    %c1_255 = arith.constant 1 : index
    %c0_256 = arith.constant 0 : index
    %c0_257 = arith.constant 0 : index
    %173 = vector.load %arg34[%c2_254, %c1_255, %c0_256, %c0_257] : memref<6x6x6x4xf32, #tpu.memory_space<vmem>>, vector<4x4x4x4xf32>
    %174 = vector.shape_cast %173 : vector<4x4x4x4xf32> to vector<64x4xf32>
    %c2_258 = arith.constant 2 : index
    %c1_259 = arith.constant 1 : index
    %c1_260 = arith.constant 1 : index
    %c0_261 = arith.constant 0 : index
    %175 = vector.load %arg34[%c2_258, %c1_259, %c1_260, %c0_261] : memref<6x6x6x4xf32, #tpu.memory_space<vmem>>, vector<4x4x4x4xf32>
    %176 = vector.shape_cast %175 : vector<4x4x4x4xf32> to vector<64x4xf32>
    %c2_262 = arith.constant 2 : index
    %c1_263 = arith.constant 1 : index
    %c2_264 = arith.constant 2 : index
    %c0_265 = arith.constant 0 : index
    %177 = vector.load %arg34[%c2_262, %c1_263, %c2_264, %c0_265] : memref<6x6x6x4xf32, #tpu.memory_space<vmem>>, vector<4x4x4x4xf32>
    %178 = vector.shape_cast %177 : vector<4x4x4x4xf32> to vector<64x4xf32>
    %c2_266 = arith.constant 2 : index
    %c2_267 = arith.constant 2 : index
    %c0_268 = arith.constant 0 : index
    %c0_269 = arith.constant 0 : index
    %179 = vector.load %arg34[%c2_266, %c2_267, %c0_268, %c0_269] : memref<6x6x6x4xf32, #tpu.memory_space<vmem>>, vector<4x4x4x4xf32>
    %180 = vector.shape_cast %179 : vector<4x4x4x4xf32> to vector<64x4xf32>
    %c2_270 = arith.constant 2 : index
    %c2_271 = arith.constant 2 : index
    %c1_272 = arith.constant 1 : index
    %c0_273 = arith.constant 0 : index
    %181 = vector.load %arg34[%c2_270, %c2_271, %c1_272, %c0_273] : memref<6x6x6x4xf32, #tpu.memory_space<vmem>>, vector<4x4x4x4xf32>
    %182 = vector.shape_cast %181 : vector<4x4x4x4xf32> to vector<64x4xf32>
    %c2_274 = arith.constant 2 : index
    %c2_275 = arith.constant 2 : index
    %c2_276 = arith.constant 2 : index
    %c0_277 = arith.constant 0 : index
    %183 = vector.load %arg34[%c2_274, %c2_275, %c2_276, %c0_277] : memref<6x6x6x4xf32, #tpu.memory_space<vmem>>, vector<4x4x4x4xf32>
    %184 = vector.shape_cast %183 : vector<4x4x4x4xf32> to vector<64x4xf32>
    %185 = tpu.concatenate %132, %134, %136, %138, %140, %142, %144, %146, %148, %150, %152, %154, %156, %158, %160, %162 in 1 : vector<64x4xf32>, vector<64x4xf32>, vector<64x4xf32>, vector<64x4xf32>, vector<64x4xf32>, vector<64x4xf32>, vector<64x4xf32>, vector<64x4xf32>, vector<64x4xf32>, vector<64x4xf32>, vector<64x4xf32>, vector<64x4xf32>, vector<64x4xf32>, vector<64x4xf32>, vector<64x4xf32>, vector<64x4xf32> -> vector<64x64xf32>
    %186 = tpu.concatenate %164, %166, %168, %170, %172, %174, %176, %178, %180, %182, %184 in 1 : vector<64x4xf32>, vector<64x4xf32>, vector<64x4xf32>, vector<64x4xf32>, vector<64x4xf32>, vector<64x4xf32>, vector<64x4xf32>, vector<64x4xf32>, vector<64x4xf32>, vector<64x4xf32>, vector<64x4xf32> -> vector<64x44xf32>
    %187 = tpu.concatenate %185, %186 in 1 : vector<64x64xf32>, vector<64x44xf32> -> vector<64x108xf32>
    %188 = arith.truncf %187 : vector<64x108xf32> to vector<64x108xbf16>
    %c0_278 = arith.constant 0 : index
    %c0_279 = arith.constant 0 : index
    %189 = vector.load %arg20[%c0_278, %c0_279] : memref<108x4xbf16, #tpu.memory_space<vmem>>, vector<108x4xbf16>
    %cst_280 = arith.constant dense<0.000000e+00> : vector<64x4xf32>
    %190 = tpu.matmul %188, %189, %cst_280 {dimension_numbers = #tpu.dot_dimension_numbers<[1], [0], [0], [1], [0, 0, 1, 1], [], []>} : vector<64x108xbf16>, vector<108x4xbf16>, vector<64x4xf32> -> vector<64x4xf32>
    %c0_281 = arith.constant 0 : index
    %c0_282 = arith.constant 0 : index
    %191 = vector.load %arg21[%c0_281, %c0_282] : memref<1x4xf32, #tpu.memory_space<vmem>>, vector<1x4xf32>
    %192 = vector.broadcast %191 : vector<1x4xf32> to vector<64x4xf32>
    %193 = arith.mulf %190, %192 : vector<64x4xf32>
    %c0_283 = arith.constant 0 : index
    %c0_284 = arith.constant 0 : index
    %194 = vector.load %arg22[%c0_283, %c0_284] : memref<1x4xf32, #tpu.memory_space<vmem>>, vector<1x4xf32>
    %195 = vector.broadcast %194 : vector<1x4xf32> to vector<64x4xf32>
    %196 = arith.addf %193, %195 : vector<64x4xf32>
    %cst_285 = arith.constant 0.000000e+00 : f32
    %197 = vector.broadcast %cst_285 : f32 to vector<64x4xf32>
    %198 = arith.maximumf %196, %197 : vector<64x4xf32>
    %199 = arith.truncf %198 : vector<64x4xf32> to vector<64x4xbf16>
    %c0_286 = arith.constant 0 : index
    %c0_287 = arith.constant 0 : index
    %200 = vector.load %arg23[%c0_286, %c0_287] : memref<4x16xbf16, #tpu.memory_space<vmem>>, vector<4x16xbf16>
    %cst_288 = arith.constant dense<0.000000e+00> : vector<64x16xf32>
    %201 = tpu.matmul %199, %200, %cst_288 {dimension_numbers = #tpu.dot_dimension_numbers<[1], [0], [0], [1], [0, 0, 1, 1], [], []>} : vector<64x4xbf16>, vector<4x16xbf16>, vector<64x16xf32> -> vector<64x16xf32>
    %202 = arith.addf %201, %109 : vector<64x16xf32>
    %203 = vector.shape_cast %202 : vector<64x16xf32> to vector<32x2x16xf32>
    %204 = vector.extract_strided_slice %203 {offsets = [0, 0, 0], sizes = [32, 1, 16], strides = [1, 1, 1]} : vector<32x2x16xf32> to vector<32x1x16xf32>
    %205 = vector.shape_cast %204 : vector<32x1x16xf32> to vector<32x16xf32>
    %206 = vector.extract_strided_slice %203 {offsets = [0, 1, 0], sizes = [32, 1, 16], strides = [1, 1, 1]} : vector<32x2x16xf32> to vector<32x1x16xf32>
    %207 = vector.shape_cast %206 : vector<32x1x16xf32> to vector<32x16xf32>
    %208 = arith.maximumf %205, %207 : vector<32x16xf32>
    %209 = vector.shape_cast %208 : vector<32x16xf32> to vector<8x2x2x16xf32>
    %210 = vector.extract_strided_slice %209 {offsets = [0, 0, 0, 0], sizes = [8, 1, 2, 16], strides = [1, 1, 1, 1]} : vector<8x2x2x16xf32> to vector<8x1x2x16xf32>
    %211 = vector.shape_cast %210 : vector<8x1x2x16xf32> to vector<8x2x16xf32>
    %212 = vector.extract_strided_slice %209 {offsets = [0, 1, 0, 0], sizes = [8, 1, 2, 16], strides = [1, 1, 1, 1]} : vector<8x2x2x16xf32> to vector<8x1x2x16xf32>
    %213 = vector.shape_cast %212 : vector<8x1x2x16xf32> to vector<8x2x16xf32>
    %214 = arith.maximumf %211, %213 : vector<8x2x16xf32>
    %215 = vector.shape_cast %214 : vector<8x2x16xf32> to vector<2x2x4x16xf32>
    %216 = vector.extract_strided_slice %215 {offsets = [0, 0, 0, 0], sizes = [2, 1, 4, 16], strides = [1, 1, 1, 1]} : vector<2x2x4x16xf32> to vector<2x1x4x16xf32>
    %217 = vector.shape_cast %216 : vector<2x1x4x16xf32> to vector<2x4x16xf32>
    %218 = vector.extract_strided_slice %215 {offsets = [0, 1, 0, 0], sizes = [2, 1, 4, 16], strides = [1, 1, 1, 1]} : vector<2x2x4x16xf32> to vector<2x1x4x16xf32>
    %219 = vector.shape_cast %218 : vector<2x1x4x16xf32> to vector<2x4x16xf32>
    %220 = arith.maximumf %217, %219 : vector<2x4x16xf32>
    %221 = vector.shape_cast %220 : vector<2x4x16xf32> to vector<8x16xf32>
    %c0_289 = arith.constant 0 : index
    %c0_290 = arith.constant 0 : index
    %c0_291 = arith.constant 0 : index
    %222 = vector.load %arg2[%c0_289, %c0_290, %c0_291] : memref<1x8x16xf32, #tpu.memory_space<vmem>>, vector<1x8x16xf32>
    %223 = vector.shape_cast %222 : vector<1x8x16xf32> to vector<8x16xf32>
    %c0_292 = arith.constant 0 : index
    %c0_293 = arith.constant 0 : index
    %224 = vector.load %arg24[%c0_292, %c0_293] : memref<1x16xf32, #tpu.memory_space<vmem>>, vector<1x16xf32>
    %225 = vector.broadcast %224 : vector<1x16xf32> to vector<8x16xf32>
    %226 = arith.mulf %223, %225 : vector<8x16xf32>
    %c0_294 = arith.constant 0 : index
    %c0_295 = arith.constant 0 : index
    %227 = vector.load %arg25[%c0_294, %c0_295] : memref<1x16xf32, #tpu.memory_space<vmem>>, vector<1x16xf32>
    %228 = vector.broadcast %227 : vector<1x16xf32> to vector<8x16xf32>
    %229 = arith.addf %226, %228 : vector<8x16xf32>
    %cst_296 = arith.constant 0.000000e+00 : f32
    %230 = vector.broadcast %cst_296 : f32 to vector<8x16xf32>
    %231 = arith.maximumf %229, %230 : vector<8x16xf32>
    %232 = arith.truncf %231 : vector<8x16xf32> to vector<8x16xbf16>
    %c0_297 = arith.constant 0 : index
    %c0_298 = arith.constant 0 : index
    %233 = vector.load %arg26[%c0_297, %c0_298] : memref<16x4xbf16, #tpu.memory_space<vmem>>, vector<16x4xbf16>
    %cst_299 = arith.constant dense<0.000000e+00> : vector<8x4xf32>
    %234 = tpu.matmul %232, %233, %cst_299 {dimension_numbers = #tpu.dot_dimension_numbers<[1], [0], [0], [1], [0, 0, 1, 1], [], []>} : vector<8x16xbf16>, vector<16x4xbf16>, vector<8x4xf32> -> vector<8x4xf32>
    %c0_300 = arith.constant 0 : index
    %c0_301 = arith.constant 0 : index
    %235 = vector.load %arg27[%c0_300, %c0_301] : memref<1x4xf32, #tpu.memory_space<vmem>>, vector<1x4xf32>
    %236 = vector.broadcast %235 : vector<1x4xf32> to vector<8x4xf32>
    %237 = arith.mulf %234, %236 : vector<8x4xf32>
    %c0_302 = arith.constant 0 : index
    %c0_303 = arith.constant 0 : index
    %238 = vector.load %arg28[%c0_302, %c0_303] : memref<1x4xf32, #tpu.memory_space<vmem>>, vector<1x4xf32>
    %239 = vector.broadcast %238 : vector<1x4xf32> to vector<8x4xf32>
    %240 = arith.addf %237, %239 : vector<8x4xf32>
    %cst_304 = arith.constant 0.000000e+00 : f32
    %241 = vector.broadcast %cst_304 : f32 to vector<8x4xf32>
    %242 = arith.maximumf %240, %241 : vector<8x4xf32>
    %243 = vector.shape_cast %242 : vector<8x4xf32> to vector<2x2x2x4xf32>
    %c1_305 = arith.constant 1 : index
    %c1_306 = arith.constant 1 : index
    %c1_307 = arith.constant 1 : index
    %c0_308 = arith.constant 0 : index
    %244 = vector.load %arg35[%c1_305, %c1_306, %c1_307, %c0_308] : memref<4x4x4x4xf32, #tpu.memory_space<vmem>>, vector<2x2x2x4xf32>
    tpu.vector_store %arg35[%c1_305, %c1_306, %c1_307, %c0_308], %243 {strides = array<i32>} : memref<4x4x4x4xf32, #tpu.memory_space<vmem>>, vector<2x2x2x4xf32>,
    %c0_309 = arith.constant 0 : index
    %c0_310 = arith.constant 0 : index
    %c0_311 = arith.constant 0 : index
    %c0_312 = arith.constant 0 : index
    %245 = vector.load %arg35[%c0_309, %c0_310, %c0_311, %c0_312] : memref<4x4x4x4xf32, #tpu.memory_space<vmem>>, vector<2x2x2x4xf32>
    %246 = vector.shape_cast %245 : vector<2x2x2x4xf32> to vector<8x4xf32>
    %c0_313 = arith.constant 0 : index
    %c0_314 = arith.constant 0 : index
    %c1_315 = arith.constant 1 : index
    %c0_316 = arith.constant 0 : index
    %247 = vector.load %arg35[%c0_313, %c0_314, %c1_315, %c0_316] : memref<4x4x4x4xf32, #tpu.memory_space<vmem>>, vector<2x2x2x4xf32>
    %248 = vector.shape_cast %247 : vector<2x2x2x4xf32> to vector<8x4xf32>
    %c0_317 = arith.constant 0 : index
    %c0_318 = arith.constant 0 : index
    %c2_319 = arith.constant 2 : index
    %c0_320 = arith.constant 0 : index
    %249 = vector.load %arg35[%c0_317, %c0_318, %c2_319, %c0_320] : memref<4x4x4x4xf32, #tpu.memory_space<vmem>>, vector<2x2x2x4xf32>
    %250 = vector.shape_cast %249 : vector<2x2x2x4xf32> to vector<8x4xf32>
    %c0_321 = arith.constant 0 : index
    %c1_322 = arith.constant 1 : index
    %c0_323 = arith.constant 0 : index
    %c0_324 = arith.constant 0 : index
    %251 = vector.load %arg35[%c0_321, %c1_322, %c0_323, %c0_324] : memref<4x4x4x4xf32, #tpu.memory_space<vmem>>, vector<2x2x2x4xf32>
    %252 = vector.shape_cast %251 : vector<2x2x2x4xf32> to vector<8x4xf32>
    %c0_325 = arith.constant 0 : index
    %c1_326 = arith.constant 1 : index
    %c1_327 = arith.constant 1 : index
    %c0_328 = arith.constant 0 : index
    %253 = vector.load %arg35[%c0_325, %c1_326, %c1_327, %c0_328] : memref<4x4x4x4xf32, #tpu.memory_space<vmem>>, vector<2x2x2x4xf32>
    %254 = vector.shape_cast %253 : vector<2x2x2x4xf32> to vector<8x4xf32>
    %c0_329 = arith.constant 0 : index
    %c1_330 = arith.constant 1 : index
    %c2_331 = arith.constant 2 : index
    %c0_332 = arith.constant 0 : index
    %255 = vector.load %arg35[%c0_329, %c1_330, %c2_331, %c0_332] : memref<4x4x4x4xf32, #tpu.memory_space<vmem>>, vector<2x2x2x4xf32>
    %256 = vector.shape_cast %255 : vector<2x2x2x4xf32> to vector<8x4xf32>
    %c0_333 = arith.constant 0 : index
    %c2_334 = arith.constant 2 : index
    %c0_335 = arith.constant 0 : index
    %c0_336 = arith.constant 0 : index
    %257 = vector.load %arg35[%c0_333, %c2_334, %c0_335, %c0_336] : memref<4x4x4x4xf32, #tpu.memory_space<vmem>>, vector<2x2x2x4xf32>
    %258 = vector.shape_cast %257 : vector<2x2x2x4xf32> to vector<8x4xf32>
    %c0_337 = arith.constant 0 : index
    %c2_338 = arith.constant 2 : index
    %c1_339 = arith.constant 1 : index
    %c0_340 = arith.constant 0 : index
    %259 = vector.load %arg35[%c0_337, %c2_338, %c1_339, %c0_340] : memref<4x4x4x4xf32, #tpu.memory_space<vmem>>, vector<2x2x2x4xf32>
    %260 = vector.shape_cast %259 : vector<2x2x2x4xf32> to vector<8x4xf32>
    %c0_341 = arith.constant 0 : index
    %c2_342 = arith.constant 2 : index
    %c2_343 = arith.constant 2 : index
    %c0_344 = arith.constant 0 : index
    %261 = vector.load %arg35[%c0_341, %c2_342, %c2_343, %c0_344] : memref<4x4x4x4xf32, #tpu.memory_space<vmem>>, vector<2x2x2x4xf32>
    %262 = vector.shape_cast %261 : vector<2x2x2x4xf32> to vector<8x4xf32>
    %c1_345 = arith.constant 1 : index
    %c0_346 = arith.constant 0 : index
    %c0_347 = arith.constant 0 : index
    %c0_348 = arith.constant 0 : index
    %263 = vector.load %arg35[%c1_345, %c0_346, %c0_347, %c0_348] : memref<4x4x4x4xf32, #tpu.memory_space<vmem>>, vector<2x2x2x4xf32>
    %264 = vector.shape_cast %263 : vector<2x2x2x4xf32> to vector<8x4xf32>
    %c1_349 = arith.constant 1 : index
    %c0_350 = arith.constant 0 : index
    %c1_351 = arith.constant 1 : index
    %c0_352 = arith.constant 0 : index
    %265 = vector.load %arg35[%c1_349, %c0_350, %c1_351, %c0_352] : memref<4x4x4x4xf32, #tpu.memory_space<vmem>>, vector<2x2x2x4xf32>
    %266 = vector.shape_cast %265 : vector<2x2x2x4xf32> to vector<8x4xf32>
    %c1_353 = arith.constant 1 : index
    %c0_354 = arith.constant 0 : index
    %c2_355 = arith.constant 2 : index
    %c0_356 = arith.constant 0 : index
    %267 = vector.load %arg35[%c1_353, %c0_354, %c2_355, %c0_356] : memref<4x4x4x4xf32, #tpu.memory_space<vmem>>, vector<2x2x2x4xf32>
    %268 = vector.shape_cast %267 : vector<2x2x2x4xf32> to vector<8x4xf32>
    %c1_357 = arith.constant 1 : index
    %c1_358 = arith.constant 1 : index
    %c0_359 = arith.constant 0 : index
    %c0_360 = arith.constant 0 : index
    %269 = vector.load %arg35[%c1_357, %c1_358, %c0_359, %c0_360] : memref<4x4x4x4xf32, #tpu.memory_space<vmem>>, vector<2x2x2x4xf32>
    %270 = vector.shape_cast %269 : vector<2x2x2x4xf32> to vector<8x4xf32>
    %c1_361 = arith.constant 1 : index
    %c1_362 = arith.constant 1 : index
    %c1_363 = arith.constant 1 : index
    %c0_364 = arith.constant 0 : index
    %271 = vector.load %arg35[%c1_361, %c1_362, %c1_363, %c0_364] : memref<4x4x4x4xf32, #tpu.memory_space<vmem>>, vector<2x2x2x4xf32>
    %272 = vector.shape_cast %271 : vector<2x2x2x4xf32> to vector<8x4xf32>
    %c1_365 = arith.constant 1 : index
    %c1_366 = arith.constant 1 : index
    %c2_367 = arith.constant 2 : index
    %c0_368 = arith.constant 0 : index
    %273 = vector.load %arg35[%c1_365, %c1_366, %c2_367, %c0_368] : memref<4x4x4x4xf32, #tpu.memory_space<vmem>>, vector<2x2x2x4xf32>
    %274 = vector.shape_cast %273 : vector<2x2x2x4xf32> to vector<8x4xf32>
    %c1_369 = arith.constant 1 : index
    %c2_370 = arith.constant 2 : index
    %c0_371 = arith.constant 0 : index
    %c0_372 = arith.constant 0 : index
    %275 = vector.load %arg35[%c1_369, %c2_370, %c0_371, %c0_372] : memref<4x4x4x4xf32, #tpu.memory_space<vmem>>, vector<2x2x2x4xf32>
    %276 = vector.shape_cast %275 : vector<2x2x2x4xf32> to vector<8x4xf32>
    %c1_373 = arith.constant 1 : index
    %c2_374 = arith.constant 2 : index
    %c1_375 = arith.constant 1 : index
    %c0_376 = arith.constant 0 : index
    %277 = vector.load %arg35[%c1_373, %c2_374, %c1_375, %c0_376] : memref<4x4x4x4xf32, #tpu.memory_space<vmem>>, vector<2x2x2x4xf32>
    %278 = vector.shape_cast %277 : vector<2x2x2x4xf32> to vector<8x4xf32>
    %c1_377 = arith.constant 1 : index
    %c2_378 = arith.constant 2 : index
    %c2_379 = arith.constant 2 : index
    %c0_380 = arith.constant 0 : index
    %279 = vector.load %arg35[%c1_377, %c2_378, %c2_379, %c0_380] : memref<4x4x4x4xf32, #tpu.memory_space<vmem>>, vector<2x2x2x4xf32>
    %280 = vector.shape_cast %279 : vector<2x2x2x4xf32> to vector<8x4xf32>
    %c2_381 = arith.constant 2 : index
    %c0_382 = arith.constant 0 : index
    %c0_383 = arith.constant 0 : index
    %c0_384 = arith.constant 0 : index
    %281 = vector.load %arg35[%c2_381, %c0_382, %c0_383, %c0_384] : memref<4x4x4x4xf32, #tpu.memory_space<vmem>>, vector<2x2x2x4xf32>
    %282 = vector.shape_cast %281 : vector<2x2x2x4xf32> to vector<8x4xf32>
    %c2_385 = arith.constant 2 : index
    %c0_386 = arith.constant 0 : index
    %c1_387 = arith.constant 1 : index
    %c0_388 = arith.constant 0 : index
    %283 = vector.load %arg35[%c2_385, %c0_386, %c1_387, %c0_388] : memref<4x4x4x4xf32, #tpu.memory_space<vmem>>, vector<2x2x2x4xf32>
    %284 = vector.shape_cast %283 : vector<2x2x2x4xf32> to vector<8x4xf32>
    %c2_389 = arith.constant 2 : index
    %c0_390 = arith.constant 0 : index
    %c2_391 = arith.constant 2 : index
    %c0_392 = arith.constant 0 : index
    %285 = vector.load %arg35[%c2_389, %c0_390, %c2_391, %c0_392] : memref<4x4x4x4xf32, #tpu.memory_space<vmem>>, vector<2x2x2x4xf32>
    %286 = vector.shape_cast %285 : vector<2x2x2x4xf32> to vector<8x4xf32>
    %c2_393 = arith.constant 2 : index
    %c1_394 = arith.constant 1 : index
    %c0_395 = arith.constant 0 : index
    %c0_396 = arith.constant 0 : index
    %287 = vector.load %arg35[%c2_393, %c1_394, %c0_395, %c0_396] : memref<4x4x4x4xf32, #tpu.memory_space<vmem>>, vector<2x2x2x4xf32>
    %288 = vector.shape_cast %287 : vector<2x2x2x4xf32> to vector<8x4xf32>
    %c2_397 = arith.constant 2 : index
    %c1_398 = arith.constant 1 : index
    %c1_399 = arith.constant 1 : index
    %c0_400 = arith.constant 0 : index
    %289 = vector.load %arg35[%c2_397, %c1_398, %c1_399, %c0_400] : memref<4x4x4x4xf32, #tpu.memory_space<vmem>>, vector<2x2x2x4xf32>
    %290 = vector.shape_cast %289 : vector<2x2x2x4xf32> to vector<8x4xf32>
    %c2_401 = arith.constant 2 : index
    %c1_402 = arith.constant 1 : index
    %c2_403 = arith.constant 2 : index
    %c0_404 = arith.constant 0 : index
    %291 = vector.load %arg35[%c2_401, %c1_402, %c2_403, %c0_404] : memref<4x4x4x4xf32, #tpu.memory_space<vmem>>, vector<2x2x2x4xf32>
    %292 = vector.shape_cast %291 : vector<2x2x2x4xf32> to vector<8x4xf32>
    %c2_405 = arith.constant 2 : index
    %c2_406 = arith.constant 2 : index
    %c0_407 = arith.constant 0 : index
    %c0_408 = arith.constant 0 : index
    %293 = vector.load %arg35[%c2_405, %c2_406, %c0_407, %c0_408] : memref<4x4x4x4xf32, #tpu.memory_space<vmem>>, vector<2x2x2x4xf32>
    %294 = vector.shape_cast %293 : vector<2x2x2x4xf32> to vector<8x4xf32>
    %c2_409 = arith.constant 2 : index
    %c2_410 = arith.constant 2 : index
    %c1_411 = arith.constant 1 : index
    %c0_412 = arith.constant 0 : index
    %295 = vector.load %arg35[%c2_409, %c2_410, %c1_411, %c0_412] : memref<4x4x4x4xf32, #tpu.memory_space<vmem>>, vector<2x2x2x4xf32>
    %296 = vector.shape_cast %295 : vector<2x2x2x4xf32> to vector<8x4xf32>
    %c2_413 = arith.constant 2 : index
    %c2_414 = arith.constant 2 : index
    %c2_415 = arith.constant 2 : index
    %c0_416 = arith.constant 0 : index
    %297 = vector.load %arg35[%c2_413, %c2_414, %c2_415, %c0_416] : memref<4x4x4x4xf32, #tpu.memory_space<vmem>>, vector<2x2x2x4xf32>
    %298 = vector.shape_cast %297 : vector<2x2x2x4xf32> to vector<8x4xf32>
    %299 = tpu.concatenate %246, %248, %250, %252, %254, %256, %258, %260, %262, %264, %266, %268, %270, %272, %274, %276 in 1 : vector<8x4xf32>, vector<8x4xf32>, vector<8x4xf32>, vector<8x4xf32>, vector<8x4xf32>, vector<8x4xf32>, vector<8x4xf32>, vector<8x4xf32>, vector<8x4xf32>, vector<8x4xf32>, vector<8x4xf32>, vector<8x4xf32>, vector<8x4xf32>, vector<8x4xf32>, vector<8x4xf32>, vector<8x4xf32> -> vector<8x64xf32>
    %300 = tpu.concatenate %278, %280, %282, %284, %286, %288, %290, %292, %294, %296, %298 in 1 : vector<8x4xf32>, vector<8x4xf32>, vector<8x4xf32>, vector<8x4xf32>, vector<8x4xf32>, vector<8x4xf32>, vector<8x4xf32>, vector<8x4xf32>, vector<8x4xf32>, vector<8x4xf32>, vector<8x4xf32> -> vector<8x44xf32>
    %301 = tpu.concatenate %299, %300 in 1 : vector<8x64xf32>, vector<8x44xf32> -> vector<8x108xf32>
    %302 = arith.truncf %301 : vector<8x108xf32> to vector<8x108xbf16>
    %c0_417 = arith.constant 0 : index
    %c0_418 = arith.constant 0 : index
    %303 = vector.load %arg29[%c0_417, %c0_418] : memref<108x4xbf16, #tpu.memory_space<vmem>>, vector<108x4xbf16>
    %cst_419 = arith.constant dense<0.000000e+00> : vector<8x4xf32>
    %304 = tpu.matmul %302, %303, %cst_419 {dimension_numbers = #tpu.dot_dimension_numbers<[1], [0], [0], [1], [0, 0, 1, 1], [], []>} : vector<8x108xbf16>, vector<108x4xbf16>, vector<8x4xf32> -> vector<8x4xf32>
    %c0_420 = arith.constant 0 : index
    %c0_421 = arith.constant 0 : index
    %305 = vector.load %arg30[%c0_420, %c0_421] : memref<1x4xf32, #tpu.memory_space<vmem>>, vector<1x4xf32>
    %306 = vector.broadcast %305 : vector<1x4xf32> to vector<8x4xf32>
    %307 = arith.mulf %304, %306 : vector<8x4xf32>
    %c0_422 = arith.constant 0 : index
    %c0_423 = arith.constant 0 : index
    %308 = vector.load %arg31[%c0_422, %c0_423] : memref<1x4xf32, #tpu.memory_space<vmem>>, vector<1x4xf32>
    %309 = vector.broadcast %308 : vector<1x4xf32> to vector<8x4xf32>
    %310 = arith.addf %307, %309 : vector<8x4xf32>
    %cst_424 = arith.constant 0.000000e+00 : f32
    %311 = vector.broadcast %cst_424 : f32 to vector<8x4xf32>
    %312 = arith.maximumf %310, %311 : vector<8x4xf32>
    %313 = arith.truncf %312 : vector<8x4xf32> to vector<8x4xbf16>
    %c0_425 = arith.constant 0 : index
    %c0_426 = arith.constant 0 : index
    %314 = vector.load %arg32[%c0_425, %c0_426] : memref<4x16xbf16, #tpu.memory_space<vmem>>, vector<4x16xbf16>
    %cst_427 = arith.constant dense<0.000000e+00> : vector<8x16xf32>
    %315 = tpu.matmul %313, %314, %cst_427 {dimension_numbers = #tpu.dot_dimension_numbers<[1], [0], [0], [1], [0, 0, 1, 1], [], []>} : vector<8x4xbf16>, vector<4x16xbf16>, vector<8x16xf32> -> vector<8x16xf32>
    %316 = arith.addf %315, %223 : vector<8x16xf32>
    %317 = tpu.concatenate %221, %316 in 1 : vector<8x16xf32>, vector<8x16xf32> -> vector<8x32xf32>
    %318 = vector.extract_strided_slice %317 {offsets = [0, 0], sizes = [1, 32], strides = [1, 1]} : vector<8x32xf32> to vector<1x32xf32>
    %319 = vector.extract_strided_slice %317 {offsets = [1, 0], sizes = [1, 32], strides = [1, 1]} : vector<8x32xf32> to vector<1x32xf32>
    %320 = vector.extract_strided_slice %317 {offsets = [2, 0], sizes = [1, 32], strides = [1, 1]} : vector<8x32xf32> to vector<1x32xf32>
    %321 = vector.extract_strided_slice %317 {offsets = [3, 0], sizes = [1, 32], strides = [1, 1]} : vector<8x32xf32> to vector<1x32xf32>
    %322 = vector.extract_strided_slice %317 {offsets = [4, 0], sizes = [1, 32], strides = [1, 1]} : vector<8x32xf32> to vector<1x32xf32>
    %323 = vector.extract_strided_slice %317 {offsets = [5, 0], sizes = [1, 32], strides = [1, 1]} : vector<8x32xf32> to vector<1x32xf32>
    %324 = vector.extract_strided_slice %317 {offsets = [6, 0], sizes = [1, 32], strides = [1, 1]} : vector<8x32xf32> to vector<1x32xf32>
    %325 = vector.extract_strided_slice %317 {offsets = [7, 0], sizes = [1, 32], strides = [1, 1]} : vector<8x32xf32> to vector<1x32xf32>
    %326 = tpu.concatenate %318, %319, %320, %321, %322, %323, %324, %325 in 1 : vector<1x32xf32>, vector<1x32xf32>, vector<1x32xf32>, vector<1x32xf32>, vector<1x32xf32>, vector<1x32xf32>, vector<1x32xf32>, vector<1x32xf32> -> vector<1x256xf32>
    %327 = vector.shape_cast %326 : vector<1x256xf32> to vector<1x1x256xf32>
    %c0_428 = arith.constant 0 : index
    %c0_429 = arith.constant 0 : index
    %c0_430 = arith.constant 0 : index
    %328 = vector.load %arg33[%c0_428, %c0_429, %c0_430] : memref<1x1x256xf32, #tpu.memory_space<vmem>>, vector<1x1x256xf32>
    tpu.vector_store %arg33[%c0_428, %c0_429, %c0_430], %327 {strides = array<i32>} : memref<1x1x256xf32, #tpu.memory_space<vmem>>, vector<1x1x256xf32>,
    return
  }
  func.func @transform_0(%arg0: i32) -> (i32, i32, i32) {
    %c0_i32 = arith.constant 0 : i32
    %c0_i32_0 = arith.constant 0 : i32
    %c0_i32_1 = arith.constant 0 : i32
    return %arg0, %c0_i32, %c0_i32_0 : i32, i32, i32
  }
  func.func @transform_1(%arg0: i32) -> (i32, i32, i32) {
    %c0_i32 = arith.constant 0 : i32
    %c0_i32_0 = arith.constant 0 : i32
    %c0_i32_1 = arith.constant 0 : i32
    return %arg0, %c0_i32, %c0_i32_0 : i32, i32, i32
  }
  func.func @transform_2(%arg0: i32) -> (i32, i32) {
    %c0_i32 = arith.constant 0 : i32
    %c0_i32_0 = arith.constant 0 : i32
    %c0_i32_1 = arith.constant 0 : i32
    return %c0_i32, %c0_i32_0 : i32, i32
  }
  func.func @transform_3(%arg0: i32) -> (i32, i32) {
    %c0_i32 = arith.constant 0 : i32
    %c0_i32_0 = arith.constant 0 : i32
    %c0_i32_1 = arith.constant 0 : i32
    return %c0_i32, %c0_i32_0 : i32, i32
  }
  func.func @transform_4(%arg0: i32) -> (i32, i32) {
    %c0_i32 = arith.constant 0 : i32
    %c0_i32_0 = arith.constant 0 : i32
    %c0_i32_1 = arith.constant 0 : i32
    return %c0_i32, %c0_i32_0 : i32, i32
  }
  func.func @transform_5(%arg0: i32) -> (i32, i32) {
    %c0_i32 = arith.constant 0 : i32
    %c0_i32_0 = arith.constant 0 : i32
    %c0_i32_1 = arith.constant 0 : i32
    return %c0_i32, %c0_i32_0 : i32, i32
  }
  func.func @transform_6(%arg0: i32) -> (i32, i32) {
    %c0_i32 = arith.constant 0 : i32
    %c0_i32_0 = arith.constant 0 : i32
    %c0_i32_1 = arith.constant 0 : i32
    return %c0_i32, %c0_i32_0 : i32, i32
  }
  func.func @transform_7(%arg0: i32) -> (i32, i32) {
    %c0_i32 = arith.constant 0 : i32
    %c0_i32_0 = arith.constant 0 : i32
    %c0_i32_1 = arith.constant 0 : i32
    return %c0_i32, %c0_i32_0 : i32, i32
  }
  func.func @transform_8(%arg0: i32) -> (i32, i32) {
    %c0_i32 = arith.constant 0 : i32
    %c0_i32_0 = arith.constant 0 : i32
    %c0_i32_1 = arith.constant 0 : i32
    return %c0_i32, %c0_i32_0 : i32, i32
  }
  func.func @transform_9(%arg0: i32) -> (i32, i32) {
    %c0_i32 = arith.constant 0 : i32
    %c0_i32_0 = arith.constant 0 : i32
    %c0_i32_1 = arith.constant 0 : i32
    return %c0_i32, %c0_i32_0 : i32, i32
  }
  func.func @transform_10(%arg0: i32) -> (i32, i32) {
    %c0_i32 = arith.constant 0 : i32
    %c0_i32_0 = arith.constant 0 : i32
    %c0_i32_1 = arith.constant 0 : i32
    return %c0_i32, %c0_i32_0 : i32, i32
  }
  func.func @transform_11(%arg0: i32) -> (i32, i32) {
    %c0_i32 = arith.constant 0 : i32
    %c0_i32_0 = arith.constant 0 : i32
    %c0_i32_1 = arith.constant 0 : i32
    return %c0_i32, %c0_i32_0 : i32, i32
  }
  func.func @transform_12(%arg0: i32) -> (i32, i32) {
    %c0_i32 = arith.constant 0 : i32
    %c0_i32_0 = arith.constant 0 : i32
    %c0_i32_1 = arith.constant 0 : i32
    return %c0_i32, %c0_i32_0 : i32, i32
  }
  func.func @transform_13(%arg0: i32) -> (i32, i32) {
    %c0_i32 = arith.constant 0 : i32
    %c0_i32_0 = arith.constant 0 : i32
    %c0_i32_1 = arith.constant 0 : i32
    return %c0_i32, %c0_i32_0 : i32, i32
  }
  func.func @transform_14(%arg0: i32) -> (i32, i32) {
    %c0_i32 = arith.constant 0 : i32
    %c0_i32_0 = arith.constant 0 : i32
    %c0_i32_1 = arith.constant 0 : i32
    return %c0_i32, %c0_i32_0 : i32, i32
  }
  func.func @transform_15(%arg0: i32) -> (i32, i32) {
    %c0_i32 = arith.constant 0 : i32
    %c0_i32_0 = arith.constant 0 : i32
    %c0_i32_1 = arith.constant 0 : i32
    return %c0_i32, %c0_i32_0 : i32, i32
  }
  func.func @transform_16(%arg0: i32) -> (i32, i32) {
    %c0_i32 = arith.constant 0 : i32
    %c0_i32_0 = arith.constant 0 : i32
    %c0_i32_1 = arith.constant 0 : i32
    return %c0_i32, %c0_i32_0 : i32, i32
  }
  func.func @transform_17(%arg0: i32) -> (i32, i32) {
    %c0_i32 = arith.constant 0 : i32
    %c0_i32_0 = arith.constant 0 : i32
    %c0_i32_1 = arith.constant 0 : i32
    return %c0_i32, %c0_i32_0 : i32, i32
  }
  func.func @transform_18(%arg0: i32) -> (i32, i32) {
    %c0_i32 = arith.constant 0 : i32
    %c0_i32_0 = arith.constant 0 : i32
    %c0_i32_1 = arith.constant 0 : i32
    return %c0_i32, %c0_i32_0 : i32, i32
  }
  func.func @transform_19(%arg0: i32) -> (i32, i32) {
    %c0_i32 = arith.constant 0 : i32
    %c0_i32_0 = arith.constant 0 : i32
    %c0_i32_1 = arith.constant 0 : i32
    return %c0_i32, %c0_i32_0 : i32, i32
  }
  func.func @transform_20(%arg0: i32) -> (i32, i32) {
    %c0_i32 = arith.constant 0 : i32
    %c0_i32_0 = arith.constant 0 : i32
    %c0_i32_1 = arith.constant 0 : i32
    return %c0_i32, %c0_i32_0 : i32, i32
  }
  func.func @transform_21(%arg0: i32) -> (i32, i32) {
    %c0_i32 = arith.constant 0 : i32
    %c0_i32_0 = arith.constant 0 : i32
    %c0_i32_1 = arith.constant 0 : i32
    return %c0_i32, %c0_i32_0 : i32, i32
  }
  func.func @transform_22(%arg0: i32) -> (i32, i32) {
    %c0_i32 = arith.constant 0 : i32
    %c0_i32_0 = arith.constant 0 : i32
    %c0_i32_1 = arith.constant 0 : i32
    return %c0_i32, %c0_i32_0 : i32, i32
  }
  func.func @transform_23(%arg0: i32) -> (i32, i32) {
    %c0_i32 = arith.constant 0 : i32
    %c0_i32_0 = arith.constant 0 : i32
    %c0_i32_1 = arith.constant 0 : i32
    return %c0_i32, %c0_i32_0 : i32, i32
  }
  func.func @transform_24(%arg0: i32) -> (i32, i32) {
    %c0_i32 = arith.constant 0 : i32
    %c0_i32_0 = arith.constant 0 : i32
    %c0_i32_1 = arith.constant 0 : i32
    return %c0_i32, %c0_i32_0 : i32, i32
  }
  func.func @transform_25(%arg0: i32) -> (i32, i32) {
    %c0_i32 = arith.constant 0 : i32
    %c0_i32_0 = arith.constant 0 : i32
    %c0_i32_1 = arith.constant 0 : i32
    return %c0_i32, %c0_i32_0 : i32, i32
  }
  func.func @transform_26(%arg0: i32) -> (i32, i32) {
    %c0_i32 = arith.constant 0 : i32
    %c0_i32_0 = arith.constant 0 : i32
    %c0_i32_1 = arith.constant 0 : i32
    return %c0_i32, %c0_i32_0 : i32, i32
  }
  func.func @transform_27(%arg0: i32) -> (i32, i32) {
    %c0_i32 = arith.constant 0 : i32
    %c0_i32_0 = arith.constant 0 : i32
    %c0_i32_1 = arith.constant 0 : i32
    return %c0_i32, %c0_i32_0 : i32, i32
  }
  func.func @transform_28(%arg0: i32) -> (i32, i32) {
    %c0_i32 = arith.constant 0 : i32
    %c0_i32_0 = arith.constant 0 : i32
    %c0_i32_1 = arith.constant 0 : i32
    return %c0_i32, %c0_i32_0 : i32, i32
  }
  func.func @transform_29(%arg0: i32) -> (i32, i32) {
    %c0_i32 = arith.constant 0 : i32
    %c0_i32_0 = arith.constant 0 : i32
    %c0_i32_1 = arith.constant 0 : i32
    return %c0_i32, %c0_i32_0 : i32, i32
  }
  func.func @transform_30(%arg0: i32) -> (i32, i32) {
    %c0_i32 = arith.constant 0 : i32
    %c0_i32_0 = arith.constant 0 : i32
    %c0_i32_1 = arith.constant 0 : i32
    return %c0_i32, %c0_i32_0 : i32, i32
  }
  func.func @transform_31(%arg0: i32) -> (i32, i32) {
    %c0_i32 = arith.constant 0 : i32
    %c0_i32_0 = arith.constant 0 : i32
    %c0_i32_1 = arith.constant 0 : i32
    return %c0_i32, %c0_i32_0 : i32, i32
  }
  func.func @transform_32(%arg0: i32) -> (i32, i32, i32) {
    %c0_i32 = arith.constant 0 : i32
    %c0_i32_0 = arith.constant 0 : i32
    %c0_i32_1 = arith.constant 0 : i32
    return %arg0, %c0_i32, %c0_i32_0 : i32, i32, i32
  }
}

</mosaic_0001>

<bundles_post_ra>
// kernel: fish_head_forward.1
= control target key start
LH: loop header
LB: loop body
LE: loop exit
PB: predicated region body
PF: predicated region fallthrough
CT: control target
= control target key end

     0   :  { %s11496_s6 = smov 1   ;;  %s11497_s10 = smov 2   ;;  %s14011_s0 = inlined_call_operand.smem [shape: u32[33], index: -1, kind: input, shape index: {}] }
   0x1   :  { %s11589_s5 = sld [smem:[%s14011_s0]]   ;;  %s11498_s14 = smov 3  }
   0x2   :  { %s11594_s9 = sld [smem:[%s14011_s0 + %s11496_s6]]   ;;  %s11499_s18 = smov 4  }
   0x3   :  { %s11599_s13 = sld [smem:[%s14011_s0 + %s11497_s10]]   ;;  %s11500_s22 = smov 5  }
   0x4   :  { %s11604_s17 = sld [smem:[%s14011_s0 + %s11498_s14]]   ;;  %s11501_s26 = smov 6  }
   0x5   :  { %s11609_s21 = sld [smem:[%s14011_s0 + %s11499_s18]]   ;;  %s11502_s30 = smov 7  }
   0x6   :  { %s11614_s25 = sld [smem:[%s14011_s0 + %s11500_s22]]   ;;  %s11503_s4 = smov 8  }
   0x7   :  { %14070 = sst [smem:[#allocation63_spill]] %s11589_s5  ;;  %s11504_s10 = smov 9  }
   0x8   :  { %14071 = sst [smem:[#allocation64_spill]] %s11594_s9  ;;  %s11505_s15 = smov 10  }
   0x9   :  { %14072 = sst [smem:[#allocation65_spill]] %s11599_s13  ;;  %s11506_s20 = smov 11  }
   0xa   :  { %14073 = sst [smem:[#allocation66_spill]] %s11604_s17  ;;  %s11508_s1 = smov 13  }
   0xb   :  { %s11619_s29 = sld [smem:[%s14011_s0 + %s11501_s26]]   ;;  %s11507_s26 = smov 12  }
   0xc   :  { %s11624_s3 = sld [smem:[%s14011_s0 + %s11502_s30]]   ;;  %s11509_s7 = smov 14  }
   0xd   :  { %s11629_s8 = sld [smem:[%s14011_s0 + %s11503_s4]]   ;;  %s11511_s22 = smov 16  }
   0xe   :  { %s11634_s14 = sld [smem:[%s14011_s0 + %s11504_s10]]   ;;  %s11512_s28 = smov 17  }
   0xf   :  { %s11639_s19 = sld [smem:[%s14011_s0 + %s11505_s15]]   ;;  %s11510_s15 = smov 15  }
  0x10   :  { %s11644_s24 = sld [smem:[%s14011_s0 + %s11506_s20]]  }
  0x11   :  { %s11649_s30 = sld [smem:[%s14011_s0 + %s11507_s26]]  }
  0x12   :  { %14074 = sst [smem:[#allocation67_spill]] %s11624_s3 }
  0x13   :  { %14075 = sst [smem:[#allocation68_spill]] %s11629_s8 }
  0x14   :  { %14076 = sst [smem:[#allocation69_spill]] %s11634_s14 }
  0x15   :  { %14077 = sst [smem:[#allocation70_spill]] %s11639_s19 }
  0x16   :  { %s11654_s6 = sld [smem:[%s14011_s0 + %s11508_s1]]  }
  0x17   :  { %14078 = sst [smem:[#allocation71_spill]] %s11649_s30 }
  0x18   :  { %s11659_s12 = sld [smem:[%s14011_s0 + %s11509_s7]]   ;;  %s11513_s7 = smov 18  }
  0x19   :  { %s11664_s20 = sld [smem:[%s14011_s0 + %s11510_s15]]   ;;  %s11514_s15 = smov 19  }
  0x1a   :  { %s11669_s27 = sld [smem:[%s14011_s0 + %s11511_s22]]   ;;  %s11515_s22 = smov 20  }
  0x1b   :  { %s11674_s4 = sld [smem:[%s14011_s0 + %s11512_s28]]   ;;  %s11516_s28 = smov 21  }
  0x1c   :  { %14079 = sst [smem:[#allocation72_spill]] %s11654_s6 }
  0x1d   :  { %s11679_s9 = sld [smem:[%s14011_s0 + %s11513_s7]]   ;;  %s11517_s7 = smov 22  }
  0x1e   :  { %14080 = sst [smem:[#allocation73_spill]] %s11659_s12 }
  0x1f   :  { %s11684_s5 = sld [smem:[%s14011_s0 + %s11514_s15]]   ;;  %s11518_s15 = smov 23  }
  0x20   :  { %14081 = sst [smem:[#allocation74_spill]] %s11669_s27 }
  0x21   :  { %14082 = sst [smem:[#allocation75_spill]] %s11674_s4 }
  0x22   :  { %s11689_s27 = sld [smem:[%s14011_s0 + %s11515_s22]]   ;;  %s11519_s22 = smov 24  }
  0x23   :  { %14083 = sst [smem:[#allocation76_spill]] %s11679_s9 }
  0x24   :  { %s11694_s4 = sld [smem:[%s14011_s0 + %s11516_s28]]   ;;  %s11520_s28 = smov 25  }
  0x25   :  { %14084 = sst [smem:[#allocation77_spill]] %s11684_s5 }
  0x26   :  { %s11699_s12 = sld [smem:[%s14011_s0 + %s11517_s7]]   ;;  %s11521_s7 = smov 26  }
  0x27   :  { %s11704_s5 = sld [smem:[%s14011_s0 + %s11518_s15]]   ;;  %s11522_s15 = smov 27  }
  0x28   :  { %14085 = sst [smem:[#allocation78_spill]] %s11689_s27 }
  0x29   :  { %s11709_s27 = sld [smem:[%s14011_s0 + %s11519_s22]]   ;;  %s11523_s22 = smov 28  }
  0x2a   :  { %14086 = sst [smem:[#allocation79_spill]] %s11694_s4 }
  0x2b   :  { %s11714_s30 = sld [smem:[%s14011_s0 + %s11520_s28]]   ;;  %s11524_s28 = smov 29  }
  0x2c   :  { %14087 = sst [smem:[#allocation80_spill]] %s11699_s12 }
  0x2d   :  { %14088 = sst [smem:[#allocation81_spill]] %s11704_s5 }
  0x2e   :  { %s11719_s12 = sld [smem:[%s14011_s0 + %s11521_s7]]   ;;  %s11525_s7 = smov 30  }
  0x2f   :  { %14089 = sst [smem:[#allocation82_spill]] %s11709_s27 }
  0x30   :  { %s11724_s19 = sld [smem:[%s14011_s0 + %s11522_s15]]   ;;  %s11526_s15 = smov 31  }
  0x31   :  { %14090 = sst [smem:[#allocation83_spill]] %s11714_s30 }
  0x32   :  { %s11729_s27 = sld [smem:[%s14011_s0 + %s11523_s22]]   ;;  %s11527_s22 = smov 32  }
  0x33   :  { %s11734_s30 = sld [smem:[%s14011_s0 + %s11524_s28]]  }
  0x34   :  { %14091 = sst [smem:[#allocation84_spill]] %s11719_s12 }
  0x35   :  { %s11739_s8 = sld [smem:[%s14011_s0 + %s11525_s7]]  }
  0x36   :  { %14092 = sst [smem:[#allocation85_spill]] %s11724_s19 }
  0x37   :  { %s11744_s19 = sld [smem:[%s14011_s0 + %s11526_s15]]  }
  0x38   :  { %14093 = sst [smem:[#allocation86_spill]] %s11729_s27 }
  0x39   :  { %s11749_s27 = sld [smem:[%s14011_s0 + %s11527_s22]]  }
  0x3b   :  { %14094 = sst [smem:[#allocation87_spill]] %s11739_s8 }
  0x3d   :  { %14095 = sst [smem:[#allocation88_spill]] %s11744_s19 }
  0x3f   :  { %14096 = sst [smem:[#allocation89_spill]] %s11749_s27 }
  0x40   :  { %70 = vsyncpa [#allocation5], 0 }
  0x41   :  { %72 = vsyncpa [#allocation5 + $0x1], 0 }
  0x42   :  { %73 = vsyncpa [#allocation7], 0 }
  0x43   :  { %75 = vsyncpa [#allocation7 + $0x1], 0 }
  0x44   :  { %76 = vsyncpa [#allocation10], 0 }
  0x45   :  { %77 = vsyncpa [#allocation13], 0 }
  0x46   :  { %78 = vsyncpa [#allocation16], 0 }
  0x47   :  { %79 = vsyncpa [#allocation19], 0 }
  0x48   :  { %80 = vsyncpa [#allocation22], 0 }
  0x49   :  { %81 = vsyncpa [#allocation25], 0 }
  0x4a   :  { %82 = vsyncpa [#allocation28], 0 }
  0x4b   :  { %83 = vsyncpa [#allocation31], 0 }
  0x4c   :  { %84 = vsyncpa [#allocation34], 0 }
  0x4d   :  { %85 = vsyncpa [#allocation37], 0 }
  0x4e   :  { %86 = vsyncpa [#allocation40], 0 }
  0x4f   :  { %87 = vsyncpa [#allocation43], 0 }
  0x50   :  { %88 = vsyncpa [#allocation46], 0  ;;  %s11751_s28 = smov 0   ;;  %s11753_s0 = smov 0  }
  0x51   :  { %s11755_s1 = smov 0   ;;  %s11757_s2 = smov 0  }
  0x52 LB: > { %s14097_s19 = sld [smem:[#allocation88_spill]]  ;;  %s14098_s14 = sld [smem:[#allocation69_spill]]  ;;  %s11490_s1 = sphi %s11755_s1, %s14293_s1   ;;  %s11486_s0 = sphi %s11753_s0, %s14292_s0   ;;  %s11482_s28 = sphi %s11751_s28, %s14291_s28   ;;  %s11494_s2 = sphi %s11757_s2, %s14294_s2  }
  0x53   : > { %s14099_s12 = sld [smem:[#allocation84_spill]]  ;;  %s14100_s8 = sld [smem:[#allocation87_spill]] }
  0x54   : > { %s14101_s9 = sld [smem:[#allocation76_spill]]  ;;  %s14102_s6 = sld [smem:[#allocation72_spill]] }
  0x55   : > { %s14103_s5 = sld [smem:[#allocation81_spill]]  ;;  %s14104_s4 = sld [smem:[#allocation79_spill]] }
  0x56   : > { %s14105_s3 = sld [smem:[#allocation67_spill]]  ;;  %s14106_s17 = sld [smem:[#allocation66_spill]] }
  0x57   : > { %s14107_s13 = sld [smem:[#allocation65_spill]]  ;;  %s11528_s7 = smov [#allocation8]  }
  0x58   : > { %s820_s10 = sshll.u32 %s11528_s7, 4  ;;  %s11772_s11 = sadd.s32 4294967295, %s11494_s2   ;;  %s11777_s10 = int_to_ptr.vmem [resolvable:$true] %s820_s10 }
  0x59   : > { %p8269_p0 = scmp.ge.s32.totalorder %s11494_s2, 1  ;;  %p14026_p1 = scmp.eq.s32.totalorder %s11772_s11, 0 }
  0x5a   : > { %p807_p2 = scmp.lt.s32.totalorder %s11494_s2, 3  ;;  %s11529_s16 = smov [#allocation9]  }
  0x5b   : > { %s831_s18 = sshll.u32 %s11529_s16, 4  ;;  %s11530_s22 = smov [#allocation12]   ;;  %s11785_s18 = int_to_ptr.vmem [resolvable:$true] %s831_s18 }
  0x5c   : > { %p11779_p3 = pnand %p8269_p0, %p807_p2  ;;  %s853_s23 = sshll.u32 %s11530_s22, 4  ;;  %s11793_s23 = int_to_ptr.vmem [resolvable:$true] %s853_s23 }
  0x5d   : > { %s11531_s7 = smov [#allocation15]  }
  0x5e   : > { %s14108_s15 = scalar_select %p11779_p3, 1, 0 }
  0x5f   : > { %p8746_p4 = pneg %p11779_p3  ;;  %s11795_s27 = sshll.u32 %s11531_s7, 4  ;;  %s875_s27 = int_to_ptr.vmem [resolvable:$true] %s11795_s27 }
  0x60   : > { %14109 = sst [smem:[#allocation90_spill]] %s14108_s15  ;;  %s10612_s15 = scalar_lea.hbm %s14107_s13, 16 }
  0x61   : > { %p11789_p5 = pnand %p8746_p4, %p14026_p1  ;;  %p10613_p6 = scmp.ne.s32.totalorder %s14107_s13, %s10612_s15 }
  0x62   : > { %p10619_p10 = scmp.lt.u32.totalorder %s10612_s15, %s14107_s13 }
  0x63   : > { %p11801_p7 = pneg %p11789_p5 }
  0x65   : > { %p10615_p8 = pnand %p11801_p7, %p10613_p6 }
  0x67   : > { %p10616_p9 = pneg %p10615_p8 }
  0x69   : > { %p10621_p11 = pnand %p10619_p10, %p10616_p9 }
  0x6b   : > { %10624 = shalt.err (!%p10621_p11)
}
  0x6c   : > { %s10625_s22 = scalar_lea.vmem %s11777_s10, 16  ;;  %s10632_s7 = scalar_lea.vmem %s11777_s10, 32 }
  0x6d   : > { %p10626_p12 = scmp.ne.s32.totalorder %s11777_s10, %s10625_s22  ;;  %p10633_p2 = scmp.lt.s32.totalorder %s11777_s10, %s11777_s10 }
  0x6e   : > { %p10634_p4 = scmp.lt.s32.totalorder %s10632_s7, %s10625_s22 }
  0x6f   : > { %p10628_p13 = pnand %p10626_p12, %p11801_p7 }
  0x70   : > { %p10635_p1 = por %p10634_p4, %p10633_p2 }
  0x71   : > { %p10629_p0 = pneg %p10628_p13 }
  0x73   : > { %p10636_p6 = pnand %p10635_p1, %p10629_p0 }
  0x75   : > { %10639 = shalt.err (!%p10636_p6)
}
  0x76   : > { %8749 = dma.hbm_to_vmem [thread:$0]  (!%p11789_p5), %s14107_s13, 16, %s11777_s10, [#allocation7]  }
  0x77   : > { %s10640_s15 = scalar_lea.hbm %s14106_s17, 16 }
  0x78   : > { %p10641_p8 = scmp.ne.s32.totalorder %s14106_s17, %s10640_s15  ;;  %p10647_p11 = scmp.lt.u32.totalorder %s10640_s15, %s14106_s17 }
  0x7a   : > { %p10643_p9 = pnand %p10641_p8, %p11801_p7 }
  0x7c   : > { %p10644_p10 = pneg %p10643_p9 }
  0x7e   : > { %p10649_p12 = pnand %p10647_p11, %p10644_p10 }
  0x80   : > { %10652 = shalt.err (!%p10649_p12)
}
  0x81   : > { %s10653_s22 = scalar_lea.vmem %s11785_s18, 16  ;;  %s10660_s7 = scalar_lea.vmem %s11785_s18, 32 }
  0x82   : > { %p10654_p1 = scmp.ne.s32.totalorder %s11785_s18, %s10653_s22  ;;  %p10661_p2 = scmp.lt.s32.totalorder %s11785_s18, %s11785_s18 }
  0x83   : > { %p10662_p4 = scmp.lt.s32.totalorder %s10660_s7, %s10653_s22 }
  0x84   : > { %p10656_p13 = pnand %p10654_p1, %p11801_p7 }
  0x85   : > { %p10663_p6 = por %p10662_p4, %p10661_p2 }
  0x86   : > { %p10657_p0 = pneg %p10656_p13 }
  0x88   : > { %p10664_p8 = pnand %p10663_p6, %p10657_p0 }
  0x8a   : > { %10667 = shalt.err (!%p10664_p8)
}
  0x8b   : > { %8752 = dma.hbm_to_vmem [thread:$0]  (!%p11789_p5), %s14106_s17, 16, %s11785_s18, [#allocation10]  }
  0x8c   : > { %s10668_s10 = scalar_lea.hbm %s11614_s25, 16 }
  0x8d   : > { %p10669_p9 = scmp.ne.s32.totalorder %s11614_s25, %s10668_s10  ;;  %p10675_p12 = scmp.lt.u32.totalorder %s10668_s10, %s11614_s25 }
  0x8f   : > { %p10671_p10 = pnand %p10669_p9, %p11801_p7 }
  0x91   : > { %p10672_p11 = pneg %p10671_p10 }
  0x93   : > { %p10677_p1 = pnand %p10675_p12, %p10672_p11 }
  0x95   : > { %10680 = shalt.err (!%p10677_p1)
}
  0x96   : > { %s10681_s15 = scalar_lea.vmem %s11793_s23, 16  ;;  %s10688_s22 = scalar_lea.vmem %s11793_s23, 32 }
  0x97   : > { %p10682_p13 = scmp.ne.s32.totalorder %s11793_s23, %s10681_s15  ;;  %p10689_p4 = scmp.lt.s32.totalorder %s11793_s23, %s11793_s23 }
  0x98   : > { %p10690_p6 = scmp.lt.s32.totalorder %s10688_s22, %s10681_s15 }
  0x99   : > { %p10684_p0 = pnand %p10682_p13, %p11801_p7 }
  0x9a   : > { %p10691_p8 = por %p10690_p6, %p10689_p4 }
  0x9b   : > { %p10685_p2 = pneg %p10684_p0 }
  0x9d   : > { %p10692_p9 = pnand %p10691_p8, %p10685_p2 }
  0x9f   : > { %10695 = shalt.err (!%p10692_p9)
}
  0xa0   : > { %8758 = dma.hbm_to_vmem [thread:$0]  (!%p11789_p5), %s11614_s25, 16, %s11793_s23, [#allocation13]  }
  0xa1   : > { %s10696_s18 = scalar_lea.hbm %s14105_s3, 896 }
  0xa2   : > { %p10697_p10 = scmp.ne.s32.totalorder %s14105_s3, %s10696_s18  ;;  %p10703_p1 = scmp.lt.u32.totalorder %s10696_s18, %s14105_s3 }
  0xa4   : > { %p10699_p11 = pnand %p10697_p10, %p11801_p7 }
  0xa6   : > { %p10700_p12 = pneg %p10699_p11 }
  0xa8   : > { %p10705_p13 = pnand %p10703_p1, %p10700_p12 }
  0xaa   : > { %10708 = shalt.err (!%p10705_p13)
}
  0xab   : > { %s10709_s7 = scalar_lea.vmem %s875_s27, 896  ;;  %p10717_p6 = scmp.lt.s32.totalorder %s875_s27, %s875_s27 }
  0xac   : > { %p10710_p0 = scmp.ne.s32.totalorder %s875_s27, %s10709_s7  ;;  %p10718_p8 = scmp.lt.s32.totalorder %s10709_s7, %s10709_s7 }
  0xae   : > { %p10712_p2 = pnand %p10710_p0, %p11801_p7  ;;  %p10719_p9 = por %p10718_p8, %p10717_p6 }
  0xb0   : > { %p10713_p4 = pneg %p10712_p2 }
  0xb2   : > { %p10720_p3 = pnand %p10719_p9, %p10713_p4 }
  0xb4   : > { %10723 = shalt.err (!%p10720_p3)
}
  0xb5   : > { %s11532_s23 = smov 64   ;;  %s11533_s10 = smov 4  }
  0xb6   : > { %8764 = dma.hbm_to_vmem [thread:$0]  (!%p11789_p5), %s14105_s3, 896, %s875_s27, [#allocation16], %s11532_s23, %s11532_s23, %s11533_s10  }
  0xb7   : > { %s11534_s15 = smov [#allocation18]   ;;  %s11535_s18 = smov [#allocation21]  }
  0xb8   : > { %s899_s22 = sshll.u32 %s11534_s15, 4  ;;  %s921_s13 = sshll.u32 %s11535_s18, 4  ;;  %s900_s22 = int_to_ptr.vmem [resolvable:$true] %s899_s22  ;;  %s11862_s13 = int_to_ptr.vmem [resolvable:$true] %s921_s13 }
  0xb9   : > { %s10724_s7 = scalar_lea.hbm %s14098_s14, 16 }
  0xba   : > { %p10725_p10 = scmp.ne.s32.totalorder %s14098_s14, %s10724_s7  ;;  %p10731_p12 = scmp.lt.u32.totalorder %s10724_s7, %s14098_s14 }
  0xbc   : > { %p10727_p3 = pnand %p10725_p10, %p11801_p7 }
  0xbe   : > { %p10728_p11 = pneg %p10727_p3 }
  0xc0   : > { %p10733_p1 = pnand %p10731_p12, %p10728_p11 }
  0xc2   : > { %10736 = shalt.err (!%p10733_p1)
}
  0xc3   : > { %s10737_s17 = scalar_lea.vmem %s900_s22, 16  ;;  %s10744_s27 = scalar_lea.vmem %s900_s22, 32 }
  0xc4   : > { %p10738_p13 = scmp.ne.s32.totalorder %s900_s22, %s10737_s17  ;;  %p10745_p4 = scmp.lt.s32.totalorder %s900_s22, %s900_s22 }
  0xc5   : > { %p10746_p6 = scmp.lt.s32.totalorder %s10744_s27, %s10737_s17 }
  0xc6   : > { %p10740_p0 = pnand %p10738_p13, %p11801_p7 }
  0xc7   : > { %p10747_p8 = por %p10746_p6, %p10745_p4 }
  0xc8   : > { %p10741_p2 = pneg %p10740_p0 }
  0xca   : > { %p10748_p9 = pnand %p10747_p8, %p10741_p2 }
  0xcc   : > { %10751 = shalt.err (!%p10748_p9)
}
  0xcd   : > { %8770 = dma.hbm_to_vmem [thread:$0]  (!%p11789_p5), %s14098_s14, 16, %s900_s22, [#allocation19]  }
  0xce   : > { %s10752_s23 = scalar_lea.hbm %s11644_s24, 16 }
  0xcf   : > { %p10753_p10 = scmp.ne.s32.totalorder %s11644_s24, %s10752_s23  ;;  %p10759_p12 = scmp.lt.u32.totalorder %s10752_s23, %s11644_s24 }
  0xd1   : > { %p10755_p3 = pnand %p10753_p10, %p11801_p7 }
  0xd3   : > { %p10756_p11 = pneg %p10755_p3 }
  0xd5   : > { %p10761_p1 = pnand %p10759_p12, %p10756_p11 }
  0xd7   : > { %10764 = shalt.err (!%p10761_p1)
}
  0xd8   : > { %s10765_s17 = scalar_lea.vmem %s11862_s13, 16  ;;  %s10772_s10 = scalar_lea.vmem %s11862_s13, 32 }
  0xd9   : > { %p10766_p13 = scmp.ne.s32.totalorder %s11862_s13, %s10765_s17  ;;  %p10773_p4 = scmp.lt.s32.totalorder %s11862_s13, %s11862_s13 }
  0xda   : > { %p10774_p6 = scmp.lt.s32.totalorder %s10772_s10, %s10765_s17 }
  0xdb   : > { %p10768_p0 = pnand %p10766_p13, %p11801_p7 }
  0xdc   : > { %p10775_p8 = por %p10774_p6, %p10773_p4 }
  0xdd   : > { %p10769_p2 = pneg %p10768_p0 }
  0xdf   : > { %p10776_p9 = pnand %p10775_p8, %p10769_p2 }
  0xe1   : > { %10779 = shalt.err (!%p10776_p9)
}
  0xe2   : > { %8776 = dma.hbm_to_vmem [thread:$0]  (!%p11789_p5), %s11644_s24, 16, %s11862_s13, [#allocation22]  }
  0xe3   : > { %s11536_s15 = smov [#allocation24]   ;;  %s11537_s18 = smov [#allocation27]  }
  0xe4   : > { %s943_s22 = sshll.u32 %s11536_s15, 4  ;;  %s965_s7 = sshll.u32 %s11537_s18, 4  ;;  %s944_s22 = int_to_ptr.vmem [resolvable:$true] %s943_s22  ;;  %s11890_s7 = int_to_ptr.vmem [resolvable:$true] %s965_s7 }
  0xe5   : > { %s10780_s27 = scalar_lea.hbm %s14102_s6, 64 }
  0xe6   : > { %p10781_p10 = scmp.ne.s32.totalorder %s14102_s6, %s10780_s27  ;;  %p10787_p12 = scmp.lt.u32.totalorder %s10780_s27, %s14102_s6 }
  0xe8   : > { %p10783_p3 = pnand %p10781_p10, %p11801_p7 }
  0xea   : > { %p10784_p11 = pneg %p10783_p3 }
  0xec   : > { %p10789_p1 = pnand %p10787_p12, %p10784_p11 }
  0xee   : > { %10792 = shalt.err (!%p10789_p1)
}
  0xef   : > { %s10793_s23 = scalar_lea.vmem %s944_s22, 64  ;;  %p10801_p4 = scmp.lt.s32.totalorder %s944_s22, %s944_s22 }
  0xf0   : > { %p10794_p13 = scmp.ne.s32.totalorder %s944_s22, %s10793_s23  ;;  %p10802_p6 = scmp.lt.s32.totalorder %s10793_s23, %s10793_s23 }
  0xf2   : > { %p10796_p0 = pnand %p10794_p13, %p11801_p7  ;;  %p10803_p8 = por %p10802_p6, %p10801_p4 }
  0xf4   : > { %p10797_p2 = pneg %p10796_p0 }
  0xf6   : > { %p10804_p9 = pnand %p10803_p8, %p10797_p2 }
  0xf8   : > { %10807 = shalt.err (!%p10804_p9)
}
  0xf9   : > { %8782 = dma.hbm_to_vmem [thread:$0]  (!%p11789_p5), %s14102_s6, 64, %s944_s22, [#allocation25]  }
  0xfa   : > { %s10808_s13 = scalar_lea.hbm %s11664_s20, 16 }
  0xfb   : > { %p10809_p10 = scmp.ne.s32.totalorder %s11664_s20, %s10808_s13  ;;  %p10815_p12 = scmp.lt.u32.totalorder %s10808_s13, %s11664_s20 }
  0xfd   : > { %p10811_p3 = pnand %p10809_p10, %p11801_p7 }
  0xff   : > { %p10812_p11 = pneg %p10811_p3 }
 0x101   : > { %p10817_p1 = pnand %p10815_p12, %p10812_p11 }
 0x103   : > { %10820 = shalt.err (!%p10817_p1)
}
 0x104   : > { %s10821_s17 = scalar_lea.vmem %s11890_s7, 16  ;;  %s10828_s10 = scalar_lea.vmem %s11890_s7, 32 }
 0x105   : > { %p10822_p13 = scmp.ne.s32.totalorder %s11890_s7, %s10821_s17  ;;  %p10829_p4 = scmp.lt.s32.totalorder %s11890_s7, %s11890_s7 }
 0x106   : > { %p10830_p6 = scmp.lt.s32.totalorder %s10828_s10, %s10821_s17 }
 0x107   : > { %p10824_p0 = pnand %p10822_p13, %p11801_p7 }
 0x108   : > { %p10831_p8 = por %p10830_p6, %p10829_p4 }
 0x109   : > { %p10825_p2 = pneg %p10824_p0 }
 0x10b   : > { %p10832_p9 = pnand %p10831_p8, %p10825_p2 }
 0x10d   : > { %10835 = shalt.err (!%p10832_p9)
}
 0x10e   : > { %8788 = dma.hbm_to_vmem [thread:$0]  (!%p11789_p5), %s11664_s20, 16, %s11890_s7, [#allocation28]  }
 0x10f   : > { %s11538_s15 = smov [#allocation30]   ;;  %s11539_s18 = smov [#allocation33]  }
 0x110   : > { %s990_s22 = sshll.u32 %s11538_s15, 4  ;;  %s1015_s27 = sshll.u32 %s11539_s18, 4  ;;  %s991_s22 = int_to_ptr.vmem [resolvable:$true] %s990_s22  ;;  %s11918_s27 = int_to_ptr.vmem [resolvable:$true] %s1015_s27 }
 0x111   : > { %s10836_s23 = scalar_lea.hbm %s14101_s9, 16 }
 0x112   : > { %p10837_p10 = scmp.ne.s32.totalorder %s14101_s9, %s10836_s23  ;;  %p10843_p12 = scmp.lt.u32.totalorder %s10836_s23, %s14101_s9 }
 0x114   : > { %p10839_p3 = pnand %p10837_p10, %p11801_p7 }
 0x116   : > { %p10840_p11 = pneg %p10839_p3 }
 0x118   : > { %p10845_p1 = pnand %p10843_p12, %p10840_p11 }
 0x11a   : > { %10848 = shalt.err (!%p10845_p1)
}
 0x11b   : > { %s10849_s13 = scalar_lea.vmem %s991_s22, 16  ;;  %s10856_s7 = scalar_lea.vmem %s991_s22, 32 }
 0x11c   : > { %p10850_p13 = scmp.ne.s32.totalorder %s991_s22, %s10849_s13  ;;  %p10857_p4 = scmp.lt.s32.totalorder %s991_s22, %s991_s22 }
 0x11d   : > { %p10858_p6 = scmp.lt.s32.totalorder %s10856_s7, %s10849_s13 }
 0x11e   : > { %p10852_p0 = pnand %p10850_p13, %p11801_p7 }
 0x11f   : > { %p10859_p8 = por %p10858_p6, %p10857_p4 }
 0x120   : > { %p10853_p2 = pneg %p10852_p0 }
 0x122   : > { %p10860_p9 = pnand %p10859_p8, %p10853_p2 }
 0x124   : > { %10863 = shalt.err (!%p10860_p9)
}
 0x125   : > { %8794 = dma.hbm_to_vmem [thread:$0]  (!%p11789_p5), %s14101_s9, 16, %s991_s22, [#allocation31]  }
 0x126   : > { %s10864_s17 = scalar_lea.hbm %s14104_s4, 16 }
 0x127   : > { %p10865_p10 = scmp.ne.s32.totalorder %s14104_s4, %s10864_s17  ;;  %p10871_p12 = scmp.lt.u32.totalorder %s10864_s17, %s14104_s4 }
 0x129   : > { %p10867_p3 = pnand %p10865_p10, %p11801_p7 }
 0x12b   : > { %p10868_p11 = pneg %p10867_p3 }
 0x12d   : > { %p10873_p1 = pnand %p10871_p12, %p10868_p11 }
 0x12f   : > { %10876 = shalt.err (!%p10873_p1)
}
 0x130   : > { %s10877_s10 = scalar_lea.vmem %s11918_s27, 16  ;;  %s10884_s15 = scalar_lea.vmem %s11918_s27, 32 }
 0x131   : > { %p10878_p13 = scmp.ne.s32.totalorder %s11918_s27, %s10877_s10  ;;  %p10885_p4 = scmp.lt.s32.totalorder %s11918_s27, %s11918_s27 }
 0x132   : > { %p10886_p6 = scmp.lt.s32.totalorder %s10884_s15, %s10877_s10 }
 0x133   : > { %p10880_p0 = pnand %p10878_p13, %p11801_p7 }
 0x134   : > { %p10887_p8 = por %p10886_p6, %p10885_p4 }
 0x135   : > { %p10881_p2 = pneg %p10880_p0 }
 0x137   : > { %p10888_p9 = pnand %p10887_p8, %p10881_p2 }
 0x139   : > { %10891 = shalt.err (!%p10888_p9)
}
 0x13a   : > { %8800 = dma.hbm_to_vmem [thread:$0]  (!%p11789_p5), %s14104_s4, 16, %s11918_s27, [#allocation34]  }
 0x13b   : > { %s11540_s22 = smov [#allocation36]   ;;  %s11541_s23 = smov [#allocation39]  }
 0x13c   : > { %s1037_s18 = sshll.u32 %s11540_s22, 4  ;;  %s1062_s13 = sshll.u32 %s11541_s23, 4  ;;  %s1038_s18 = int_to_ptr.vmem [resolvable:$true] %s1037_s18  ;;  %s11946_s13 = int_to_ptr.vmem [resolvable:$true] %s1062_s13 }
 0x13d   : > { %s10892_s7 = scalar_lea.hbm %s14103_s5, 16 }
 0x13e   : > { %p10893_p10 = scmp.ne.s32.totalorder %s14103_s5, %s10892_s7  ;;  %p10899_p12 = scmp.lt.u32.totalorder %s10892_s7, %s14103_s5 }
 0x140   : > { %p10895_p3 = pnand %p10893_p10, %p11801_p7 }
 0x142   : > { %p10896_p11 = pneg %p10895_p3 }
 0x144   : > { %p10901_p1 = pnand %p10899_p12, %p10896_p11 }
 0x146   : > { %10904 = shalt.err (!%p10901_p1)
}
 0x147   : > { %s10905_s17 = scalar_lea.vmem %s1038_s18, 16  ;;  %s10912_s27 = scalar_lea.vmem %s1038_s18, 32 }
 0x148   : > { %p10906_p13 = scmp.ne.s32.totalorder %s1038_s18, %s10905_s17  ;;  %p10913_p4 = scmp.lt.s32.totalorder %s1038_s18, %s1038_s18 }
 0x149   : > { %p10914_p6 = scmp.lt.s32.totalorder %s10912_s27, %s10905_s17 }
 0x14a   : > { %p10908_p0 = pnand %p10906_p13, %p11801_p7 }
 0x14b   : > { %p10915_p8 = por %p10914_p6, %p10913_p4 }
 0x14c   : > { %p10909_p2 = pneg %p10908_p0 }
 0x14e   : > { %p10916_p9 = pnand %p10915_p8, %p10909_p2 }
 0x150   : > { %10919 = shalt.err (!%p10916_p9)
}
 0x151   : > { %8806 = dma.hbm_to_vmem [thread:$0]  (!%p11789_p5), %s14103_s5, 16, %s1038_s18, [#allocation37]  }
 0x152   : > { %s10920_s10 = scalar_lea.hbm %s14099_s12, 16 }
 0x153   : > { %p10921_p10 = scmp.ne.s32.totalorder %s14099_s12, %s10920_s10  ;;  %p10927_p12 = scmp.lt.u32.totalorder %s10920_s10, %s14099_s12 }
 0x155   : > { %p10923_p3 = pnand %p10921_p10, %p11801_p7 }
 0x157   : > { %p10924_p11 = pneg %p10923_p3 }
 0x159   : > { %p10929_p1 = pnand %p10927_p12, %p10924_p11 }
 0x15b   : > { %10932 = shalt.err (!%p10929_p1)
}
 0x15c   : > { %s10933_s15 = scalar_lea.vmem %s11946_s13, 16  ;;  %s10940_s22 = scalar_lea.vmem %s11946_s13, 32 }
 0x15d   : > { %p10934_p13 = scmp.ne.s32.totalorder %s11946_s13, %s10933_s15  ;;  %p10941_p4 = scmp.lt.s32.totalorder %s11946_s13, %s11946_s13 }
 0x15e   : > { %p10942_p6 = scmp.lt.s32.totalorder %s10940_s22, %s10933_s15 }
 0x15f   : > { %p10936_p0 = pnand %p10934_p13, %p11801_p7 }
 0x160   : > { %p10943_p8 = por %p10942_p6, %p10941_p4 }
 0x161   : > { %p10937_p2 = pneg %p10936_p0 }
 0x163   : > { %p10944_p9 = pnand %p10943_p8, %p10937_p2 }
 0x165   : > { %10947 = shalt.err (!%p10944_p9)
}
 0x166   : > { %8812 = dma.hbm_to_vmem [thread:$0]  (!%p11789_p5), %s14099_s12, 16, %s11946_s13, [#allocation40]  }
 0x167   : > { %s11542_s18 = smov [#allocation42]   ;;  %s11543_s7 = smov [#allocation11]  }
 0x168   : > { %s1087_s23 = sshll.u32 %s11542_s18, 4  ;;  %s842_s17 = sshll.u32 %s11543_s7, 4  ;;  %s1088_s23 = int_to_ptr.vmem [resolvable:$true] %s1087_s23  ;;  %s11974_s17 = int_to_ptr.vmem [resolvable:$true] %s842_s17 }
 0x169   : > { %s10948_s27 = scalar_lea.hbm %s11734_s30, 16 }
 0x16a   : > { %p10949_p10 = scmp.ne.s32.totalorder %s11734_s30, %s10948_s27  ;;  %p10955_p12 = scmp.lt.u32.totalorder %s10948_s27, %s11734_s30 }
 0x16c   : > { %p10951_p3 = pnand %p10949_p10, %p11801_p7 }
 0x16e   : > { %p10952_p11 = pneg %p10951_p3 }
 0x170   : > { %p10957_p1 = pnand %p10955_p12, %p10952_p11 }
 0x172   : > { %10960 = shalt.err (!%p10957_p1)
}
 0x173   : > { %s10961_s10 = scalar_lea.vmem %s1088_s23, 16  ;;  %s10968_s13 = scalar_lea.vmem %s1088_s23, 32 }
 0x174   : > { %p10962_p13 = scmp.ne.s32.totalorder %s1088_s23, %s10961_s10  ;;  %p10969_p4 = scmp.lt.s32.totalorder %s1088_s23, %s1088_s23 }
 0x175   : > { %p10970_p6 = scmp.lt.s32.totalorder %s10968_s13, %s10961_s10 }
 0x176   : > { %p10964_p0 = pnand %p10962_p13, %p11801_p7 }
 0x177   : > { %p10971_p8 = por %p10970_p6, %p10969_p4 }
 0x178   : > { %p10965_p2 = pneg %p10964_p0 }
 0x17a   : > { %p10972_p9 = pnand %p10971_p8, %p10965_p2 }
 0x17c   : > { %10975 = shalt.err (!%p10972_p9)
}
 0x17d   : > { %8818 = dma.hbm_to_vmem [thread:$0]  (!%p11789_p5), %s11734_s30, 16, %s1088_s23, [#allocation43]  }
 0x17e   : > { %s10976_s15 = scalar_lea.hbm %s11609_s21, 64 }
 0x17f   : > { %p10977_p10 = scmp.ne.s32.totalorder %s11609_s21, %s10976_s15  ;;  %p10983_p12 = scmp.lt.u32.totalorder %s10976_s15, %s11609_s21 }
 0x181   : > { %p10979_p3 = pnand %p10977_p10, %p11801_p7 }
 0x183   : > { %p10980_p11 = pneg %p10979_p3 }
 0x185   : > { %p10985_p1 = pnand %p10983_p12, %p10980_p11 }
 0x187   : > { %10988 = shalt.err (!%p10985_p1)
}
 0x188   : > { %s10989_s22 = scalar_lea.vmem %s11974_s17, 64  ;;  %p10997_p4 = scmp.lt.s32.totalorder %s11974_s17, %s11974_s17 }
 0x189   : > { %p10990_p13 = scmp.ne.s32.totalorder %s11974_s17, %s10989_s22  ;;  %p10998_p6 = scmp.lt.s32.totalorder %s10989_s22, %s10989_s22 }
 0x18b   : > { %p10992_p0 = pnand %p10990_p13, %p11801_p7  ;;  %p10999_p8 = por %p10998_p6, %p10997_p4 }
 0x18d   : > { %p10993_p2 = pneg %p10992_p0 }
 0x18f   : > { %p11000_p9 = pnand %p10999_p8, %p10993_p2 }
 0x191   : > { %11003 = shalt.err (!%p11000_p9)
}
 0x192   : > { %8755 = dma.hbm_to_vmem [thread:$0]  (!%p11789_p5), %s11609_s21, 64, %s11974_s17, [#allocation10]  }
 0x193   : > { %s11544_s18 = smov [#allocation14]   ;;  %s11545_s7 = smov [#allocation17]  }
 0x194   : > { %s864_s23 = sshll.u32 %s11544_s18, 4  ;;  %s888_s27 = sshll.u32 %s11545_s7, 4  ;;  %s865_s23 = int_to_ptr.vmem [resolvable:$true] %s864_s23  ;;  %s12001_s27 = int_to_ptr.vmem [resolvable:$true] %s888_s27 }
 0x195   : > { %s11004_s10 = scalar_lea.hbm %s11619_s29, 16 }
 0x196   : > { %p11005_p10 = scmp.ne.s32.totalorder %s11619_s29, %s11004_s10  ;;  %p11011_p12 = scmp.lt.u32.totalorder %s11004_s10, %s11619_s29 }
 0x198   : > { %p11007_p3 = pnand %p11005_p10, %p11801_p7 }
 0x19a   : > { %p11008_p11 = pneg %p11007_p3 }
 0x19c   : > { %p11013_p1 = pnand %p11011_p12, %p11008_p11 }
 0x19e   : > { %11016 = shalt.err (!%p11013_p1)
}
 0x19f   : > { %s11017_s13 = scalar_lea.vmem %s865_s23, 16  ;;  %s11024_s17 = scalar_lea.vmem %s865_s23, 32 }
 0x1a0   : > { %p11018_p13 = scmp.ne.s32.totalorder %s865_s23, %s11017_s13  ;;  %p11025_p4 = scmp.lt.s32.totalorder %s865_s23, %s865_s23 }
 0x1a1   : > { %p11026_p6 = scmp.lt.s32.totalorder %s11024_s17, %s11017_s13 }
 0x1a2   : > { %p11020_p0 = pnand %p11018_p13, %p11801_p7 }
 0x1a3   : > { %p11027_p8 = por %p11026_p6, %p11025_p4 }
 0x1a4   : > { %p11021_p2 = pneg %p11020_p0 }
 0x1a6   : > { %p11028_p9 = pnand %p11027_p8, %p11021_p2 }
 0x1a8   : > { %11031 = shalt.err (!%p11028_p9)
}
 0x1a9   : > { %s14112_s15 = sld [smem:[#allocation68_spill]] }
 0x1aa   : > { %8761 = dma.hbm_to_vmem [thread:$0]  (!%p11789_p5), %s11619_s29, 16, %s865_s23, [#allocation13]  }
 0x1af   : > { %s11032_s22 = scalar_lea.hbm %s14112_s15, 16 }
 0x1b0   : > { %p11033_p10 = scmp.ne.s32.totalorder %s14112_s15, %s11032_s22  ;;  %p11039_p12 = scmp.lt.u32.totalorder %s11032_s22, %s14112_s15 }
 0x1b2   : > { %p11035_p3 = pnand %p11033_p10, %p11801_p7 }
 0x1b4   : > { %p11036_p11 = pneg %p11035_p3 }
 0x1b6   : > { %p11041_p1 = pnand %p11039_p12, %p11036_p11 }
 0x1b8   : > { %11044 = shalt.err (!%p11041_p1)
}
 0x1b9   : > { %s11045_s18 = scalar_lea.vmem %s12001_s27, 16  ;;  %s11052_s7 = scalar_lea.vmem %s12001_s27, 32 }
 0x1ba   : > { %p11046_p13 = scmp.ne.s32.totalorder %s12001_s27, %s11045_s18  ;;  %p11053_p4 = scmp.lt.s32.totalorder %s12001_s27, %s12001_s27 }
 0x1bb   : > { %p11054_p6 = scmp.lt.s32.totalorder %s11052_s7, %s11045_s18 }
 0x1bc   : > { %p11048_p0 = pnand %p11046_p13, %p11801_p7 }
 0x1bd   : > { %p11055_p8 = por %p11054_p6, %p11053_p4 }
 0x1be   : > { %p11049_p2 = pneg %p11048_p0 }
 0x1c0   : > { %p11056_p9 = pnand %p11055_p8, %p11049_p2 }
 0x1c2   : > { %11059 = shalt.err (!%p11056_p9)
}
 0x1c3   : > { %s14113_s23 = sld [smem:[#allocation70_spill]]  ;;  %s11546_s10 = smov [#allocation20]  }
 0x1c4   : > { %8767 = dma.hbm_to_vmem [thread:$0]  (!%p11789_p5), %s14112_s15, 16, %s12001_s27, [#allocation16]  }
 0x1c5   : > { %s910_s13 = sshll.u32 %s11546_s10, 4  ;;  %s11547_s17 = smov [#allocation23]   ;;  %s911_s13 = int_to_ptr.vmem [resolvable:$true] %s910_s13 }
 0x1c6   : > { %s932_s22 = sshll.u32 %s11547_s17, 4  ;;  %s12029_s22 = int_to_ptr.vmem [resolvable:$true] %s932_s22 }
 0x1c9   : > { %s11060_s18 = scalar_lea.hbm %s14113_s23, 32 }
 0x1ca   : > { %p11061_p10 = scmp.ne.s32.totalorder %s14113_s23, %s11060_s18  ;;  %p11067_p12 = scmp.lt.u32.totalorder %s11060_s18, %s14113_s23 }
 0x1cc   : > { %p11063_p3 = pnand %p11061_p10, %p11801_p7 }
 0x1ce   : > { %p11064_p11 = pneg %p11063_p3 }
 0x1d0   : > { %p11069_p1 = pnand %p11067_p12, %p11064_p11 }
 0x1d2   : > { %11072 = shalt.err (!%p11069_p1)
}
 0x1d3   : > { %s11073_s7 = scalar_lea.vmem %s911_s13, 32  ;;  %p11081_p4 = scmp.lt.s32.totalorder %s911_s13, %s911_s13 }
 0x1d4   : > { %p11074_p13 = scmp.ne.s32.totalorder %s911_s13, %s11073_s7  ;;  %p11082_p6 = scmp.lt.s32.totalorder %s11073_s7, %s11073_s7 }
 0x1d6   : > { %p11076_p0 = pnand %p11074_p13, %p11801_p7  ;;  %p11083_p8 = por %p11082_p6, %p11081_p4 }
 0x1d8   : > { %p11077_p2 = pneg %p11076_p0 }
 0x1da   : > { %p11084_p9 = pnand %p11083_p8, %p11077_p2 }
 0x1dc   : > { %11087 = shalt.err (!%p11084_p9)
}
 0x1dd   : > { %s14114_s27 = sld [smem:[#allocation71_spill]] }
 0x1de   : > { %8773 = dma.hbm_to_vmem [thread:$0]  (!%p11789_p5), %s14113_s23, 32, %s911_s13, [#allocation19]  }
 0x1e3   : > { %s11088_s10 = scalar_lea.hbm %s14114_s27, 16 }
 0x1e4   : > { %p11089_p10 = scmp.ne.s32.totalorder %s14114_s27, %s11088_s10  ;;  %p11095_p12 = scmp.lt.u32.totalorder %s11088_s10, %s14114_s27 }
 0x1e6   : > { %p11091_p3 = pnand %p11089_p10, %p11801_p7 }
 0x1e8   : > { %p11092_p11 = pneg %p11091_p3 }
 0x1ea   : > { %p11097_p1 = pnand %p11095_p12, %p11092_p11 }
 0x1ec   : > { %11100 = shalt.err (!%p11097_p1)
}
 0x1ed   : > { %s11101_s17 = scalar_lea.vmem %s12029_s22, 16  ;;  %s11108_s18 = scalar_lea.vmem %s12029_s22, 32 }
 0x1ee   : > { %p11102_p13 = scmp.ne.s32.totalorder %s12029_s22, %s11101_s17  ;;  %p11109_p4 = scmp.lt.s32.totalorder %s12029_s22, %s12029_s22 }
 0x1ef   : > { %p11110_p6 = scmp.lt.s32.totalorder %s11108_s18, %s11101_s17 }
 0x1f0   : > { %p11104_p0 = pnand %p11102_p13, %p11801_p7 }
 0x1f1   : > { %p11111_p8 = por %p11110_p6, %p11109_p4 }
 0x1f2   : > { %p11105_p2 = pneg %p11104_p0 }
 0x1f4   : > { %p11112_p9 = pnand %p11111_p8, %p11105_p2 }
 0x1f6   : > { %11115 = shalt.err (!%p11112_p9)
}
 0x1f7   : > { %s14115_s13 = sld [smem:[#allocation73_spill]]  ;;  %s11548_s7 = smov [#allocation26]  }
 0x1f8   : > { %8779 = dma.hbm_to_vmem [thread:$0]  (!%p11789_p5), %s14114_s27, 16, %s12029_s22, [#allocation22]  }
 0x1f9   : > { %s954_s10 = sshll.u32 %s11548_s7, 4  ;;  %s11549_s3 = smov [#allocation29]   ;;  %s955_s10 = int_to_ptr.vmem [resolvable:$true] %s954_s10 }
 0x1fa   : > { %s979_s4 = sshll.u32 %s11549_s3, 4  ;;  %s12057_s4 = int_to_ptr.vmem [resolvable:$true] %s979_s4 }
 0x1fd   : > { %s11116_s17 = scalar_lea.hbm %s14115_s13, 16 }
 0x1fe   : > { %p11117_p10 = scmp.ne.s32.totalorder %s14115_s13, %s11116_s17  ;;  %p11123_p12 = scmp.lt.u32.totalorder %s11116_s17, %s14115_s13 }
 0x200   : > { %p11119_p3 = pnand %p11117_p10, %p11801_p7 }
 0x202   : > { %p11120_p11 = pneg %p11119_p3 }
 0x204   : > { %p11125_p1 = pnand %p11123_p12, %p11120_p11 }
 0x206   : > { %11128 = shalt.err (!%p11125_p1)
}
 0x207   : > { %s11129_s18 = scalar_lea.vmem %s955_s10, 16  ;;  %s11136_s22 = scalar_lea.vmem %s955_s10, 32 }
 0x208   : > { %p11130_p13 = scmp.ne.s32.totalorder %s955_s10, %s11129_s18  ;;  %p11137_p4 = scmp.lt.s32.totalorder %s955_s10, %s955_s10 }
 0x209   : > { %p11138_p6 = scmp.lt.s32.totalorder %s11136_s22, %s11129_s18 }
 0x20a   : > { %p11132_p0 = pnand %p11130_p13, %p11801_p7 }
 0x20b   : > { %p11139_p8 = por %p11138_p6, %p11137_p4 }
 0x20c   : > { %p11133_p2 = pneg %p11132_p0 }
 0x20e   : > { %p11140_p9 = pnand %p11139_p8, %p11133_p2 }
 0x210   : > { %11143 = shalt.err (!%p11140_p9)
}
 0x211   : > { %s14116_s3 = sld [smem:[#allocation75_spill]] }
 0x212   : > { %8785 = dma.hbm_to_vmem [thread:$0]  (!%p11789_p5), %s14115_s13, 16, %s955_s10, [#allocation25]  }
 0x217   : > { %s11144_s7 = scalar_lea.hbm %s14116_s3, 16 }
 0x218   : > { %p11145_p10 = scmp.ne.s32.totalorder %s14116_s3, %s11144_s7  ;;  %p11151_p12 = scmp.lt.u32.totalorder %s11144_s7, %s14116_s3 }
 0x21a   : > { %p11147_p3 = pnand %p11145_p10, %p11801_p7 }
 0x21c   : > { %p11148_p11 = pneg %p11147_p3 }
 0x21e   : > { %p11153_p1 = pnand %p11151_p12, %p11148_p11 }
 0x220   : > { %11156 = shalt.err (!%p11153_p1)
}
 0x221   : > { %s11157_s17 = scalar_lea.vmem %s12057_s4, 16  ;;  %s11164_s18 = scalar_lea.vmem %s12057_s4, 32 }
 0x222   : > { %p11158_p13 = scmp.ne.s32.totalorder %s12057_s4, %s11157_s17  ;;  %p11165_p4 = scmp.lt.s32.totalorder %s12057_s4, %s12057_s4 }
 0x223   : > { %p11166_p6 = scmp.lt.s32.totalorder %s11164_s18, %s11157_s17 }
 0x224   : > { %p11160_p0 = pnand %p11158_p13, %p11801_p7 }
 0x225   : > { %p11167_p8 = por %p11166_p6, %p11165_p4 }
 0x226   : > { %p11161_p2 = pneg %p11160_p0 }
 0x228   : > { %p11168_p9 = pnand %p11167_p8, %p11161_p2 }
 0x22a   : > { %11171 = shalt.err (!%p11168_p9)
}
 0x22b   : > { %s14117_s10 = sld [smem:[#allocation78_spill]]  ;;  %s11550_s22 = smov [#allocation32]  }
 0x22c   : > { %8791 = dma.hbm_to_vmem [thread:$0]  (!%p11789_p5), %s14116_s3, 16, %s12057_s4, [#allocation28]  }
 0x22d   : > { %s1004_s7 = sshll.u32 %s11550_s22, 4  ;;  %s11551_s5 = smov [#allocation35]   ;;  %s1005_s7 = int_to_ptr.vmem [resolvable:$true] %s1004_s7 }
 0x22e   : > { %s1026_s6 = sshll.u32 %s11551_s5, 4  ;;  %s12085_s6 = int_to_ptr.vmem [resolvable:$true] %s1026_s6 }
 0x231   : > { %s11172_s17 = scalar_lea.hbm %s14117_s10, 16 }
 0x232   : > { %p11173_p10 = scmp.ne.s32.totalorder %s14117_s10, %s11172_s17  ;;  %p11179_p12 = scmp.lt.u32.totalorder %s11172_s17, %s14117_s10 }
 0x234   : > { %p11175_p3 = pnand %p11173_p10, %p11801_p7 }
 0x236   : > { %p11176_p11 = pneg %p11175_p3 }
 0x238   : > { %p11181_p1 = pnand %p11179_p12, %p11176_p11 }
 0x23a   : > { %11184 = shalt.err (!%p11181_p1)
}
 0x23b   : > { %s11185_s18 = scalar_lea.vmem %s1005_s7, 16  ;;  %s11192_s4 = scalar_lea.vmem %s1005_s7, 32 }
 0x23c   : > { %p11186_p13 = scmp.ne.s32.totalorder %s1005_s7, %s11185_s18  ;;  %p11193_p4 = scmp.lt.s32.totalorder %s1005_s7, %s1005_s7 }
 0x23d   : > { %p11194_p6 = scmp.lt.s32.totalorder %s11192_s4, %s11185_s18 }
 0x23e   : > { %p11188_p0 = pnand %p11186_p13, %p11801_p7 }
 0x23f   : > { %p11195_p8 = por %p11194_p6, %p11193_p4 }
 0x240   : > { %p11189_p2 = pneg %p11188_p0 }
 0x242   : > { %p11196_p9 = pnand %p11195_p8, %p11189_p2 }
 0x244   : > { %11199 = shalt.err (!%p11196_p9)
}
 0x245   : > { %s14118_s5 = sld [smem:[#allocation80_spill]] }
 0x246   : > { %8797 = dma.hbm_to_vmem [thread:$0]  (!%p11789_p5), %s14117_s10, 16, %s1005_s7, [#allocation31]  }
 0x24b   : > { %s11200_s22 = scalar_lea.hbm %s14118_s5, 32 }
 0x24c   : > { %p11201_p10 = scmp.ne.s32.totalorder %s14118_s5, %s11200_s22  ;;  %p11207_p12 = scmp.lt.u32.totalorder %s11200_s22, %s14118_s5 }
 0x24e   : > { %p11203_p3 = pnand %p11201_p10, %p11801_p7 }
 0x250   : > { %p11204_p11 = pneg %p11203_p3 }
 0x252   : > { %p11209_p1 = pnand %p11207_p12, %p11204_p11 }
 0x254   : > { %11212 = shalt.err (!%p11209_p1)
}
 0x255   : > { %s11213_s17 = scalar_lea.vmem %s12085_s6, 32  ;;  %p11221_p4 = scmp.lt.s32.totalorder %s12085_s6, %s12085_s6 }
 0x256   : > { %p11214_p13 = scmp.ne.s32.totalorder %s12085_s6, %s11213_s17  ;;  %p11222_p6 = scmp.lt.s32.totalorder %s11213_s17, %s11213_s17 }
 0x258   : > { %p11216_p0 = pnand %p11214_p13, %p11801_p7  ;;  %p11223_p8 = por %p11222_p6, %p11221_p4 }
 0x25a   : > { %p11217_p2 = pneg %p11216_p0 }
 0x25c   : > { %p11224_p9 = pnand %p11223_p8, %p11217_p2 }
 0x25e   : > { %11227 = shalt.err (!%p11224_p9)
}
 0x25f   : > { %s14119_s7 = sld [smem:[#allocation82_spill]]  ;;  %s11552_s18 = smov [#allocation38]  }
 0x260   : > { %8803 = dma.hbm_to_vmem [thread:$0]  (!%p11789_p5), %s14118_s5, 32, %s12085_s6, [#allocation34]  }
 0x261   : > { %s1048_s4 = sshll.u32 %s11552_s18, 4  ;;  %s11553_s22 = smov [#allocation41]   ;;  %s1049_s4 = int_to_ptr.vmem [resolvable:$true] %s1048_s4 }
 0x262   : > { %s1073_s3 = sshll.u32 %s11553_s22, 4  ;;  %s12112_s3 = int_to_ptr.vmem [resolvable:$true] %s1073_s3 }
 0x265   : > { %s11228_s17 = scalar_lea.hbm %s14119_s7, 16 }
 0x266   : > { %p11229_p10 = scmp.ne.s32.totalorder %s14119_s7, %s11228_s17  ;;  %p11235_p12 = scmp.lt.u32.totalorder %s11228_s17, %s14119_s7 }
 0x268   : > { %p11231_p3 = pnand %p11229_p10, %p11801_p7 }
 0x26a   : > { %p11232_p11 = pneg %p11231_p3 }
 0x26c   : > { %p11237_p1 = pnand %p11235_p12, %p11232_p11 }
 0x26e   : > { %11240 = shalt.err (!%p11237_p1)
}
 0x26f   : > { %s11241_s9 = scalar_lea.vmem %s1049_s4, 16  ;;  %s11248_s6 = scalar_lea.vmem %s1049_s4, 32 }
 0x270   : > { %p11242_p13 = scmp.ne.s32.totalorder %s1049_s4, %s11241_s9  ;;  %p11249_p4 = scmp.lt.s32.totalorder %s1049_s4, %s1049_s4 }
 0x271   : > { %p11250_p6 = scmp.lt.s32.totalorder %s11248_s6, %s11241_s9 }
 0x272   : > { %p11244_p0 = pnand %p11242_p13, %p11801_p7 }
 0x273   : > { %p11251_p8 = por %p11250_p6, %p11249_p4 }
 0x274   : > { %p11245_p2 = pneg %p11244_p0 }
 0x276   : > { %p11252_p9 = pnand %p11251_p8, %p11245_p2 }
 0x278   : > { %11255 = shalt.err (!%p11252_p9)
}
 0x279   : > { %s14120_s18 = sld [smem:[#allocation85_spill]] }
 0x27a   : > { %8809 = dma.hbm_to_vmem [thread:$0]  (!%p11789_p5), %s14119_s7, 16, %s1049_s4, [#allocation37]  }
 0x27f   : > { %s11256_s22 = scalar_lea.hbm %s14120_s18, 16 }
 0x280   : > { %p11257_p10 = scmp.ne.s32.totalorder %s14120_s18, %s11256_s22  ;;  %p11263_p12 = scmp.lt.u32.totalorder %s11256_s22, %s14120_s18 }
 0x282   : > { %p11259_p3 = pnand %p11257_p10, %p11801_p7 }
 0x284   : > { %p11260_p11 = pneg %p11259_p3 }
 0x286   : > { %p11265_p1 = pnand %p11263_p12, %p11260_p11 }
 0x288   : > { %11268 = shalt.err (!%p11265_p1)
}
 0x289   : > { %s11269_s9 = scalar_lea.vmem %s12112_s3, 16  ;;  %s11276_s17 = scalar_lea.vmem %s12112_s3, 32 }
 0x28a   : > { %p11270_p13 = scmp.ne.s32.totalorder %s12112_s3, %s11269_s9  ;;  %p11277_p4 = scmp.lt.s32.totalorder %s12112_s3, %s12112_s3 }
 0x28b   : > { %p11278_p6 = scmp.lt.s32.totalorder %s11276_s17, %s11269_s9 }
 0x28c   : > { %p11272_p0 = pnand %p11270_p13, %p11801_p7 }
 0x28d   : > { %p11279_p8 = por %p11278_p6, %p11277_p4 }
 0x28e   : > { %p11273_p2 = pneg %p11272_p0 }
 0x290   : > { %p11280_p9 = pnand %p11279_p8, %p11273_p2 }
 0x292   : > { %11283 = shalt.err (!%p11280_p9)
}
 0x293   : > { %8815 = dma.hbm_to_vmem [thread:$0]  (!%p11789_p5), %s14120_s18, 16, %s12112_s3, [#allocation40]  }
 0x294   : > { %s11554_s4 = smov [#allocation44]   ;;  %s11555_s22 = smov [#allocation45]  }
 0x295   : > { %s1098_s6 = sshll.u32 %s11554_s4, 4  ;;  %s1109_s5 = sshll.u32 %s11555_s22, 4  ;;  %s1099_s6 = int_to_ptr.vmem [resolvable:$true] %s1098_s6  ;;  %s12140_s5 = int_to_ptr.vmem [resolvable:$true] %s1109_s5 }
 0x296   : > { %s11284_s9 = scalar_lea.hbm %s14100_s8, 16 }
 0x297   : > { %p11285_p10 = scmp.ne.s32.totalorder %s14100_s8, %s11284_s9  ;;  %p11291_p12 = scmp.lt.u32.totalorder %s11284_s9, %s14100_s8 }
 0x299   : > { %p11287_p3 = pnand %p11285_p10, %p11801_p7 }
 0x29b   : > { %p11288_p11 = pneg %p11287_p3 }
 0x29d   : > { %p11293_p1 = pnand %p11291_p12, %p11288_p11 }
 0x29f   : > { %11296 = shalt.err (!%p11293_p1)
}
 0x2a0   : > { %s11297_s17 = scalar_lea.vmem %s1099_s6, 16  ;;  %s11304_s3 = scalar_lea.vmem %s1099_s6, 32 }
 0x2a1   : > { %p11298_p13 = scmp.ne.s32.totalorder %s1099_s6, %s11297_s17  ;;  %p11305_p4 = scmp.lt.s32.totalorder %s1099_s6, %s1099_s6 }
 0x2a2   : > { %p11306_p6 = scmp.lt.s32.totalorder %s11304_s3, %s11297_s17 }
 0x2a3   : > { %p11300_p0 = pnand %p11298_p13, %p11801_p7 }
 0x2a4   : > { %p11307_p8 = por %p11306_p6, %p11305_p4 }
 0x2a5   : > { %p11301_p2 = pneg %p11300_p0 }
 0x2a7   : > { %p11308_p9 = pnand %p11307_p8, %p11301_p2 }
 0x2a9   : > { %11311 = shalt.err (!%p11308_p9)
}
 0x2aa   : > { %8821 = dma.hbm_to_vmem [thread:$0]  (!%p11789_p5), %s14100_s8, 16, %s1099_s6, [#allocation43]  }
 0x2ab   : > { %s11312_s4 = scalar_lea.hbm %s14097_s19, 32 }
 0x2ac   : > { %p11313_p10 = scmp.ne.s32.totalorder %s14097_s19, %s11312_s4  ;;  %p11319_p12 = scmp.lt.u32.totalorder %s11312_s4, %s14097_s19 }
 0x2ae   : > { %p11315_p3 = pnand %p11313_p10, %p11801_p7 }
 0x2b0   : > { %p11316_p11 = pneg %p11315_p3 }
 0x2b2   : > { %p11321_p1 = pnand %p11319_p12, %p11316_p11 }
 0x2b4   : > { %11324 = shalt.err (!%p11321_p1)
}
 0x2b5   : > { %s11325_s22 = scalar_lea.vmem %s12140_s5, 32  ;;  %p11333_p4 = scmp.lt.s32.totalorder %s12140_s5, %s12140_s5 }
 0x2b6   : > { %p11326_p13 = scmp.ne.s32.totalorder %s12140_s5, %s11325_s22  ;;  %p11334_p6 = scmp.lt.s32.totalorder %s11325_s22, %s11325_s22 }
 0x2b8   : > { %p11328_p0 = pnand %p11326_p13, %p11801_p7  ;;  %p11335_p8 = por %p11334_p6, %p11333_p4 }
 0x2ba   : > { %p11329_p2 = pneg %p11328_p0 }
 0x2bc   : > { %p11336_p9 = pnand %p11335_p8, %p11329_p2 }
 0x2be   : > { %11339 = shalt.err (!%p11336_p9)
}
 0x2bf   : > { %s14121_s16 = sld [smem:[#allocation63_spill]]  ;;  %s12168_s6 = sadd.s32 1, %s11494_s2  }
 0x2c0   : > { %8824 = dma.hbm_to_vmem [thread:$0]  (!%p11789_p5), %s14097_s19, 32, %s12140_s5, [#allocation46]  }
 0x2c1   : > { %s101_s26 = sadd.s32 1, %s11490_s1  ;;  %s98_s9 = ssub.s32 %s11494_s2, %s12168_s6 }
 0x2c2   : > { %p108_p7 = scmp.ne.s32.totalorder %s11490_s1, %s11486_s0  ;;  %p99_p10 = scmp.eq.s32.totalorder %s98_s9, 0 }
 0x2c3   : > { %p109_p3 = scmp.eq.s32.totalorder %s11494_s2, 0  ;;  %p114_p11 = scmp.ne.s32.totalorder %s11486_s0, %s11482_s28 }
 0x2c4   : > { %p8858_p12 = scmp.lt.s32.totalorder %s11494_s2, 2  ;;  %p14122_p13 = scmp.eq.s32.totalorder %s11772_s11, 0 }
 0x2c5   : > { %s12180_s17 = scalar_select %p99_p10, %s11490_s1, %s101_s26  }
 0x2c6   : > { %p110_p1 = por %p109_p3, %p108_p7  ;;  %p12184_p0 = por %p14122_p13, %p114_p11 }
 0x2c7   : > { %s12189_s5 = sand.u32 1, %s11490_s1   ;;  %s8440_s4 = sshll.u32 %s11494_s2, 10 }
 0x2c8   : > { %s14123_s3 = scalar_select %p12184_p0, 1, 0 }
 0x2c9   : > { %s8297_s22 = sshll.u32 %s12189_s5, 6  ;;  %s12194_s9 = scalar_lea.hbm %s14121_s16, %s8440_s4 }
 0x2ca   : > { %s1124_s28 = scalar_lea.vmem [#allocation4], %s8297_s22  ;;  %p12196_p5 = pnand %p8858_p12, %p110_p1 }
 0x2cb   : > { %s1131_s26 = sshll.u32 %s1124_s28, 4  ;;  %s11340_s10 = scalar_lea.hbm %s12194_s9, 1024  ;;  %s12200_s26 = int_to_ptr.vmem [resolvable:$true] %s1131_s26 }
 0x2cc   : > { %p11341_p2 = scmp.ne.s32.totalorder %s12194_s9, %s11340_s10  ;;  %p11342_p4 = pneg %p12196_p5 }
 0x2cd   : > { %s11345_s4 = scalar_lea.hbm %s14121_s16, 2048  ;;  %p11346_p9 = scmp.lt.u32.totalorder %s12194_s9, %s14121_s16 }
 0x2ce   : > { %p11343_p6 = pnand %p11342_p4, %p11341_p2  ;;  %p11347_p7 = scmp.lt.u32.totalorder %s11345_s4, %s11340_s10 }
 0x2cf   : > { %p11349_p3 = scmp.lt.u32.totalorder %s11340_s10, %s12194_s9 }
 0x2d0   : > { %p11344_p8 = pneg %p11343_p6  ;;  %p11348_p10 = por %p11347_p7, %p11346_p9 }
 0x2d2   : > { %p11350_p11 = por %p11349_p3, %p11348_p10 }
 0x2d4   : > { %p11351_p12 = pnand %p11350_p11, %p11344_p8 }
 0x2d6   : > { %11354 = shalt.err (!%p11351_p12)
}
 0x2d7   : > { %s11355_s22 = scalar_lea.vmem %s12200_s26, 1024  ;;  %s11556_s28 = smov [#allocation4]  }
 0x2d8   : > { %p11356_p1 = scmp.ne.s32.totalorder %s12200_s26, %s11355_s22  ;;  %s11360_s8 = sshll.u32 %s11556_s28, 4  ;;  %s11361_s8 = int_to_ptr.vmem [resolvable:$false] %s11360_s8 }
 0x2d9   : > { %s11362_s12 = scalar_lea.vmem %s11361_s8, 2048  ;;  %p11363_p2 = scmp.lt.s32.totalorder %s12200_s26, %s11361_s8 }
 0x2da   : > { %p11358_p13 = pnand %p11356_p1, %p11342_p4  ;;  %p11364_p6 = scmp.lt.s32.totalorder %s11362_s12, %s11355_s22 }
 0x2dc   : > { %p11359_p0 = pneg %p11358_p13  ;;  %p11365_p9 = por %p11364_p6, %p11363_p2 }
 0x2de   : > { %p11366_p7 = pnand %p11365_p9, %p11359_p0 }
 0x2e0   : > { %11369 = shalt.err (!%p11366_p7)
}
 0x2e1   : > { %s11557_s10 = smov 128   ;;  %s14125_s4 = sld [smem:[#allocation64_spill]] }
 0x2e2   : > { %s11558_s28 = smov 8   ;;  %s14126_s13 = scalar_lea.sflag [#allocation5], %s12189_s5 }
 0x2e3   : > { %8828 = dma.hbm_to_vmem [thread:$0]  (!%p12196_p5), %s12194_s9, 1024, %s12200_s26, %s14126_s13, %s11557_s10, %s11557_s10, %s11558_s28  }
 0x2e4   : > { %s1141_s8 = sand.u32 1, %s11494_s2   ;;  %s8300_s12 = sshll.u32 %s12189_s5, 3 }
 0x2e5   : > { %s8301_s22 = sshll.u32 %s11494_s2, 7  ;;  %s1145_s14 = scalar_lea.vmem [#allocation6], %s8300_s12 }
 0x2e6   : > { %s1152_s15 = sshll.u32 %s1145_s14, 4  ;;  %s1142_s18 = scalar_lea.sflag [#allocation7], %s1141_s8  ;;  %s1153_s15 = int_to_ptr.vmem [resolvable:$true] %s1152_s15 }
 0x2e7   : > { %s12230_s16 = scalar_lea.hbm %s14125_s4, %s8301_s22  ;;  %s11375_s13 = scalar_lea.hbm %s14125_s4, 256 }
 0x2e8   : > { %s11370_s19 = scalar_lea.hbm %s12230_s16, 128  ;;  %p11376_p3 = scmp.lt.u32.totalorder %s12230_s16, %s14125_s4 }
 0x2e9   : > { %p11371_p0 = scmp.ne.s32.totalorder %s12230_s16, %s11370_s19  ;;  %p11377_p11 = scmp.lt.u32.totalorder %s11375_s13, %s11370_s19 }
 0x2ea   : > { %p11379_p1 = scmp.lt.u32.totalorder %s11370_s19, %s12230_s16 }
 0x2eb   : > { %p11373_p8 = pnand %p11371_p0, %p11342_p4  ;;  %p11378_p12 = por %p11377_p11, %p11376_p3 }
 0x2ed   : > { %p11374_p10 = pneg %p11373_p8  ;;  %p11380_p13 = por %p11379_p1, %p11378_p12 }
 0x2ef   : > { %p11381_p2 = pnand %p11380_p13, %p11374_p10 }
 0x2f1   : > { %11384 = shalt.err (!%p11381_p2)
}
 0x2f2   : > { %s11385_s14 = scalar_lea.vmem %s1153_s15, 128  ;;  %s11559_s2 = smov [#allocation6]  }
 0x2f3   : > { %p11386_p6 = scmp.ne.s32.totalorder %s1153_s15, %s11385_s14  ;;  %s11390_s5 = sshll.u32 %s11559_s2, 4  ;;  %s11391_s5 = int_to_ptr.vmem [resolvable:$false] %s11390_s5 }
 0x2f4   : > { %s11392_s9 = scalar_lea.vmem %s11391_s5, 256  ;;  %p11393_p0 = scmp.lt.s32.totalorder %s1153_s15, %s11391_s5 }
 0x2f5   : > { %p11388_p9 = pnand %p11386_p6, %p11342_p4  ;;  %p11394_p8 = scmp.lt.s32.totalorder %s11392_s9, %s11385_s14 }
 0x2f7   : > { %p11389_p7 = pneg %p11388_p9  ;;  %p11395_p3 = por %p11394_p8, %p11393_p0 }
 0x2f9   : > { %p11396_p11 = pnand %p11395_p3, %p11389_p7 }
 0x2fb   : > { %11399 = shalt.err (!%p11396_p11)
}
 0x2fc   : > { %8831 = dma.hbm_to_vmem [thread:$0]  (!%p12196_p5), %s12230_s16, 128, %s1153_s15, %s1142_s18  }
 0x2fd   : > { %s14127_s19 = sld [smem:[#allocation90_spill]] }
 0x303   : > { %p14128_p10 = scmp.ne.s32.totalorder %s14127_s19, 0 }
 0x305   : > { %1161 = sbr.rel (%p14128_p10) target bundleno = 3856 (0xf10), region = 148 }
 0x30c   : > { %s1163_s26 = sand.u32 1, %s11486_s0   ;;  %p14129_p4 = scmp.ne.s32.totalorder %s14123_s3, 0 }
 0x30d   : > { %s8303_s10 = sshll.u32 %s1163_s26, 6  ;;  %s1164_s28 = scalar_lea.sflag [#allocation5], %s1163_s26 }
 0x30e   : > { %s12250_s8 = scalar_lea.vmem [#allocation4], %s8303_s10 }
 0x30f   : > { %11417 = dma.done.wait (%p14129_p4), %s1164_s28, 1024  }
 0x310   : > { %11419 = vsyncadd (%p14129_p4), %s1164_s28, 4294966272  ;;  %s1172_s7 = sand.u32 1, %s11772_s11   ;;  %s8304_s12 = sshll.u32 %s1163_s26, 3 }
 0x311   : > { %s1173_s15 = scalar_lea.sflag [#allocation7], %s1172_s7  ;;  %s12257_s18 = scalar_lea.vmem [#allocation6], %s8304_s12 }
 0x312   : > { %11421 = dma.done.wait (%p14129_p4), %s1173_s15, 128  }
 0x313   : > { %11423 = vsyncadd (%p14129_p4), %s1173_s15, 4294967168  ;;  %p14130_p5 = scmp.eq.s32.totalorder %s11772_s11, 0 }
 0x315   : > { %11425 = dma.done.wait (%p14130_p5), [#allocation7], 16   ;;  %p14131_p12 = pmov %p14130_p5 }
 0x316   : > { %p14132_p1 = pmov %p14130_p5 }
 0x317   : > { %11427 = vsyncadd (%p14131_p12), [#allocation7], 4294967280 }
 0x318   : > { %11429 = dma.done.wait (%p14132_p1), [#allocation10], 80   ;;  %p14133_p13 = pmov %p14132_p1 }
 0x319   : > { %p14134_p2 = pmov %p14132_p1 }
 0x31a   : > { %11431 = vsyncadd (%p14133_p13), [#allocation10], 4294967216 }
 0x31b   : > { %11433 = dma.done.wait (%p14134_p2), [#allocation13], 32   ;;  %p14135_p6 = pmov %p14132_p1 }
 0x31c   : > { %p14136_p9 = pmov %p14132_p1 }
 0x31d   : > { %11435 = vsyncadd (%p14135_p6), [#allocation13], 4294967264 }
 0x31e   : > { %11437 = dma.done.wait (%p14136_p9), [#allocation16], 912   ;;  %p14137_p7 = pmov %p14132_p1 }
 0x31f   : > { %p14138_p0 = pmov %p14132_p1 }
 0x320   : > { %11439 = vsyncadd (%p14137_p7), [#allocation16], 4294966384 }
 0x321   : > { %11441 = dma.done.wait (%p14138_p0), [#allocation19], 48   ;;  %p14139_p8 = pmov %p14138_p0 }
 0x322   : > { %p14140_p3 = pmov %p14138_p0 }
 0x323   : > { %11443 = vsyncadd (%p14139_p8), [#allocation19], 4294967248 }
 0x324   : > { %11445 = dma.done.wait (%p14140_p3), [#allocation22], 32   ;;  %p14141_p11 = pmov %p14138_p0 }
 0x325   : > { %p14142_p10 = pmov %p14138_p0 }
 0x326   : > { %11447 = vsyncadd (%p14141_p11), [#allocation22], 4294967264 }
 0x327   : > { %11449 = dma.done.wait (%p14142_p10), [#allocation25], 80   ;;  %p14143_p4 = pmov %p14138_p0 }
 0x328   : > { %p14144_p5 = pmov %p14138_p0 }
 0x329   : > { %11451 = vsyncadd (%p14143_p4), [#allocation25], 4294967216 }
 0x32a   : > { %11453 = dma.done.wait (%p14144_p5), [#allocation28], 32   ;;  %p14145_p12 = pmov %p14138_p0 }
 0x32b   : > { %p14146_p1 = pmov %p14138_p0 }
 0x32c   : > { %11455 = vsyncadd (%p14145_p12), [#allocation28], 4294967264 }
 0x32d   : > { %11457 = dma.done.wait (%p14146_p1), [#allocation31], 32   ;;  %p14147_p13 = pmov %p14138_p0 }
 0x32e   : > { %p14148_p2 = pmov %p14138_p0 }
 0x32f   : > { %11459 = vsyncadd (%p14147_p13), [#allocation31], 4294967264 }
 0x330   : > { %11461 = dma.done.wait (%p14148_p2), [#allocation34], 48   ;;  %p14149_p6 = pmov %p14138_p0 }
 0x331   : > { %p14150_p9 = pmov %p14138_p0 }
 0x332   : > { %11463 = vsyncadd (%p14149_p6), [#allocation34], 4294967248 }
 0x333   : > { %11465 = dma.done.wait (%p14150_p9), [#allocation37], 32   ;;  %p14151_p7 = pmov %p14138_p0 }
 0x335   : > { %11467 = vsyncadd (%p14151_p7), [#allocation37], 4294967264 }
 0x336   : > { %11469 = dma.done.wait (%p14138_p0), [#allocation40], 32   ;;  %p14152_p8 = pmov %p14138_p0 }
 0x337   : > { %p14153_p3 = pmov %p14138_p0 }
 0x338   : > { %11471 = vsyncadd (%p14152_p8), [#allocation40], 4294967264 }
 0x339   : > { %11473 = dma.done.wait (%p14153_p3), [#allocation43], 32   ;;  %p14154_p11 = pmov %p14138_p0 }
 0x33a   : > { %p14155_p10 = pmov %p14138_p0 }
 0x33b   : > { %11475 = vsyncadd (%p14154_p11), [#allocation43], 4294967264 }
 0x33c   : > { %11477 = dma.done.wait (%p14155_p10), [#allocation46], 32   ;;  %p14156_p4 = pmov %p14138_p0 }
 0x33d   : > { %vm1370_vm0 = vcmask 29696   ;;  %v14063_v0 = vmov 0.0   ;;  %vm14052_vm1 = vcmask 27648   ;;  %vm1488_vm2 = vcmask 1043456   ;;  %v1474_v1 = vld [vmem:[#allocation11] sm:$0xf] }
 0x33e   : > { %11479 = vsyncadd (%p14156_p4), [#allocation46], 4294967264  ;;  %1401 = vst.msk [vmem:[#allocation2 + $0xf0] sm:$0x3f] %vm1370_vm0, %v14063_v0  ;;  %v1424_v2 = vld [vmem:[%s12250_s8] sm:$0xff]  ;;  %v1425_v3 = vld [vmem:[%s12250_s8 + $0x8] sm:$0xff]  ;;  %8632 = vmatprep.subr.msk.bf16.mxu1 %vm1488_vm2, %v1474_v1 }
 0x33f   : > { %1402 = vst.msk [vmem:[#allocation2 + $0xf8] sm:$0x3f] %vm1370_vm0, %v14063_v0  ;;  %1403 = vst.msk [vmem:[#allocation2 + $0x100] sm:$0x3f] %vm1370_vm0, %v14063_v0  ;;  %v1490_v4 = vsel %vm1488_vm2, %v1474_v1, 0  ;;  %v1426_v7 = vld [vmem:[%s12250_s8 + $0x10] sm:$0xff] }
 0x340   : > { %1404 = vst.msk [vmem:[#allocation2 + $0x108] sm:$0x3f] %vm1370_vm0, %v14063_v0  ;;  %1371 = vst.msk [vmem:[#allocation2] sm:$0x3f] %vm1370_vm0, %v14063_v0  ;;  %v8332_v5 = vld [vmem:[#allocation8] ss:$0 sm:$0xff]  ;;  %8501 = vmatpush3.bf16.msra.mxu1 %v1490_v4 }
 0x341   : > { %1372 = vst.msk [vmem:[#allocation2 + $0x8] sm:$0x3f] %vm1370_vm0, %v14063_v0  ;;  %1373 = vst.msk [vmem:[#allocation2 + $0x10] sm:$0x3f] %vm1370_vm0, %v14063_v0  ;;  %v8333_v6 = vld [vmem:[#allocation9] ss:$0 sm:$0xff]  ;;  %v1439_v8 = vmul.f32 %v8332_v5, %v1424_v2  ;;  %v1440_v9 = vmul.f32 %v8332_v5, %v1425_v3  ;;  %v1441_v11 = vmul.f32 %v8332_v5, %v1426_v7 }
 0x342   : > { %1374 = vst.msk [vmem:[#allocation2 + $0x18] sm:$0x3f] %vm1370_vm0, %v14063_v0  ;;  %1375 = vst.msk [vmem:[#allocation2 + $0x20] sm:$0x3f] %vm1370_vm0, %v14063_v0  ;;  %v1427_v10 = vld [vmem:[%s12250_s8 + $0x18] sm:$0xff]  ;;  %v1428_v12 = vld [vmem:[%s12250_s8 + $0x20] sm:$0xff] }
 0x343   : > { %1376 = vst.msk [vmem:[#allocation2 + $0x28] sm:$0x3f] %vm1370_vm0, %v14063_v0  ;;  %1377 = vst.msk [vmem:[#allocation2 + $0x30] sm:$0x3f] %vm1370_vm0, %v14063_v0  ;;  %v1429_v13 = vld [vmem:[%s12250_s8 + $0x28] sm:$0xff]  ;;  %vm1475_vm3 = vcmask 64512   ;;  %v1442_v14 = vmul.f32 %v8332_v5, %v1427_v10  ;;  %v1443_v15 = vmul.f32 %v8332_v5, %v1428_v12  ;;  %v1454_v19 = vadd.f32 %v8333_v6, %v1439_v8 }
 0x344   : > { %1378 = vst.msk [vmem:[#allocation2 + $0x38] sm:$0x3f] %vm1370_vm0, %v14063_v0  ;;  %1379 = vst.msk [vmem:[#allocation2 + $0x40] sm:$0x3f] %vm1370_vm0, %v14063_v0  ;;  %v1444_v16 = vmul.f32 %v8332_v5, %v1429_v13  ;;  %v1430_v17 = vld [vmem:[%s12250_s8 + $0x30] sm:$0xff]  ;;  %v1431_v18 = vld [vmem:[%s12250_s8 + $0x38] sm:$0xff]  ;;  %v1455_v20 = vadd.f32 %v8333_v6, %v1440_v9  ;;  %v1456_v21 = vadd.f32 %v8333_v6, %v1441_v11 }
 0x345   : > { %1380 = vst.msk [vmem:[#allocation2 + $0x48] sm:$0x3f] %vm1370_vm0, %v14063_v0  ;;  %1381 = vst.msk [vmem:[#allocation2 + $0x50] sm:$0x3f] %vm1370_vm0, %v14063_v0  ;;  %v1445_v22 = vmul.f32 %v8332_v5, %v1430_v17  ;;  %v1457_v23 = vadd.f32 %v8333_v6, %v1442_v14  ;;  %v1458_v24 = vadd.f32 %v8333_v6, %v1443_v15  ;;  %v1462_v29 = vmax.f32 %v1454_v19, 0.0  ;;  %s11561_s16 = smov 8  }
 0x346   : > { %1382 = vst.msk [vmem:[#allocation2 + $0x58] sm:$0x3f] %vm1370_vm0, %v14063_v0  ;;  %1383 = vst.msk [vmem:[#allocation2 + $0x60] sm:$0x3f] %vm1370_vm0, %v14063_v0  ;;  %v1459_v25 = vadd.f32 %v8333_v6, %v1444_v16  ;;  %v1446_v26 = vmul.f32 %v8332_v5, %v1431_v18  ;;  %v10040_v27 = vld [vmem:[#allocation2 + $0xf0] ss:$8 sps:$4 sm:$0xff]  }
 0x347   : > { %1384 = vst.msk [vmem:[#allocation2 + $0x68] sm:$0x3f] %vm1370_vm0, %v14063_v0  ;;  %1385 = vst.msk [vmem:[#allocation2 + $0x70] sm:$0x3f] %vm1370_vm0, %v14063_v0  ;;  %v10041_v28 = vld [vmem:[#allocation2 + $0x100] ss:$8 sps:$4 sm:$0xff]   ;;  %v1460_v32 = vadd.f32 %v8333_v6, %v1445_v22 }
 0x348   : > { %1386 = vst.msk [vmem:[#allocation2 + $0x78] sm:$0x3f] %vm1370_vm0, %v14063_v0  ;;  %1387 = vst.msk [vmem:[#allocation2 + $0x80] sm:$0x3f] %vm1370_vm0, %v14063_v0  ;;  %v1463_v30 = vmax.f32 %v1455_v20, 0.0  ;;  %v1464_v31 = vmax.f32 %v1456_v21, 0.0  ;;  %v1461_v36 = vadd.f32 %v8333_v6, %v1446_v26  ;;  %v9000_v38 = vpack.i.bf16 %v10041_v28, %v10040_v27 }
 0x349   : > { %1388 = vst.msk [vmem:[#allocation2 + $0x88] sm:$0x3f] %vm1370_vm0, %v14063_v0  ;;  %1389 = vst.msk [vmem:[#allocation2 + $0x90] sm:$0x3f] %vm1370_vm0, %v14063_v0  ;;  %v1465_v33 = vmax.f32 %v1457_v23, 0.0  ;;  %v1466_v34 = vmax.f32 %v1458_v24, 0.0 }
 0x34a   : > { %1390 = vst.msk [vmem:[#allocation2 + $0x98] sm:$0x3f] %vm1370_vm0, %v14063_v0  ;;  %1391 = vst.msk [vmem:[#allocation2 + $0xa0] sm:$0x3f] %vm1370_vm0, %v14063_v0  ;;  %v1467_v35 = vmax.f32 %v1459_v25, 0.0  ;;  %v1470_v37 = vpack.c.bf16 %v1463_v30, %v1462_v29  ;;  %v1468_v42 = vmax.f32 %v1460_v32, 0.0  ;;  %9001 = vrot.lane.b32.xlu0 %v9000_v38, %s11561_s16 }
 0x34b   : > { %1392 = vst.msk [vmem:[#allocation2 + $0xa8] sm:$0x3f] %vm1370_vm0, %v14063_v0  ;;  %1393 = vst.msk [vmem:[#allocation2 + $0xb0] sm:$0x3f] %vm1370_vm0, %v14063_v0  ;;  %v10042_v39 = vld [vmem:[#allocation2 + $0x1] ss:$8 sps:$4 sm:$0xff]   ;;  %v1471_v40 = vpack.c.bf16 %v1465_v33, %v1464_v31 }
 0x34c   : > { %1394 = vst.msk [vmem:[#allocation2 + $0xb8] sm:$0x3f] %vm1370_vm0, %v14063_v0  ;;  %1395 = vst.msk [vmem:[#allocation2 + $0xc0] sm:$0x3f] %vm1370_vm0, %v14063_v0  ;;  %v1472_v41 = vpack.c.bf16 %v1467_v35, %v1466_v34  ;;  %v1469_v43 = vmax.f32 %v1461_v36, 0.0  ;;  %8502 = vmatprep.mubr.msk.bf16.mxu1 %vm1475_vm3, %v1470_v37  ;;  %s11562_s3 = smov 4  }
 0x34d   : > { %1396 = vst.msk [vmem:[#allocation2 + $0xc8] sm:$0x3f] %vm1370_vm0, %v14063_v0  ;;  %1397 = vst.msk [vmem:[#allocation2 + $0xd0] sm:$0x3f] %vm1370_vm0, %v14063_v0  ;;  %v10043_v44 = vld [vmem:[#allocation2 + $0x11] ss:$8 sps:$4 sm:$0xff]   ;;  %8503 = vmatmul.mubr.msk.bf16.vlgmr.msra.gmra.mrb[0].mxu1 %vm1475_vm3, %v1471_v40 }
 0x34e   : > { %1398 = vst.msk [vmem:[#allocation2 + $0xd8] sm:$0x3f] %vm1370_vm0, %v14063_v0  ;;  %1399 = vst.msk [vmem:[#allocation2 + $0xe0] sm:$0x3f] %vm1370_vm0, %v14063_v0  ;;  %v9045_v45 = vpack.i.bf16 %v10043_v44, %v10042_v39  ;;  %v10044_v46 = vld [vmem:[#allocation2 + $0x2] ss:$8 sps:$4 sm:$0xff]   ;;  %8506 = vmatprep.mubr.msk.bf16.mxu1 %vm1475_vm3, %v1472_v41  ;;  %v1473_v51 = vpack.c.bf16 %v1469_v43, %v1468_v42 }
 0x34f   : > { %1400 = vst.msk [vmem:[#allocation2 + $0xe8] sm:$0x3f] %vm1370_vm0, %v14063_v0  ;;  %1405 = vst.msk [vmem:[#allocation2 + $0x110] sm:$0x3f] %vm1370_vm0, %v14063_v0  ;;  %v10045_v47 = vld [vmem:[#allocation2 + $0x12] ss:$8 sps:$4 sm:$0xff]  }
 0x350   : > { %1406 = vst.msk [vmem:[#allocation2 + $0x118] sm:$0x3f] %vm1370_vm0, %v14063_v0  ;;  %v10046_v48 = vld [vmem:[#allocation2 + $0x8] ss:$8 sps:$4 sm:$0xff]   ;;  %v10047_v49 = vld [vmem:[#allocation2 + $0x18] ss:$8 sps:$4 sm:$0xff]   ;;  %9046 = vrot.lane.b32.xlu0 %v9045_v45, %s11562_s3  ;;  %v9050_v50 = vpack.i.bf16 %v10045_v47, %v10044_v46 }
 0x351   : > { %1408 = vst.msk [vmem:[#allocation3] sm:$0xf] %vm14052_vm1, %v14063_v0  ;;  %1409 = vst.msk [vmem:[#allocation3 + $0x4] sm:$0xf] %vm14052_vm1, %v14063_v0  ;;  %v10048_v52 = vld [vmem:[#allocation2 + $0x9] ss:$8 sps:$4 sm:$0xff]   ;;  %v9055_v54 = vpack.i.bf16 %v10047_v49, %v10046_v48 }
 0x352   : > { %1410 = vst.msk [vmem:[#allocation3 + $0x8] sm:$0xf] %vm14052_vm1, %v14063_v0  ;;  %1411 = vst.msk [vmem:[#allocation3 + $0xc] sm:$0xf] %vm14052_vm1, %v14063_v0  ;;  %v10049_v53 = vld [vmem:[#allocation2 + $0x19] ss:$8 sps:$4 sm:$0xff]  }
 0x353   : > { %1412 = vst.msk [vmem:[#allocation3 + $0x10] sm:$0xf] %vm14052_vm1, %v14063_v0  ;;  %1413 = vst.msk [vmem:[#allocation3 + $0x14] sm:$0xf] %vm14052_vm1, %v14063_v0  ;;  %v10050_v55 = vld [vmem:[#allocation2 + $0xa] ss:$8 sps:$4 sm:$0xff]   ;;  %v9060_v59 = vpack.i.bf16 %v10049_v53, %v10048_v52 }
 0x354   : > { %1414 = vst.msk [vmem:[#allocation3 + $0x18] sm:$0xf] %vm14052_vm1, %v14063_v0  ;;  %1415 = vst.msk [vmem:[#allocation3 + $0x1c] sm:$0xf] %vm14052_vm1, %v14063_v0  ;;  %9051 = vrot.lane.b32.xlu0 %v9050_v50, %s11561_s16  ;;  %v10051_v56 = vld [vmem:[#allocation2 + $0x1a] ss:$8 sps:$4 sm:$0xff]  }
 0x355   : > { %1416 = vst.msk [vmem:[#allocation3 + $0x20] sm:$0xf] %vm14052_vm1, %v14063_v0  ;;  %1417 = vst.msk [vmem:[#allocation3 + $0x24] sm:$0xf] %vm14052_vm1, %v14063_v0  ;;  %8507 = vmatmul.mubr.msk.bf16.gmra.mrb[4].mxu1 %vm1475_vm3, %v1473_v51  ;;  %v10054_v57 = vld [vmem:[#allocation2 + $0xf1] ss:$8 sps:$4 sm:$0xff]   ;;  %v9065_v2 = vpack.i.bf16 %v10051_v56, %v10050_v55 }
 0x356   : > { %1418 = vst.msk [vmem:[#allocation3 + $0x28] sm:$0xf] %vm14052_vm1, %v14063_v0  ;;  %1419 = vst.msk [vmem:[#allocation3 + $0x2c] sm:$0xf] %vm14052_vm1, %v14063_v0  ;;  %v10055_v58 = vld [vmem:[#allocation2 + $0x101] ss:$8 sps:$4 sm:$0xff]  }
 0x357   : > { %1420 = vst.msk [vmem:[#allocation3 + $0x30] sm:$0xf] %vm14052_vm1, %v14063_v0  ;;  %1421 = vst.msk [vmem:[#allocation3 + $0x34] sm:$0xf] %vm14052_vm1, %v14063_v0  ;;  %s11563_s22 = smov 12   ;;  %v9005_v60 = vpack.i.bf16 %v10055_v58, %v10054_v57  ;;  %s11564_s13 = smov 16  }
 0x358   : > { %1422 = vst.msk [vmem:[#allocation3 + $0x38] sm:$0xf] %vm14052_vm1, %v14063_v0  ;;  %1423 = vst.msk [vmem:[#allocation3 + $0x3c] sm:$0xf] %vm14052_vm1, %v14063_v0  ;;  %9056 = vrot.lane.b32.xlu0 %v9055_v54, %s11563_s22  ;;  %v10052_v61 = vld [vmem:[#allocation2 + $0x10] ss:$8 sps:$4 sm:$0xff]  }
 0x359   : > { %v10053_v62 = vld [vmem:[#allocation2 + $0x20] ss:$8 sps:$4 sm:$0xff]   ;;  %9006 = vrot.lane.b32.xlu1 %v9005_v60, %s11563_s22  ;;  %v10058_v63 = vld [vmem:[#allocation2 + $0xf2] ss:$8 sps:$4 sm:$0xff]   ;;  %s11565_s14 = smov 20   ;;  %s11566_s2 = smov 24  }
 0x35a   : > { %v10059_v1 = vld [vmem:[#allocation2 + $0x102] ss:$8 sps:$4 sm:$0xff]   ;;  %v10056_v4 = vld [vmem:[#allocation2 + $0x11] ss:$8 sps:$4 sm:$0xff]   ;;  %v9070_v8 = vpack.i.bf16 %v10053_v62, %v10052_v61  ;;  %s11567_s5 = smov 28   ;;  %s11568_s9 = smov 32  }
 0x35b   : > { %v9010_v3 = vpack.i.bf16 %v10059_v1, %v10058_v63  ;;  %v10057_v5 = vld [vmem:[#allocation2 + $0x21] ss:$8 sps:$4 sm:$0xff]   ;;  %v10060_v10 = vld [vmem:[#allocation2 + $0x12] ss:$8 sps:$4 sm:$0xff]   ;;  %s11569_s19 = smov 36   ;;  %s11570_s26 = smov 40  }
 0x35c   : > { %9061 = vrot.lane.b32.xlu0 %v9060_v59, %s11564_s13  ;;  %v10062_v6 = vld [vmem:[#allocation2 + $0xf8] ss:$8 sps:$4 sm:$0xff]   ;;  %v10063_v7 = vld [vmem:[#allocation2 + $0x108] ss:$8 sps:$4 sm:$0xff]   ;;  %v9075_v12 = vpack.i.bf16 %v10057_v5, %v10056_v4  ;;  %s11571_s10 = smov 44   ;;  %s11572_s28 = smov 48  }
 0x35d   : > { %9011 = vrot.lane.b32.xlu1 %v9010_v3, %s11564_s13  ;;  %v9015_v9 = vpack.i.bf16 %v10063_v7, %v10062_v6  ;;  %v10061_v11 = vld [vmem:[#allocation2 + $0x22] ss:$8 sps:$4 sm:$0xff]   ;;  %v10069_v21 = vld [vmem:[#allocation2 + $0x110] ss:$8 sps:$4 sm:$0xff]   ;;  %s14048_s7 = smov 52   ;;  %s14066_s12 = smov 56  }
 0x35e   : > { %v9080_v13 = vpack.i.bf16 %v10061_v11, %v10060_v10  ;;  %v10064_v14 = vld [vmem:[#allocation2 + $0xf9] ss:$8 sps:$4 sm:$0xff]   ;;  %v10065_v15 = vld [vmem:[#allocation2 + $0x109] ss:$8 sps:$4 sm:$0xff]   ;;  %v12454_v29 = vld [vmem:[#allocation12] ss:$0 sm:$0xff] }
 0x35f   : > { %v9020_v16 = vpack.i.bf16 %v10065_v15, %v10064_v14  ;;  %v10066_v17 = vld [vmem:[#allocation2 + $0xfa] ss:$8 sps:$4 sm:$0xff]   ;;  %v10067_v18 = vld [vmem:[#allocation2 + $0x10a] ss:$8 sps:$4 sm:$0xff]   ;;  %s14069_s15 = smov 60   ;;  %vm2827_vm4 = vcmask 31744  }
 0x360   : > { %9066 = vrot.lane.b32.xlu0 %v9065_v2, %s11565_s14  ;;  %v9025_v19 = vpack.i.bf16 %v10067_v18, %v10066_v17  ;;  %v10068_v20 = vld [vmem:[#allocation2 + $0x100] ss:$8 sps:$4 sm:$0xff]   ;;  %v10071_v24 = vld [vmem:[#allocation2 + $0x111] ss:$8 sps:$4 sm:$0xff]   ;;  %vm2844_vm5 = vcmask 97280   ;;  %vm2853_vm6 = vcmask 130048  }
 0x361   : > { %9016 = vrot.lane.b32.xlu1 %v9015_v9, %s11565_s14  ;;  %v9030_v22 = vpack.i.bf16 %v10069_v21, %v10068_v20  ;;  %v10070_v23 = vld [vmem:[#allocation2 + $0x101] ss:$8 sps:$4 sm:$0xff]   ;;  %v10073_v27 = vld [vmem:[#allocation2 + $0x112] ss:$8 sps:$4 sm:$0xff]   ;;  %vm2862_vm7 = vcmask 162816   ;;  %vm2871_vm8 = vcmask 195584  }
 0x362   : > { %v9035_v25 = vpack.i.bf16 %v10071_v24, %v10070_v23  ;;  %v10072_v26 = vld [vmem:[#allocation2 + $0x102] ss:$8 sps:$4 sm:$0xff]   ;;  %v12456_v31 = vld [vmem:[#allocation14] ss:$0 sm:$0xff]  ;;  %vm14068_vm9 = vcmask 228352   ;;  %vm14067_vm10 = vcmask 261120  }
 0x363   : > { %v9040_v28 = vpack.i.bf16 %v10073_v27, %v10072_v26  ;;  %vm14058_vm11 = vcmask 293888   ;;  %vm14057_vm12 = vcmask 326656   ;;  %vm14051_vm13 = vcmask 1045504   ;;  %p1365_p5 = scmp.lt.s32.totalorder %s11772_s11, 1 }
 0x364   : > { %9071 = vrot.lane.b32.xlu0 %v9070_v8, %s11566_s2  ;;  %vm14050_vm14 = vcmask 1041408   ;;  %vm14056_vm15 = vcmask 359424   ;;  %vm2925_vm0 = vcmask 392192  }
 0x365   : > { %9021 = vrot.lane.b32.xlu1 %v9020_v16, %s11566_s2  ;;  %s14296_s11 = smov (!%p1365_p5, %s11772_s11), 1 }
 0x368   : > { %9076 = vrot.lane.b32.xlu0 %v9075_v12, %s11567_s5 }
 0x369   : > { %9026 = vrot.lane.b32.xlu1 %v9025_v19, %s11567_s5 }
 0x36c   : > { %9081 = vrot.lane.b32.xlu0 %v9080_v13, %s11568_s9 }
 0x36d   : > { %9031 = vrot.lane.b32.xlu1 %v9030_v22, %s11568_s9 }
 0x371   : > { %9036 = vrot.lane.b32.xlu1 %v9035_v25, %s11569_s19 }
 0x375   : > { %9041 = vrot.lane.b32.xlu1 %v9040_v28, %s11570_s26 }
 0x420   : > { %v8504_v30 = vpop.f32.mrb[0].mxu1 }
 0x421   : > { %v1566_v32 = vmul.f32 %v8504_v30, %v12454_v29  ;;  %v1526_v33 = vpop.f32.mrb[1].mxu1 }
 0x422   : > { %v1564_v34 = vmul.f32 %v12454_v29, %v1526_v33  ;;  %v8505_v35 = vpop.f32.mrb[2].mxu1 }
 0x423   : > { %v1581_v36 = vadd.f32 %v12456_v31, %v1566_v32  ;;  %v1567_v37 = vmul.f32 %v8505_v35, %v12454_v29  ;;  %v1529_v38 = vpop.f32.mrb[3].mxu1 }
 0x424   : > { %v1579_v39 = vadd.f32 %v12456_v31, %v1564_v34  ;;  %v1565_v40 = vmul.f32 %v12454_v29, %v1529_v38 }
 0x425   : > { %v1589_v41 = vmax.f32 %v1581_v36, 0.0  ;;  %v1582_v42 = vadd.f32 %v12456_v31, %v1567_v37 }
 0x426   : > { %v1587_v43 = vmax.f32 %v1579_v39, 0.0  ;;  %v1580_v44 = vadd.f32 %v12456_v31, %v1565_v40 }
 0x427   : > { %v1605_v45 = vcombine.high %v1589_v41, %v1589_v41  ;;  %1624 = vst.msk [vmem:[#allocation2 + $0x69] sm:$0xf] %vm14052_vm1, %v1589_v41  ;;  %v1590_v46 = vmax.f32 %v1582_v42, 0.0 }
 0x428   : > { %v1603_v47 = vcombine.high %v1587_v43, %v1587_v43  ;;  %1620 = vst.msk [vmem:[#allocation2 + $0x39] sm:$0xf] %vm14052_vm1, %v1587_v43  ;;  %v1588_v48 = vmax.f32 %v1580_v44, 0.0  ;;  %v8508_v49 = vpop.f32.mrb[4].mxu1 }
 0x429   : > { %1625 = vst.msk [vmem:[#allocation2 + $0x71] sm:$0xf] %vm14052_vm1, %v1605_v45  ;;  %v1606_v50 = vcombine.high %v1590_v46, %v1590_v46  ;;  %1626 = vst.msk [vmem:[#allocation2 + $0x79] sm:$0xf] %vm14052_vm1, %v1590_v46  ;;  %v1570_v51 = vmul.f32 %v8508_v49, %v12454_v29  ;;  %v1542_v52 = vpop.f32.mrb[5].mxu1 }
 0x42a   : > { %1621 = vst.msk [vmem:[#allocation2 + $0x41] sm:$0xf] %vm14052_vm1, %v1603_v47  ;;  %v1604_v53 = vcombine.high %v1588_v48, %v1588_v48  ;;  %1622 = vst.msk [vmem:[#allocation2 + $0x49] sm:$0xf] %vm14052_vm1, %v1588_v48  ;;  %v8509_v54 = vpop.f32.mrb[6].mxu1  ;;  %v1568_v14 = vmul.f32 %v12454_v29, %v1542_v52 }
 0x42b   : > { %1627 = vst.msk [vmem:[#allocation2 + $0x81] sm:$0xf] %vm14052_vm1, %v1606_v50  ;;  %v1585_v55 = vadd.f32 %v12456_v31, %v1570_v51  ;;  %v1545_v56 = vpop.f32.mrb[7].mxu1  ;;  %v1571_v15 = vmul.f32 %v8509_v54, %v12454_v29 }
 0x42c   : > { %1623 = vst.msk [vmem:[#allocation2 + $0x51] sm:$0xf] %vm14052_vm1, %v1604_v53  ;;  %v1583_v22 = vadd.f32 %v12456_v31, %v1568_v14  ;;  %v1569_v24 = vmul.f32 %v12454_v29, %v1545_v56 }
 0x42d   : > { %v1593_v57 = vmax.f32 %v1585_v55, 0.0  ;;  %v1586_v23 = vadd.f32 %v12456_v31, %v1571_v15 }
 0x42e   : > { %v10074_v58 = vld [vmem:[#allocation2 + $0x60] ss:$8 sps:$4 sm:$0xff]   ;;  %v1591_v33 = vmax.f32 %v1583_v22, 0.0  ;;  %v1584_v35 = vadd.f32 %v12456_v31, %v1569_v24 }
 0x42f   : > { %v10076_v59 = vld [vmem:[#allocation2 + $0x61] ss:$8 sps:$4 sm:$0xff]   ;;  %v1609_v60 = vcombine.high %v1593_v57, %v1593_v57  ;;  %1632 = vst.msk [vmem:[#allocation2 + $0xc9] sm:$0xf] %vm14052_vm1, %v1593_v57  ;;  %v10086_v18 = vld [vmem:[#allocation2 + $0x31] ss:$8 sps:$4 sm:$0xff]  }
 0x430   : > { %v10075_v61 = vld [vmem:[#allocation2 + $0x70] ss:$8 sps:$4 sm:$0xff]   ;;  %v10078_v3 = vld [vmem:[#allocation2 + $0x61] ss:$8 sps:$4 sm:$0xff]   ;;  %v1594_v34 = vmax.f32 %v1586_v23, 0.0  ;;  %v1607_v29 = vcombine.high %v1591_v33, %v1591_v33  ;;  %v1592_v31 = vmax.f32 %v1584_v35, 0.0 }
 0x431   : > { %v10077_v62 = vld [vmem:[#allocation2 + $0x71] ss:$8 sps:$4 sm:$0xff]   ;;  %1633 = vst.msk [vmem:[#allocation2 + $0xd1] sm:$0xf] %vm14052_vm1, %v1609_v60  ;;  %v9085_v63 = vpack.i.bf16 %v10075_v61, %v10074_v58  ;;  %v10080_v5 = vld [vmem:[#allocation2 + $0x62] ss:$8 sps:$4 sm:$0xff]  }
 0x432   : > { %v10079_v1 = vld [vmem:[#allocation2 + $0x71] ss:$8 sps:$4 sm:$0xff]   ;;  %v9090_v2 = vpack.i.bf16 %v10077_v62, %v10076_v59  ;;  %v10082_v9 = vld [vmem:[#allocation2 + $0x62] ss:$8 sps:$4 sm:$0xff]   ;;  %1628 = vst.msk [vmem:[#allocation2 + $0x99] sm:$0xf] %vm14052_vm1, %v1591_v33  ;;  %v1610_v39 = vcombine.high %v1594_v34, %v1594_v34  ;;  %v1608_v46 = vcombine.high %v1592_v31, %v1592_v31 }
 0x433   : > { %9086 = vrot.lane.b32.xlu1 %v9085_v63, %s11561_s16  ;;  %v10081_v4 = vld [vmem:[#allocation2 + $0x72] ss:$8 sps:$4 sm:$0xff]   ;;  %v9100_v6 = vpack.i.bf16 %v10079_v1, %v10078_v3  ;;  %v10084_v11 = vld [vmem:[#allocation2 + $0x60] ss:$8 sps:$4 sm:$0xff]   ;;  %1634 = vst.msk [vmem:[#allocation2 + $0xd9] sm:$0xf] %vm14052_vm1, %v1594_v34 }
 0x434   : > { %9091 = vrot.lane.b32.xlu0 %v9090_v2, %s11563_s22  ;;  %v10083_v7 = vld [vmem:[#allocation2 + $0x72] ss:$8 sps:$4 sm:$0xff]   ;;  %v9095_v8 = vpack.i.bf16 %v10081_v4, %v10080_v5  ;;  %v10087_v13 = vld [vmem:[#allocation2 + $0x41] ss:$8 sps:$4 sm:$0xff]   ;;  %1629 = vst.msk [vmem:[#allocation2 + $0xa1] sm:$0xf] %vm14052_vm1, %v1607_v29 }
 0x435   : > { %v10085_v10 = vld [vmem:[#allocation2 + $0x70] ss:$8 sps:$4 sm:$0xff]   ;;  %v9105_v12 = vpack.i.bf16 %v10083_v7, %v10082_v9  ;;  %v10088_v19 = vld [vmem:[#allocation2 + $0x61] ss:$8 sps:$4 sm:$0xff]   ;;  %v9125_v20 = vpack.i.bf16 %v10087_v13, %v10086_v18  ;;  %1635 = vst.msk [vmem:[#allocation2 + $0xe1] sm:$0xf] %vm14052_vm1, %v1610_v39 }
 0x436   : > { %v9110_v16 = vpack.i.bf16 %v10085_v10, %v10084_v11  ;;  %v10089_v17 = vld [vmem:[#allocation2 + $0x71] ss:$8 sps:$4 sm:$0xff]   ;;  %v10091_v21 = vld [vmem:[#allocation2 + $0x42] ss:$8 sps:$4 sm:$0xff]   ;;  %1630 = vst.msk [vmem:[#allocation2 + $0xa9] sm:$0xf] %vm14052_vm1, %v1592_v31 }
 0x437   : > { %9101 = vrot.lane.b32.xlu1 %v9100_v6, %s11562_s3  ;;  %v9115_v25 = vpack.i.bf16 %v10089_v17, %v10088_v19  ;;  %v10093_v26 = vld [vmem:[#allocation2 + $0x72] ss:$8 sps:$4 sm:$0xff]   ;;  %v10092_v28 = vld [vmem:[#allocation2 + $0x62] ss:$8 sps:$4 sm:$0xff]   ;;  %1631 = vst.msk [vmem:[#allocation2 + $0xb1] sm:$0xf] %vm14052_vm1, %v1608_v46 }
 0x438   : > { %9096 = vrot.lane.b32.xlu0 %v9095_v8, %s11564_s13  ;;  %v10090_v27 = vld [vmem:[#allocation2 + $0x32] ss:$8 sps:$4 sm:$0xff]   ;;  %v10095_v30 = vld [vmem:[#allocation2 + $0x40] ss:$8 sps:$4 sm:$0xff]   ;;  %v9120_v36 = vpack.i.bf16 %v10093_v26, %v10092_v28  ;;  %vm14055_vm1 = vcmask 523264  }
 0x439   : > { %v9130_v32 = vpack.i.bf16 %v10091_v21, %v10090_v27  ;;  %v10094_v37 = vld [vmem:[#allocation2 + $0x30] ss:$8 sps:$4 sm:$0xff]   ;;  %v10097_v38 = vld [vmem:[#allocation2 + $0x82] ss:$8 sps:$4 sm:$0xff]  }
 0x43a   : > { %v10096_v40 = vld [vmem:[#allocation2 + $0x72] ss:$8 sps:$4 sm:$0xff]   ;;  %v10099_v41 = vld [vmem:[#allocation2 + $0x41] ss:$8 sps:$4 sm:$0xff]   ;;  %v9135_v42 = vpack.i.bf16 %v10095_v30, %v10094_v37 }
 0x43b   : > { %9106 = vrot.lane.b32.xlu1 %v9105_v12, %s11561_s16  ;;  %v9150_v43 = vpack.i.bf16 %v10097_v38, %v10096_v40  ;;  %v10098_v44 = vld [vmem:[#allocation2 + $0x31] ss:$8 sps:$4 sm:$0xff]   ;;  %v10103_v48 = vld [vmem:[#allocation2 + $0x42] ss:$8 sps:$4 sm:$0xff]  }
 0x43c   : > { %9111 = vrot.lane.b32.xlu0 %v9110_v16, %s11569_s19  ;;  %v10101_v45 = vld [vmem:[#allocation2 + $0x78] ss:$8 sps:$4 sm:$0xff]   ;;  %v10100_v47 = vld [vmem:[#allocation2 + $0x68] ss:$8 sps:$4 sm:$0xff]   ;;  %v9140_v49 = vpack.i.bf16 %v10099_v41, %v10098_v44 }
 0x43d   : > { %v9155_v50 = vpack.i.bf16 %v10101_v45, %v10100_v47  ;;  %v10102_v51 = vld [vmem:[#allocation2 + $0x32] ss:$8 sps:$4 sm:$0xff]   ;;  %v10107_v55 = vld [vmem:[#allocation2 + $0x81] ss:$8 sps:$4 sm:$0xff]  }
 0x43e   : > { %v10105_v52 = vld [vmem:[#allocation2 + $0x79] ss:$8 sps:$4 sm:$0xff]   ;;  %v10104_v53 = vld [vmem:[#allocation2 + $0x69] ss:$8 sps:$4 sm:$0xff]   ;;  %v9145_v54 = vpack.i.bf16 %v10103_v48, %v10102_v51 }
 0x43f   : > { %9126 = vrot.lane.b32.xlu1 %v9125_v20, %s11562_s3  ;;  %v9160_v56 = vpack.i.bf16 %v10105_v52, %v10104_v53  ;;  %v10109_v57 = vld [vmem:[#allocation2 + $0x7a] ss:$8 sps:$4 sm:$0xff]   ;;  %v10108_v59 = vld [vmem:[#allocation2 + $0x6a] ss:$8 sps:$4 sm:$0xff]  }
 0x440   : > { %9116 = vrot.lane.b32.xlu0 %v9115_v25, %s11570_s26  ;;  %v10106_v58 = vld [vmem:[#allocation2 + $0x71] ss:$8 sps:$4 sm:$0xff]   ;;  %v10111_v61 = vld [vmem:[#allocation2 + $0x82] ss:$8 sps:$4 sm:$0xff]   ;;  %v9165_v63 = vpack.i.bf16 %v10109_v57, %v10108_v59 }
 0x441   : > { %v9175_v60 = vpack.i.bf16 %v10107_v55, %v10106_v58  ;;  %v10113_v62 = vld [vmem:[#allocation2 + $0x80] ss:$8 sps:$4 sm:$0xff]   ;;  %v10110_v1 = vld [vmem:[#allocation2 + $0x72] ss:$8 sps:$4 sm:$0xff]  }
 0x442   : > { %v10112_v2 = vld [vmem:[#allocation2 + $0x70] ss:$8 sps:$4 sm:$0xff]   ;;  %v9180_v3 = vpack.i.bf16 %v10111_v61, %v10110_v1  ;;  %v10116_v8 = vld [vmem:[#allocation2 + $0x42] ss:$8 sps:$4 sm:$0xff]  }
 0x443   : > { %9131 = vrot.lane.b32.xlu1 %v9130_v32, %s11561_s16  ;;  %v10115_v4 = vld [vmem:[#allocation2 + $0x78] ss:$8 sps:$4 sm:$0xff]   ;;  %v9170_v5 = vpack.i.bf16 %v10113_v62, %v10112_v2  ;;  %v10114_v7 = vld [vmem:[#allocation2 + $0x68] ss:$8 sps:$4 sm:$0xff]  }
 0x444   : > { %9121 = vrot.lane.b32.xlu0 %v9120_v36, %s11571_s10  ;;  %v10117_v6 = vld [vmem:[#allocation2 + $0x52] ss:$8 sps:$4 sm:$0xff]   ;;  %v9185_v9 = vpack.i.bf16 %v10115_v4, %v10114_v7  ;;  %v10120_v14 = vld [vmem:[#allocation2 + $0x42] ss:$8 sps:$4 sm:$0xff]  }
 0x445   : > { %v10119_v10 = vld [vmem:[#allocation2 + $0x79] ss:$8 sps:$4 sm:$0xff]   ;;  %v9195_v11 = vpack.i.bf16 %v10117_v6, %v10116_v8  ;;  %v10118_v12 = vld [vmem:[#allocation2 + $0x69] ss:$8 sps:$4 sm:$0xff]  }
 0x446   : > { %v10121_v13 = vld [vmem:[#allocation2 + $0x52] ss:$8 sps:$4 sm:$0xff]   ;;  %v9190_v16 = vpack.i.bf16 %v10119_v10, %v10118_v12  ;;  %v10124_v19 = vld [vmem:[#allocation2 + $0xc2] ss:$8 sps:$4 sm:$0xff]  }
 0x447   : > { %9136 = vrot.lane.b32.xlu1 %v9135_v42, %s11569_s19  ;;  %v10123_v15 = vld [vmem:[#allocation2 + $0x48] ss:$8 sps:$4 sm:$0xff]   ;;  %v10122_v17 = vld [vmem:[#allocation2 + $0x38] ss:$8 sps:$4 sm:$0xff]   ;;  %v9225_v18 = vpack.i.bf16 %v10121_v13, %v10120_v14 }
 0x448   : > { %9151 = vrot.lane.b32.xlu0 %v9150_v43, %s11562_s3  ;;  %v10125_v20 = vld [vmem:[#allocation2 + $0xd2] ss:$8 sps:$4 sm:$0xff]   ;;  %v9200_v22 = vpack.i.bf16 %v10123_v15, %v10122_v17  ;;  %v10129_v25 = vld [vmem:[#allocation2 + $0xa1] ss:$8 sps:$4 sm:$0xff]  }
 0x449   : > { %v10127_v21 = vld [vmem:[#allocation2 + $0x49] ss:$8 sps:$4 sm:$0xff]   ;;  %v9240_v24 = vpack.i.bf16 %v10125_v20, %v10124_v19  ;;  %v10126_v26 = vld [vmem:[#allocation2 + $0x39] ss:$8 sps:$4 sm:$0xff]  }
 0x44a   : > { %v10128_v23 = vld [vmem:[#allocation2 + $0x91] ss:$8 sps:$4 sm:$0xff]   ;;  %v9205_v27 = vpack.i.bf16 %v10127_v21, %v10126_v26  ;;  %v10133_v33 = vld [vmem:[#allocation2 + $0xa2] ss:$8 sps:$4 sm:$0xff]  }
 0x44b   : > { %9141 = vrot.lane.b32.xlu1 %v9140_v49, %s11570_s26  ;;  %v10131_v28 = vld [vmem:[#allocation2 + $0x4a] ss:$8 sps:$4 sm:$0xff]   ;;  %v9260_v32 = vpack.i.bf16 %v10129_v25, %v10128_v23  ;;  %v10130_v34 = vld [vmem:[#allocation2 + $0x3a] ss:$8 sps:$4 sm:$0xff]   ;;  %v12522_v49 = vpop.permute.xlu0 %9001 }
 0x44c   : > { %9156 = vrot.lane.b32.xlu0 %v9155_v50, %s11565_s14  ;;  %v10132_v30 = vld [vmem:[#allocation2 + $0x92] ss:$8 sps:$4 sm:$0xff]   ;;  %v9210_v35 = vpack.i.bf16 %v10131_v28, %v10130_v34  ;;  %v10134_v36 = vld [vmem:[#allocation2 + $0x40] ss:$8 sps:$4 sm:$0xff]  }
 0x44d   : > { %v10135_v37 = vld [vmem:[#allocation2 + $0x50] ss:$8 sps:$4 sm:$0xff]   ;;  %v9265_v38 = vpack.i.bf16 %v10133_v33, %v10132_v30  ;;  %v10137_v39 = vld [vmem:[#allocation2 + $0xe2] ss:$8 sps:$4 sm:$0xff]  }
 0x44e   : > { %v10136_v29 = vld [vmem:[#allocation2 + $0xd2] ss:$8 sps:$4 sm:$0xff]   ;;  %v9215_v41 = vpack.i.bf16 %v10135_v37, %v10134_v36  ;;  %v10140_v42 = vld [vmem:[#allocation2 + $0x41] ss:$8 sps:$4 sm:$0xff]  }
 0x44f   : > { %9146 = vrot.lane.b32.xlu1 %v9145_v54, %s11571_s10  ;;  %v10141_v40 = vld [vmem:[#allocation2 + $0x51] ss:$8 sps:$4 sm:$0xff]   ;;  %v9270_v31 = vpack.i.bf16 %v10137_v39, %v10136_v29  ;;  %v10144_v45 = vld [vmem:[#allocation2 + $0xc0] ss:$8 sps:$4 sm:$0xff]   ;;  %v12529_v59 = vpop.permute.xlu0 %9046 }
 0x450   : > { %9161 = vrot.lane.b32.xlu0 %v9160_v56, %s11566_s2  ;;  %v10142_v43 = vld [vmem:[#allocation2 + $0xc8] ss:$8 sps:$4 sm:$0xff]   ;;  %v10143_v44 = vld [vmem:[#allocation2 + $0xd8] ss:$8 sps:$4 sm:$0xff]   ;;  %v9220_v47 = vpack.i.bf16 %v10141_v40, %v10140_v42  ;;  %v12526_v56 = vpop.permute.xlu1 %9006 }
 0x451   : > { %v10145_v46 = vld [vmem:[#allocation2 + $0xd0] ss:$8 sps:$4 sm:$0xff]   ;;  %v9275_v50 = vpack.i.bf16 %v10143_v44, %v10142_v43  ;;  %v10148_v52 = vld [vmem:[#allocation2 + $0xc1] ss:$8 sps:$4 sm:$0xff]  }
 0x452   : > { %v10146_v48 = vld [vmem:[#allocation2 + $0xc9] ss:$8 sps:$4 sm:$0xff]   ;;  %v10147_v51 = vld [vmem:[#allocation2 + $0xd9] ss:$8 sps:$4 sm:$0xff]   ;;  %v9230_v53 = vpack.i.bf16 %v10145_v46, %v10144_v45 }
 0x453   : > { %9176 = vrot.lane.b32.xlu1 %v9175_v60, %s11569_s19  ;;  %v10149_v54 = vld [vmem:[#allocation2 + $0xd1] ss:$8 sps:$4 sm:$0xff]   ;;  %v9280_v57 = vpack.i.bf16 %v10147_v51, %v10146_v48  ;;  %v10153_v61 = vld [vmem:[#allocation2 + $0xa0] ss:$8 sps:$4 sm:$0xff]   ;;  %v12536_v7 = vpop.permute.xlu0 %9051 }
 0x454   : > { %9166 = vrot.lane.b32.xlu0 %v9165_v63, %s11567_s5  ;;  %v10150_v55 = vld [vmem:[#allocation2 + $0xca] ss:$8 sps:$4 sm:$0xff]   ;;  %v10151_v58 = vld [vmem:[#allocation2 + $0xda] ss:$8 sps:$4 sm:$0xff]   ;;  %v9235_v62 = vpack.i.bf16 %v10149_v54, %v10148_v52 }
 0x455   : > { %v10152_v60 = vld [vmem:[#allocation2 + $0x90] ss:$8 sps:$4 sm:$0xff]   ;;  %v9285_v63 = vpack.i.bf16 %v10151_v58, %v10150_v55  ;;  %v10155_v2 = vld [vmem:[#allocation2 + $0xe0] ss:$8 sps:$4 sm:$0xff]  }
 0x456   : > { %v10154_v1 = vld [vmem:[#allocation2 + $0xd0] ss:$8 sps:$4 sm:$0xff]   ;;  %v9245_v6 = vpack.i.bf16 %v10153_v61, %v10152_v60  ;;  %v10159_v10 = vld [vmem:[#allocation2 + $0xe1] ss:$8 sps:$4 sm:$0xff]  }
 0x457   : > { %9181 = vrot.lane.b32.xlu1 %v9180_v3, %s11570_s26  ;;  %v12533_v3 = vpop.permute.xlu1 %9011  ;;  %v10156_v4 = vld [vmem:[#allocation2 + $0x91] ss:$8 sps:$4 sm:$0xff]   ;;  %v9290_v8 = vpack.i.bf16 %v10155_v2, %v10154_v1  ;;  %v10161_v12 = vld [vmem:[#allocation2 + $0xa2] ss:$8 sps:$4 sm:$0xff]  }
 0x458   : > { %9171 = vrot.lane.b32.xlu0 %v9170_v5, %s11568_s9  ;;  %v10157_v5 = vld [vmem:[#allocation2 + $0xa1] ss:$8 sps:$4 sm:$0xff]   ;;  %v10162_v14 = vld [vmem:[#allocation2 + $0xd2] ss:$8 sps:$4 sm:$0xff]  }
 0x459   : > { %v9250_v13 = vpack.i.bf16 %v10157_v5, %v10156_v4  ;;  %v10163_v17 = vld [vmem:[#allocation2 + $0xe2] ss:$8 sps:$4 sm:$0xff]   ;;  %v10171_v34 = vld [vmem:[#allocation2 + $0xb0] ss:$8 sps:$4 sm:$0xff]  }
 0x45a   : > { %v10164_v19 = vld [vmem:[#allocation2 + $0x98] ss:$8 sps:$4 sm:$0xff]   ;;  %v10165_v21 = vld [vmem:[#allocation2 + $0xa8] ss:$8 sps:$4 sm:$0xff]   ;;  %v9300_v23 = vpack.i.bf16 %v10163_v17, %v10162_v14 }
 0x45b   : > { %9186 = vrot.lane.b32.xlu1 %v9185_v9, %s11563_s22  ;;  %v10158_v9 = vld [vmem:[#allocation2 + $0xd1] ss:$8 sps:$4 sm:$0xff]   ;;  %v12540_v15 = vpop.permute.xlu1 %9016  ;;  %v9305_v28 = vpack.i.bf16 %v10165_v21, %v10164_v19  ;;  %v10170_v30 = vld [vmem:[#allocation2 + $0xa0] ss:$8 sps:$4 sm:$0xff]  }
 0x45c   : > { %9196 = vrot.lane.b32.xlu0 %v9195_v11, %s11562_s3  ;;  %v10160_v11 = vld [vmem:[#allocation2 + $0x92] ss:$8 sps:$4 sm:$0xff]   ;;  %v9350_v39 = vpack.i.bf16 %v10171_v34, %v10170_v30  ;;  %v10178_v44 = vld [vmem:[#allocation2 + $0xa2] ss:$8 sps:$4 sm:$0xff]  }
 0x45d   : > { %v9255_v20 = vpack.i.bf16 %v10161_v12, %v10160_v11  ;;  %v10168_v25 = vld [vmem:[#allocation2 + $0x99] ss:$8 sps:$4 sm:$0xff]   ;;  %v10173_v36 = vld [vmem:[#allocation2 + $0xaa] ss:$8 sps:$4 sm:$0xff]  }
 0x45e   : > { %v10175_v40 = vld [vmem:[#allocation2 + $0xb1] ss:$8 sps:$4 sm:$0xff]   ;;  %v10193_v14 = vld [vmem:[#allocation2 + $0x80] ss:$8 sps:$4 sm:$0xff]  }
 0x45f   : > { %9191 = vrot.lane.b32.xlu1 %v9190_v16, %s11564_s13  ;;  %v9295_v16 = vpack.i.bf16 %v10159_v10, %v10158_v9  ;;  %v12547_v26 = vpop.permute.xlu1 %9021  ;;  %v10179_v46 = vld [vmem:[#allocation2 + $0xb2] ss:$8 sps:$4 sm:$0xff]  }
 0x460   : > { %9226 = vrot.lane.b32.xlu0 %v9225_v18, %s11568_s9  ;;  %v12543_v18 = vpop.permute.xlu0 %9056  ;;  %v10181_v48 = vld [vmem:[#allocation2 + $0x48] ss:$8 sps:$4 sm:$0xff]   ;;  %v9360_v52 = vpack.i.bf16 %v10179_v46, %v10178_v44  ;;  %v10180_v54 = vld [vmem:[#allocation2 + $0x38] ss:$8 sps:$4 sm:$0xff]  }
 0x461   : > { %v10182_v55 = vld [vmem:[#allocation2 + $0x69] ss:$8 sps:$4 sm:$0xff]   ;;  %v10185_v60 = vld [vmem:[#allocation2 + $0x7a] ss:$8 sps:$4 sm:$0xff]  }
 0x462   : > { %v10187_v61 = vld [vmem:[#allocation2 + $0x7a] ss:$8 sps:$4 sm:$0xff]   ;;  %v10186_v1 = vld [vmem:[#allocation2 + $0x6a] ss:$8 sps:$4 sm:$0xff]  }
 0x463   : > { %9201 = vrot.lane.b32.xlu1 %v9200_v22, %s11563_s22  ;;  %v10167_v22 = vld [vmem:[#allocation2 + $0x78] ss:$8 sps:$4 sm:$0xff]   ;;  %v12554_v29 = vpop.permute.xlu1 %9026  ;;  %v10189_v5 = vld [vmem:[#allocation2 + $0x49] ss:$8 sps:$4 sm:$0xff]  }
 0x464   : > { %9241 = vrot.lane.b32.xlu0 %v9240_v24, %s11564_s13  ;;  %v10166_v24 = vld [vmem:[#allocation2 + $0x68] ss:$8 sps:$4 sm:$0xff]   ;;  %v10188_v10 = vld [vmem:[#allocation2 + $0x39] ss:$8 sps:$4 sm:$0xff]  }
 0x465   : > { %v9335_v33 = vpack.i.bf16 %v10167_v22, %v10166_v24  ;;  %v10190_v11 = vld [vmem:[#allocation2 + $0x70] ss:$8 sps:$4 sm:$0xff]   ;;  %v9340_v12 = vpack.i.bf16 %v10189_v5, %v10188_v10  ;;  %v10220_v10 = vld [vmem:[#allocation2 + $0xa0] ss:$8 sps:$4 sm:$0xff]  }
 0x466   : > { %v10194_v19 = vld [vmem:[#allocation2 + $0x91] ss:$8 sps:$4 sm:$0xff]  }
 0x467   : > { %9206 = vrot.lane.b32.xlu1 %v9205_v27, %s11564_s13  ;;  %v10169_v27 = vld [vmem:[#allocation2 + $0xa9] ss:$8 sps:$4 sm:$0xff]   ;;  %v10198_v30 = vld [vmem:[#allocation2 + $0x3a] ss:$8 sps:$4 sm:$0xff]  }
 0x468   : > { %9261 = vrot.lane.b32.xlu0 %v9260_v32, %s11562_s3  ;;  %v12550_v32 = vpop.permute.xlu0 %9061  ;;  %v9310_v37 = vpack.i.bf16 %v10169_v27, %v10168_v25  ;;  %v10199_v21 = vld [vmem:[#allocation2 + $0x4a] ss:$8 sps:$4 sm:$0xff]   ;;  %v10210_v44 = vld [vmem:[#allocation2 + $0x99] ss:$8 sps:$4 sm:$0xff]  }
 0x469   : > { %v10200_v27 = vld [vmem:[#allocation2 + $0x92] ss:$8 sps:$4 sm:$0xff]  }
 0x46b   : > { %9211 = vrot.lane.b32.xlu1 %v9210_v35, %s11565_s14  ;;  %v10172_v35 = vld [vmem:[#allocation2 + $0x9a] ss:$8 sps:$4 sm:$0xff]  }
 0x46c   : > { %9266 = vrot.lane.b32.xlu0 %v9265_v38, %s11561_s16  ;;  %v10174_v38 = vld [vmem:[#allocation2 + $0xa1] ss:$8 sps:$4 sm:$0xff]   ;;  %v12557_v42 = vpop.permute.xlu0 %9066  ;;  %v9315_v43 = vpack.i.bf16 %v10173_v36, %v10172_v35  ;;  %v9370_v35 = vpack.i.bf16 %v10199_v21, %v10198_v30 }
 0x46d   : > { %v9355_v45 = vpack.i.bf16 %v10175_v40, %v10174_v38  ;;  %v10204_v36 = vld [vmem:[#allocation2 + $0x98] ss:$8 sps:$4 sm:$0xff]  }
 0x46e   : > { %v10202_v40 = vld [vmem:[#allocation2 + $0x71] ss:$8 sps:$4 sm:$0xff]  }
 0x46f   : > { %9216 = vrot.lane.b32.xlu1 %v9215_v41, %s11566_s2  ;;  %v10176_v41 = vld [vmem:[#allocation2 + $0xa2] ss:$8 sps:$4 sm:$0xff]  }
 0x470   : > { %9271 = vrot.lane.b32.xlu0 %v9270_v31, %s11562_s3  ;;  %v10177_v31 = vld [vmem:[#allocation2 + $0xb2] ss:$8 sps:$4 sm:$0xff]   ;;  %v12564_v51 = vpop.permute.xlu0 %9071 }
 0x473   : > { %9221 = vrot.lane.b32.xlu1 %v9220_v47, %s11567_s5  ;;  %v12561_v47 = vpop.permute.xlu1 %9031 }
 0x474   : > { %9276 = vrot.lane.b32.xlu0 %v9275_v50, %s11565_s14  ;;  %v9320_v50 = vpack.i.bf16 %v10177_v31, %v10176_v41  ;;  %v12571_v2 = vpop.permute.xlu0 %9076 }
 0x477   : > { %9231 = vrot.lane.b32.xlu1 %v9230_v53, %s11561_s16  ;;  %v10183_v53 = vld [vmem:[#allocation2 + $0x79] ss:$8 sps:$4 sm:$0xff]   ;;  %v12568_v58 = vpop.permute.xlu1 %9036 }
 0x478   : > { %9281 = vrot.lane.b32.xlu0 %v9280_v57, %s11566_s2  ;;  %v9325_v57 = vpack.i.bf16 %v10181_v48, %v10180_v54  ;;  %v10211_v48 = vld [vmem:[#allocation2 + $0xa9] ss:$8 sps:$4 sm:$0xff]  }
 0x479   : > { %v10213_v54 = vld [vmem:[#allocation2 + $0x82] ss:$8 sps:$4 sm:$0xff]  }
 0x47b   : > { %9236 = vrot.lane.b32.xlu1 %v9235_v62, %s11563_s22  ;;  %v9365_v62 = vpack.i.bf16 %v10183_v53, %v10182_v55  ;;  %v12575_v9 = vpop.permute.xlu1 %9041 }
 0x47c   : > { %9286 = vrot.lane.b32.xlu0 %v9285_v63, %s11567_s5  ;;  %v10184_v63 = vld [vmem:[#allocation2 + $0x6a] ss:$8 sps:$4 sm:$0xff]  }
 0x47d   : > { %v9330_v4 = vpack.i.bf16 %v10185_v60, %v10184_v63  ;;  %v10214_v60 = vld [vmem:[#allocation2 + $0x9a] ss:$8 sps:$4 sm:$0xff]  }
 0x47e   : > { %v10218_v63 = vld [vmem:[#allocation2 + $0x90] ss:$8 sps:$4 sm:$0xff]  }
 0x47f   : > { %9246 = vrot.lane.b32.xlu1 %v9245_v6, %s11561_s16  ;;  %v9380_v6 = vpack.i.bf16 %v10187_v61, %v10186_v1  ;;  %v10215_v61 = vld [vmem:[#allocation2 + $0xaa] ss:$8 sps:$4 sm:$0xff]  }
 0x480   : > { %9291 = vrot.lane.b32.xlu0 %v9290_v8, %s11568_s9  ;;  %v10191_v8 = vld [vmem:[#allocation2 + $0x80] ss:$8 sps:$4 sm:$0xff]  }
 0x481   : > { %v9395_v17 = vpack.i.bf16 %v10191_v8, %v10190_v11  ;;  %v10219_v1 = vld [vmem:[#allocation2 + $0xa0] ss:$8 sps:$4 sm:$0xff]   ;;  %v9450_v8 = vpack.i.bf16 %v10215_v61, %v10214_v60  ;;  %v10221_v11 = vld [vmem:[#allocation2 + $0xb0] ss:$8 sps:$4 sm:$0xff]  }
 0x482   : > { %v9455_v21 = vpack.i.bf16 %v10221_v11, %v10220_v10  ;;  %v10236_v61 = vld [vmem:[#allocation2 + $0x99] ss:$8 sps:$4 sm:$0xff]  }
 0x483   : > { %9251 = vrot.lane.b32.xlu1 %v9250_v13, %s11563_s22  ;;  %v10192_v13 = vld [vmem:[#allocation2 + $0x70] ss:$8 sps:$4 sm:$0xff]  }
 0x484   : > { %9296 = vrot.lane.b32.xlu0 %v9295_v16, %s11569_s19  ;;  %v12578_v16 = vpop.permute.xlu0 %9081  ;;  %v10241_v11 = vld [vmem:[#allocation2 + $0xd9] ss:$8 sps:$4 sm:$0xff]  }
 0x487   : > { %9256 = vrot.lane.b32.xlu1 %v9255_v20, %s11564_s13  ;;  %v10195_v20 = vld [vmem:[#allocation2 + $0xa1] ss:$8 sps:$4 sm:$0xff]  }
 0x488   : > { %9301 = vrot.lane.b32.xlu0 %v9300_v23, %s11570_s26  ;;  %v9345_v23 = vpack.i.bf16 %v10193_v14, %v10192_v13  ;;  %v9410_v25 = vpack.i.bf16 %v10195_v20, %v10194_v19  ;;  %v10223_v13 = vld [vmem:[#allocation2 + $0xd0] ss:$8 sps:$4 sm:$0xff]   ;;  %v10224_v19 = vld [vmem:[#allocation2 + $0xa1] ss:$8 sps:$4 sm:$0xff]  }
 0x48b   : > { %9306 = vrot.lane.b32.xlu1 %v9305_v28, %s11565_s14  ;;  %v10201_v28 = vld [vmem:[#allocation2 + $0xa2] ss:$8 sps:$4 sm:$0xff]  }
 0x48c   : > { %9336 = vrot.lane.b32.xlu0 %v9335_v33, %s11572_s28  ;;  %v10203_v33 = vld [vmem:[#allocation2 + $0x81] ss:$8 sps:$4 sm:$0xff]   ;;  %v9420_v38 = vpack.i.bf16 %v10201_v28, %v10200_v27  ;;  %v10227_v27 = vld [vmem:[#allocation2 + $0xd1] ss:$8 sps:$4 sm:$0xff]  }
 0x48d   : > { %v9375_v31 = vpack.i.bf16 %v10203_v33, %v10202_v40  ;;  %v10228_v33 = vld [vmem:[#allocation2 + $0xa2] ss:$8 sps:$4 sm:$0xff]   ;;  %v10231_v40 = vld [vmem:[#allocation2 + $0xd2] ss:$8 sps:$4 sm:$0xff]  }
 0x48f   : > { %9311 = vrot.lane.b32.xlu1 %v9310_v37, %s11566_s2 }
 0x490   : > { %9351 = vrot.lane.b32.xlu0 %v9350_v39, %s11568_s9  ;;  %v10205_v39 = vld [vmem:[#allocation2 + $0xa8] ss:$8 sps:$4 sm:$0xff]  }
 0x491   : > { %v9440_v46 = vpack.i.bf16 %v10205_v39, %v10204_v36  ;;  %v10230_v39 = vld [vmem:[#allocation2 + $0xc2] ss:$8 sps:$4 sm:$0xff]  }
 0x492   : > { %v9425_v60 = vpack.i.bf16 %v10231_v40, %v10230_v39 }
 0x493   : > { %9316 = vrot.lane.b32.xlu1 %v9315_v43, %s11567_s5  ;;  %v10209_v43 = vld [vmem:[#allocation2 + $0x50] ss:$8 sps:$4 sm:$0xff]  }
 0x494   : > { %9356 = vrot.lane.b32.xlu0 %v9355_v45, %s11569_s19 }
 0x497   : > { %9321 = vrot.lane.b32.xlu1 %v9320_v50, %s11562_s3  ;;  %v10208_v50 = vld [vmem:[#allocation2 + $0x40] ss:$8 sps:$4 sm:$0xff]  }
 0x498   : > { %9361 = vrot.lane.b32.xlu0 %v9360_v52, %s11570_s26  ;;  %v9385_v53 = vpack.i.bf16 %v10209_v43, %v10208_v50 }
 0x49b   : > { %9326 = vrot.lane.b32.xlu1 %v9325_v57, %s11572_s28  ;;  %v9445_v57 = vpack.i.bf16 %v10211_v48, %v10210_v44  ;;  %v10232_v44 = vld [vmem:[#allocation2 + $0x98] ss:$8 sps:$4 sm:$0xff]  }
 0x49c   : > { %9366 = vrot.lane.b32.xlu0 %v9365_v62, %s14048_s7  ;;  %v10212_v62 = vld [vmem:[#allocation2 + $0x72] ss:$8 sps:$4 sm:$0xff]  }
 0x49d   : > { %v9390_v5 = vpack.i.bf16 %v10213_v54, %v10212_v62  ;;  %v10235_v54 = vld [vmem:[#allocation2 + $0xd8] ss:$8 sps:$4 sm:$0xff]   ;;  %v10237_v62 = vld [vmem:[#allocation2 + $0xa9] ss:$8 sps:$4 sm:$0xff]  }
 0x49f   : > { %9331 = vrot.lane.b32.xlu1 %v9330_v4, %s11565_s14 }
 0x4a0   : > { %9381 = vrot.lane.b32.xlu0 %v9380_v6, %s14066_s12 }
 0x4a3   : > { %9341 = vrot.lane.b32.xlu1 %v9340_v12, %s14048_s7  ;;  %v10222_v12 = vld [vmem:[#allocation2 + $0xc0] ss:$8 sps:$4 sm:$0xff]  }
 0x4a4   : > { %9396 = vrot.lane.b32.xlu0 %v9395_v17, %s14069_s15  ;;  %v9400_v17 = vpack.i.bf16 %v10219_v1, %v10218_v63  ;;  %v9405_v30 = vpack.i.bf16 %v10223_v13, %v10222_v12  ;;  %v9475_v13 = vpack.i.bf16 %v10237_v62, %v10236_v61 }
 0x4a5   : > { %v12582_v22 = vpop.permute.xlu1 %9086 }
 0x4a6   : > { %v12584_v24 = vpop.permute.xlu0 %9091  ;;  %v9089_v39 = vunpack.i.h.bf16 %v12582_v22  ;;  %v9088_v40 = vunpack.i.l.bf16 %v12582_v22 }
 0x4a7   : > { %9346 = vrot.lane.b32.xlu1 %v9345_v23, %s11566_s2  ;;  %v10225_v23 = vld [vmem:[#allocation2 + $0xb1] ss:$8 sps:$4 sm:$0xff]  }
 0x4a8   : > { %9411 = vrot.lane.b32.xlu0 %v9410_v25, %s11570_s26  ;;  %v10226_v25 = vld [vmem:[#allocation2 + $0xc1] ss:$8 sps:$4 sm:$0xff]   ;;  %v9460_v36 = vpack.i.bf16 %v10225_v23, %v10224_v19 }
 0x4a9   : > { %v12588_v34 = vpop.permute.xlu1 %9101  ;;  %v9415_v43 = vpack.i.bf16 %v10227_v27, %v10226_v25  ;;  %v10243_v19 = vld [vmem:[#allocation2 + $0xaa] ss:$8 sps:$4 sm:$0xff]  }
 0x4aa   : > { %v12590_v37 = vpop.permute.xlu0 %9096 }
 0x4ab   : > { %9371 = vrot.lane.b32.xlu1 %v9370_v35, %s14066_s12 }
 0x4ac   : > { %9421 = vrot.lane.b32.xlu0 %v9420_v38, %s11571_s10  ;;  %v10229_v38 = vld [vmem:[#allocation2 + $0xb2] ss:$8 sps:$4 sm:$0xff]  }
 0x4ad   : > { %v12594_v41 = vpop.permute.xlu1 %9106  ;;  %v9465_v50 = vpack.i.bf16 %v10229_v38, %v10228_v33  ;;  %v10239_v33 = vld [vmem:[#allocation2 + $0x51] ss:$8 sps:$4 sm:$0xff]  }
 0x4ae   : > { %v12596_v45 = vpop.permute.xlu0 %9111 }
 0x4af   : > { %9376 = vrot.lane.b32.xlu1 %v9375_v31, %s11567_s5 }
 0x4b0   : > { %9441 = vrot.lane.b32.xlu0 %v9440_v46, %s11563_s22  ;;  %v10233_v46 = vld [vmem:[#allocation2 + $0xa8] ss:$8 sps:$4 sm:$0xff]  }
 0x4b1   : > { %v12600_v52 = vpop.permute.xlu1 %9126  ;;  %v9470_v1 = vpack.i.bf16 %v10233_v46, %v10232_v44  ;;  %v9093_v44 = vunpack.i.l.bf16 %v12584_v24 }
 0x4b2   : > { %v12602_v55 = vpop.permute.xlu0 %9116 }
 0x4b3   : > { %9386 = vrot.lane.b32.xlu1 %v9385_v53, %s14069_s15  ;;  %v10234_v53 = vld [vmem:[#allocation2 + $0xc8] ss:$8 sps:$4 sm:$0xff]  }
 0x4b4   : > { %9446 = vrot.lane.b32.xlu0 %v9445_v57, %s11564_s13  ;;  %v9430_v10 = vpack.i.bf16 %v10235_v54, %v10234_v53  ;;  %v9099_v54 = vunpack.i.h.bf16 %v12590_v37 }
 0x4b5   : > { %v12606_v4 = vpop.permute.xlu1 %9131 }
 0x4b6   : > { %v12608_v6 = vpop.permute.xlu0 %9121 }
 0x4b7   : > { %9391 = vrot.lane.b32.xlu1 %v9390_v5, %s11568_s9  ;;  %v10240_v5 = vld [vmem:[#allocation2 + $0xc9] ss:$8 sps:$4 sm:$0xff]  }
 0x4b8   : > { %9451 = vrot.lane.b32.xlu0 %v9450_v8, %s11565_s14  ;;  %v9435_v23 = vpack.i.bf16 %v10241_v11, %v10240_v5 }
 0x4b9   : > { %v12612_v14 = vpop.permute.xlu1 %9136 }
 0x4ba   : > { %v12614_v20 = vpop.permute.xlu0 %9151 }
 0x4bb   : > { %9401 = vrot.lane.b32.xlu1 %v9400_v17, %s11569_s19  ;;  %v10242_v17 = vld [vmem:[#allocation2 + $0x9a] ss:$8 sps:$4 sm:$0xff]  }
 0x4bc   : > { %9456 = vrot.lane.b32.xlu0 %v9455_v21, %s11566_s2  ;;  %v9480_v27 = vpack.i.bf16 %v10243_v19, %v10242_v17 }
 0x4bd   : > { %v12618_v28 = vpop.permute.xlu1 %9141 }
 0x4be   : > { %v12620_v35 = vpop.permute.xlu0 %9156 }
 0x4bf   : > { %9406 = vrot.lane.b32.xlu1 %v9405_v30, %s11569_s19  ;;  %v10238_v30 = vld [vmem:[#allocation2 + $0x41] ss:$8 sps:$4 sm:$0xff]  }
 0x4c0   : > { %9461 = vrot.lane.b32.xlu0 %v9460_v36, %s11567_s5 }
 0x4c1   : > { %v12624_v31 = vpop.permute.xlu1 %9146 }
 0x4c2   : > { %v12626_v48 = vpop.permute.xlu0 %9161 }
 0x4c3   : > { %9416 = vrot.lane.b32.xlu1 %v9415_v43, %s11570_s26  ;;  %v9094_v43 = vunpack.i.h.bf16 %v12584_v24  ;;  %v9158_v24 = vunpack.i.l.bf16 %v12620_v35  ;;  %v9164_v11 = vunpack.i.h.bf16 %v12626_v48 }
 0x4c4   : > { %9466 = vrot.lane.b32.xlu0 %v9465_v50, %s11568_s9 }
 0x4c5   : > { %v12630_v57 = vpop.permute.xlu1 %9176 }
 0x4c6   : > { %v12632_v63 = vpop.permute.xlu0 %9166 }
 0x4c7   : > { %9426 = vrot.lane.b32.xlu1 %v9425_v60, %s11571_s10  ;;  %v9098_v60 = vunpack.i.l.bf16 %v12590_v37  ;;  %v9169_v19 = vunpack.i.h.bf16 %v12632_v63 }
 0x4c8   : > { %9471 = vrot.lane.b32.xlu0 %v9470_v1, %s11572_s28  ;;  %v9159_v1 = vunpack.i.h.bf16 %v12620_v35 }
 0x4c9   : > { %v12636_v8 = vpop.permute.xlu1 %9181 }
 0x4ca   : > { %v12638_v12 = vpop.permute.xlu0 %9171 }
 0x4cb   : > { %9431 = vrot.lane.b32.xlu1 %v9430_v10, %s11572_s28 }
 0x4cc   : > { %9476 = vrot.lane.b32.xlu0 %v9475_v13, %s14048_s7  ;;  %v9163_v13 = vunpack.i.l.bf16 %v12626_v48 }
 0x4cd   : > { %v12642_v21 = vpop.permute.xlu1 %9186 }
 0x4ce   : > { %v9197_v25 = vpop.permute.xlu0 %9196 }
 0x4cf   : > { %v9199_v36 = vunpack.i.h.bf16 %v9197_v25  ;;  %v9198_v38 = vunpack.i.l.bf16 %v9197_v25  ;;  %9436 = vrot.lane.b32.xlu1 %v9435_v23, %s14048_s7  ;;  %v9168_v23 = vunpack.i.l.bf16 %v12632_v63  ;;  %v9178_v63 = vunpack.i.l.bf16 %v12630_v57  ;;  %s14060_s7 = smov 64  }
 0x4d0   : > { %9481 = vrot.lane.b32.xlu0 %v9480_v27, %s14066_s12 }
 0x4d1   : > { %v3474_v46 = vsel %vm2827_vm4, %v10239_v33, %v9199_v36  ;;  %v3473_v50 = vsel %vm2827_vm4, %v10238_v30, %v9198_v38  ;;  %v12652_v53 = vpop.permute.xlu1 %9191  ;;  %v9174_v30 = vunpack.i.h.bf16 %v12638_v12  ;;  %v9173_v33 = vunpack.i.l.bf16 %v12638_v12 }
 0x4d2   : > { %v3482_v61 = vsel %vm1475_vm3, %v3474_v46, %v9089_v39  ;;  %v3481_v22 = vsel %vm1475_vm3, %v3473_v50, %v9088_v40  ;;  %v12658_v62 = vpop.permute.xlu0 %9226  ;;  %v9179_v39 = vunpack.i.h.bf16 %v12630_v57  ;;  %v9183_v46 = vunpack.i.l.bf16 %v12636_v8 }
 0x4d3   : > { %v3489_v5 = vsel %vm2844_vm5, %v3481_v22, %v9093_v44  ;;  %v3490_v10 = vsel %vm2844_vm5, %v3482_v61, %v9094_v43  ;;  %v9184_v44 = vunpack.i.h.bf16 %v12636_v8  ;;  %v10247_v8 = vld [vmem:[#allocation2 + $0xda] ss:$8 sps:$4 sm:$0xff]  }
 0x4d4   : > { %v3497_v37 = vsel %vm2853_vm6, %v3489_v5, %v9098_v60  ;;  %v3498_v17 = vsel %vm2853_vm6, %v3490_v10, %v9099_v54  ;;  %v10246_v5 = vld [vmem:[#allocation2 + $0xca] ss:$8 sps:$4 sm:$0xff]  }
 0x4d5   : > { %v12670_v25 = vpop.permute.xlu1 %9201  ;;  %v3505_v35 = vsel %vm2862_vm7, %v3497_v37, %v9158_v24  ;;  %v3506_v27 = vsel %vm2862_vm7, %v3498_v17, %v9159_v1  ;;  %v10250_v37 = vld [vmem:[#allocation2 + $0xd0] ss:$8 sps:$4 sm:$0xff]   ;;  %v10251_v17 = vld [vmem:[#allocation2 + $0xe0] ss:$8 sps:$4 sm:$0xff]  }
 0x4d6   : > { %v12676_v36 = vpop.permute.xlu0 %9241  ;;  %v3513_v48 = vsel %vm2871_vm8, %v3505_v35, %v9163_v13  ;;  %v3514_v38 = vsel %vm2871_vm8, %v3506_v27, %v9164_v11  ;;  %v9490_v13 = vpack.i.bf16 %v10247_v8, %v10246_v5  ;;  %v10248_v35 = vld [vmem:[#allocation2 + $0xd1] ss:$8 sps:$4 sm:$0xff]   ;;  %v10249_v27 = vld [vmem:[#allocation2 + $0xe1] ss:$8 sps:$4 sm:$0xff]  }
 0x4d7   : > { %v3521_v40 = vsel %vm14068_vm9, %v3513_v48, %v9168_v23  ;;  %v3522_v43 = vsel %vm14068_vm9, %v3514_v38, %v9169_v19  ;;  %v9505_v48 = vpack.i.bf16 %v10251_v17, %v10250_v37  ;;  %v9004_v38 = vunpack.i.h.bf16 %v12522_v49  ;;  %v10256_v5 = vld [vmem:[#allocation15] sm:$0xff]   ;;  %v10257_v8 = vld [vmem:[#allocation15 + $0x8] sm:$0xff]  }
 0x4d8   : > { %v3529_v12 = vsel %vm14067_vm10, %v3521_v40, %v9173_v33  ;;  %v3530_v50 = vsel %vm14067_vm10, %v3522_v43, %v9174_v30  ;;  %v9008_v40 = vunpack.i.l.bf16 %v12526_v56  ;;  %v9024_v37 = vunpack.i.h.bf16 %v12547_v26  ;;  %8510 = vmatprep.subr.bf16.mxu1 %v10256_v5 }
 0x4d9   : > { %v12688_v54 = vpop.permute.xlu1 %9206  ;;  %v3537_v60 = vsel %vm14058_vm11, %v3529_v12, %v9178_v63  ;;  %v3538_v61 = vsel %vm14058_vm11, %v3530_v50, %v9179_v39  ;;  %v9003_v39 = vunpack.i.l.bf16 %v12522_v49  ;;  %v9009_v63 = vunpack.i.h.bf16 %v12526_v56  ;;  %8511 = vmatpush3.bf16.msra.mxu1 %v10256_v5  ;;  %v10259_v5 = vld [vmem:[#allocation15 + $0x18] sm:$0xff]  }
 0x4da   : > { %v12692_v57 = vpop.permute.xlu0 %9261  ;;  %v3545_v22 = vsel %vm14057_vm12, %v3537_v60, %v9183_v46  ;;  %v3546_v1 = vsel %vm14057_vm12, %v3538_v61, %v9184_v44  ;;  %v9014_v12 = vunpack.i.h.bf16 %v12533_v3  ;;  %v9013_v50 = vunpack.i.l.bf16 %v12533_v3  ;;  %8512 = vmatprep.subr.bf16.mxu1 %v10257_v8 }
 0x4db   : > { %v9485_v24 = vpack.i.bf16 %v3546_v1, %v3545_v22  ;;  %v9019_v56 = vunpack.i.h.bf16 %v12540_v15  ;;  %v9018_v22 = vunpack.i.l.bf16 %v12540_v15  ;;  %v9023_v17 = vunpack.i.l.bf16 %v12547_v26 }
 0x4dc   : > { %v9029_v15 = vunpack.i.h.bf16 %v12554_v29 }
 0x4dd   : > { %9486 = vrot.lane.b32.xlu1 %v9485_v24, %s14060_s7  ;;  %v12697_v10 = vpop.permute.xlu1 %9211  ;;  %8513 = vmatpush3.bf16.msra.mxu1 %v10257_v8  ;;  %v10261_v8 = vld [vmem:[#allocation15 + $0x28] sm:$0xff]  }
 0x4de   : > { %v12699_v11 = vpop.permute.xlu0 %9266 }
 0x4e1   : > { %9491 = vrot.lane.b32.xlu1 %v9490_v13, %s14066_s12  ;;  %v12702_v19 = vpop.permute.xlu1 %9216 }
 0x4e2   : > { %v9272_v23 = vpop.permute.xlu0 %9271 }
 0x4e3   : > { %v9274_v30 = vunpack.i.h.bf16 %v9272_v23  ;;  %v9273_v33 = vunpack.i.l.bf16 %v9272_v23 }
 0x4e5   : > { %v3480_v43 = vsel %vm2827_vm4, %v10249_v27, %v9274_v30  ;;  %v3479_v44 = vsel %vm2827_vm4, %v10248_v35, %v9273_v33  ;;  %9506 = vrot.lane.b32.xlu1 %v9505_v48, %s14069_s15  ;;  %v12711_v46 = vpop.permute.xlu1 %9221  ;;  %v9028_v30 = vunpack.i.l.bf16 %v12554_v29  ;;  %v9034_v48 = vunpack.i.h.bf16 %v12561_v47 }
 0x4e6   : > { %v3488_v60 = vsel %vm1475_vm3, %v3480_v43, %v9004_v38  ;;  %v3487_v49 = vsel %vm1475_vm3, %v3479_v44, %v9003_v39  ;;  %v12717_v61 = vpop.permute.xlu0 %9276  ;;  %v9033_v38 = vunpack.i.l.bf16 %v12561_v47  ;;  %v9038_v43 = vunpack.i.l.bf16 %v12568_v58 }
 0x4e7   : > { %v3496_v1 = vsel %vm2844_vm5, %v3488_v60, %v9009_v63  ;;  %v3495_v24 = vsel %vm2844_vm5, %v3487_v49, %v9008_v40  ;;  %v10258_v63 = vld [vmem:[#allocation15 + $0x10] sm:$0xff]   ;;  %v9039_v40 = vunpack.i.h.bf16 %v12568_v58 }
 0x4e8   : > { %v3504_v13 = vsel %vm2853_vm6, %v3496_v1, %v9014_v12  ;;  %v3503_v3 = vsel %vm2853_vm6, %v3495_v24, %v9013_v50  ;;  %v9044_v12 = vunpack.i.h.bf16 %v12575_v9  ;;  %v9043_v50 = vunpack.i.l.bf16 %v12575_v9  ;;  %8514 = vmatprep.subr.bf16.mxu1 %v10258_v63 }
 0x4e9   : > { %v3512_v23 = vsel %vm2862_vm7, %v3504_v13, %v9019_v56  ;;  %v3511_v35 = vsel %vm2862_vm7, %v3503_v3, %v9018_v22  ;;  %v12729_v27 = vpop.permute.xlu1 %9231  ;;  %8515 = vmatpush3.bf16.msra.mxu1 %v10258_v63 }
 0x4ea   : > { %v12733_v33 = vpop.permute.xlu0 %9281  ;;  %v3519_v26 = vsel %vm2871_vm8, %v3511_v35, %v9023_v17  ;;  %v3520_v39 = vsel %vm2871_vm8, %v3512_v23, %v9024_v37  ;;  %8516 = vmatprep.subr.bf16.mxu1 %v10259_v5  ;;  %v10260_v37 = vld [vmem:[#allocation15 + $0x20] sm:$0xff]  }
 0x4eb   : > { %v3527_v44 = vsel %vm14068_vm9, %v3519_v26, %v9028_v30  ;;  %v3528_v29 = vsel %vm14068_vm9, %v3520_v39, %v9029_v15 }
 0x4ec   : > { %v3535_v47 = vsel %vm14067_vm10, %v3527_v44, %v9033_v38  ;;  %v3536_v49 = vsel %vm14067_vm10, %v3528_v29, %v9034_v48  ;;  %v9154_v48 = vunpack.i.h.bf16 %v12614_v20  ;;  %v9153_v38 = vunpack.i.l.bf16 %v12614_v20 }
 0x4ed   : > { %v12745_v60 = vpop.permute.xlu1 %9236  ;;  %v3543_v22 = vsel %vm14058_vm11, %v3535_v47, %v9038_v43  ;;  %v3544_v58 = vsel %vm14058_vm11, %v3536_v49, %v9039_v40  ;;  %8517 = vmatpush3.bf16.msra.mxu1 %v10259_v5  ;;  %v10216_v40 = vld [vmem:[#allocation2 + $0x71] ss:$8 sps:$4 sm:$0xff]   ;;  %v10217_v43 = vld [vmem:[#allocation2 + $0x81] ss:$8 sps:$4 sm:$0xff]  }
 0x4ee   : > { %v12749_v56 = vpop.permute.xlu0 %9286  ;;  %v3551_v1 = vsel %vm14057_vm12, %v3543_v22, %v9043_v50  ;;  %v3552_v24 = vsel %vm14057_vm12, %v3544_v58, %v9044_v12  ;;  %8518 = vmatprep.subr.bf16.mxu1 %v10260_v37  ;;  %v3476_v49 = vsel %vm2827_vm4, %v10217_v43, %v9154_v48  ;;  %v3475_v22 = vsel %vm2827_vm4, %v10216_v40, %v9153_v38 }
 0x4ef   : > { %v9515_v9 = vpack.i.bf16 %v3552_v24, %v3551_v1 }
 0x4f1   : > { %v9247_v13 = vpop.permute.xlu1 %9246  ;;  %9516 = vrot.lane.b32.xlu1 %v9515_v9, %s14060_s7  ;;  %8519 = vmatpush3.bf16.msra.mxu1 %v10260_v37 }
 0x4f2   : > { %v12756_v3 = vpop.permute.xlu0 %9291  ;;  %8520 = vmatprep.subr.bf16.mxu1 %v10261_v8  ;;  %v9249_v39 = vunpack.i.h.bf16 %v9247_v13  ;;  %v9248_v63 = vunpack.i.l.bf16 %v9247_v13 }
 0x4f4   : > { %v3483_v20 = vsel %vm1475_vm3, %v3475_v22, %v9248_v63  ;;  %v3484_v5 = vsel %vm1475_vm3, %v3476_v49, %v9249_v39 }
 0x4f5   : > { %v9252_v17 = vpop.permute.xlu1 %9251  ;;  %8521 = vmatpush3.bf16.msra.mxu1 %v10261_v8  ;;  %v9244_v8 = vunpack.i.h.bf16 %v12676_v36 }
 0x4f6   : > { %v12758_v23 = vpop.permute.xlu0 %9296  ;;  %v9254_v44 = vunpack.i.h.bf16 %v9252_v17  ;;  %v9253_v29 = vunpack.i.l.bf16 %v9252_v17 }
 0x4f8   : > { %v3491_v37 = vsel %vm2844_vm5, %v3483_v20, %v9253_v29  ;;  %v3492_v17 = vsel %vm2844_vm5, %v3484_v5, %v9254_v44 }
 0x4f9   : > { %v9257_v35 = vpop.permute.xlu1 %9256 }
 0x4fa   : > { %v12760_v15 = vpop.permute.xlu0 %9301  ;;  %v9259_v12 = vunpack.i.h.bf16 %v9257_v35  ;;  %v9258_v50 = vunpack.i.l.bf16 %v9257_v35  ;;  %v9243_v35 = vunpack.i.l.bf16 %v12676_v36  ;;  %v9234_v36 = vunpack.i.h.bf16 %v12729_v27 }
 0x4fc   : > { %v3499_v48 = vsel %vm2853_vm6, %v3491_v37, %v9258_v50  ;;  %v3500_v38 = vsel %vm2853_vm6, %v3492_v17, %v9259_v12  ;;  %v10262_v17 = vld [vmem:[#allocation15 + $0x30] sm:$0x3f]  }
 0x4fd   : > { %v9307_v30 = vpop.permute.xlu1 %9306  ;;  %8633 = vmatprep.subr.msk.bf16.mxu1 %vm14051_vm13, %v10262_v17 }
 0x4fe   : > { %v12764_v26 = vpop.permute.xlu0 %9336  ;;  %v9309_v58 = vunpack.i.h.bf16 %v9307_v30  ;;  %v9308_v1 = vunpack.i.l.bf16 %v9307_v30 }
 0x500   : > { %v3507_v40 = vsel %vm2862_vm7, %v3499_v48, %v9308_v1  ;;  %v3508_v63 = vsel %vm2862_vm7, %v3500_v38, %v9309_v58  ;;  %v10253_v48 = vld [vmem:[#allocation2 + $0xb1] ss:$8 sps:$4 sm:$0xff]  }
 0x501   : > { %v9312_v47 = vpop.permute.xlu1 %9311 }
 0x502   : > { %v9352_v24 = vpop.permute.xlu0 %9351  ;;  %v9314_v9 = vunpack.i.h.bf16 %v9312_v47  ;;  %v9313_v13 = vunpack.i.l.bf16 %v9312_v47 }
 0x503   : > { %v9354_v49 = vunpack.i.h.bf16 %v9352_v24  ;;  %v9353_v22 = vunpack.i.l.bf16 %v9352_v24  ;;  %v10252_v24 = vld [vmem:[#allocation2 + $0xa1] ss:$8 sps:$4 sm:$0xff]  }
 0x504   : > { %v3515_v29 = vsel %vm2871_vm8, %v3507_v40, %v9313_v13  ;;  %v3516_v44 = vsel %vm2871_vm8, %v3508_v63, %v9314_v9  ;;  %v9233_v13 = vunpack.i.l.bf16 %v12729_v27 }
 0x505   : > { %v9317_v30 = vpop.permute.xlu1 %9316 }
 0x506   : > { %v9319_v39 = vunpack.i.h.bf16 %v9317_v30  ;;  %v9318_v43 = vunpack.i.l.bf16 %v9317_v30  ;;  %v9357_v47 = vpop.permute.xlu0 %9356 }
 0x507   : > { %v9358_v20 = vunpack.i.l.bf16 %v9357_v47  ;;  %v9359_v5 = vunpack.i.h.bf16 %v9357_v47  ;;  %v3668_v47 = vsel %vm14051_vm13, %v10262_v17, 0  ;;  %v9283_v17 = vunpack.i.l.bf16 %v12733_v33 }
 0x508   : > { %v3523_v50 = vsel %vm14068_vm9, %v3515_v29, %v9318_v43  ;;  %v3524_v12 = vsel %vm14068_vm9, %v3516_v44, %v9319_v39  ;;  %v9239_v29 = vunpack.i.h.bf16 %v12745_v60  ;;  %v9238_v44 = vunpack.i.l.bf16 %v12745_v60  ;;  %8523 = vmatpush3.bf16.msra.mxu1 %v3668_v47 }
 0x509   : > { %v3531_v1 = vsel %vm14067_vm10, %v3523_v50, %v9353_v22  ;;  %v3532_v58 = vsel %vm14067_vm10, %v3524_v12, %v9354_v49  ;;  %v9322_v37 = vpop.permute.xlu1 %9321  ;;  %v9279_v22 = vunpack.i.h.bf16 %v12717_v61  ;;  %v9278_v50 = vunpack.i.l.bf16 %v12717_v61 }
 0x50a   : > { %v3539_v9 = vsel %vm14058_vm11, %v3531_v1, %v9358_v20  ;;  %v9324_v38 = vunpack.i.h.bf16 %v9322_v37  ;;  %v9323_v30 = vunpack.i.l.bf16 %v9322_v37  ;;  %v9362_v40 = vpop.permute.xlu0 %9361  ;;  %v3540_v63 = vsel %vm14058_vm11, %v3532_v58, %v9359_v5 }
 0x50b   : > { %v9364_v39 = vunpack.i.h.bf16 %v9362_v40  ;;  %v9363_v43 = vunpack.i.l.bf16 %v9362_v40  ;;  %vm14062_vm13 = vcmask 490496  }
 0x50c   : > { %v3478_v27 = vsel %vm2827_vm4, %v10253_v48, %v9324_v38  ;;  %v3477_v49 = vsel %vm2827_vm4, %v10252_v24, %v9323_v30  ;;  %v9289_v30 = vunpack.i.h.bf16 %v12749_v56 }
 0x50d   : > { %v3485_v12 = vsel %vm1475_vm3, %v3477_v49, %v9233_v13  ;;  %v3486_v20 = vsel %vm1475_vm3, %v3478_v27, %v9234_v36  ;;  %v12798_v5 = vpop.permute.xlu1 %9326  ;;  %v3547_v60 = vsel %vm14057_vm12, %v3539_v9, %v9363_v43  ;;  %v3548_v37 = vsel %vm14057_vm12, %v3540_v63, %v9364_v39  ;;  %v10254_v39 = vld [vmem:[#allocation2 + $0xa0] ss:$8 sps:$4 sm:$0xff]   ;;  %v10255_v43 = vld [vmem:[#allocation2 + $0xb0] ss:$8 sps:$4 sm:$0xff]  }
 0x50e   : > { %v3493_v1 = vsel %vm2844_vm5, %v3485_v12, %v9238_v44  ;;  %v3494_v58 = vsel %vm2844_vm5, %v3486_v20, %v9239_v29  ;;  %v9284_v13 = vunpack.i.h.bf16 %v12733_v33  ;;  %v9288_v36 = vunpack.i.l.bf16 %v12749_v56  ;;  %v3820_v12 = vld [vmem:[#allocation24] sm:$0xf]  ;;  %v12828_v20 = vld [vmem:[#allocation21] ss:$0 sm:$0xff] }
 0x50f   : > { %v3501_v24 = vsel %vm2853_vm6, %v3493_v1, %v9243_v35  ;;  %v3502_v61 = vsel %vm2853_vm6, %v3494_v58, %v9244_v8  ;;  %v9293_v9 = vunpack.i.l.bf16 %v12756_v3  ;;  %v9495_v40 = vpack.i.bf16 %v3548_v37, %v3547_v60  ;;  %8634 = vmatprep.subr.msk.bf16.mxu0 %vm1488_vm2, %v3820_v12 }
 0x510   : > { %v3509_v48 = vsel %vm2862_vm7, %v3501_v24, %v9278_v50  ;;  %v3510_v38 = vsel %vm2862_vm7, %v3502_v61, %v9279_v22  ;;  %v9294_v8 = vunpack.i.h.bf16 %v12756_v3  ;;  %v9298_v33 = vunpack.i.l.bf16 %v12758_v23  ;;  %v3777_v24 = vld [vmem:[#allocation20] sm:$0x3] }
 0x511   : > { %v12813_v63 = vpop.permute.xlu1 %9331  ;;  %v3517_v35 = vsel %vm2871_vm8, %v3509_v48, %v9283_v17  ;;  %v3518_v47 = vsel %vm2871_vm8, %v3510_v38, %v9284_v13  ;;  %v9299_v44 = vunpack.i.h.bf16 %v12758_v23  ;;  %v9303_v56 = vunpack.i.l.bf16 %v12760_v15  ;;  %9496 = vrot.lane.b32.xlu0 %v9495_v40, %s14060_s7  ;;  %v12837_v17 = vld [vmem:[#allocation23] ss:$0 sm:$0xff]  ;;  %v10549_v13 = vld [vmem:[%s12250_s8] sm:$0xff]  ;;  %v10550_v48 = vld [vmem:[%s12250_s8 + $0x8] sm:$0xff] }
 0x512   : > { %v3525_v29 = vsel %vm14068_vm9, %v3517_v35, %v9288_v36  ;;  %v3526_v27 = vsel %vm14068_vm9, %v3518_v47, %v9289_v30  ;;  %v9304_v22 = vunpack.i.h.bf16 %v12760_v15  ;;  %v9500_v23 = vpack.i.bf16 %v10255_v43, %v10254_v39  ;;  %v10551_v40 = vld [vmem:[%s12250_s8 + $0x10] sm:$0xff]  ;;  %v10552_v35 = vld [vmem:[%s12250_s8 + $0x18] sm:$0xff] }
 0x513   : > { %v3533_v49 = vsel %vm14067_vm10, %v3525_v29, %v9293_v9  ;;  %v3534_v3 = vsel %vm14067_vm10, %v3526_v27, %v9294_v8  ;;  %v3834_v37 = vsel %vm1488_vm2, %v3820_v12, 0  ;;  %v3785_v36 = vmul.f32 %v10549_v13, %v12828_v20 }
 0x514   : > { %v3541_v50 = vsel %vm14058_vm11, %v3533_v49, %v9298_v33  ;;  %v3542_v58 = vsel %vm14058_vm11, %v3534_v3, %v9299_v44  ;;  %8533 = vmatpush3.bf16.msra.mxu0 %v3834_v37  ;;  %v3786_v38 = vmul.f32 %v10550_v48, %v12828_v20  ;;  %v3787_v39 = vmul.f32 %v10551_v40, %v12828_v20  ;;  %v10139_v37 = vld [vmem:[#allocation2] ss:$8 sps:$4 sm:$0xff]  }
 0x515   : > { %v12830_v1 = vpop.permute.xlu1 %9341  ;;  %v3549_v60 = vsel %vm14057_vm12, %v3541_v50, %v9303_v56  ;;  %v3550_v15 = vsel %vm14057_vm12, %v3542_v58, %v9304_v22  ;;  %9501 = vrot.lane.b32.xlu0 %v9500_v23, %s14069_s15  ;;  %v3800_v9 = vadd.f32 %v12837_v17, %v3785_v36  ;;  %8635 = vmatprep.subr.msk.bf16.mxu0 %vm14050_vm14, %v3777_v24  ;;  %v3915_v50 = vsel %vm14050_vm14, %v3777_v24, 0  ;;  %v12872_v24 = vpop.permute.xlu0 %9366 }
 0x516   : > { %v9510_v61 = vpack.i.bf16 %v3550_v15, %v3549_v60  ;;  %v3801_v43 = vadd.f32 %v12837_v17, %v3786_v38  ;;  %v3788_v8 = vmul.f32 %v10552_v35, %v12828_v20  ;;  %v3802_v47 = vadd.f32 %v12837_v17, %v3787_v39 }
 0x517   : > { %v3808_v33 = vmax.f32 %v3800_v9, 0.0  ;;  %v9048_v15 = vunpack.i.l.bf16 %v12529_v59  ;;  %v9049_v13 = vunpack.i.h.bf16 %v12529_v59  ;;  %v9053_v36 = vunpack.i.l.bf16 %v12536_v7 }
 0x518   : > { %v3809_v29 = vmax.f32 %v3801_v43, 0.0  ;;  %v3803_v44 = vadd.f32 %v12837_v17, %v3788_v8  ;;  %v3810_v27 = vmax.f32 %v3802_v47, 0.0  ;;  %v9054_v9 = vunpack.i.h.bf16 %v12536_v7 }
 0x519   : > { %v12844_v30 = vpop.permute.xlu1 %9346  ;;  %9511 = vrot.lane.b32.xlu0 %v9510_v61, %s14060_s7  ;;  %v10138_v61 = vld [vmem:[#allocation2 + $0x10] ss:$8 sps:$4 sm:$0xff]   ;;  %v2828_v38 = vsel %vm2827_vm4, %v10139_v37, %v9048_v15  ;;  %v9058_v39 = vunpack.i.l.bf16 %v12543_v18  ;;  %v9059_v35 = vunpack.i.h.bf16 %v12543_v18  ;;  %v9063_v8 = vunpack.i.l.bf16 %v12550_v32  ;;  %s14172_s7 = sld [smem:[#allocation74_spill]] }
 0x51a   : > { %v3816_v49 = vpack.c.bf16 %v3809_v29, %v3808_v33  ;;  %v3811_v22 = vmax.f32 %v3803_v44, 0.0  ;;  %v2829_v40 = vsel %vm2827_vm4, %v10138_v61, %v9049_v13  ;;  %v2836_v43 = vsel %vm1475_vm3, %v2828_v38, %v9053_v36  ;;  %v12884_v33 = vpop.permute.xlu0 %9381 }
 0x51b   : > { %v2837_v59 = vsel %vm1475_vm3, %v2829_v40, %v9054_v9  ;;  %v2845_v29 = vsel %vm2844_vm5, %v2836_v43, %v9058_v39  ;;  %v9064_v7 = vunpack.i.h.bf16 %v12550_v32  ;;  %v9069_v18 = vunpack.i.h.bf16 %v12557_v42 }
 0x51c   : > { %8534 = vmatprep.mubr.msk.bf16.mxu0 %vm1475_vm3, %v3816_v49  ;;  %v3817_v3 = vpack.c.bf16 %v3811_v22, %v3810_v27  ;;  %v2846_v44 = vsel %vm2844_vm5, %v2837_v59, %v9059_v35  ;;  %v9068_v27 = vunpack.i.l.bf16 %v12557_v42  ;;  %v2854_v49 = vsel %vm2853_vm6, %v2845_v29, %v9063_v8 }
 0x51d   : > { %v12856_v56 = vpop.permute.xlu1 %9371  ;;  %v2855_v22 = vsel %vm2853_vm6, %v2846_v44, %v9064_v7  ;;  %v9074_v32 = vunpack.i.h.bf16 %v12564_v51  ;;  %v9078_v13 = vunpack.i.l.bf16 %v12571_v2  ;;  %v9079_v42 = vunpack.i.h.bf16 %v12571_v2 }
 0x51e   : > { %8535 = vmatmul.mubr.msk.bf16.vlgmr.msra.gmra.mrb[0].mxu0 %vm1475_vm3, %v3817_v3  ;;  %v9073_v3 = vunpack.i.l.bf16 %v12564_v51  ;;  %v2863_v37 = vsel %vm2862_vm7, %v2854_v49, %v9068_v27  ;;  %v2864_v61 = vsel %vm2862_vm7, %v2855_v22, %v9069_v18  ;;  %v9083_v9 = vunpack.i.l.bf16 %v12578_v16 }
 0x51f   : > { %8543 = vmatpush3.bf16.msra.mxu0 %v3915_v50  ;;  %v12896_v50 = vpop.permute.xlu0 %9396  ;;  %v2873_v38 = vsel %vm2871_vm8, %v2864_v61, %v9074_v32  ;;  %v9084_v51 = vunpack.i.h.bf16 %v12578_v16  ;;  %v9138_v35 = vunpack.i.l.bf16 %v12612_v14  ;;  %v9139_v8 = vunpack.i.h.bf16 %v12612_v14 }
 0x520   : > { %v2872_v36 = vsel %vm2871_vm8, %v2863_v37, %v9073_v3  ;;  %v2882_v59 = vsel %vm14068_vm9, %v2873_v38, %v9079_v42  ;;  %v9143_v2 = vunpack.i.l.bf16 %v12618_v28  ;;  %v9144_v29 = vunpack.i.h.bf16 %v12618_v28 }
 0x521   : > { %v12860_v12 = vpop.permute.xlu1 %9376  ;;  %v2881_v43 = vsel %vm14068_vm9, %v2872_v36, %v9078_v13  ;;  %v9148_v7 = vunpack.i.l.bf16 %v12624_v31  ;;  %v9149_v27 = vunpack.i.h.bf16 %v12624_v31  ;;  %v2891_v49 = vsel %vm14067_vm10, %v2882_v59, %v9084_v51 }
 0x522   : > { %v2890_v44 = vsel %vm14067_vm10, %v2881_v43, %v9083_v9  ;;  %v9329_v18 = vunpack.i.h.bf16 %v12798_v5  ;;  %v9328_v22 = vunpack.i.l.bf16 %v12798_v5  ;;  %v2900_v14 = vsel %vm14058_vm11, %v2891_v49, %v9139_v8 }
 0x523   : > { %v12908_v40 = vpop.permute.xlu0 %9411  ;;  %v2899_v16 = vsel %vm14058_vm11, %v2890_v44, %v9138_v35  ;;  %v9344_v28 = vunpack.i.h.bf16 %v12830_v1  ;;  %v9343_v37 = vunpack.i.l.bf16 %v12830_v1  ;;  %v2909_v31 = vsel %vm14057_vm12, %v2900_v14, %v9144_v29 }
 0x524   : > { %v2908_v3 = vsel %vm14057_vm12, %v2899_v16, %v9143_v2  ;;  %v9374_v36 = vunpack.i.h.bf16 %v12856_v56  ;;  %v9373_v5 = vunpack.i.l.bf16 %v12856_v56  ;;  %v2918_v42 = vsel %vm14056_vm15, %v2909_v31, %v9149_v27  ;;  %v10207_v31 = vld [vmem:[#allocation2 + $0x30] ss:$8 sps:$4 sm:$0xff]  }
 0x525   : > { %v12863_v23 = vpop.permute.xlu1 %9386  ;;  %v2917_v13 = vsel %vm14056_vm15, %v2908_v3, %v9148_v7  ;;  %v2927_v43 = vsel %vm2925_vm0, %v2918_v42, %v9329_v18  ;;  %vm14053_vm2 = vcmask 424960   ;;  %vm14059_vm14 = vcmask 457728  }
 0x526   : > { %v9389_v38 = vunpack.i.h.bf16 %v12863_v23  ;;  %v9388_v9 = vunpack.i.l.bf16 %v12863_v23  ;;  %v2926_v1 = vsel %vm2925_vm0, %v2917_v13, %v9328_v22  ;;  %v2936_v35 = vsel %vm14053_vm2, %v2927_v43, %v9344_v28 }
 0x527   : > { %v12930_v32 = vpop.permute.xlu0 %9421  ;;  %v2935_v51 = vsel %vm14053_vm2, %v2926_v1, %v9343_v37  ;;  %v2945_v8 = vsel %vm14059_vm14, %v2936_v35, %v9374_v36  ;;  %vm14054_vm2 = vcmask 883712   ;;  %v9129_v22 = vunpack.i.h.bf16 %v12600_v52  ;;  %v10206_v37 = vld [vmem:[#allocation2 + $0x40] ss:$8 sps:$4 sm:$0xff]  }
 0x528   : > { %v2944_v59 = vsel %vm14059_vm14, %v2935_v51, %v9373_v5  ;;  %v2954_v44 = vsel %vm14062_vm13, %v2945_v8, %v9389_v38  ;;  %v9128_v14 = vunpack.i.l.bf16 %v12600_v52  ;;  %v9134_v3 = vunpack.i.h.bf16 %v12606_v4 }
 0x529   : > { %v12865_v58 = vpop.permute.xlu1 %9391  ;;  %v2953_v7 = vsel %vm14062_vm13, %v2944_v59, %v9388_v9  ;;  %v9133_v28 = vunpack.i.l.bf16 %v12606_v4  ;;  %v9204_v13 = vunpack.i.h.bf16 %v12670_v25  ;;  %v9203_v36 = vunpack.i.l.bf16 %v12670_v25 }
 0x52a   : > { %v9209_v42 = vunpack.i.h.bf16 %v12688_v54  ;;  %v9208_v38 = vunpack.i.l.bf16 %v12688_v54  ;;  %v2831_v9 = vsel %vm2827_vm4, %v10206_v37, %v9129_v22  ;;  %v2830_v52 = vsel %vm2827_vm4, %v10207_v31, %v9128_v14  ;;  %v10196_v31 = vld [vmem:[#allocation2 + $0x70] ss:$8 sps:$4 sm:$0xff]  }
 0x52b   : > { %v12947_v23 = vpop.permute.xlu0 %9441  ;;  %v9214_v1 = vunpack.i.h.bf16 %v12697_v10  ;;  %v9213_v4 = vunpack.i.l.bf16 %v12697_v10  ;;  %v2838_v43 = vsel %vm1475_vm3, %v2830_v52, %v9133_v28  ;;  %v2839_v51 = vsel %vm1475_vm3, %v2831_v9, %v9134_v3 }
 0x52c   : > { %v9219_v25 = vunpack.i.h.bf16 %v12702_v19  ;;  %v9218_v35 = vunpack.i.l.bf16 %v12702_v19  ;;  %v2848_v54 = vsel %vm2844_vm5, %v2839_v51, %v9204_v13  ;;  %v9224_v59 = vunpack.i.h.bf16 %v12711_v46  ;;  %v10197_v13 = vld [vmem:[#allocation2 + $0x60] ss:$8 sps:$4 sm:$0xff]  }
 0x52d   : > { %v12867_v60 = vpop.permute.xlu1 %9401  ;;  %v9223_v8 = vunpack.i.l.bf16 %v12711_v46  ;;  %v2857_v10 = vsel %vm2853_vm6, %v2848_v54, %v9209_v42  ;;  %v9109_v14 = vunpack.i.h.bf16 %v12594_v41  ;;  %v9108_v3 = vunpack.i.l.bf16 %v12594_v41 }
 0x52e   : > { %v9229_v28 = vunpack.i.h.bf16 %v12658_v62  ;;  %v9228_v37 = vunpack.i.l.bf16 %v12658_v62  ;;  %v9114_v9 = vunpack.i.h.bf16 %v12596_v45  ;;  %v9113_v52 = vunpack.i.l.bf16 %v12596_v45 }
 0x52f   : > { %v12954_v18 = vpop.permute.xlu0 %9446  ;;  %v9189_v51 = vunpack.i.h.bf16 %v12642_v21  ;;  %v9124_v45 = vunpack.i.h.bf16 %v12608_v6  ;;  %v9194_v54 = vunpack.i.h.bf16 %v12652_v53 }
 0x531   : > { %v12874_v48 = vpop.permute.xlu1 %9406 }
 0x533   : > { %v12962_v5 = vpop.permute.xlu0 %9451 }
 0x535   : > { %v12886_v47 = vpop.permute.xlu1 %9416 }
 0x539   : > { %v12898_v15 = vpop.permute.xlu1 %9426 }
 0x53d   : > { %v12910_v39 = vpop.permute.xlu1 %9431 }
 0x541   : > { %v12932_v61 = vpop.permute.xlu1 %9436 }
 0x54f   : > { %v9487_v56 = vpop.permute.xlu1 %9486 }
 0x550   : > { %v9489_v2 = vunpack.i.h.bf16 %v9487_v56  ;;  %v9488_v29 = vunpack.i.l.bf16 %v9487_v56  ;;  %v2847_v56 = vsel %vm2844_vm5, %v2838_v43, %v9203_v36  ;;  %v9118_v43 = vunpack.i.l.bf16 %v12602_v55 }
 0x552   : > { %v3586_v27 = vsel %vm14055_vm1, %v2953_v7, %v9488_v29  ;;  %v3587_v49 = vsel %vm14055_vm1, %v2954_v44, %v9489_v2  ;;  %v2856_v2 = vsel %vm2853_vm6, %v2847_v56, %v9208_v38  ;;  %v2866_v7 = vsel %vm2862_vm7, %v2857_v10, %v9214_v1  ;;  %v12982_v44 = vpop.permute.xlu0 %9456 }
 0x553   : > { %v3594_v16 = vpack.c.bf16 %v3587_v49, %v3586_v27  ;;  %v2865_v29 = vsel %vm2862_vm7, %v2856_v2, %v9213_v4  ;;  %v2875_v27 = vsel %vm2871_vm8, %v2866_v7, %v9219_v25  ;;  %v9104_v49 = vunpack.i.h.bf16 %v12588_v34 }
 0x554   : > { %v2874_v19 = vsel %vm2871_vm8, %v2865_v29, %v9218_v35  ;;  %v2884_v22 = vsel %vm14068_vm9, %v2875_v27, %v9224_v59  ;;  %v9119_v4 = vunpack.i.h.bf16 %v12602_v55  ;;  %v9188_v25 = vunpack.i.l.bf16 %v12642_v21  ;;  %v10245_v29 = vld [vmem:[#allocation2 + $0xa0] ss:$8 sps:$4 sm:$0xff]  }
 0x555   : > { %8524 = vmatprep.mubr.msk.bf16.mxu1 %vm14054_vm2, %v3594_v16  ;;  %v9103_v16 = vunpack.i.l.bf16 %v12588_v34  ;;  %v2883_v46 = vsel %vm14068_vm9, %v2874_v19, %v9223_v8  ;;  %v2893_v42 = vsel %vm14067_vm10, %v2884_v22, %v9229_v28  ;;  %v2833_v34 = vsel %vm2827_vm4, %v10196_v31, %v9104_v49 }
 0x556   : > { %v2892_v36 = vsel %vm14067_vm10, %v2883_v46, %v9228_v37  ;;  %v13000_v1 = vpop.permute.xlu0 %9461  ;;  %v2841_v62 = vsel %vm1475_vm3, %v2833_v34, %v9109_v14  ;;  %v2902_v56 = vsel %vm14058_vm11, %v2893_v42, %v9114_v9  ;;  %v9193_v59 = vunpack.i.l.bf16 %v12652_v53 }
 0x557   : > { %v2832_v38 = vsel %vm2827_vm4, %v10197_v13, %v9103_v16  ;;  %v2901_v35 = vsel %vm14058_vm11, %v2892_v36, %v9113_v52  ;;  %v9264_v8 = vunpack.i.h.bf16 %v12692_v57  ;;  %v9123_v2 = vunpack.i.l.bf16 %v12608_v6  ;;  %v10244_v6 = vld [vmem:[#allocation2 + $0x90] ss:$8 sps:$4 sm:$0xff]  }
 0x558   : > { %v2840_v41 = vsel %vm1475_vm3, %v2832_v38, %v9108_v3  ;;  %v9263_v55 = vunpack.i.l.bf16 %v12692_v57  ;;  %v9269_v10 = vunpack.i.h.bf16 %v12699_v11  ;;  %v9268_v21 = vunpack.i.l.bf16 %v12699_v11 }
 0x559   : > { %v9339_v7 = vunpack.i.h.bf16 %v12764_v26  ;;  %v9338_v19 = vunpack.i.l.bf16 %v12764_v26  ;;  %v2910_v27 = vsel %vm14057_vm12, %v2901_v35, %v9118_v43  ;;  %v2911_v49 = vsel %vm14057_vm12, %v2902_v56, %v9119_v4 }
 0x55a   : > { %v2850_v53 = vsel %vm2844_vm5, %v2841_v62, %v9189_v51  ;;  %v2849_v16 = vsel %vm2844_vm5, %v2840_v41, %v9188_v25  ;;  %v9369_v57 = vunpack.i.h.bf16 %v12872_v24  ;;  %v9368_v46 = vunpack.i.l.bf16 %v12872_v24  ;;  %v9467_v22 = vpop.permute.xlu0 %9466 }
 0x55b   : > { %v2858_v11 = vsel %vm2853_vm6, %v2849_v16, %v9193_v59  ;;  %v2859_v14 = vsel %vm2853_vm6, %v2850_v53, %v9194_v54  ;;  %v2835_v26 = vsel %vm2827_vm4, %v10245_v29, %v9264_v8  ;;  %v9333_v3 = vunpack.i.l.bf16 %v12813_v63 }
 0x55c   : > { %v2834_v28 = vsel %vm2827_vm4, %v10244_v6, %v9263_v55  ;;  %v2919_v37 = vsel %vm14056_vm15, %v2910_v27, %v9123_v2  ;;  %v2920_v31 = vsel %vm14056_vm15, %v2911_v49, %v9124_v45  ;;  %v9334_v13 = vunpack.i.h.bf16 %v12813_v63 }
 0x55d   : > { %v2842_v36 = vsel %vm1475_vm3, %v2834_v28, %v9268_v21  ;;  %v2843_v24 = vsel %vm1475_vm3, %v2835_v26, %v9269_v10  ;;  %v2928_v42 = vsel %vm2925_vm0, %v2919_v37, %v9338_v19  ;;  %v2929_v34 = vsel %vm2925_vm0, %v2920_v31, %v9339_v7 }
 0x55e   : > { %vm14157_vm2 = vcmask 424960   ;;  %v9444_v52 = vunpack.i.h.bf16 %v12947_v23  ;;  %v9443_v41 = vunpack.i.l.bf16 %v12947_v23  ;;  %v2867_v63 = vsel %vm2862_vm7, %v2858_v11, %v9333_v3  ;;  %v13054_v45 = vpop.permute.xlu0 %9471 }
 0x55f   : > { %v13039_v38 = vsel %vm14157_vm2, %v2928_v42, %v9368_v46  ;;  %vm14158_vm1 = vmmov %vm14157_vm2  ;;  %v9384_v62 = vunpack.i.h.bf16 %v12884_v33  ;;  %v9449_v4 = vunpack.i.h.bf16 %v12954_v18  ;;  %v9448_v43 = vunpack.i.l.bf16 %v12954_v18  ;;  %v13092_v42 = vpop.permute.xlu1 %9491 }
 0x560   : > { %v13042_v9 = vsel %vm14158_vm1, %v2929_v34, %v9369_v57  ;;  %v2868_v51 = vsel %vm2862_vm7, %v2859_v14, %v9334_v13  ;;  %v9349_v25 = vunpack.i.h.bf16 %v12844_v30  ;;  %v9454_v35 = vunpack.i.h.bf16 %v12962_v5 }
 0x561   : > { %v9453_v56 = vunpack.i.l.bf16 %v12962_v5  ;;  %v9348_v23 = vunpack.i.l.bf16 %v12844_v30  ;;  %v9378_v54 = vunpack.i.l.bf16 %v12860_v12  ;;  %v9459_v59 = vunpack.i.h.bf16 %v12982_v44 }
 0x562   : > { %v9458_v8 = vunpack.i.l.bf16 %v12982_v44  ;;  %v2851_v18 = vsel %vm2844_vm5, %v2842_v36, %v9443_v41  ;;  %v2852_v2 = vsel %vm2844_vm5, %v2843_v24, %v9444_v52  ;;  %v9464_v55 = vunpack.i.h.bf16 %v13000_v1 }
 0x563   : > { %v9463_v10 = vunpack.i.l.bf16 %v13000_v1  ;;  %v2860_v5 = vsel %vm2853_vm6, %v2851_v18, %v9448_v43  ;;  %v2861_v21 = vsel %vm2853_vm6, %v2852_v2, %v9449_v4  ;;  %v9469_v29 = vunpack.i.h.bf16 %v9467_v22 }
 0x564   : > { %v9468_v30 = vunpack.i.l.bf16 %v9467_v22  ;;  %v9379_v7 = vunpack.i.h.bf16 %v12860_v12  ;;  %v9393_v19 = vunpack.i.l.bf16 %v12865_v58  ;;  %v2869_v44 = vsel %vm2862_vm7, %v2860_v5, %v9453_v56  ;;  %v13078_v22 = vpop.permute.xlu0 %9476 }
 0x565   : > { %v2870_v27 = vsel %vm2862_vm7, %v2861_v21, %v9454_v35  ;;  %v9394_v49 = vunpack.i.h.bf16 %v12865_v58  ;;  %v9403_v53 = vunpack.i.l.bf16 %v12867_v60  ;;  %v2878_v1 = vsel %vm2871_vm8, %v2869_v44, %v9458_v8  ;;  %v9507_v21 = vpop.permute.xlu1 %9506 }
 0x566   : > { %v2879_v16 = vsel %vm2871_vm8, %v2870_v27, %v9459_v59  ;;  %v2876_v6 = vsel %vm2871_vm8, %v2867_v63, %v9348_v23  ;;  %v9404_v57 = vunpack.i.h.bf16 %v12867_v60  ;;  %v2887_v12 = vsel %vm14068_vm9, %v2878_v1, %v9463_v10 }
 0x567   : > { %v2888_v46 = vsel %vm14068_vm9, %v2879_v16, %v9464_v55  ;;  %v2877_v11 = vsel %vm2871_vm8, %v2868_v51, %v9349_v25  ;;  %v2885_v58 = vsel %vm14068_vm9, %v2876_v6, %v9378_v54  ;;  %v2896_v14 = vsel %vm14067_vm10, %v2887_v12, %v9468_v30 }
 0x568   : > { %v2897_v26 = vsel %vm14067_vm10, %v2888_v46, %v9469_v29  ;;  %v2886_v3 = vsel %vm14068_vm9, %v2877_v11, %v9379_v7  ;;  %v2894_v28 = vsel %vm14067_vm10, %v2885_v58, %v9393_v19  ;;  %v9409_v60 = vunpack.i.h.bf16 %v12874_v48  ;;  %v9482_v54 = vpop.permute.xlu0 %9481 }
 0x569   : > { %v9408_v37 = vunpack.i.l.bf16 %v12874_v48  ;;  %v9383_v31 = vunpack.i.l.bf16 %v12884_v33  ;;  %v9399_v13 = vunpack.i.h.bf16 %v12896_v50  ;;  %v2895_v36 = vsel %vm14067_vm10, %v2886_v3, %v9394_v49  ;;  %v9517_v16 = vpop.permute.xlu1 %9516 }
 0x56a   : > { %v2903_v24 = vsel %vm14058_vm11, %v2894_v28, %v9403_v53  ;;  %v9413_v34 = vunpack.i.l.bf16 %v12908_v40  ;;  %v2904_v52 = vsel %vm14058_vm11, %v2895_v36, %v9404_v57  ;;  %v2906_v63 = vsel %vm14058_vm11, %v2897_v26, %v9409_v60 }
 0x56b   : > { %v2905_v41 = vsel %vm14058_vm11, %v2896_v14, %v9408_v37  ;;  %v9398_v48 = vunpack.i.l.bf16 %v12896_v50  ;;  %v9414_v4 = vunpack.i.h.bf16 %v12908_v40  ;;  %v9419_v43 = vunpack.i.h.bf16 %v12886_v47 }
 0x56c   : > { %v9418_v51 = vunpack.i.l.bf16 %v12886_v47  ;;  %v2912_v25 = vsel %vm14057_vm12, %v2903_v24, %v9413_v34  ;;  %v9429_v35 = vunpack.i.h.bf16 %v12898_v15  ;;  %v9428_v56 = vunpack.i.l.bf16 %v12898_v15 }
 0x56d   : > { %v9473_v23 = vunpack.i.l.bf16 %v13054_v45  ;;  %v9423_v59 = vunpack.i.l.bf16 %v12930_v32  ;;  %v2913_v8 = vsel %vm14057_vm12, %v2904_v52, %v9414_v4  ;;  %v2915_v40 = vsel %vm14057_vm12, %v2906_v63, %v9419_v43 }
 0x56e   : > { %v2914_v50 = vsel %vm14057_vm12, %v2905_v41, %v9418_v51  ;;  %v2946_v47 = vsel %vm14059_vm14, %v13039_v38, %v9383_v31  ;;  %v2947_v18 = vsel %vm14059_vm14, %v13042_v9, %v9384_v62  ;;  %v9424_v15 = vunpack.i.h.bf16 %v12930_v32 }
 0x56f   : > { %v9474_v2 = vunpack.i.h.bf16 %v13054_v45  ;;  %v2955_v55 = vsel %vm14062_vm13, %v2946_v47, %v9398_v48  ;;  %v2956_v10 = vsel %vm14062_vm13, %v2947_v18, %v9399_v13  ;;  %v2921_v5 = vsel %vm14056_vm15, %v2912_v25, %v9423_v59  ;;  %v10554_v18 = vld [vmem:[%s12250_s8 + $0x28] sm:$0xff] }
 0x570   : > { %v2923_v29 = vsel %vm14056_vm15, %v2914_v50, %v9428_v56  ;;  %v2924_v38 = vsel %vm14056_vm15, %v2915_v40, %v9429_v35  ;;  %v2922_v33 = vsel %vm14056_vm15, %v2913_v8, %v9424_v15  ;;  %v2930_v30 = vsel %vm2925_vm0, %v2921_v5, %v9473_v23  ;;  %v10553_v40 = vld [vmem:[%s12250_s8 + $0x20] sm:$0xff] }
 0x571   : > { %v9434_v32 = vunpack.i.h.bf16 %v12910_v39  ;;  %v9433_v62 = vunpack.i.l.bf16 %v12910_v39  ;;  %v2931_v19 = vsel %vm2925_vm0, %v2922_v33, %v9474_v2  ;;  %v9479_v44 = vunpack.i.h.bf16 %v13078_v22  ;;  %v10555_v2 = vld [vmem:[%s12250_s8 + $0x30] sm:$0xff] }
 0x572   : > { %v9478_v27 = vunpack.i.l.bf16 %v13078_v22  ;;  %v9439_v49 = vunpack.i.h.bf16 %v12932_v61  ;;  %v9438_v53 = vunpack.i.l.bf16 %v12932_v61  ;;  %v9484_v1 = vunpack.i.h.bf16 %v9482_v54 }
 0x573   : > { %vm14159_vm1 = vcmask 523264   ;;  %v9483_v12 = vunpack.i.l.bf16 %v9482_v54  ;;  %v9494_v39 = vunpack.i.h.bf16 %v13092_v42  ;;  %v9493_v46 = vunpack.i.l.bf16 %v13092_v42 }
 0x574   : > { %vm14160_vm2 = vmmov %vm14159_vm1  ;;  %v2932_v14 = vsel %vm2925_vm0, %v2923_v29, %v9433_v62  ;;  %v2933_v22 = vsel %vm2925_vm0, %v2924_v38, %v9434_v32  ;;  %v9509_v26 = vunpack.i.h.bf16 %v9507_v21  ;;  %v9508_v3 = vunpack.i.l.bf16 %v9507_v21 }
 0x575   : > { %v9519_v61 = vunpack.i.h.bf16 %v9517_v16  ;;  %v9518_v28 = vunpack.i.l.bf16 %v9517_v16  ;;  %v3789_v47 = vmul.f32 %v10553_v40, %v12828_v20  ;;  %v3790_v15 = vmul.f32 %v10554_v18, %v12828_v20  ;;  %v10268_v40 = vld [vmem:[#allocation2 + $0x2] ss:$8 sps:$4 sm:$0xff]   ;;  %v10278_v18 = vld [vmem:[#allocation2 + $0xf1] ss:$8 sps:$4 sm:$0xff]  }
 0x577   : > { %v3804_v21 = vadd.f32 %v12837_v17, %v3789_v47  ;;  %v3805_v29 = vadd.f32 %v12837_v17, %v3790_v15  ;;  %v10269_v47 = vld [vmem:[#allocation2 + $0x12] ss:$8 sps:$4 sm:$0xff]   ;;  %v10279_v15 = vld [vmem:[#allocation2 + $0x101] ss:$8 sps:$4 sm:$0xff]  }
 0x583   : > { %v9497_v9 = vpop.permute.xlu0 %9496 }
 0x584   : > { %v9499_v45 = vunpack.i.h.bf16 %v9497_v9  ;;  %v9498_v7 = vunpack.i.l.bf16 %v9497_v9  ;;  %v3813_v9 = vmax.f32 %v3805_v29, 0.0  ;;  %v10271_v29 = vld [vmem:[#allocation2 + $0x18] ss:$8 sps:$4 sm:$0xff]  }
 0x586   : > { %v3588_v6 = vsel %vm14159_vm1, %v2955_v55, %v9498_v7  ;;  %v3589_v57 = vsel %vm14160_vm2, %v2956_v10, %v9499_v45  ;;  %vm14161_vm1 = vcmask 883712   ;;  %vm14162_vm2 = vcmask 424960   ;;  %v10556_v10 = vld [vmem:[%s12250_s8 + $0x38] sm:$0xff]  ;;  %s14189_s8 = smov 52  }
 0x587   : > { %v3595_v11 = vpack.c.bf16 %v3589_v57, %v3588_v6  ;;  %v9502_v58 = vpop.permute.xlu0 %9501  ;;  %v2939_v31 = vsel %vm14162_vm2, %v2930_v30, %v9478_v27  ;;  %vm14163_vm15 = vmmov %vm14162_vm2  ;;  %v3791_v55 = vmul.f32 %v10555_v2, %v12828_v20  ;;  %v3792_v5 = vmul.f32 %v10556_v10, %v12828_v20  ;;  %v8351_v20 = vld [vmem:[#allocation17] ss:$0 sm:$0xff]  ;;  %v8352_v27 = vld [vmem:[#allocation18] ss:$0 sm:$0xff] }
 0x588   : > { %v9504_v60 = vunpack.i.h.bf16 %v9502_v58  ;;  %v9503_v37 = vunpack.i.l.bf16 %v9502_v58  ;;  %v2940_v13 = vsel %vm14163_vm15, %v2931_v19, %v9479_v44  ;;  %vm14164_vm12 = vmmov %vm14162_vm2  ;;  %v2948_v42 = vsel %vm14059_vm14, %v2939_v31, %v9483_v12  ;;  %v10263_v19 = vld [vmem:[%s14172_s7] sm:$0xff]   ;;  %v10282_v2 = vld [vmem:[#allocation2 + $0xf2] ss:$8 sps:$4 sm:$0xff]   ;;  %s14194_s7 = smov 64  }
 0x589   : > { %8525 = vmatmul.mubr.msk.bf16.vlgmr.msra.gmra.mrb[8].mxu1 %vm14161_vm1, %v3595_v11  ;;  %v2941_v36 = vsel %vm14164_vm12, %v2932_v14, %v9438_v53  ;;  %vm14165_vm11 = vmmov %vm14162_vm2  ;;  %v2949_v34 = vsel %vm14059_vm14, %v2940_v13, %v9484_v1  ;;  %vm14166_vm12 = vcmask 523264   ;;  %vm14170_vm2 = vcmask 883712   ;;  %8552 = vmatprep.subr.bf16.mxu1 %v10263_v19 }
 0x58a   : > { %v2942_v24 = vsel %vm14165_vm11, %v2933_v22, %v9439_v49  ;;  %v2950_v41 = vsel %vm14059_vm14, %v2941_v36, %v9493_v46  ;;  %vm14167_vm11 = vmmov %vm14166_vm12  ;;  %v2958_v56 = vsel %vm14062_vm13, %v2949_v34, %v9504_v60  ;;  %v2957_v23 = vsel %vm14062_vm13, %v2948_v42, %v9503_v37  ;;  %8553 = vmatpush3.bf16.msra.mxu1 %v10263_v19  ;;  %v10274_v19 = vld [vmem:[#allocation2 + $0xa] ss:$8 sps:$4 sm:$0xff]  }
 0x58b   : > { %v2951_v52 = vsel %vm14059_vm14, %v2942_v24, %v9494_v39  ;;  %v9512_v63 = vpop.permute.xlu0 %9511  ;;  %v2959_v48 = vsel %vm14062_vm13, %v2950_v41, %v9508_v3  ;;  %vm14168_vm15 = vmmov %vm14167_vm11  ;;  %v3806_v38 = vadd.f32 %v12837_v17, %v3791_v55  ;;  %v3807_v33 = vadd.f32 %v12837_v17, %v3792_v5  ;;  %v10283_v55 = vld [vmem:[#allocation2 + $0x102] ss:$8 sps:$4 sm:$0xff]  }
 0x58c   : > { %v2960_v4 = vsel %vm14062_vm13, %v2951_v52, %v9509_v26  ;;  %v9514_v43 = vunpack.i.h.bf16 %v9512_v63  ;;  %v9513_v51 = vunpack.i.l.bf16 %v9512_v63  ;;  %v3592_v25 = vsel %vm14166_vm12, %v2959_v48, %v9518_v28  ;;  %vm14169_vm1 = vmmov %vm14167_vm11 }
 0x58d   : > { %v3593_v35 = vsel %vm14167_vm11, %v2960_v4, %v9519_v61  ;;  %vm14171_vm14 = vmmov %vm14170_vm2  ;;  %v3812_v30 = vmax.f32 %v3804_v21, 0.0  ;;  %v3814_v32 = vmax.f32 %v3806_v38, 0.0  ;;  %v3815_v62 = vmax.f32 %v3807_v33, 0.0  ;;  %v10270_v21 = vld [vmem:[#allocation2 + $0x8] ss:$8 sps:$4 sm:$0xff]  }
 0x58e   : > { %v3590_v54 = vsel %vm14168_vm15, %v2957_v23, %v9513_v51  ;;  %v3591_v59 = vsel %vm14169_vm1, %v2958_v56, %v9514_v43  ;;  %v3597_v50 = vpack.c.bf16 %v3593_v35, %v3592_v25  ;;  %v10264_v56 = vld [vmem:[#allocation2 + $0xf0] ss:$8 sps:$4 sm:$0xff]   ;;  %v10265_v23 = vld [vmem:[#allocation2 + $0x100] ss:$8 sps:$4 sm:$0xff]   ;;  %v9525_v10 = vpack.i.bf16 %v10279_v15, %v10278_v18 }
 0x58f   : > { %v3596_v8 = vpack.c.bf16 %v3591_v59, %v3590_v54  ;;  %v3818_v45 = vpack.c.bf16 %v3813_v9, %v3812_v30  ;;  %v3819_v7 = vpack.c.bf16 %v3815_v62, %v3814_v32  ;;  %v10266_v54 = vld [vmem:[#allocation2 + $0x1] ss:$8 sps:$4 sm:$0xff]   ;;  %v10267_v59 = vld [vmem:[#allocation2 + $0x11] ss:$8 sps:$4 sm:$0xff]   ;;  %v9570_v5 = vpack.i.bf16 %v10269_v47, %v10268_v40 }
 0x590   : > { %9526 = vrot.lane.b32.xlu1 %v9525_v10, %s11563_s22  ;;  %v9530_v38 = vpack.i.bf16 %v10283_v55, %v10282_v2  ;;  %v10286_v33 = vld [vmem:[#allocation2 + $0xf8] ss:$8 sps:$4 sm:$0xff]   ;;  %v10287_v30 = vld [vmem:[#allocation2 + $0x108] ss:$8 sps:$4 sm:$0xff]   ;;  %v9575_v9 = vpack.i.bf16 %v10271_v29, %v10270_v21 }
 0x591   : > { %8528 = vmatprep.mubr.msk.bf16.mxu1 %vm14170_vm2, %v3596_v8  ;;  %8538 = vmatprep.mubr.msk.bf16.mxu0 %vm1475_vm3, %v3818_v45  ;;  %v9520_v8 = vpack.i.bf16 %v10265_v23, %v10264_v56  ;;  %v10272_v32 = vld [vmem:[#allocation2 + $0x9] ss:$8 sps:$4 sm:$0xff]   ;;  %v10273_v62 = vld [vmem:[#allocation2 + $0x19] ss:$8 sps:$4 sm:$0xff]   ;;  %v9535_v45 = vpack.i.bf16 %v10287_v30, %v10286_v33 }
 0x592   : > { %8529 = vmatmul.mubr.msk.bf16.gmra.mrb[12].mxu1 %vm14171_vm14, %v3597_v50  ;;  %8539 = vmatmul.mubr.msk.bf16.gmra.mrb[4].mxu0 %vm1475_vm3, %v3819_v7  ;;  %v9565_v50 = vpack.i.bf16 %v10267_v59, %v10266_v54  ;;  %v9580_v7 = vpack.i.bf16 %v10273_v62, %v10272_v32  ;;  %v10288_v55 = vld [vmem:[#allocation2 + $0xf9] ss:$8 sps:$4 sm:$0xff]   ;;  %v10289_v10 = vld [vmem:[#allocation2 + $0x109] ss:$8 sps:$4 sm:$0xff]   ;;  %vm14174_vm14 = vcmask 27648  }
 0x593   : > { %9521 = vrot.lane.b32.xlu0 %v9520_v8, %s11561_s16  ;;  %v10290_v21 = vld [vmem:[#allocation2 + $0xfa] ss:$8 sps:$4 sm:$0xff]   ;;  %v10291_v29 = vld [vmem:[#allocation2 + $0x10a] ss:$8 sps:$4 sm:$0xff]   ;;  %vm14175_vm12 = vmmov %vm14174_vm14 }
 0x594   : > { %9531 = vrot.lane.b32.xlu1 %v9530_v38, %s11564_s13  ;;  %v10292_v38 = vld [vmem:[#allocation2 + $0x100] ss:$8 sps:$4 sm:$0xff]   ;;  %v10293_v33 = vld [vmem:[#allocation2 + $0x110] ss:$8 sps:$4 sm:$0xff]   ;;  %v9545_v30 = vpack.i.bf16 %v10291_v29, %v10290_v21  ;;  %vm14176_vm11 = vmmov %vm14175_vm12 }
 0x595   : > { %v10294_v32 = vld [vmem:[#allocation2 + $0x101] ss:$8 sps:$4 sm:$0xff]   ;;  %v10295_v62 = vld [vmem:[#allocation2 + $0x111] ss:$8 sps:$4 sm:$0xff]   ;;  %vm14177_vm15 = vmmov %vm14176_vm11 }
 0x596   : > { %vm14178_vm1 = vmmov %vm14176_vm11 }
 0x597   : > { %9566 = vrot.lane.b32.xlu0 %v9565_v50, %s11562_s3  ;;  %vm14179_vm2 = vmmov %vm14178_vm1 }
 0x598   : > { %9536 = vrot.lane.b32.xlu1 %v9535_v45, %s11565_s14  ;;  %v10296_v45 = vld [vmem:[#allocation2 + $0x102] ss:$8 sps:$4 sm:$0xff]   ;;  %vm14180_vm13 = vmmov %vm14178_vm1 }
 0x59b   : > { %9571 = vrot.lane.b32.xlu0 %v9570_v5, %s11561_s16  ;;  %v9540_v5 = vpack.i.bf16 %v10289_v10, %v10288_v55 }
 0x59d   : > { %9541 = vrot.lane.b32.xlu1 %v9540_v5, %s11566_s2 }
 0x59f   : > { %9576 = vrot.lane.b32.xlu0 %v9575_v9, %s11563_s22  ;;  %v9550_v9 = vpack.i.bf16 %v10293_v33, %v10292_v38 }
 0x5a1   : > { %9546 = vrot.lane.b32.xlu1 %v9545_v30, %s11567_s5 }
 0x5a3   : > { %9581 = vrot.lane.b32.xlu0 %v9580_v7, %s11564_s13  ;;  %v10297_v7 = vld [vmem:[#allocation2 + $0x112] ss:$8 sps:$4 sm:$0xff]  }
 0x5a5   : > { %9551 = vrot.lane.b32.xlu1 %v9550_v9, %s11568_s9 }
 0x65c   : > { %v8526_v44 = vpop.f32.mrb[8].mxu1 }
 0x65d   : > { %v3744_v49 = vmul.f32 %v8526_v44, %v8351_v20  ;;  %v3704_v53 = vpop.f32.mrb[9].mxu1 }
 0x65e   : > { %v3742_v1 = vmul.f32 %v8351_v20, %v3704_v53  ;;  %v8527_v17 = vpop.f32.mrb[10].mxu1 }
 0x65f   : > { %v3759_v16 = vadd.f32 %v8352_v27, %v3744_v49  ;;  %v3745_v6 = vmul.f32 %v8527_v17, %v8351_v20  ;;  %v3707_v57 = vpop.f32.mrb[11].mxu1  ;;  %v10277_v49 = vld [vmem:[#allocation2 + $0x20] ss:$8 sps:$4 sm:$0xff]  }
 0x660   : > { %v3757_v12 = vadd.f32 %v8352_v27, %v3742_v1  ;;  %v3743_v39 = vmul.f32 %v8351_v20, %v3707_v57  ;;  %v10280_v1 = vld [vmem:[#allocation2 + $0x11] ss:$8 sps:$4 sm:$0xff]   ;;  %v10281_v17 = vld [vmem:[#allocation2 + $0x21] ss:$8 sps:$4 sm:$0xff]  }
 0x661   : > { %v3760_v46 = vadd.f32 %v8352_v27, %v3745_v6  ;;  %v3767_v58 = vmax.f32 %v3759_v16, 0.0  ;;  %v9595_v16 = vpack.i.bf16 %v10281_v17, %v10280_v1  ;;  %v10284_v6 = vld [vmem:[#allocation2 + $0x12] ss:$8 sps:$4 sm:$0xff]   ;;  %v10285_v57 = vld [vmem:[#allocation2 + $0x22] ss:$8 sps:$4 sm:$0xff]  }
 0x662   : > { %v3758_v11 = vadd.f32 %v8352_v27, %v3743_v39  ;;  %v3765_v22 = vmax.f32 %v3757_v12, 0.0  ;;  %v9600_v12 = vpack.i.bf16 %v10285_v57, %v10284_v6  ;;  %v8363_v39 = vld [vmem:[#allocation26] ss:$0 sm:$0xff] }
 0x663   : > { %v3768_v14 = vmax.f32 %v3760_v46, 0.0 }
 0x664   : > { %v3766_v26 = vmax.f32 %v3758_v11, 0.0  ;;  %v8364_v11 = vld [vmem:[#allocation27] ss:$0 sm:$0xff] }
 0x665   : > { %v3774_v3 = vpack.c.bf16 %v3768_v14, %v3767_v58  ;;  %v8530_v61 = vpop.f32.mrb[12].mxu1 }
 0x666   : > { %v3773_v28 = vpack.c.bf16 %v3766_v26, %v3765_v22  ;;  %v3748_v60 = vmul.f32 %v8530_v61, %v8351_v20  ;;  %v3720_v37 = vpop.f32.mrb[13].mxu1 }
 0x667   : > { %v3746_v31 = vmul.f32 %v8351_v20, %v3720_v37  ;;  %v8531_v13 = vpop.f32.mrb[14].mxu1 }
 0x668   : > { %v3763_v36 = vadd.f32 %v8352_v27, %v3748_v60  ;;  %v3749_v24 = vmul.f32 %v8531_v13, %v8351_v20  ;;  %8544 = vmatprep.mubr.msk.bf16.mxu0 %vm2827_vm4, %v3773_v28  ;;  %v3723_v42 = vpop.f32.mrb[15].mxu1 }
 0x669   : > { %v3761_v34 = vadd.f32 %v8352_v27, %v3746_v31  ;;  %v3747_v52 = vmul.f32 %v8351_v20, %v3723_v42  ;;  %8545 = vmatmul.mubr.msk.bf16.vlgmr.msra.gmra.mrb[0].mxu0 %vm2827_vm4, %v3774_v3  ;;  %v10275_v20 = vld [vmem:[#allocation2 + $0x1a] ss:$8 sps:$4 sm:$0xff]  }
 0x66a   : > { %v3764_v41 = vadd.f32 %v8352_v27, %v3749_v24  ;;  %v3771_v48 = vmax.f32 %v3763_v36, 0.0  ;;  %v9585_v44 = vpack.i.bf16 %v10275_v20, %v10274_v19  ;;  %v9555_v19 = vpack.i.bf16 %v10295_v62, %v10294_v32 }
 0x66b   : > { %v3762_v63 = vadd.f32 %v8352_v27, %v3747_v52  ;;  %v3769_v43 = vmax.f32 %v3761_v34, 0.0  ;;  %v10276_v27 = vld [vmem:[#allocation2 + $0x10] ss:$8 sps:$4 sm:$0xff]   ;;  %v9560_v20 = vpack.i.bf16 %v10297_v7, %v10296_v45 }
 0x66c   : > { %v3772_v4 = vmax.f32 %v3764_v41, 0.0  ;;  %9586 = vrot.lane.b32.xlu0 %v9585_v44, %s11565_s14  ;;  %v9590_v53 = vpack.i.bf16 %v10277_v49, %v10276_v27  ;;  %9556 = vrot.lane.b32.xlu1 %v9555_v19, %s11569_s19  ;;  %v8370_v44 = vld [vmem:[#allocation29] ss:$0 sm:$0xff]  ;;  %v8371_v49 = vld [vmem:[#allocation30] ss:$0 sm:$0xff] }
 0x66d   : > { %v3770_v51 = vmax.f32 %v3762_v63, 0.0 }
 0x66e   : > { %v3776_v25 = vpack.c.bf16 %v3772_v4, %v3771_v48 }
 0x66f   : > { %v3775_v35 = vpack.c.bf16 %v3770_v51, %v3769_v43 }
 0x670   : > { %9591 = vrot.lane.b32.xlu0 %v9590_v53, %s11566_s2  ;;  %9561 = vrot.lane.b32.xlu1 %v9560_v20, %s11570_s26 }
 0x671   : > { %8548 = vmatprep.mubr.msk.bf16.mxu0 %vm2827_vm4, %v3775_v35 }
 0x672   : > { %8549 = vmatmul.mubr.msk.bf16.gmra.mrb[4].mxu0 %vm2827_vm4, %v3776_v25 }
 0x674   : > { %9596 = vrot.lane.b32.xlu0 %v9595_v16, %s11567_s5 }
 0x678   : > { %9601 = vrot.lane.b32.xlu0 %v9600_v12, %s11568_s9 }
 0x73c   : > { %v13188_v46 = vpop.f32.mrb[0].mxu0 }
 0x73d   : > { %v3991_v58 = vmul.f32 %v13188_v46, %v8363_v39  ;;  %v13191_v14 = vpop.f32.mrb[1].mxu0 }
 0x73e   : > { %v3989_v22 = vmul.f32 %v8363_v39, %v13191_v14  ;;  %v13194_v26 = vpop.f32.mrb[2].mxu0 }
 0x73f   : > { %v4006_v3 = vadd.f32 %v8364_v11, %v3991_v58  ;;  %v3992_v61 = vmul.f32 %v13194_v26, %v8363_v39  ;;  %v13197_v28 = vpop.f32.mrb[3].mxu0 }
 0x740   : > { %v4004_v60 = vadd.f32 %v8364_v11, %v3989_v22  ;;  %v3990_v37 = vmul.f32 %v8363_v39, %v13197_v28 }
 0x741   : > { %v4007_v31 = vadd.f32 %v8364_v11, %v3992_v61  ;;  %v4014_v36 = vmax.f32 %v4006_v3, 0.0 }
 0x742   : > { %v4005_v13 = vadd.f32 %v8364_v11, %v3990_v37  ;;  %v4012_v42 = vmax.f32 %v4004_v60, 0.0 }
 0x743   : > { %v4015_v24 = vmax.f32 %v4007_v31, 0.0 }
 0x744   : > { %v4013_v34 = vmax.f32 %v4005_v13, 0.0 }
 0x745   : > { %v4021_v52 = vpack.c.bf16 %v4015_v24, %v4014_v36  ;;  %v13200_v41 = vpop.f32.mrb[4].mxu0 }
 0x746   : > { %v4020_v63 = vpack.c.bf16 %v4013_v34, %v4012_v42  ;;  %v3995_v48 = vmul.f32 %v13200_v41, %v8363_v39  ;;  %v13203_v4 = vpop.f32.mrb[5].mxu0 }
 0x747   : > { %v3993_v43 = vmul.f32 %v8363_v39, %v13203_v4  ;;  %v13206_v51 = vpop.f32.mrb[6].mxu0 }
 0x748   : > { %v4010_v25 = vadd.f32 %v8364_v11, %v3995_v48  ;;  %v3996_v35 = vmul.f32 %v13206_v51, %v8363_v39  ;;  %8554 = vmatprep.mubr.msk.bf16.mxu1 %vm2853_vm6, %v4020_v63  ;;  %v13210_v56 = vpop.f32.mrb[7].mxu0 }
 0x749   : > { %14173 = vst [vmem:[#allocation91_spill] sm:$0xff] %v13210_v56  ;;  %v4008_v23 = vadd.f32 %v8364_v11, %v3993_v43  ;;  %v3994_v54 = vmul.f32 %v8363_v39, %v13210_v56  ;;  %8555 = vmatmul.mubr.msk.bf16.vlgmr.msra.gmra.mrb[16].mxu1 %vm2853_vm6, %v4021_v52 }
 0x74a   : > { %v4011_v59 = vadd.f32 %v8364_v11, %v3996_v35  ;;  %v4018_v50 = vmax.f32 %v4010_v25, 0.0 }
 0x74b   : > { %v4009_v8 = vadd.f32 %v8364_v11, %v3994_v54  ;;  %v4016_v47 = vmax.f32 %v4008_v23, 0.0 }
 0x74c   : > { %v4019_v40 = vmax.f32 %v4011_v59, 0.0 }
 0x74d   : > { %v4017_v18 = vmax.f32 %v4009_v8, 0.0 }
 0x74e   : > { %v4023_v15 = vpack.c.bf16 %v4019_v40, %v4018_v50 }
 0x74f   : > { %v4022_v2 = vpack.c.bf16 %v4017_v18, %v4016_v47 }
 0x751   : > { %8558 = vmatprep.mubr.msk.bf16.mxu1 %vm2853_vm6, %v4022_v2 }
 0x752   : > { %8559 = vmatmul.mubr.msk.bf16.gmra.mrb[20].mxu1 %vm2853_vm6, %v4023_v15 }
 0x81c   : > { %v8556_v27 = vpop.f32.mrb[16].mxu1 }
 0x81d   : > { %v4118_v53 = vmul.f32 %v8556_v27, %v8370_v44  ;;  %v4078_v1 = vpop.f32.mrb[17].mxu1 }
 0x81e   : > { %v4116_v17 = vmul.f32 %v8370_v44, %v4078_v1  ;;  %v8557_v16 = vpop.f32.mrb[18].mxu1 }
 0x81f   : > { %v4133_v6 = vadd.f32 %v8371_v49, %v4118_v53  ;;  %v4119_v57 = vmul.f32 %v8557_v16, %v8370_v44  ;;  %v4081_v12 = vpop.f32.mrb[19].mxu1 }
 0x820   : > { %v4131_v39 = vadd.f32 %v8371_v49, %v4116_v17  ;;  %v4117_v11 = vmul.f32 %v8370_v44, %v4081_v12 }
 0x821   : > { %v4141_v58 = vmax.f32 %v4133_v6, 0.0  ;;  %v4134_v22 = vadd.f32 %v8371_v49, %v4119_v57 }
 0x822   : > { %v4139_v3 = vmax.f32 %v4131_v39, 0.0  ;;  %v4132_v61 = vadd.f32 %v8371_v49, %v4117_v11 }
 0x823   : > { %v4157_v60 = vcombine.high %v4141_v58, %v4141_v58  ;;  %4175 = vst.msk [vmem:[#allocation2 + $0x69] sm:$0xf] %vm14174_vm14, %v4141_v58  ;;  %v4142_v37 = vmax.f32 %v4134_v22, 0.0  ;;  %vm14181_vm14 = vmmov %vm14178_vm1 }
 0x824   : > { %v4155_v31 = vcombine.high %v4139_v3, %v4139_v3  ;;  %4171 = vst.msk [vmem:[#allocation2 + $0x39] sm:$0xf] %vm14175_vm12, %v4139_v3  ;;  %v4140_v13 = vmax.f32 %v4132_v61, 0.0  ;;  %vm14182_vm12 = vmmov %vm14178_vm1 }
 0x825   : > { %4176 = vst.msk [vmem:[#allocation2 + $0x71] sm:$0xf] %vm14176_vm11, %v4157_v60  ;;  %v4158_v36 = vcombine.high %v4142_v37, %v4142_v37  ;;  %v8560_v24 = vpop.f32.mrb[20].mxu1  ;;  %vm14184_vm11 = vmmov %vm14178_vm1 }
 0x826   : > { %4177 = vst.msk [vmem:[#allocation2 + $0x79] sm:$0xf] %vm14177_vm15, %v4142_v37  ;;  %v4156_v42 = vcombine.high %v4140_v13, %v4140_v13  ;;  %v4122_v34 = vmul.f32 %v8560_v24, %v8370_v44  ;;  %v4094_v52 = vpop.f32.mrb[21].mxu1  ;;  %vm14185_vm15 = vmmov %vm14178_vm1 }
 0x827   : > { %4172 = vst.msk [vmem:[#allocation2 + $0x41] sm:$0xf] %vm14178_vm1, %v4155_v31  ;;  %v4120_v63 = vmul.f32 %v8370_v44, %v4094_v52  ;;  %v8561_v48 = vpop.f32.mrb[22].mxu1 }
 0x828   : > { %4173 = vst.msk [vmem:[#allocation2 + $0x49] sm:$0xf] %vm14179_vm2, %v4140_v13  ;;  %v4137_v43 = vadd.f32 %v8371_v49, %v4122_v34  ;;  %v4123_v25 = vmul.f32 %v8561_v48, %v8370_v44  ;;  %v4097_v35 = vpop.f32.mrb[23].mxu1  ;;  %vm14186_vm2 = vmmov %vm14178_vm1 }
 0x829   : > { %4178 = vst.msk [vmem:[#allocation2 + $0x81] sm:$0xf] %vm14180_vm13, %v4158_v36  ;;  %v4135_v23 = vadd.f32 %v8371_v49, %v4120_v63  ;;  %v4121_v54 = vmul.f32 %v8370_v44, %v4097_v35  ;;  %vm14183_vm13 = vmmov %vm14178_vm1 }
 0x82a   : > { %4174 = vst.msk [vmem:[#allocation2 + $0x51] sm:$0xf] %vm14181_vm14, %v4156_v42  ;;  %v4145_v59 = vmax.f32 %v4137_v43, 0.0  ;;  %v4138_v8 = vadd.f32 %v8371_v49, %v4123_v25  ;;  %v10298_v47 = vld [vmem:[#allocation2 + $0x60] ss:$8 sps:$4 sm:$0xff]   ;;  %vm14187_vm14 = vmmov %vm14178_vm1 }
 0x82b   : > { %v4143_v50 = vmax.f32 %v4135_v23, 0.0  ;;  %v4136_v40 = vadd.f32 %v8371_v49, %v4121_v54  ;;  %v10300_v2 = vld [vmem:[#allocation2 + $0x61] ss:$8 sps:$4 sm:$0xff]   ;;  %v10308_v49 = vld [vmem:[#allocation2 + $0x31] ss:$8 sps:$4 sm:$0xff]  }
 0x82c   : > { %v4161_v18 = vcombine.high %v4145_v59, %v4145_v59  ;;  %4183 = vst.msk [vmem:[#allocation2 + $0xc9] sm:$0xf] %vm14182_vm12, %v4145_v59  ;;  %v4146_v15 = vmax.f32 %v4138_v8, 0.0  ;;  %v10302_v30 = vld [vmem:[#allocation2 + $0x61] ss:$8 sps:$4 sm:$0xff]   ;;  %vm14188_vm12 = vmmov %vm14178_vm1 }
 0x82d   : > { %v4159_v55 = vcombine.high %v4143_v50, %v4143_v50  ;;  %4179 = vst.msk [vmem:[#allocation2 + $0x99] sm:$0xf] %vm14183_vm13, %v4143_v50  ;;  %v4144_v10 = vmax.f32 %v4136_v40, 0.0  ;;  %v10299_v5 = vld [vmem:[#allocation2 + $0x70] ss:$8 sps:$4 sm:$0xff]   ;;  %vm14190_vm13 = vcmask 293888  }
 0x82e   : > { %4184 = vst.msk [vmem:[#allocation2 + $0xd1] sm:$0xf] %vm14184_vm11, %v4161_v18  ;;  %v4162_v21 = vcombine.high %v4146_v15, %v4146_v15  ;;  %v10301_v29 = vld [vmem:[#allocation2 + $0x71] ss:$8 sps:$4 sm:$0xff]   ;;  %v9605_v33 = vpack.i.bf16 %v10299_v5, %v10298_v47  ;;  %v10304_v62 = vld [vmem:[#allocation2 + $0x62] ss:$8 sps:$4 sm:$0xff]   ;;  %vm14191_vm11 = vmmov %vm14190_vm13 }
 0x82f   : > { %4185 = vst.msk [vmem:[#allocation2 + $0xd9] sm:$0xf] %vm14185_vm15, %v4146_v15  ;;  %v4160_v38 = vcombine.high %v4144_v10, %v4144_v10  ;;  %v9620_v9 = vpack.i.bf16 %v10301_v29, %v10300_v2  ;;  %v10303_v32 = vld [vmem:[#allocation2 + $0x71] ss:$8 sps:$4 sm:$0xff]   ;;  %v10306_v44 = vld [vmem:[#allocation2 + $0x62] ss:$8 sps:$4 sm:$0xff]  }
 0x830   : > { %4180 = vst.msk [vmem:[#allocation2 + $0xa1] sm:$0xf] %vm14178_vm1, %v4159_v55  ;;  %9606 = vrot.lane.b32.xlu0 %v9605_v33, %s11561_s16  ;;  %v10305_v45 = vld [vmem:[#allocation2 + $0x72] ss:$8 sps:$4 sm:$0xff]   ;;  %v9610_v7 = vpack.i.bf16 %v10303_v32, %v10302_v30  ;;  %v10309_v27 = vld [vmem:[#allocation2 + $0x41] ss:$8 sps:$4 sm:$0xff]  }
 0x831   : > { %4181 = vst.msk [vmem:[#allocation2 + $0xa9] sm:$0xf] %vm14186_vm2, %v4144_v10  ;;  %9621 = vrot.lane.b32.xlu1 %v9620_v9, %s11562_s3  ;;  %v10307_v19 = vld [vmem:[#allocation2 + $0x72] ss:$8 sps:$4 sm:$0xff]   ;;  %v9625_v20 = vpack.i.bf16 %v10305_v45, %v10304_v62  ;;  %v9645_v17 = vpack.i.bf16 %v10309_v27, %v10308_v49  ;;  %v10313_v16 = vld [vmem:[#allocation2 + $0x42] ss:$8 sps:$4 sm:$0xff]   ;;  %vm14196_vm2 = vmmov %vm14191_vm11 }
 0x832   : > { %4186 = vst.msk [vmem:[#allocation2 + $0xe1] sm:$0xf] %vm14187_vm14, %v4162_v21  ;;  %v10311_v53 = vld [vmem:[#allocation2 + $0x70] ss:$8 sps:$4 sm:$0xff]   ;;  %v9615_v1 = vpack.i.bf16 %v10307_v19, %v10306_v44  ;;  %v10310_v6 = vld [vmem:[#allocation2 + $0x60] ss:$8 sps:$4 sm:$0xff]   ;;  %vm14197_vm14 = vmmov %vm14196_vm2 }
 0x833   : > { %4182 = vst.msk [vmem:[#allocation2 + $0xb1] sm:$0xf] %vm14188_vm12, %v4160_v38  ;;  %v10312_v57 = vld [vmem:[#allocation2 + $0x32] ss:$8 sps:$4 sm:$0xff]   ;;  %v9630_v12 = vpack.i.bf16 %v10311_v53, %v10310_v6  ;;  %v10317_v11 = vld [vmem:[#allocation2 + $0x40] ss:$8 sps:$4 sm:$0xff]  }
 0x834   : > { %9611 = vrot.lane.b32.xlu0 %v9610_v7, %s11563_s22  ;;  %v10315_v39 = vld [vmem:[#allocation2 + $0x71] ss:$8 sps:$4 sm:$0xff]   ;;  %v9650_v58 = vpack.i.bf16 %v10313_v16, %v10312_v57  ;;  %v10314_v22 = vld [vmem:[#allocation2 + $0x61] ss:$8 sps:$4 sm:$0xff]   ;;  %vm14192_vm15 = vcmask 326656  }
 0x835   : > { %9626 = vrot.lane.b32.xlu1 %v9625_v20, %s11561_s16  ;;  %v10316_v3 = vld [vmem:[#allocation2 + $0x30] ss:$8 sps:$4 sm:$0xff]   ;;  %v9635_v61 = vpack.i.bf16 %v10315_v39, %v10314_v22  ;;  %v10321_v31 = vld [vmem:[#allocation2 + $0x41] ss:$8 sps:$4 sm:$0xff]   ;;  %vm14193_vm1 = vmmov %vm14192_vm15 }
 0x836   : > { %v10319_v60 = vld [vmem:[#allocation2 + $0x72] ss:$8 sps:$4 sm:$0xff]   ;;  %v9655_v37 = vpack.i.bf16 %v10317_v11, %v10316_v3  ;;  %v10318_v13 = vld [vmem:[#allocation2 + $0x62] ss:$8 sps:$4 sm:$0xff]   ;;  %vm14198_vm12 = vmmov %vm14193_vm1 }
 0x837   : > { %v10320_v36 = vld [vmem:[#allocation2 + $0x31] ss:$8 sps:$4 sm:$0xff]   ;;  %v9640_v42 = vpack.i.bf16 %v10319_v60, %v10318_v13  ;;  %v10325_v63 = vld [vmem:[#allocation2 + $0x42] ss:$8 sps:$4 sm:$0xff]  }
 0x838   : > { %9616 = vrot.lane.b32.xlu0 %v9615_v1, %s11564_s13  ;;  %v10323_v24 = vld [vmem:[#allocation2 + $0x78] ss:$8 sps:$4 sm:$0xff]   ;;  %v9660_v34 = vpack.i.bf16 %v10321_v31, %v10320_v36  ;;  %v10322_v52 = vld [vmem:[#allocation2 + $0x68] ss:$8 sps:$4 sm:$0xff]  }
 0x839   : > { %9646 = vrot.lane.b32.xlu1 %v9645_v17, %s11562_s3  ;;  %v10324_v48 = vld [vmem:[#allocation2 + $0x32] ss:$8 sps:$4 sm:$0xff]   ;;  %v9675_v25 = vpack.i.bf16 %v10323_v24, %v10322_v52  ;;  %v10329_v23 = vld [vmem:[#allocation2 + $0x82] ss:$8 sps:$4 sm:$0xff]  }
 0x83a   : > { %v10327_v43 = vld [vmem:[#allocation2 + $0x79] ss:$8 sps:$4 sm:$0xff]   ;;  %v9665_v35 = vpack.i.bf16 %v10325_v63, %v10324_v48  ;;  %v10326_v54 = vld [vmem:[#allocation2 + $0x69] ss:$8 sps:$4 sm:$0xff]  }
 0x83b   : > { %v10328_v59 = vld [vmem:[#allocation2 + $0x72] ss:$8 sps:$4 sm:$0xff]   ;;  %v9680_v8 = vpack.i.bf16 %v10327_v43, %v10326_v54  ;;  %v10333_v40 = vld [vmem:[#allocation2 + $0x81] ss:$8 sps:$4 sm:$0xff]  }
 0x83c   : > { %9631 = vrot.lane.b32.xlu0 %v9630_v12, %s11569_s19  ;;  %v10331_v50 = vld [vmem:[#allocation2 + $0x7a] ss:$8 sps:$4 sm:$0xff]   ;;  %v9670_v47 = vpack.i.bf16 %v10329_v23, %v10328_v59  ;;  %v10330_v18 = vld [vmem:[#allocation2 + $0x6a] ss:$8 sps:$4 sm:$0xff]   ;;  %v13269_v59 = vpop.permute.xlu0 %9521 }
 0x83d   : > { %9651 = vrot.lane.b32.xlu1 %v9650_v58, %s11561_s16  ;;  %v10332_v15 = vld [vmem:[#allocation2 + $0x71] ss:$8 sps:$4 sm:$0xff]   ;;  %v9685_v2 = vpack.i.bf16 %v10331_v50, %v10330_v18  ;;  %v10335_v55 = vld [vmem:[#allocation2 + $0x80] ss:$8 sps:$4 sm:$0xff]  }
 0x83e   : > { %v9695_v10 = vpack.i.bf16 %v10333_v40, %v10332_v15  ;;  %v10337_v5 = vld [vmem:[#allocation2 + $0x82] ss:$8 sps:$4 sm:$0xff]   ;;  %v10334_v21 = vld [vmem:[#allocation2 + $0x70] ss:$8 sps:$4 sm:$0xff]  }
 0x83f   : > { %v10336_v29 = vld [vmem:[#allocation2 + $0x72] ss:$8 sps:$4 sm:$0xff]   ;;  %v9690_v38 = vpack.i.bf16 %v10335_v55, %v10334_v21  ;;  %v10340_v32 = vld [vmem:[#allocation2 + $0x42] ss:$8 sps:$4 sm:$0xff]  }
 0x840   : > { %9636 = vrot.lane.b32.xlu0 %v9635_v61, %s11570_s26  ;;  %v10341_v33 = vld [vmem:[#allocation2 + $0x52] ss:$8 sps:$4 sm:$0xff]   ;;  %v9700_v30 = vpack.i.bf16 %v10337_v5, %v10336_v29  ;;  %v10344_v44 = vld [vmem:[#allocation2 + $0x42] ss:$8 sps:$4 sm:$0xff]   ;;  %v13273_v29 = vpop.permute.xlu1 %9526 }
 0x841   : > { %9656 = vrot.lane.b32.xlu1 %v9655_v37, %s11569_s19  ;;  %v10339_v9 = vld [vmem:[#allocation2 + $0x78] ss:$8 sps:$4 sm:$0xff]   ;;  %v10338_v62 = vld [vmem:[#allocation2 + $0x68] ss:$8 sps:$4 sm:$0xff]   ;;  %v9715_v7 = vpack.i.bf16 %v10341_v33, %v10340_v32 }
 0x842   : > { %v10345_v45 = vld [vmem:[#allocation2 + $0x52] ss:$8 sps:$4 sm:$0xff]   ;;  %v9705_v19 = vpack.i.bf16 %v10339_v9, %v10338_v62  ;;  %v10348_v16 = vld [vmem:[#allocation2 + $0xc2] ss:$8 sps:$4 sm:$0xff]  }
 0x843   : > { %v10343_v20 = vld [vmem:[#allocation2 + $0x79] ss:$8 sps:$4 sm:$0xff]   ;;  %v10342_v27 = vld [vmem:[#allocation2 + $0x69] ss:$8 sps:$4 sm:$0xff]   ;;  %v9745_v49 = vpack.i.bf16 %v10345_v45, %v10344_v44 }
 0x844   : > { %9641 = vrot.lane.b32.xlu0 %v9640_v42, %s11571_s10  ;;  %v10349_v53 = vld [vmem:[#allocation2 + $0xd2] ss:$8 sps:$4 sm:$0xff]   ;;  %v9710_v1 = vpack.i.bf16 %v10343_v20, %v10342_v27  ;;  %v10353_v39 = vld [vmem:[#allocation2 + $0xa1] ss:$8 sps:$4 sm:$0xff]  }
 0x845   : > { %9661 = vrot.lane.b32.xlu1 %v9660_v34, %s11570_s26  ;;  %v10347_v17 = vld [vmem:[#allocation2 + $0x48] ss:$8 sps:$4 sm:$0xff]   ;;  %v10346_v6 = vld [vmem:[#allocation2 + $0x38] ss:$8 sps:$4 sm:$0xff]   ;;  %v9760_v57 = vpack.i.bf16 %v10349_v53, %v10348_v16 }
 0x846   : > { %v10351_v12 = vld [vmem:[#allocation2 + $0x49] ss:$8 sps:$4 sm:$0xff]   ;;  %v9720_v11 = vpack.i.bf16 %v10347_v17, %v10346_v6  ;;  %v10350_v22 = vld [vmem:[#allocation2 + $0x39] ss:$8 sps:$4 sm:$0xff]  }
 0x847   : > { %v10352_v58 = vld [vmem:[#allocation2 + $0x91] ss:$8 sps:$4 sm:$0xff]   ;;  %v10357_v61 = vld [vmem:[#allocation2 + $0xa2] ss:$8 sps:$4 sm:$0xff]   ;;  %v9725_v60 = vpack.i.bf16 %v10351_v12, %v10350_v22 }
 0x848   : > { %9676 = vrot.lane.b32.xlu0 %v9675_v25, %s11565_s14  ;;  %v9780_v3 = vpack.i.bf16 %v10353_v39, %v10352_v58  ;;  %v10355_v37 = vld [vmem:[#allocation2 + $0x4a] ss:$8 sps:$4 sm:$0xff]   ;;  %v10354_v13 = vld [vmem:[#allocation2 + $0x3a] ss:$8 sps:$4 sm:$0xff]  }
 0x849   : > { %9666 = vrot.lane.b32.xlu1 %v9665_v35, %s11571_s10  ;;  %v10356_v31 = vld [vmem:[#allocation2 + $0x92] ss:$8 sps:$4 sm:$0xff]   ;;  %v10361_v36 = vld [vmem:[#allocation2 + $0xe2] ss:$8 sps:$4 sm:$0xff]   ;;  %v9730_v42 = vpack.i.bf16 %v10355_v37, %v10354_v13 }
 0x84a   : > { %v9785_v24 = vpack.i.bf16 %v10357_v61, %v10356_v31  ;;  %v10359_v34 = vld [vmem:[#allocation2 + $0x50] ss:$8 sps:$4 sm:$0xff]   ;;  %v10358_v63 = vld [vmem:[#allocation2 + $0x40] ss:$8 sps:$4 sm:$0xff]  }
 0x84b   : > { %v10360_v52 = vld [vmem:[#allocation2 + $0xd2] ss:$8 sps:$4 sm:$0xff]   ;;  %v9735_v25 = vpack.i.bf16 %v10359_v34, %v10358_v63  ;;  %v10364_v54 = vld [vmem:[#allocation2 + $0x41] ss:$8 sps:$4 sm:$0xff]  }
 0x84c   : > { %9681 = vrot.lane.b32.xlu0 %v9680_v8, %s11566_s2  ;;  %v9790_v48 = vpack.i.bf16 %v10361_v36, %v10360_v52  ;;  %v10367_v43 = vld [vmem:[#allocation2 + $0xd8] ss:$8 sps:$4 sm:$0xff]   ;;  %v10366_v23 = vld [vmem:[#allocation2 + $0xc8] ss:$8 sps:$4 sm:$0xff]  }
 0x84d   : > { %9671 = vrot.lane.b32.xlu1 %v9670_v47, %s11562_s3  ;;  %v10365_v35 = vld [vmem:[#allocation2 + $0x51] ss:$8 sps:$4 sm:$0xff]   ;;  %v9795_v8 = vpack.i.bf16 %v10367_v43, %v10366_v23  ;;  %v10368_v15 = vld [vmem:[#allocation2 + $0xc0] ss:$8 sps:$4 sm:$0xff]  }
 0x84e   : > { %v10369_v50 = vld [vmem:[#allocation2 + $0xd0] ss:$8 sps:$4 sm:$0xff]   ;;  %v9740_v47 = vpack.i.bf16 %v10365_v35, %v10364_v54  ;;  %v10372_v33 = vld [vmem:[#allocation2 + $0xc1] ss:$8 sps:$4 sm:$0xff]  }
 0x84f   : > { %v10371_v40 = vld [vmem:[#allocation2 + $0xd9] ss:$8 sps:$4 sm:$0xff]   ;;  %v10370_v18 = vld [vmem:[#allocation2 + $0xc9] ss:$8 sps:$4 sm:$0xff]  }
 0x850   : > { %9686 = vrot.lane.b32.xlu0 %v9685_v2, %s11567_s5  ;;  %v9800_v2 = vpack.i.bf16 %v10371_v40, %v10370_v18  ;;  %v10375_v55 = vld [vmem:[#allocation2 + $0xda] ss:$8 sps:$4 sm:$0xff]   ;;  %v10374_v21 = vld [vmem:[#allocation2 + $0xca] ss:$8 sps:$4 sm:$0xff]  }
 0x851   : > { %9696 = vrot.lane.b32.xlu1 %v9695_v10, %s11569_s19  ;;  %v9750_v10 = vpack.i.bf16 %v10369_v50, %v10368_v15  ;;  %v10373_v5 = vld [vmem:[#allocation2 + $0xd1] ss:$8 sps:$4 sm:$0xff]   ;;  %v10379_v9 = vld [vmem:[#allocation2 + $0xe0] ss:$8 sps:$4 sm:$0xff]  }
 0x852   : > { %v9755_v32 = vpack.i.bf16 %v10373_v5, %v10372_v33  ;;  %v10377_v62 = vld [vmem:[#allocation2 + $0xa0] ss:$8 sps:$4 sm:$0xff]   ;;  %v10378_v45 = vld [vmem:[#allocation2 + $0xd0] ss:$8 sps:$4 sm:$0xff]  }
 0x853   : > { %v9810_v44 = vpack.i.bf16 %v10379_v9, %v10378_v45  ;;  %v10383_v27 = vld [vmem:[#allocation2 + $0xe1] ss:$8 sps:$4 sm:$0xff]   ;;  %v10382_v17 = vld [vmem:[#allocation2 + $0xd1] ss:$8 sps:$4 sm:$0xff]  }
 0x854   : > { %9691 = vrot.lane.b32.xlu0 %v9690_v38, %s11568_s9  ;;  %v13275_v38 = vpop.permute.xlu0 %9566  ;;  %v10381_v53 = vld [vmem:[#allocation2 + $0xa1] ss:$8 sps:$4 sm:$0xff]   ;;  %v9815_v16 = vpack.i.bf16 %v10383_v27, %v10382_v17  ;;  %v10384_v58 = vld [vmem:[#allocation2 + $0x92] ss:$8 sps:$4 sm:$0xff]  }
 0x855   : > { %9701 = vrot.lane.b32.xlu1 %v9700_v30, %s11570_s26  ;;  %v9805_v30 = vpack.i.bf16 %v10375_v55, %v10374_v21  ;;  %v10385_v6 = vld [vmem:[#allocation2 + $0xa2] ss:$8 sps:$4 sm:$0xff]   ;;  %v10386_v22 = vld [vmem:[#allocation2 + $0xd2] ss:$8 sps:$4 sm:$0xff]  }
 0x856   : > { %v10389_v61 = vld [vmem:[#allocation2 + $0x78] ss:$8 sps:$4 sm:$0xff]   ;;  %v10391_v37 = vld [vmem:[#allocation2 + $0xa8] ss:$8 sps:$4 sm:$0xff]  }
 0x857   : > { %v10388_v31 = vld [vmem:[#allocation2 + $0x68] ss:$8 sps:$4 sm:$0xff]   ;;  %v10390_v13 = vld [vmem:[#allocation2 + $0x98] ss:$8 sps:$4 sm:$0xff]  }
 0x858   : > { %9716 = vrot.lane.b32.xlu0 %v9715_v7, %s11562_s3  ;;  %v10376_v7 = vld [vmem:[#allocation2 + $0x90] ss:$8 sps:$4 sm:$0xff]   ;;  %v13283_v20 = vpop.permute.xlu0 %9571  ;;  %v9855_v34 = vpack.i.bf16 %v10389_v61, %v10388_v31  ;;  %v9825_v52 = vpack.i.bf16 %v10391_v37, %v10390_v13  ;;  %v10392_v63 = vld [vmem:[#allocation2 + $0xa0] ss:$8 sps:$4 sm:$0xff]  }
 0x859   : > { %9706 = vrot.lane.b32.xlu1 %v9705_v19, %s11563_s22  ;;  %v13281_v19 = vpop.permute.xlu1 %9531  ;;  %v10393_v36 = vld [vmem:[#allocation2 + $0xb0] ss:$8 sps:$4 sm:$0xff]   ;;  %v10396_v54 = vld [vmem:[#allocation2 + $0xa1] ss:$8 sps:$4 sm:$0xff]  }
 0x85a   : > { %v10394_v43 = vld [vmem:[#allocation2 + $0x99] ss:$8 sps:$4 sm:$0xff]   ;;  %v9870_v35 = vpack.i.bf16 %v10393_v36, %v10392_v63  ;;  %v10404_v45 = vld [vmem:[#allocation2 + $0x69] ss:$8 sps:$4 sm:$0xff]  }
 0x85b   : > { %v10401_v18 = vld [vmem:[#allocation2 + $0xb2] ss:$8 sps:$4 sm:$0xff]   ;;  %v10400_v55 = vld [vmem:[#allocation2 + $0xa2] ss:$8 sps:$4 sm:$0xff]  }
 0x85c   : > { %9746 = vrot.lane.b32.xlu0 %v9745_v49, %s11568_s9  ;;  %v9765_v49 = vpack.i.bf16 %v10377_v62, %v10376_v7  ;;  %v10402_v5 = vld [vmem:[#allocation2 + $0xa2] ss:$8 sps:$4 sm:$0xff]   ;;  %v10420_v63 = vld [vmem:[#allocation2 + $0x70] ss:$8 sps:$4 sm:$0xff]  }
 0x85d   : > { %9711 = vrot.lane.b32.xlu1 %v9710_v1, %s11564_s13  ;;  %v10380_v1 = vld [vmem:[#allocation2 + $0x91] ss:$8 sps:$4 sm:$0xff]   ;;  %v13287_v39 = vpop.permute.xlu1 %9536  ;;  %v10419_v37 = vld [vmem:[#allocation2 + $0xa1] ss:$8 sps:$4 sm:$0xff]  }
 0x85e   : > { %v9770_v12 = vpack.i.bf16 %v10381_v53, %v10380_v1  ;;  %v10405_v9 = vld [vmem:[#allocation2 + $0x79] ss:$8 sps:$4 sm:$0xff]   ;;  %v10407_v62 = vld [vmem:[#allocation2 + $0x48] ss:$8 sps:$4 sm:$0xff]  }
 0x85f   : > { %v10406_v7 = vld [vmem:[#allocation2 + $0x38] ss:$8 sps:$4 sm:$0xff]  }
 0x860   : > { %9761 = vrot.lane.b32.xlu0 %v9760_v57, %s11564_s13  ;;  %v10387_v57 = vld [vmem:[#allocation2 + $0xe2] ss:$8 sps:$4 sm:$0xff]  }
 0x861   : > { %9721 = vrot.lane.b32.xlu1 %v9720_v11, %s11563_s22  ;;  %v13289_v11 = vpop.permute.xlu0 %9576  ;;  %v10409_v27 = vld [vmem:[#allocation2 + $0x7a] ss:$8 sps:$4 sm:$0xff]  }
 0x862   : > { %v10411_v1 = vld [vmem:[#allocation2 + $0x7a] ss:$8 sps:$4 sm:$0xff]  }
 0x864   : > { %9781 = vrot.lane.b32.xlu0 %v9780_v3, %s11562_s3  ;;  %v9820_v3 = vpack.i.bf16 %v10387_v57, %v10386_v22  ;;  %v10412_v22 = vld [vmem:[#allocation2 + $0x70] ss:$8 sps:$4 sm:$0xff]  }
 0x865   : > { %9726 = vrot.lane.b32.xlu1 %v9725_v60, %s11564_s13  ;;  %v9775_v60 = vpack.i.bf16 %v10385_v6, %v10384_v58  ;;  %v10410_v6 = vld [vmem:[#allocation2 + $0x6a] ss:$8 sps:$4 sm:$0xff]  }
 0x866   : > { %v9850_v58 = vpack.i.bf16 %v10411_v1, %v10410_v6  ;;  %v10432_v1 = vld [vmem:[#allocation2 + $0x40] ss:$8 sps:$4 sm:$0xff]  }
 0x868   : > { %9786 = vrot.lane.b32.xlu0 %v9785_v24, %s11561_s16  ;;  %v13295_v24 = vpop.permute.xlu1 %9541 }
 0x869   : > { %9731 = vrot.lane.b32.xlu1 %v9730_v42, %s11565_s14  ;;  %v13297_v42 = vpop.permute.xlu0 %9581 }
 0x86c   : > { %9791 = vrot.lane.b32.xlu0 %v9790_v48, %s11562_s3  ;;  %v10395_v48 = vld [vmem:[#allocation2 + $0xa9] ss:$8 sps:$4 sm:$0xff]   ;;  %v13301_v50 = vpop.permute.xlu1 %9546 }
 0x86d   : > { %9736 = vrot.lane.b32.xlu1 %v9735_v25, %s11566_s2  ;;  %v10397_v25 = vld [vmem:[#allocation2 + $0xb1] ss:$8 sps:$4 sm:$0xff]   ;;  %v9830_v23 = vpack.i.bf16 %v10395_v48, %v10394_v43  ;;  %v13303_v40 = vpop.permute.xlu0 %9586 }
 0x86e   : > { %v9875_v15 = vpack.i.bf16 %v10397_v25, %v10396_v54  ;;  %v10423_v25 = vld [vmem:[#allocation2 + $0xa2] ss:$8 sps:$4 sm:$0xff]  }
 0x86f   : > { %v10425_v54 = vld [vmem:[#allocation2 + $0x4a] ss:$8 sps:$4 sm:$0xff]  }
 0x870   : > { %9796 = vrot.lane.b32.xlu0 %v9795_v8, %s11565_s14  ;;  %v10399_v8 = vld [vmem:[#allocation2 + $0xaa] ss:$8 sps:$4 sm:$0xff]   ;;  %v13309_v21 = vpop.permute.xlu1 %9551 }
 0x871   : > { %9741 = vrot.lane.b32.xlu1 %v9740_v47, %s11567_s5  ;;  %v10398_v47 = vld [vmem:[#allocation2 + $0x9a] ss:$8 sps:$4 sm:$0xff]   ;;  %v13311_v33 = vpop.permute.xlu0 %9591 }
 0x874   : > { %9801 = vrot.lane.b32.xlu0 %v9800_v2, %s11566_s2  ;;  %v9835_v2 = vpack.i.bf16 %v10399_v8, %v10398_v47  ;;  %v13315_v53 = vpop.permute.xlu1 %9556  ;;  %v10422_v8 = vld [vmem:[#allocation2 + $0x92] ss:$8 sps:$4 sm:$0xff]  }
 0x875   : > { %9751 = vrot.lane.b32.xlu1 %v9750_v10, %s11561_s16  ;;  %v10403_v10 = vld [vmem:[#allocation2 + $0xb2] ss:$8 sps:$4 sm:$0xff]   ;;  %v13317_v17 = vpop.permute.xlu0 %9596 }
 0x876   : > { %v10424_v47 = vld [vmem:[#allocation2 + $0x3a] ss:$8 sps:$4 sm:$0xff]  }
 0x878   : > { %9806 = vrot.lane.b32.xlu0 %v9805_v30, %s11567_s5  ;;  %v9880_v30 = vpack.i.bf16 %v10401_v18, %v10400_v55  ;;  %v13323_v61 = vpop.permute.xlu1 %9561  ;;  %v10431_v55 = vld [vmem:[#allocation2 + $0xa8] ss:$8 sps:$4 sm:$0xff]  }
 0x879   : > { %9756 = vrot.lane.b32.xlu1 %v9755_v32, %s11563_s22  ;;  %v9840_v32 = vpack.i.bf16 %v10403_v10, %v10402_v5  ;;  %v13325_v31 = vpop.permute.xlu0 %9601  ;;  %v9890_v5 = vpack.i.bf16 %v10425_v54, %v10424_v47 }
 0x87c   : > { %9811 = vrot.lane.b32.xlu0 %v9810_v44, %s11568_s9  ;;  %v9885_v44 = vpack.i.bf16 %v10405_v9, %v10404_v45  ;;  %v10428_v9 = vld [vmem:[#allocation2 + $0x71] ss:$8 sps:$4 sm:$0xff]  }
 0x87d   : > { %9766 = vrot.lane.b32.xlu1 %v9765_v49, %s11561_s16  ;;  %v9845_v49 = vpack.i.bf16 %v10407_v62, %v10406_v7  ;;  %v10435_v45 = vld [vmem:[#allocation2 + $0xa9] ss:$8 sps:$4 sm:$0xff]  }
 0x880   : > { %9816 = vrot.lane.b32.xlu0 %v9815_v16, %s11569_s19  ;;  %v10408_v16 = vld [vmem:[#allocation2 + $0x6a] ss:$8 sps:$4 sm:$0xff]  }
 0x881   : > { %9771 = vrot.lane.b32.xlu1 %v9770_v12, %s11563_s22  ;;  %v9900_v57 = vpack.i.bf16 %v10409_v27, %v10408_v16  ;;  %v10413_v12 = vld [vmem:[#allocation2 + $0x80] ss:$8 sps:$4 sm:$0xff]   ;;  %v10433_v27 = vld [vmem:[#allocation2 + $0x50] ss:$8 sps:$4 sm:$0xff]  }
 0x882   : > { %v9915_v13 = vpack.i.bf16 %v10413_v12, %v10412_v22  ;;  %v10437_v22 = vld [vmem:[#allocation2 + $0x82] ss:$8 sps:$4 sm:$0xff]  }
 0x884   : > { %9821 = vrot.lane.b32.xlu0 %v9820_v3, %s11570_s26  ;;  %v10415_v3 = vld [vmem:[#allocation2 + $0x49] ss:$8 sps:$4 sm:$0xff]  }
 0x885   : > { %9776 = vrot.lane.b32.xlu1 %v9775_v60, %s11564_s13  ;;  %v10414_v60 = vld [vmem:[#allocation2 + $0x39] ss:$8 sps:$4 sm:$0xff]  }
 0x886   : > { %v9860_v36 = vpack.i.bf16 %v10415_v3, %v10414_v60  ;;  %v10436_v3 = vld [vmem:[#allocation2 + $0x72] ss:$8 sps:$4 sm:$0xff]  }
 0x887   : > { %v10438_v60 = vld [vmem:[#allocation2 + $0x9a] ss:$8 sps:$4 sm:$0xff]  }
 0x888   : > { %9856 = vrot.lane.b32.xlu0 %v9855_v34, %s11572_s28  ;;  %v10421_v34 = vld [vmem:[#allocation2 + $0x80] ss:$8 sps:$4 sm:$0xff]  }
 0x889   : > { %9826 = vrot.lane.b32.xlu1 %v9825_v52, %s11565_s14  ;;  %v10418_v52 = vld [vmem:[#allocation2 + $0x91] ss:$8 sps:$4 sm:$0xff]  }
 0x88a   : > { %v9930_v43 = vpack.i.bf16 %v10419_v37, %v10418_v52  ;;  %v9910_v52 = vpack.i.bf16 %v10437_v22, %v10436_v3 }
 0x88c   : > { %9871 = vrot.lane.b32.xlu0 %v9870_v35, %s11568_s9 }
 0x88d   : > { %9831 = vrot.lane.b32.xlu1 %v9830_v23, %s11566_s2  ;;  %v9865_v23 = vpack.i.bf16 %v10421_v34, %v10420_v63  ;;  %v10441_v63 = vld [vmem:[#allocation2 + $0xa0] ss:$8 sps:$4 sm:$0xff]  }
 0x890   : > { %9876 = vrot.lane.b32.xlu0 %v9875_v15, %s11569_s19  ;;  %v9940_v15 = vpack.i.bf16 %v10423_v25, %v10422_v8  ;;  %v10440_v25 = vld [vmem:[#allocation2 + $0x90] ss:$8 sps:$4 sm:$0xff]  }
 0x891   : > { %9836 = vrot.lane.b32.xlu1 %v9835_v2, %s11567_s5  ;;  %v10429_v2 = vld [vmem:[#allocation2 + $0x81] ss:$8 sps:$4 sm:$0xff]   ;;  %v10447_v8 = vld [vmem:[#allocation2 + $0xb1] ss:$8 sps:$4 sm:$0xff]  }
 0x894   : > { %9881 = vrot.lane.b32.xlu0 %v9880_v30, %s11570_s26  ;;  %v10430_v30 = vld [vmem:[#allocation2 + $0x98] ss:$8 sps:$4 sm:$0xff]  }
 0x895   : > { %9841 = vrot.lane.b32.xlu1 %v9840_v32, %s11562_s3  ;;  %v9960_v62 = vpack.i.bf16 %v10431_v55, %v10430_v30  ;;  %v10446_v55 = vld [vmem:[#allocation2 + $0xa1] ss:$8 sps:$4 sm:$0xff]  }
 0x898   : > { %9886 = vrot.lane.b32.xlu0 %v9885_v44, %s14189_s8  ;;  %v9895_v44 = vpack.i.bf16 %v10429_v2, %v10428_v9  ;;  %v10445_v2 = vld [vmem:[#allocation2 + $0xd0] ss:$8 sps:$4 sm:$0xff]   ;;  %v9980_v9 = vpack.i.bf16 %v10447_v8, %v10446_v55 }
 0x899   : > { %9846 = vrot.lane.b32.xlu1 %v9845_v49, %s11572_s28  ;;  %v10434_v49 = vld [vmem:[#allocation2 + $0x99] ss:$8 sps:$4 sm:$0xff]  }
 0x89a   : > { %v9965_v6 = vpack.i.bf16 %v10435_v45, %v10434_v49  ;;  %v10452_v49 = vld [vmem:[#allocation2 + $0xa2] ss:$8 sps:$4 sm:$0xff]  }
 0x89b   : > { %v10459_v8 = vld [vmem:[#allocation2 + $0xd8] ss:$8 sps:$4 sm:$0xff]  }
 0x89c   : > { %9901 = vrot.lane.b32.xlu0 %v9900_v57, %s14066_s12  ;;  %v10439_v57 = vld [vmem:[#allocation2 + $0xaa] ss:$8 sps:$4 sm:$0xff]  }
 0x89d   : > { %9851 = vrot.lane.b32.xlu1 %v9850_v58, %s11565_s14  ;;  %v9905_v58 = vpack.i.bf16 %v10433_v27, %v10432_v1  ;;  %v10451_v27 = vld [vmem:[#allocation2 + $0xd1] ss:$8 sps:$4 sm:$0xff]   ;;  %v10450_v1 = vld [vmem:[#allocation2 + $0xc1] ss:$8 sps:$4 sm:$0xff]  }
 0x89e   : > { %v9935_v3 = vpack.i.bf16 %v10451_v27, %v10450_v1  ;;  %v10465_v27 = vld [vmem:[#allocation2 + $0xd9] ss:$8 sps:$4 sm:$0xff]   ;;  %v10464_v1 = vld [vmem:[#allocation2 + $0xc9] ss:$8 sps:$4 sm:$0xff]  }
 0x8a0   : > { %9916 = vrot.lane.b32.xlu0 %v9915_v13, %s14069_s15  ;;  %v9970_v13 = vpack.i.bf16 %v10439_v57, %v10438_v60  ;;  %v10454_v60 = vld [vmem:[#allocation2 + $0xc2] ss:$8 sps:$4 sm:$0xff]  }
 0x8a1   : > { %9861 = vrot.lane.b32.xlu1 %v9860_v36, %s14189_s8  ;;  %v10443_v36 = vld [vmem:[#allocation2 + $0xb0] ss:$8 sps:$4 sm:$0xff]  }
 0x8a2   : > { %v13329_v48 = vpop.permute.xlu0 %9606 }
 0x8a3   : > { %v13331_v35 = vpop.permute.xlu1 %9621 }
 0x8a4   : > { %9931 = vrot.lane.b32.xlu0 %v9930_v43, %s11570_s26  ;;  %v10442_v43 = vld [vmem:[#allocation2 + $0xa0] ss:$8 sps:$4 sm:$0xff]  }
 0x8a5   : > { %9866 = vrot.lane.b32.xlu1 %v9865_v23, %s11566_s2  ;;  %v9975_v54 = vpack.i.bf16 %v10443_v36, %v10442_v43  ;;  %v10456_v36 = vld [vmem:[#allocation2 + $0x98] ss:$8 sps:$4 sm:$0xff]  }
 0x8a6   : > { %v13335_v18 = vpop.permute.xlu0 %9611 }
 0x8a7   : > { %v13337_v10 = vpop.permute.xlu1 %9626 }
 0x8a8   : > { %9941 = vrot.lane.b32.xlu0 %v9940_v15, %s11571_s10  ;;  %v9920_v15 = vpack.i.bf16 %v10441_v63, %v10440_v25 }
 0x8a9   : > { %9891 = vrot.lane.b32.xlu1 %v9890_v5, %s14066_s12  ;;  %v10444_v5 = vld [vmem:[#allocation2 + $0xc0] ss:$8 sps:$4 sm:$0xff]  }
 0x8aa   : > { %v13341_v32 = vpop.permute.xlu0 %9616 }
 0x8ab   : > { %v13343_v7 = vpop.permute.xlu1 %9646 }
 0x8ac   : > { %9961 = vrot.lane.b32.xlu0 %v9960_v62, %s11563_s22  ;;  %v10453_v62 = vld [vmem:[#allocation2 + $0xb2] ss:$8 sps:$4 sm:$0xff]  }
 0x8ad   : > { %9896 = vrot.lane.b32.xlu1 %v9895_v44, %s11567_s5  ;;  %v9925_v44 = vpack.i.bf16 %v10445_v2, %v10444_v5  ;;  %v10458_v2 = vld [vmem:[#allocation2 + $0xc8] ss:$8 sps:$4 sm:$0xff]  }
 0x8ae   : > { %v13347_v16 = vpop.permute.xlu0 %9631 }
 0x8af   : > { %v13349_v12 = vpop.permute.xlu1 %9651 }
 0x8b0   : > { %9966 = vrot.lane.b32.xlu0 %v9965_v6, %s11564_s13  ;;  %v10457_v6 = vld [vmem:[#allocation2 + $0xa8] ss:$8 sps:$4 sm:$0xff]  }
 0x8b1   : > { %9906 = vrot.lane.b32.xlu1 %v9905_v58, %s14069_s15  ;;  %v9985_v58 = vpack.i.bf16 %v10453_v62, %v10452_v49  ;;  %v9990_v43 = vpack.i.bf16 %v10457_v6, %v10456_v36  ;;  %v10466_v49 = vld [vmem:[#allocation2 + $0x9a] ss:$8 sps:$4 sm:$0xff]   ;;  %v9609_v6 = vunpack.i.h.bf16 %v13329_v48 }
 0x8b2   : > { %v13353_v37 = vpop.permute.xlu0 %9636  ;;  %v10462_v36 = vld [vmem:[#allocation2 + $0x41] ss:$8 sps:$4 sm:$0xff]  }
 0x8b3   : > { %v13355_v34 = vpop.permute.xlu1 %9656 }
 0x8b4   : > { %9971 = vrot.lane.b32.xlu0 %v9970_v13, %s11565_s14  ;;  %v10455_v13 = vld [vmem:[#allocation2 + $0xd2] ss:$8 sps:$4 sm:$0xff]  }
 0x8b5   : > { %9911 = vrot.lane.b32.xlu1 %v9910_v52, %s11568_s9  ;;  %v10461_v52 = vld [vmem:[#allocation2 + $0xa9] ss:$8 sps:$4 sm:$0xff]  }
 0x8b6   : > { %v13359_v23 = vpop.permute.xlu0 %9641 }
 0x8b7   : > { %v13361_v47 = vpop.permute.xlu1 %9661 }
 0x8b8   : > { %9976 = vrot.lane.b32.xlu0 %v9975_v54, %s11566_s2  ;;  %v9945_v54 = vpack.i.bf16 %v10455_v13, %v10454_v60  ;;  %v9608_v60 = vunpack.i.l.bf16 %v13329_v48  ;;  %v9648_v48 = vunpack.i.l.bf16 %v13343_v7 }
 0x8b9   : > { %9921 = vrot.lane.b32.xlu1 %v9920_v15, %s11569_s19  ;;  %v10460_v15 = vld [vmem:[#allocation2 + $0x99] ss:$8 sps:$4 sm:$0xff]  }
 0x8ba   : > { %v13365_v30 = vpop.permute.xlu0 %9676  ;;  %v9995_v5 = vpack.i.bf16 %v10461_v52, %v10460_v15  ;;  %v9614_v15 = vunpack.i.h.bf16 %v13335_v18 }
 0x8bb   : > { %v13367_v45 = vpop.permute.xlu1 %9666 }
 0x8bc   : > { %9981 = vrot.lane.b32.xlu0 %v9980_v9, %s11567_s5  ;;  %v10467_v9 = vld [vmem:[#allocation2 + $0xaa] ss:$8 sps:$4 sm:$0xff]  }
 0x8bd   : > { %9926 = vrot.lane.b32.xlu1 %v9925_v44, %s11569_s19  ;;  %v9950_v44 = vpack.i.bf16 %v10459_v8, %v10458_v2  ;;  %v9955_v8 = vpack.i.bf16 %v10465_v27, %v10464_v1  ;;  %v9613_v2 = vunpack.i.l.bf16 %v13335_v18  ;;  %v9654_v27 = vunpack.i.h.bf16 %v13349_v12 }
 0x8be   : > { %v13371_v57 = vpop.permute.xlu0 %9681  ;;  %v9653_v18 = vunpack.i.l.bf16 %v13349_v12 }
 0x8bf   : > { %v13373_v22 = vpop.permute.xlu1 %9671  ;;  %v9683_v12 = vunpack.i.l.bf16 %v13371_v57 }
 0x8c0   : > { %9986 = vrot.lane.b32.xlu0 %v9985_v58, %s11568_s9 }
 0x8c1   : > { %9936 = vrot.lane.b32.xlu1 %v9935_v3, %s11570_s26  ;;  %v10000_v3 = vpack.i.bf16 %v10467_v9, %v10466_v49  ;;  %v9649_v9 = vunpack.i.h.bf16 %v13343_v7  ;;  %v9678_v7 = vunpack.i.l.bf16 %v13365_v30 }
 0x8c2   : > { %v13377_v63 = vpop.permute.xlu0 %9686 }
 0x8c3   : > { %v13379_v25 = vpop.permute.xlu1 %9696 }
 0x8c4   : > { %9991 = vrot.lane.b32.xlu0 %v9990_v43, %s11572_s28 }
 0x8c5   : > { %9946 = vrot.lane.b32.xlu1 %v9945_v54, %s11571_s10  ;;  %v10463_v54 = vld [vmem:[#allocation2 + $0x51] ss:$8 sps:$4 sm:$0xff]  }
 0x8c6   : > { %v13383_v55 = vpop.permute.xlu0 %9691 }
 0x8c7   : > { %v13385_v62 = vpop.permute.xlu1 %9701 }
 0x8c8   : > { %9996 = vrot.lane.b32.xlu0 %v9995_v5, %s14189_s8  ;;  %v9619_v5 = vunpack.i.h.bf16 %v13341_v32 }
 0x8c9   : > { %9951 = vrot.lane.b32.xlu1 %v9950_v44, %s11572_s28  ;;  %v9618_v44 = vunpack.i.l.bf16 %v13341_v32 }
 0x8ca   : > { %v9717_v58 = vpop.permute.xlu0 %9716 }
 0x8cb   : > { %v13391_v13 = vpop.permute.xlu1 %9706  ;;  %v9719_v52 = vunpack.i.h.bf16 %v9717_v58  ;;  %v9718_v43 = vunpack.i.l.bf16 %v9717_v58 }
 0x8cc   : > { %10001 = vrot.lane.b32.xlu0 %v10000_v3, %s14066_s12  ;;  %v9679_v3 = vunpack.i.h.bf16 %v13365_v30 }
 0x8cd   : > { %v6003_v49 = vsel %vm2827_vm4, %v10462_v36, %v9718_v43  ;;  %v6004_v58 = vsel %vm2827_vm4, %v10463_v54, %v9719_v52  ;;  %9956 = vrot.lane.b32.xlu1 %v9955_v8, %s14189_s8  ;;  %v9684_v54 = vunpack.i.h.bf16 %v13371_v57  ;;  %v9689_v8 = vunpack.i.h.bf16 %v13377_v63 }
 0x8ce   : > { %v6011_v1 = vsel %vm1475_vm3, %v6003_v49, %v9608_v60  ;;  %v6012_v32 = vsel %vm1475_vm3, %v6004_v58, %v9609_v6  ;;  %v13407_v0 = vpop.permute.xlu0 %9746  ;;  %v9688_v49 = vunpack.i.l.bf16 %v13377_v63  ;;  %v9693_v58 = vunpack.i.l.bf16 %v13383_v55 }
 0x8cf   : > { %v6019_v36 = vsel %vm2844_vm5, %v6011_v1, %v9613_v2  ;;  %v6020_v52 = vsel %vm2844_vm5, %v6012_v32, %v9614_v15  ;;  %v13413_v43 = vpop.permute.xlu1 %9711  ;;  %v9694_v15 = vunpack.i.h.bf16 %v13383_v55  ;;  %v9698_v32 = vunpack.i.l.bf16 %v13379_v25 }
 0x8d0   : > { %v6027_v60 = vsel %vm2853_vm6, %v6019_v36, %v9618_v44  ;;  %v6028_v6 = vsel %vm2853_vm6, %v6020_v52, %v9619_v5  ;;  %v9699_v5 = vunpack.i.h.bf16 %v13379_v25  ;;  %v10427_v52 = vld [vmem:[#allocation2 + $0x40] ss:$8 sps:$4 sm:$0xff]   ;;  %v9703_v55 = vunpack.i.l.bf16 %v13385_v62 }
 0x8d1   : > { %v6035_v30 = vsel %vm2862_vm7, %v6027_v60, %v9678_v7  ;;  %v6036_v2 = vsel %vm2862_vm7, %v6028_v6, %v9679_v3  ;;  %v10426_v3 = vld [vmem:[#allocation2 + $0x30] ss:$8 sps:$4 sm:$0xff]   ;;  %v9704_v60 = vunpack.i.h.bf16 %v13385_v62 }
 0x8d2   : > { %v13425_v1 = vpop.permute.xlu0 %9761  ;;  %v6043_v57 = vsel %vm2871_vm8, %v6035_v30, %v9683_v12  ;;  %v6044_v44 = vsel %vm2871_vm8, %v6036_v2, %v9684_v54 }
 0x8d3   : > { %v9722_v36 = vpop.permute.xlu1 %9721  ;;  %v6051_v63 = vsel %vm14068_vm9, %v6043_v57, %v9688_v49  ;;  %v6052_v7 = vsel %vm14068_vm9, %v6044_v44, %v9689_v8  ;;  %v5373_v49 = vsel %vm2827_vm4, %v10426_v3, %v9648_v48  ;;  %v5374_v8 = vsel %vm2827_vm4, %v10427_v52, %v9649_v9  ;;  %v10470_v3 = vld [vmem:[#allocation2 + $0xca] ss:$8 sps:$4 sm:$0xff]  }
 0x8d4   : > { %v6059_v6 = vsel %vm14067_vm10, %v6051_v63, %v9693_v58  ;;  %v6060_v12 = vsel %vm14067_vm10, %v6052_v7, %v9694_v15  ;;  %v9724_v54 = vunpack.i.h.bf16 %v9722_v36  ;;  %v9723_v30 = vunpack.i.l.bf16 %v9722_v36  ;;  %v10471_v36 = vld [vmem:[#allocation2 + $0xda] ss:$8 sps:$4 sm:$0xff]  }
 0x8d5   : > { %v6067_v2 = vsel %vm14190_vm13, %v6059_v6, %v9698_v32  ;;  %v6068_v25 = vsel %vm14191_vm11, %v6060_v12, %v9699_v5  ;;  %v5381_v62 = vsel %vm1475_vm3, %v5373_v49, %v9653_v18  ;;  %v5382_v58 = vsel %vm1475_vm3, %v5374_v8, %v9654_v27  ;;  %v10469_v27 = vld [vmem:[#allocation2 + $0xa0] ss:$8 sps:$4 sm:$0xff]   ;;  %vm14199_vm13 = vmmov %vm14193_vm1 }
 0x8d6   : > { %v9782_v57 = vpop.permute.xlu0 %9781  ;;  %v6075_v44 = vsel %vm14192_vm15, %v6067_v2, %v9703_v55  ;;  %v6076_v56 = vsel %vm14193_vm1, %v6068_v25, %v9704_v60  ;;  %v5390_v48 = vsel %vm2844_vm5, %v5382_v58, %v9724_v54  ;;  %v5389_v9 = vsel %vm2844_vm5, %v5381_v62, %v9723_v30  ;;  %v10468_v60 = vld [vmem:[#allocation2 + $0x90] ss:$8 sps:$4 sm:$0xff]   ;;  %v10475_v49 = vld [vmem:[#allocation2 + $0xe0] ss:$8 sps:$4 sm:$0xff]   ;;  %vm14200_vm11 = vmmov %vm14196_vm2 }
 0x8d7   : > { %v9727_v15 = vpop.permute.xlu1 %9726  ;;  %v10005_v63 = vpack.i.bf16 %v6076_v56, %v6075_v44  ;;  %v9784_v6 = vunpack.i.h.bf16 %v9782_v57  ;;  %v9783_v5 = vunpack.i.l.bf16 %v9782_v57  ;;  %v10010_v25 = vpack.i.bf16 %v10471_v36, %v10470_v3  ;;  %v10473_v3 = vld [vmem:[#allocation2 + $0xe1] ss:$8 sps:$4 sm:$0xff]   ;;  %vm14201_vm15 = vmmov %vm14196_vm2 }
 0x8d8   : > { %v9729_v7 = vunpack.i.h.bf16 %v9727_v15  ;;  %v9728_v32 = vunpack.i.l.bf16 %v9727_v15  ;;  %v9524_v44 = vunpack.i.h.bf16 %v13269_v59  ;;  %v10474_v15 = vld [vmem:[#allocation2 + $0xd0] ss:$8 sps:$4 sm:$0xff]   ;;  %v9529_v36 = vunpack.i.h.bf16 %v13273_v29 }
 0x8d9   : > { %10006 = vrot.lane.b32.xlu1 %v10005_v63, %s14194_s7  ;;  %v5377_v8 = vsel %vm2827_vm4, %v10468_v60, %v9783_v5  ;;  %v5378_v54 = vsel %vm2827_vm4, %v10469_v27, %v9784_v6  ;;  %v9523_v63 = vunpack.i.l.bf16 %v13269_v59  ;;  %v9528_v5 = vunpack.i.l.bf16 %v13273_v29 }
 0x8da   : > { %v5397_v52 = vsel %vm2853_vm6, %v5389_v9, %v9728_v32  ;;  %v5398_v18 = vsel %vm2853_vm6, %v5390_v48, %v9729_v7  ;;  %v9787_v55 = vpop.permute.xlu0 %9786  ;;  %v10472_v9 = vld [vmem:[#allocation2 + $0xd1] ss:$8 sps:$4 sm:$0xff]  }
 0x8db   : > { %v9732_v56 = vpop.permute.xlu1 %9731  ;;  %v9789_v12 = vunpack.i.h.bf16 %v9787_v55  ;;  %v9788_v2 = vunpack.i.l.bf16 %v9787_v55  ;;  %v10025_v55 = vpack.i.bf16 %v10475_v49, %v10474_v15 }
 0x8dc   : > { %v9734_v30 = vunpack.i.h.bf16 %v9732_v56  ;;  %v9733_v57 = vunpack.i.l.bf16 %v9732_v56  ;;  %v9534_v56 = vunpack.i.h.bf16 %v13281_v19 }
 0x8dd   : > { %v13454_v62 = vsel %vm1475_vm3, %v5377_v8, %v9788_v2  ;;  %v13457_v58 = vsel %vm1475_vm3, %v5378_v54, %v9789_v12  ;;  %10011 = vrot.lane.b32.xlu1 %v10010_v25, %s14066_s12  ;;  %v9533_v12 = vunpack.i.l.bf16 %v13281_v19  ;;  %v9539_v25 = vunpack.i.h.bf16 %v13287_v39  ;;  %s14195_s12 = sld [smem:[#allocation77_spill]] }
 0x8de   : > { %v5405_v7 = vsel %vm2862_vm7, %v5397_v52, %v9733_v57  ;;  %v5406_v32 = vsel %vm2862_vm7, %v5398_v18, %v9734_v30  ;;  %v9792_v6 = vpop.permute.xlu0 %9791  ;;  %v9538_v52 = vunpack.i.l.bf16 %v13287_v39  ;;  %v9544_v39 = vunpack.i.h.bf16 %v13295_v24 }
 0x8df   : > { %v9737_v48 = vpop.permute.xlu1 %9736  ;;  %v9794_v60 = vunpack.i.h.bf16 %v9792_v6  ;;  %v9793_v27 = vunpack.i.l.bf16 %v9792_v6  ;;  %v9543_v57 = vunpack.i.l.bf16 %v13295_v24 }
 0x8e0   : > { %v9739_v59 = vunpack.i.h.bf16 %v9737_v48  ;;  %v9738_v2 = vunpack.i.l.bf16 %v9737_v48 }
 0x8e1   : > { %v6010_v18 = vsel %vm2827_vm4, %v10473_v3, %v9794_v60  ;;  %v6009_v29 = vsel %vm2827_vm4, %v10472_v9, %v9793_v27  ;;  %10026 = vrot.lane.b32.xlu1 %v10025_v55, %s14069_s15  ;;  %v9748_v3 = vunpack.i.l.bf16 %v13407_v0 }
 0x8e2   : > { %v5413_v8 = vsel %vm2871_vm8, %v5405_v7, %v9738_v2  ;;  %v5414_v49 = vsel %vm2871_vm8, %v5406_v32, %v9739_v59  ;;  %v6018_v54 = vsel %vm1475_vm3, %v6010_v18, %v9524_v44  ;;  %v6017_v19 = vsel %vm1475_vm3, %v6009_v29, %v9523_v63  ;;  %v13476_v30 = vpop.permute.xlu0 %9796 }
 0x8e3   : > { %v6026_v15 = vsel %vm2844_vm5, %v6018_v54, %v9529_v36  ;;  %v6025_v6 = vsel %vm2844_vm5, %v6017_v19, %v9528_v5  ;;  %v9742_v48 = vpop.permute.xlu1 %9741  ;;  %v9749_v63 = vunpack.i.h.bf16 %v13407_v0  ;;  %v10480_v24 = vld [vmem:[%s14195_s12] sm:$0xff]   ;;  %v10481_v55 = vld [vmem:[%s14195_s12 + $0x8] sm:$0xff]   ;;  %v9549_v2 = vunpack.i.h.bf16 %v13301_v50 }
 0x8e4   : > { %v6034_v7 = vsel %vm2853_vm6, %v6026_v15, %v9534_v56  ;;  %v6033_v32 = vsel %vm2853_vm6, %v6025_v6, %v9533_v12  ;;  %v9744_v44 = vunpack.i.h.bf16 %v9742_v48  ;;  %v9743_v9 = vunpack.i.l.bf16 %v9742_v48  ;;  %8562 = vmatprep.subr.bf16.mxu0 %v10480_v24 }
 0x8e5   : > { %v6042_v60 = vsel %vm2862_vm7, %v6034_v7, %v9539_v25  ;;  %v6041_v27 = vsel %vm2862_vm7, %v6033_v32, %v9538_v52  ;;  %v9548_v0 = vunpack.i.l.bf16 %v13301_v50  ;;  %v9554_v29 = vunpack.i.h.bf16 %v13309_v21  ;;  %8563 = vmatpush3.bf16.msra.mxu0 %v10480_v24 }
 0x8e6   : > { %v5421_v36 = vsel %vm14068_vm9, %v5413_v8, %v9743_v9  ;;  %v5422_v5 = vsel %vm14068_vm9, %v5414_v49, %v9744_v44  ;;  %v13492_v59 = vpop.permute.xlu0 %9801  ;;  %v6049_v56 = vsel %vm2871_vm8, %v6041_v27, %v9543_v57  ;;  %v6050_v12 = vsel %vm2871_vm8, %v6042_v60, %v9544_v39  ;;  %8564 = vmatprep.subr.bf16.mxu0 %v10481_v55  ;;  %v10482_v39 = vld [vmem:[%s14195_s12 + $0x10] sm:$0xff]   ;;  %v10484_v27 = vld [vmem:[%s14195_s12 + $0x20] sm:$0xff]  }
 0x8e7   : > { %v5429_v25 = vsel %vm14067_vm10, %v5421_v36, %v9748_v3  ;;  %v5430_v52 = vsel %vm14067_vm10, %v5422_v5, %v9749_v63  ;;  %v13500_v18 = vpop.permute.xlu1 %9751  ;;  %v9553_v8 = vunpack.i.l.bf16 %v13309_v21  ;;  %v9559_v49 = vunpack.i.h.bf16 %v13315_v53 }
 0x8e8   : > { %v9558_v54 = vunpack.i.l.bf16 %v13315_v53  ;;  %v6057_v19 = vsel %vm14068_vm9, %v6049_v56, %v9548_v0  ;;  %v6058_v50 = vsel %vm14068_vm9, %v6050_v12, %v9549_v2  ;;  %v9564_v57 = vunpack.i.h.bf16 %v13323_v61 }
 0x8e9   : > { %v9563_v15 = vunpack.i.l.bf16 %v13323_v61  ;;  %v6065_v21 = vsel %vm14067_vm10, %v6057_v19, %v9553_v8  ;;  %v6066_v48 = vsel %vm14067_vm10, %v6058_v50, %v9554_v29  ;;  %8565 = vmatpush3.bf16.msra.mxu0 %v10481_v55  ;;  %v10483_v61 = vld [vmem:[%s14195_s12 + $0x18] sm:$0xff]   ;;  %v9624_v5 = vunpack.i.h.bf16 %v13331_v35  ;;  %v10485_v29 = vld [vmem:[%s14195_s12 + $0x28] sm:$0xff]  }
 0x8ea   : > { %v13511_v6 = vpop.permute.xlu0 %9806  ;;  %v6073_v53 = vsel %vm14196_vm2, %v6065_v21, %v9558_v54  ;;  %v6074_v32 = vsel %vm14197_vm14, %v6066_v48, %v9559_v49  ;;  %8566 = vmatprep.subr.bf16.mxu0 %v10482_v39  ;;  %v9623_v55 = vunpack.i.l.bf16 %v13331_v35  ;;  %v9634_v56 = vunpack.i.h.bf16 %v13347_v16  ;;  %v10416_v8 = vld [vmem:[#allocation2 + $0x60] ss:$8 sps:$4 sm:$0xff]   ;;  %v10417_v49 = vld [vmem:[#allocation2 + $0x70] ss:$8 sps:$4 sm:$0xff]   ;;  %vm14202_vm2 = vmmov %vm14193_vm1 }
 0x8eb   : > { %v13515_v7 = vpop.permute.xlu1 %9756  ;;  %v6081_v44 = vsel %vm14198_vm12, %v6073_v53, %v9563_v15  ;;  %v6082_v9 = vsel %vm14199_vm13, %v6074_v32, %v9564_v57  ;;  %v9633_v12 = vunpack.i.l.bf16 %v13347_v16  ;;  %v9629_v2 = vunpack.i.h.bf16 %v13337_v10  ;;  %v10449_v21 = vld [vmem:[#allocation2 + $0x81] ss:$8 sps:$4 sm:$0xff]  }
 0x8ec   : > { %v10035_v63 = vpack.i.bf16 %v6082_v9, %v6081_v44  ;;  %v9628_v0 = vunpack.i.l.bf16 %v13337_v10  ;;  %v9674_v54 = vunpack.i.h.bf16 %v13373_v22  ;;  %v5438_v50 = vsel %vm14201_vm15, %v5430_v52, %v9634_v56 }
 0x8ed   : > { %8567 = vmatpush3.bf16.msra.mxu0 %v10482_v39  ;;  %v5437_v19 = vsel %vm14200_vm11, %v5429_v25, %v9633_v12  ;;  %v9639_v39 = vunpack.i.h.bf16 %v13353_v37  ;;  %v9638_v16 = vunpack.i.l.bf16 %v13353_v37  ;;  %v5375_v15 = vsel %vm2827_vm4, %v10416_v8, %v9623_v55  ;;  %v13558_v12 = vld [vmem:[#allocation2 + $0xb0] ss:$8 sps:$4 sm:$0xff]  }
 0x8ee   : > { %v13522_v3 = vpop.permute.xlu0 %9811  ;;  %10036 = vrot.lane.b32.xlu1 %v10035_v63, %s14194_s7  ;;  %8568 = vmatprep.subr.bf16.mxu0 %v10483_v61  ;;  %v5376_v10 = vsel %vm2827_vm4, %v10417_v49, %v9624_v5  ;;  %v5383_v48 = vsel %vm1475_vm3, %v5375_v15, %v9628_v0  ;;  %v9644_v32 = vunpack.i.h.bf16 %v13359_v23  ;;  %v9643_v37 = vunpack.i.l.bf16 %v13359_v23 }
 0x8ef   : > { %v13525_v60 = vpop.permute.xlu1 %9766  ;;  %v5384_v53 = vsel %vm1475_vm3, %v5376_v10, %v9629_v2  ;;  %v5445_v25 = vsel %vm14193_vm1, %v5437_v19, %v9638_v16  ;;  %v5446_v52 = vsel %vm14202_vm2, %v5438_v50, %v9639_v39  ;;  %v6006_v44 = vsel %vm2827_vm4, %v10449_v21, %v9674_v54  ;;  %v10448_v2 = vld [vmem:[#allocation2 + $0x71] ss:$8 sps:$4 sm:$0xff]   ;;  %v13572_v50 = vld [vmem:[#allocation2 + $0xa0] ss:$8 sps:$4 sm:$0xff]   ;;  %vm14208_vm1 = vmmov %vm14201_vm15 }
 0x8f0   : > { %v9673_v9 = vunpack.i.l.bf16 %v13373_v22  ;;  %v9713_v0 = vunpack.i.l.bf16 %v13413_v43  ;;  %v9769_v8 = vunpack.i.h.bf16 %v13525_v60  ;;  %vm14203_vm14 = vcmask 359424  }
 0x8f1   : > { %8569 = vmatpush3.bf16.msra.mxu0 %v10483_v61  ;;  %v9709_v61 = vunpack.i.h.bf16 %v13391_v13  ;;  %v5453_v23 = vsel %vm14203_vm14, %v5445_v25, %v9643_v37  ;;  %vm14204_vm12 = vmmov %vm14203_vm14  ;;  %v9768_v22 = vunpack.i.l.bf16 %v13525_v60  ;;  %v9714_v16 = vunpack.i.h.bf16 %v13413_v43 }
 0x8f2   : > { %v13528_v24 = vpop.permute.xlu0 %9816  ;;  %8570 = vmatprep.subr.bf16.mxu0 %v10484_v27  ;;  %v5454_v49 = vsel %vm14204_vm12, %v5446_v52, %v9644_v32  ;;  %v6005_v39 = vsel %vm2827_vm4, %v10448_v2, %v9673_v9  ;;  %v10020_v32 = vpack.i.bf16 %v13558_v12, %v13572_v50  ;;  %v6014_v43 = vsel %vm1475_vm3, %v6006_v44, %v9769_v8  ;;  %vm14209_vm14 = vmmov %vm14202_vm2 }
 0x8f3   : > { %v13530_v36 = vpop.permute.xlu1 %9771  ;;  %v5392_v37 = vsel %vm2844_vm5, %v5384_v53, %v9709_v61  ;;  %v9763_v44 = vunpack.i.l.bf16 %v13425_v1  ;;  %vm14205_vm13 = vcmask 1045504   ;;  %vm14210_vm12 = vcmask 1041408  }
 0x8f4   : > { %v9774_v54 = vunpack.i.h.bf16 %v13530_v36  ;;  %v9773_v15 = vunpack.i.l.bf16 %v13530_v36  ;;  %v6013_v36 = vsel %vm1475_vm3, %v6005_v39, %v9768_v22  ;;  %vm14206_vm11 = vmmov %vm14205_vm13 }
 0x8f5   : > { %8571 = vmatpush3.bf16.msra.mxu0 %v10484_v27  ;;  %v9708_v27 = vunpack.i.l.bf16 %v13391_v13 }
 0x8f6   : > { %v13542_v35 = vpop.permute.xlu0 %9821  ;;  %8572 = vmatprep.subr.bf16.mxu0 %v10485_v29  ;;  %v6021_v2 = vsel %vm2844_vm5, %v6013_v36, %v9773_v15 }
 0x8f7   : > { %v9777_v57 = vpop.permute.xlu1 %9776  ;;  %v5391_v60 = vsel %vm2844_vm5, %v5383_v48, %v9708_v27  ;;  %v13588_v27 = vsel %vm2853_vm6, %v5392_v37, %v9714_v16 }
 0x8f8   : > { %v9779_v10 = vunpack.i.h.bf16 %v9777_v57  ;;  %v9778_v21 = vunpack.i.l.bf16 %v9777_v57 }
 0x8f9   : > { %8573 = vmatpush3.bf16.msra.mxu0 %v10485_v29 }
 0x8fa   : > { %v9857_v63 = vpop.permute.xlu0 %9856  ;;  %v6029_v8 = vsel %vm2853_vm6, %v6021_v2, %v9778_v21 }
 0x8fb   : > { %v9859_v5 = vunpack.i.h.bf16 %v9857_v63  ;;  %v9858_v55 = vunpack.i.l.bf16 %v9857_v63  ;;  %v9827_v56 = vpop.permute.xlu1 %9826  ;;  %v13582_v63 = vsel %vm2853_vm6, %v5391_v60, %v9713_v0  ;;  %v10486_v0 = vld [vmem:[%s14195_s12 + $0x30] sm:$0x3f]  }
 0x8fc   : > { %v9829_v25 = vunpack.i.h.bf16 %v9827_v56  ;;  %v9828_v9 = vunpack.i.l.bf16 %v9827_v56  ;;  %v9754_v56 = vunpack.i.h.bf16 %v13500_v18  ;;  %8636 = vmatprep.subr.msk.bf16.mxu0 %vm14205_vm13, %v10486_v0  ;;  %v6195_v16 = vsel %vm14206_vm11, %v10486_v0, 0  ;;  %v10476_v0 = vld [vmem:[#allocation2 + $0xa1] ss:$8 sps:$4 sm:$0xff]   ;;  %vm14211_vm13 = vmmov %vm14208_vm1 }
 0x8fd   : > { %v13567_v13 = vsel %vm2925_vm0, %v5454_v49, %v9859_v5  ;;  %v13570_v19 = vsel %vm2925_vm0, %v5453_v23, %v9858_v55  ;;  %v6022_v5 = vsel %vm2844_vm5, %v6014_v43, %v9774_v54  ;;  %v9764_v55 = vunpack.i.h.bf16 %v13425_v1  ;;  %8575 = vmatpush3.bf16.msra.mxu0 %v6195_v16  ;;  %vm14212_vm11 = vmmov %vm14208_vm1 }
 0x8fe   : > { %v9872_v29 = vpop.permute.xlu0 %9871  ;;  %v6030_v53 = vsel %vm2853_vm6, %v6022_v5, %v9779_v10  ;;  %v6037_v22 = vsel %vm2862_vm7, %v6029_v8, %v9828_v9  ;;  %v14207_v9 = vmov 0.0   ;;  %v9758_v16 = vunpack.i.l.bf16 %v13515_v7 }
 0x8ff   : > { %v9832_v52 = vpop.permute.xlu1 %9831  ;;  %v6038_v23 = vsel %vm2862_vm7, %v6030_v53, %v9829_v25  ;;  %v9874_v15 = vunpack.i.h.bf16 %v9872_v29  ;;  %v9873_v10 = vunpack.i.l.bf16 %v9872_v29  ;;  %8600 = vmatprep.subr.bf16.mxu0 %v14207_v9 }
 0x900   : > { %v9834_v48 = vunpack.i.h.bf16 %v9832_v52  ;;  %v9833_v57 = vunpack.i.l.bf16 %v9832_v52 }
 0x902   : > { %v9877_v61 = vpop.permute.xlu0 %9876  ;;  %v6045_v60 = vsel %vm2871_vm8, %v6037_v22, %v9833_v57  ;;  %v6046_v1 = vsel %vm2871_vm8, %v6038_v23, %v9834_v48  ;;  %v10477_v23 = vld [vmem:[#allocation2 + $0xb1] ss:$8 sps:$4 sm:$0xff]   ;;  %v9759_v22 = vunpack.i.h.bf16 %v13515_v7  ;;  %v9803_v7 = vunpack.i.l.bf16 %v13492_v59 }
 0x903   : > { %v9837_v49 = vpop.permute.xlu1 %9836  ;;  %v9879_v52 = vunpack.i.h.bf16 %v9877_v61  ;;  %v9878_v21 = vunpack.i.l.bf16 %v9877_v61 }
 0x904   : > { %v9839_v54 = vunpack.i.h.bf16 %v9837_v49  ;;  %v9838_v39 = vunpack.i.l.bf16 %v9837_v49  ;;  %v9753_v49 = vunpack.i.l.bf16 %v13500_v18 }
 0x906   : > { %v6053_v25 = vsel %vm14068_vm9, %v6045_v60, %v9838_v39  ;;  %v6054_v37 = vsel %vm14068_vm9, %v6046_v1, %v9839_v54  ;;  %v9882_v43 = vpop.permute.xlu0 %9881 }
 0x907   : > { %v6061_v36 = vsel %vm14067_vm10, %v6053_v25, %v9873_v10  ;;  %v6062_v5 = vsel %vm14067_vm10, %v6054_v37, %v9874_v15  ;;  %v9884_v2 = vunpack.i.h.bf16 %v9882_v43  ;;  %v9883_v29 = vunpack.i.l.bf16 %v9882_v43  ;;  %v9842_v53 = vpop.permute.xlu1 %9841 }
 0x908   : > { %v6069_v57 = vsel %vm14201_vm15, %v6061_v36, %v9878_v21  ;;  %v6070_v48 = vsel %vm14208_vm1, %v6062_v5, %v9879_v52  ;;  %v9844_v61 = vunpack.i.h.bf16 %v9842_v53  ;;  %v9843_v8 = vunpack.i.l.bf16 %v9842_v53  ;;  %vm14213_vm15 = vmmov %vm14202_vm2 }
 0x909   : > { %v6077_v54 = vsel %vm14202_vm2, %v6069_v57, %v9883_v29  ;;  %v6078_v39 = vsel %vm14209_vm14, %v6070_v48, %v9884_v2  ;;  %v9799_v52 = vunpack.i.h.bf16 %v13476_v30  ;;  %v9798_v21 = vunpack.i.l.bf16 %v13476_v30  ;;  %vm14214_vm1 = vmmov %vm14202_vm2 }
 0x90a   : > { %v10015_v15 = vpack.i.bf16 %v6078_v39, %v6077_v54  ;;  %v6007_v10 = vsel %vm2827_vm4, %v10476_v0, %v9843_v8  ;;  %v6008_v60 = vsel %vm2827_vm4, %v10477_v23, %v9844_v61  ;;  %v13617_v1 = vpop.permute.xlu0 %9886  ;;  %v9804_v43 = vunpack.i.h.bf16 %v13492_v59  ;;  %vm14215_vm2 = vmmov %vm14210_vm12 }
 0x90b   : > { %v6015_v18 = vsel %vm1475_vm3, %v6007_v10, %v9753_v49  ;;  %v6016_v25 = vsel %vm1475_vm3, %v6008_v60, %v9754_v56  ;;  %v13623_v37 = vpop.permute.xlu1 %9846  ;;  %v9809_v2 = vunpack.i.h.bf16 %v13511_v6  ;;  %v9808_v30 = vunpack.i.l.bf16 %v13511_v6  ;;  %vm14216_vm14 = vmmov %vm14212_vm11 }
 0x90c   : > { %v6023_v36 = vsel %vm2844_vm5, %v6015_v18, %v9758_v16  ;;  %v6024_v5 = vsel %vm2844_vm5, %v6016_v25, %v9759_v22  ;;  %10016 = vrot.lane.b32.xlu0 %v10015_v15, %s14194_s7  ;;  %v9814_v53 = vunpack.i.h.bf16 %v13522_v3  ;;  %v9813_v57 = vunpack.i.l.bf16 %v13522_v3 }
 0x90d   : > { %v6031_v29 = vsel %vm2853_vm6, %v6023_v36, %v9763_v44  ;;  %v6032_v56 = vsel %vm2853_vm6, %v6024_v5, %v9764_v55  ;;  %v9819_v61 = vunpack.i.h.bf16 %v13528_v24  ;;  %v9818_v8 = vunpack.i.l.bf16 %v13528_v24  ;;  %v6304_v55 = vld [vmem:[#allocation35] sm:$0x3] }
 0x90e   : > { %v6039_v59 = vsel %vm2862_vm7, %v6031_v29, %v9798_v21  ;;  %v6040_v48 = vsel %vm2862_vm7, %v6032_v56, %v9799_v52  ;;  %v13638_v0 = vpop.permute.xlu0 %9901  ;;  %8637 = vmatprep.subr.msk.bf16.mxu1 %vm14210_vm12, %v6304_v55  ;;  %v9824_v24 = vunpack.i.h.bf16 %v13542_v35  ;;  %v9823_v39 = vunpack.i.l.bf16 %v13542_v35  ;;  %vm14217_vm12 = vmmov %vm14212_vm11 }
 0x90f   : > { %v9852_v23 = vpop.permute.xlu1 %9851  ;;  %v6047_v6 = vsel %vm2871_vm8, %v6039_v59, %v9803_v7  ;;  %v6048_v44 = vsel %vm2871_vm8, %v6040_v48, %v9804_v43  ;;  %v6318_v25 = vsel %vm14215_vm2, %v6304_v55, 0  ;;  %v9569_v55 = vunpack.i.h.bf16 %v13275_v38 }
 0x910   : > { %v9854_v49 = vunpack.i.h.bf16 %v9852_v23  ;;  %v9853_v22 = vunpack.i.l.bf16 %v9852_v23  ;;  %10021 = vrot.lane.b32.xlu0 %v10020_v32, %s14069_s15  ;;  %v6055_v3 = vsel %vm14068_vm9, %v6047_v6, %v9808_v30  ;;  %v6056_v54 = vsel %vm14068_vm9, %v6048_v44, %v9809_v2  ;;  %8585 = vmatpush3.bf16.msra.mxu1 %v6318_v25  ;;  %v10362_v6 = vld [vmem:[#allocation2] ss:$8 sps:$4 sm:$0xff]   ;;  %v10363_v44 = vld [vmem:[#allocation2 + $0x10] ss:$8 sps:$4 sm:$0xff]   ;;  %s14265_s15 = sld [smem:[#allocation83_spill]] }
 0x911   : > { %v6063_v16 = vsel %vm14067_vm10, %v6055_v3, %v9813_v57  ;;  %v6064_v15 = vsel %vm14067_vm10, %v6056_v54, %v9814_v53  ;;  %8594 = vmatprep.subr.bf16.mxu1 %v14207_v9  ;;  %vm14220_vm2 = vcmask 359424  }
 0x912   : > { %v5408_v10 = vsel %vm2862_vm7, %v13588_v27, %v9854_v49  ;;  %v5407_v12 = vsel %vm2862_vm7, %v13582_v63, %v9853_v22  ;;  %v13659_v50 = vpop.permute.xlu0 %9916  ;;  %v6071_v32 = vsel %vm14211_vm13, %v6063_v16, %v9818_v8  ;;  %v6072_v60 = vsel %vm14212_vm11, %v6064_v15, %v9819_v61  ;;  %vm14218_vm13 = vmmov %vm14212_vm11 }
 0x913   : > { %v13663_v52 = vpop.permute.xlu1 %9861  ;;  %v6079_v35 = vsel %vm14213_vm15, %v6071_v32, %v9823_v39  ;;  %v6080_v21 = vsel %vm14214_vm1, %v6072_v60, %v9824_v24  ;;  %v9568_v49 = vunpack.i.l.bf16 %v13275_v38  ;;  %v5372_v15 = vsel %vm2827_vm4, %v10363_v44, %v9569_v55  ;;  %vm14219_vm15 = vmmov %vm14214_vm1 }
 0x914   : > { %v10030_v18 = vpack.i.bf16 %v6080_v21, %v6079_v35  ;;  %v9573_v38 = vunpack.i.l.bf16 %v13283_v20 }
 0x916   : > { %10031 = vrot.lane.b32.xlu0 %v10030_v18, %s14194_s7  ;;  %v13669_v27 = vpop.permute.xlu0 %9931  ;;  %v9574_v18 = vunpack.i.h.bf16 %v13283_v20 }
 0x917   : > { %v9867_v63 = vpop.permute.xlu1 %9866 }
 0x918   : > { %v9869_v43 = vunpack.i.h.bf16 %v9867_v63  ;;  %v9868_v7 = vunpack.i.l.bf16 %v9867_v63 }
 0x91a   : > { %v5415_v36 = vsel %vm2871_vm8, %v5407_v12, %v9868_v7  ;;  %v5416_v5 = vsel %vm2871_vm8, %v5408_v10, %v9869_v43  ;;  %v13674_v2 = vpop.permute.xlu0 %9941  ;;  %v5371_v10 = vsel %vm2827_vm4, %v10362_v6, %v9568_v49  ;;  %v5380_v6 = vsel %vm1475_vm3, %v5372_v15, %v9574_v18 }
 0x91b   : > { %v13676_v30 = vpop.permute.xlu1 %9891  ;;  %v9579_v49 = vunpack.i.h.bf16 %v13289_v11 }
 0x91e   : > { %v9962_v29 = vpop.permute.xlu0 %9961 }
 0x91f   : > { %v9897_v56 = vpop.permute.xlu1 %9896  ;;  %v9964_v32 = vunpack.i.h.bf16 %v9962_v29  ;;  %v9963_v60 = vunpack.i.l.bf16 %v9962_v29 }
 0x920   : > { %v9899_v53 = vunpack.i.h.bf16 %v9897_v56  ;;  %v9898_v57 = vunpack.i.l.bf16 %v9897_v56 }
 0x921   : > { %v5393_v20 = vsel %vm2844_vm5, %v13454_v62, %v9963_v60 }
 0x922   : > { %v5423_v59 = vsel %vm14068_vm9, %v5415_v36, %v9898_v57  ;;  %v5424_v48 = vsel %vm14068_vm9, %v5416_v5, %v9899_v53  ;;  %v9967_v61 = vpop.permute.xlu0 %9966 }
 0x923   : > { %v13680_v8 = vpop.permute.xlu1 %9906  ;;  %v9969_v25 = vunpack.i.h.bf16 %v9967_v61  ;;  %v9968_v63 = vunpack.i.l.bf16 %v9967_v61 }
 0x925   : > { %v5401_v44 = vsel %vm2853_vm6, %v5393_v20, %v9968_v63 }
 0x926   : > { %v9972_v23 = vpop.permute.xlu0 %9971 }
 0x927   : > { %v9912_v22 = vpop.permute.xlu1 %9911  ;;  %v9974_v43 = vunpack.i.h.bf16 %v9972_v23  ;;  %v9973_v7 = vunpack.i.l.bf16 %v9972_v23  ;;  %v5379_v23 = vsel %vm1475_vm3, %v5371_v10, %v9573_v38  ;;  %v9584_v38 = vunpack.i.h.bf16 %v13297_v42 }
 0x928   : > { %v9914_v3 = vunpack.i.h.bf16 %v9912_v22  ;;  %v9913_v54 = vunpack.i.l.bf16 %v9912_v22  ;;  %v9578_v22 = vunpack.i.l.bf16 %v13289_v11 }
 0x92a   : > { %v5431_v24 = vsel %vm14067_vm10, %v5423_v59, %v9913_v54  ;;  %v5432_v39 = vsel %vm14067_vm10, %v5424_v48, %v9914_v3  ;;  %v9977_v16 = vpop.permute.xlu0 %9976  ;;  %v5394_v59 = vsel %vm2844_vm5, %v13457_v58, %v9964_v32  ;;  %v5409_v3 = vsel %vm2862_vm7, %v5401_v44, %v9973_v7 }
 0x92b   : > { %v9922_v12 = vpop.permute.xlu1 %9921  ;;  %v9979_v53 = vunpack.i.h.bf16 %v9977_v16  ;;  %v9978_v57 = vunpack.i.l.bf16 %v9977_v16  ;;  %v5402_v55 = vsel %vm2853_vm6, %v5394_v59, %v9969_v25  ;;  %v9583_v25 = vunpack.i.l.bf16 %v13297_v42 }
 0x92c   : > { %v9924_v35 = vunpack.i.h.bf16 %v9922_v12  ;;  %v9923_v21 = vunpack.i.l.bf16 %v9922_v12  ;;  %v5410_v58 = vsel %vm2862_vm7, %v5402_v55, %v9974_v43  ;;  %v5387_v7 = vsel %vm2844_vm5, %v5379_v23, %v9578_v22 }
 0x92d   : > { %v5417_v62 = vsel %vm2871_vm8, %v5409_v3, %v9978_v57  ;;  %v5395_v42 = vsel %vm2853_vm6, %v5387_v7, %v9583_v25  ;;  %v9593_v22 = vunpack.i.l.bf16 %v13311_v33 }
 0x92e   : > { %v13691_v36 = vsel %vm14216_vm14, %v5431_v24, %v9923_v21  ;;  %v13694_v5 = vsel %vm14217_vm12, %v5432_v39, %v9924_v35  ;;  %v9982_v56 = vpop.permute.xlu0 %9981  ;;  %v5418_v24 = vsel %vm2871_vm8, %v5410_v58, %v9979_v53  ;;  %vm14221_vm14 = vmmov %vm14220_vm2 }
 0x92f   : > { %v9927_v29 = vpop.permute.xlu1 %9926  ;;  %v9984_v48 = vunpack.i.h.bf16 %v9982_v56  ;;  %v9983_v61 = vunpack.i.l.bf16 %v9982_v56  ;;  %v5388_v56 = vsel %vm2844_vm5, %v5380_v6, %v9579_v49  ;;  %v9594_v49 = vunpack.i.h.bf16 %v13311_v33  ;;  %vm14222_vm12 = vmmov %vm14212_vm11 }
 0x930   : > { %v9929_v10 = vunpack.i.h.bf16 %v9927_v29  ;;  %v9928_v12 = vunpack.i.l.bf16 %v9927_v29  ;;  %v5396_v44 = vsel %vm2853_vm6, %v5388_v56, %v9584_v38  ;;  %v9604_v33 = vunpack.i.h.bf16 %v13325_v31 }
 0x931   : > { %v5425_v32 = vsel %vm14068_vm9, %v5417_v62, %v9983_v61  ;;  %v5426_v60 = vsel %vm14068_vm9, %v5418_v24, %v9984_v48  ;;  %v9589_v48 = vunpack.i.h.bf16 %v13303_v40  ;;  %v9588_v61 = vunpack.i.l.bf16 %v13303_v40 }
 0x932   : > { %v9987_v54 = vpop.permute.xlu0 %9986  ;;  %v9668_v38 = vunpack.i.l.bf16 %v13367_v45  ;;  %v9864_v56 = vunpack.i.h.bf16 %v13663_v52 }
 0x933   : > { %v9937_v39 = vpop.permute.xlu1 %9936  ;;  %v9989_v16 = vunpack.i.h.bf16 %v9987_v54  ;;  %v9988_v15 = vunpack.i.l.bf16 %v9987_v54  ;;  %v5403_v54 = vsel %vm2862_vm7, %v5395_v42, %v9588_v61  ;;  %v5404_v62 = vsel %vm2862_vm7, %v5396_v44, %v9589_v48 }
 0x934   : > { %v9939_v35 = vunpack.i.h.bf16 %v9937_v39  ;;  %v9938_v11 = vunpack.i.l.bf16 %v9937_v39  ;;  %v9599_v39 = vunpack.i.h.bf16 %v13317_v17  ;;  %v9909_v48 = vunpack.i.h.bf16 %v13680_v8 }
 0x935   : > { %v5433_v21 = vsel %vm14067_vm10, %v5425_v32, %v9988_v15  ;;  %v5434_v18 = vsel %vm14067_vm10, %v5426_v60, %v9989_v16  ;;  %v9598_v16 = vunpack.i.l.bf16 %v13317_v17  ;;  %v5411_v15 = vsel %vm2871_vm8, %v5403_v54, %v9593_v22 }
 0x936   : > { %v5441_v63 = vsel %vm14218_vm13, %v5433_v21, %v9928_v12  ;;  %v5442_v43 = vsel %vm14212_vm11, %v5434_v18, %v9929_v10  ;;  %v5412_v10 = vsel %vm2871_vm8, %v5404_v62, %v9594_v49  ;;  %v9603_v12 = vunpack.i.l.bf16 %v13325_v31  ;;  %vm14223_vm13 = vmmov %vm14212_vm11 }
 0x937   : > { %v9947_v53 = vpop.permute.xlu1 %9946  ;;  %v5449_v57 = vsel %vm14219_vm15, %v5441_v63, %v9938_v11  ;;  %v5450_v29 = vsel %vm14214_vm1, %v5442_v43, %v9939_v35  ;;  %v5419_v32 = vsel %vm14068_vm9, %v5411_v15, %v9598_v16  ;;  %v5420_v60 = vsel %vm14068_vm9, %v5412_v10, %v9599_v39  ;;  %vm14224_vm11 = vmmov %vm14214_vm1 }
 0x938   : > { %v9949_v59 = vunpack.i.h.bf16 %v9947_v53  ;;  %v9948_v20 = vunpack.i.l.bf16 %v9947_v53  ;;  %v9659_v35 = vunpack.i.h.bf16 %v13355_v34  ;;  %v9658_v11 = vunpack.i.l.bf16 %v13355_v34  ;;  %vm14225_vm15 = vmmov %vm14214_vm1 }
 0x939   : > { %v9664_v21 = vunpack.i.h.bf16 %v13361_v47  ;;  %v9663_v17 = vunpack.i.l.bf16 %v13361_v47  ;;  %v9669_v18 = vunpack.i.h.bf16 %v13367_v45  ;;  %v5427_v25 = vsel %vm14067_vm10, %v5419_v32, %v9603_v12  ;;  %vm14226_vm1 = vmmov %vm14220_vm2 }
 0x93a   : > { %v5457_v55 = vsel %vm14220_vm2, %v5449_v57, %v9948_v20  ;;  %v5458_v23 = vsel %vm14221_vm14, %v5450_v29, %v9949_v59  ;;  %v5428_v31 = vsel %vm14067_vm10, %v5420_v60, %v9604_v33  ;;  %v9849_v63 = vunpack.i.h.bf16 %v13623_v37  ;;  %vm14227_vm2 = vmmov %vm14226_vm1 }
 0x93b   : > { %v9952_v6 = vpop.permute.xlu1 %9951  ;;  %v9848_v43 = vunpack.i.l.bf16 %v13623_v37  ;;  %v5436_v7 = vsel %vm14222_vm12, %v5428_v31, %v9659_v35  ;;  %v5435_v34 = vsel %vm14223_vm13, %v5427_v25, %v9658_v11  ;;  %v9863_v47 = vunpack.i.l.bf16 %v13663_v52 }
 0x93c   : > { %v9954_v3 = vunpack.i.h.bf16 %v9952_v6  ;;  %v9953_v58 = vunpack.i.l.bf16 %v9952_v6  ;;  %v5443_v57 = vsel %vm14224_vm11, %v5435_v34, %v9663_v17  ;;  %v5444_v45 = vsel %vm14225_vm15, %v5436_v7, %v9664_v21 }
 0x93d   : > { %v9894_v29 = vunpack.i.h.bf16 %v13676_v30  ;;  %v9893_v59 = vunpack.i.l.bf16 %v13676_v30  ;;  %v5451_v20 = vsel %vm14226_vm1, %v5443_v57, %v9668_v38  ;;  %v5452_v37 = vsel %vm14227_vm2, %v5444_v45, %v9669_v18 }
 0x93e   : > { %v5465_v40 = vsel %vm2925_vm0, %v5457_v55, %v9953_v58  ;;  %v5466_v24 = vsel %vm2925_vm0, %v5458_v23, %v9954_v3  ;;  %v9908_v61 = vunpack.i.l.bf16 %v13680_v8  ;;  %v5460_v42 = vsel %vm2925_vm0, %v5452_v37, %v9849_v63 }
 0x93f   : > { %v9957_v53 = vpop.permute.xlu1 %9956  ;;  %v5459_v52 = vsel %vm2925_vm0, %v5451_v20, %v9848_v43  ;;  %vm14228_vm14 = vcmask 424960   ;;  %vm14230_vm13 = vcmask 457728   ;;  %vm14232_vm15 = vcmask 490496  }
 0x940   : > { %v5467_v44 = vsel %vm14228_vm14, %v5459_v52, %v9863_v47  ;;  %vm14229_vm12 = vmmov %vm14228_vm14  ;;  %vm14234_vm2 = vcmask 523264   ;;  %vm14236_vm9 = vcmask 883712   ;;  %v9959_v15 = vunpack.i.h.bf16 %v9957_v53 }
 0x941   : > { %v5468_v55 = vsel %vm14229_vm12, %v5460_v42, %v9864_v56  ;;  %v5475_v6 = vsel %vm14230_vm13, %v5467_v44, %v9893_v59  ;;  %vm14231_vm11 = vmmov %vm14230_vm13  ;;  %v9958_v10 = vunpack.i.l.bf16 %v9957_v53  ;;  %v9992_v56 = vpop.permute.xlu0 %9991  ;;  %v9888_v47 = vunpack.i.l.bf16 %v13617_v1 }
 0x942   : > { %v5476_v30 = vsel %vm14231_vm11, %v5468_v55, %v9894_v29  ;;  %v5483_v3 = vsel %vm14232_vm15, %v5475_v6, %v9908_v61  ;;  %vm14233_vm1 = vmmov %vm14232_vm15  ;;  %v5474_v11 = vsel %vm14229_vm12, %v5466_v24, %v9959_v15  ;;  %v9889_v24 = vunpack.i.h.bf16 %v13617_v1 }
 0x943   : > { %v5484_v58 = vsel %vm14233_vm1, %v5476_v30, %v9909_v48  ;;  %vm14235_vm10 = vmmov %vm14234_vm2  ;;  %v9904_v57 = vunpack.i.h.bf16 %v13638_v0  ;;  %v9903_v45 = vunpack.i.l.bf16 %v13638_v0  ;;  %v9919_v29 = vunpack.i.h.bf16 %v13659_v50 }
 0x944   : > { %vm14237_vm14 = vmmov %vm14229_vm12  ;;  %v9918_v59 = vunpack.i.l.bf16 %v13659_v50  ;;  %v9934_v55 = vunpack.i.h.bf16 %v13669_v27  ;;  %v9933_v50 = vunpack.i.l.bf16 %v13669_v27 }
 0x945   : > { %v5473_v35 = vsel %vm14237_vm14, %v5465_v40, %v9958_v10  ;;  %vm14238_vm13 = vmmov %vm14231_vm11  ;;  %v9997_v40 = vpop.permute.xlu0 %9996 }
 0x946   : > { %vm14241_vm15 = vmmov %vm14234_vm2  ;;  %v9998_v27 = vunpack.i.l.bf16 %v9997_v40 }
 0x949   : > { %v10002_v53 = vpop.permute.xlu0 %10001 }
 0x94b   : > { %v10007_v23 = vpop.permute.xlu1 %10006 }
 0x94c   : > { %v10009_v49 = vunpack.i.h.bf16 %v10007_v23  ;;  %v10008_v22 = vunpack.i.l.bf16 %v10007_v23 }
 0x94e   : > { %v6115_v8 = vsel %vm14234_vm2, %v5483_v3, %v10008_v22  ;;  %v6116_v54 = vsel %vm14235_vm10, %v5484_v58, %v10009_v49  ;;  %vm14240_vm10 = vmmov %vm14233_vm1  ;;  %v9994_v22 = vunpack.i.h.bf16 %v9992_v56  ;;  %v9993_v3 = vunpack.i.l.bf16 %v9992_v56 }
 0x94f   : > { %v6123_v62 = vpack.c.bf16 %v6116_v54, %v6115_v8  ;;  %v10012_v39 = vpop.permute.xlu1 %10011  ;;  %v9944_v58 = vunpack.i.h.bf16 %v13674_v2  ;;  %v9943_v8 = vunpack.i.l.bf16 %v13674_v2  ;;  %v9999_v54 = vunpack.i.h.bf16 %v9997_v40 }
 0x950   : > { %v10014_v33 = vunpack.i.h.bf16 %v10012_v39  ;;  %v10013_v12 = vunpack.i.l.bf16 %v10012_v39  ;;  %v10003_v39 = vunpack.i.l.bf16 %v10002_v53 }
 0x951   : > { %8576 = vmatprep.mubr.msk.bf16.mxu0 %vm14236_vm9, %v6123_v62  ;;  %vm14239_vm9 = vmmov %vm14233_vm1  ;;  %v10004_v62 = vunpack.i.h.bf16 %v10002_v53 }
 0x952   : > { %v5481_v17 = vsel %vm14238_vm13, %v5473_v35, %v10013_v12  ;;  %v5482_v18 = vsel %vm14231_vm11, %v5474_v11, %v10014_v33  ;;  %vm14242_vm1 = vmmov %vm14234_vm2 }
 0x953   : > { %v10027_v16 = vpop.permute.xlu1 %10026  ;;  %vm14243_vm2 = vmmov %vm14229_vm12 }
 0x954   : > { %v10029_v32 = vunpack.i.h.bf16 %v10027_v16  ;;  %v10028_v60 = vunpack.i.l.bf16 %v10027_v16  ;;  %v5470_v20 = vsel %vm14243_vm2, %v13567_v13, %v9889_v24  ;;  %vm14244_vm14 = vmmov %vm14243_vm2 }
 0x955   : > { %v5469_v37 = vsel %vm14244_vm14, %v13570_v19, %v9888_v47  ;;  %vm14245_vm12 = vmmov %vm14231_vm11  ;;  %vm14252_vm14 = vcmask 883712  }
 0x956   : > { %v5489_v31 = vsel %vm14239_vm9, %v5481_v17, %v10028_v60  ;;  %v5490_v63 = vsel %vm14240_vm10, %v5482_v18, %v10029_v32  ;;  %v5477_v61 = vsel %vm14245_vm12, %v5469_v37, %v9903_v45  ;;  %vm14246_vm13 = vmmov %vm14231_vm11  ;;  %vm14253_vm12 = vcmask 359424  }
 0x957   : > { %v5478_v1 = vsel %vm14246_vm13, %v5470_v20, %v9904_v57  ;;  %vm14247_vm11 = vmmov %vm14239_vm9 }
 0x958   : > { %v5485_v44 = vsel %vm14247_vm11, %v5477_v61, %v9918_v59  ;;  %v5486_v0 = vsel %vm14239_vm9, %v5478_v1, %v9919_v29  ;;  %vm14248_vm10 = vmmov %vm14242_vm1  ;;  %vm14255_vm11 = vcmask 424960  }
 0x959   : > { %vm14254_vm13 = vmmov %vm14253_vm12 }
 0x95a   : > { %vm14256_vm9 = vmmov %vm14255_vm11 }
 0x960   : > { %v10037_v21 = vpop.permute.xlu1 %10036 }
 0x961   : > { %v10039_v38 = vunpack.i.h.bf16 %v10037_v21  ;;  %v10038_v25 = vunpack.i.l.bf16 %v10037_v21 }
 0x963   : > { %v6121_v43 = vsel %vm14241_vm15, %v5489_v31, %v10038_v25  ;;  %v6122_v7 = vsel %vm14242_vm1, %v5490_v63, %v10039_v38  ;;  %vm14249_vm15 = vmmov %vm14242_vm1  ;;  %vm14250_vm1 = vcmask 326656   ;;  %v8383_v63 = vld [vmem:[#allocation32] ss:$0 sm:$0xff] }
 0x964   : > { %v6126_v34 = vpack.c.bf16 %v6122_v7, %v6121_v43  ;;  %v5447_v30 = vsel %vm14250_vm1, %v13691_v36, %v9933_v50  ;;  %vm14251_vm2 = vmmov %vm14250_vm1  ;;  %vm14259_vm1 = vcmask 490496   ;;  %v8384_v7 = vld [vmem:[#allocation33] ss:$0 sm:$0xff] }
 0x965   : > { %v5448_v49 = vsel %vm14251_vm2, %v13694_v5, %v9934_v55  ;;  %v5455_v16 = vsel %vm14253_vm12, %v5447_v30, %v9943_v8  ;;  %vm14260_vm2 = vmmov %vm14259_vm1 }
 0x966   : > { %v5456_v15 = vsel %vm14254_vm13, %v5448_v49, %v9944_v58  ;;  %v5463_v33 = vsel %vm2925_vm0, %v5455_v16, %v9993_v3  ;;  %vm14263_vm13 = vcmask 883712  }
 0x967   : > { %v5464_v5 = vsel %vm2925_vm0, %v5456_v15, %v9994_v22  ;;  %v5471_v12 = vsel %vm14255_vm11, %v5463_v33, %v9998_v27  ;;  %vm14264_vm11 = vmmov %vm14263_vm13 }
 0x968   : > { %v5472_v2 = vsel %vm14256_vm9, %v5464_v5, %v9999_v54  ;;  %vm11577_vm9 = vmmov 0  }
 0x97e   : > { %v10017_v48 = vpop.permute.xlu0 %10016 }
 0x97f   : > { %v10019_v42 = vunpack.i.h.bf16 %v10017_v48  ;;  %v10018_v52 = vunpack.i.l.bf16 %v10017_v48 }
 0x981   : > { %v6118_v13 = vsel %vm14248_vm10, %v5486_v0, %v10019_v42  ;;  %v6117_v23 = vsel %vm14249_vm15, %v5485_v44, %v10018_v52  ;;  %vm14257_vm10 = vcmask 457728   ;;  %v10487_v44 = vld [vmem:[%s14265_s15] sm:$0xff]  }
 0x982   : > { %v6124_v19 = vpack.c.bf16 %v6118_v13, %v6117_v23  ;;  %v10022_v6 = vpop.permute.xlu0 %10021  ;;  %v5479_v60 = vsel %vm14257_vm10, %v5471_v12, %v10003_v39  ;;  %vm14258_vm15 = vmmov %vm14257_vm10  ;;  %vm6823_vm10 = vcmask 25600  }
 0x983   : > { %v10024_v36 = vunpack.i.h.bf16 %v10022_v6  ;;  %v10023_v10 = vunpack.i.l.bf16 %v10022_v6  ;;  %v5480_v35 = vsel %vm14258_vm15, %v5472_v2, %v10004_v62  ;;  %v8421_v6 = vld [vmem:[#allocation36] ss:$0 sm:$0xff]  ;;  %v8422_v62 = vld [vmem:[#allocation38] ss:$0 sm:$0xff]  ;;  %vm7824_vm15 = vcmask 1041409  }
 0x984   : > { %8577 = vmatmul.mubr.msk.bf16.vlgmr.msra.gmra.mrb[8].mxu0 %vm14252_vm14, %v6124_v19  ;;  %vm14261_vm14 = vcmask 523264   ;;  %v6713_v19 = vld [vmem:[%s12257_s18] sm:$0xff] }
 0x985   : > { %v5487_v17 = vsel %vm14259_vm1, %v5479_v60, %v10023_v10  ;;  %v5488_v18 = vsel %vm14260_vm2, %v5480_v35, %v10024_v36  ;;  %vm14262_vm12 = vmmov %vm14261_vm14  ;;  %v6721_v54 = vmul.f32 %v8421_v6, %v6713_v19  ;;  %v6397_v35 = vlaneseq }
 0x986   : > { %vm7826_vm1 = vcmask 1042434   ;;  %vm7828_vm2 = vcmask 1043459  }
 0x987   : > { %v6729_v5 = vadd.f32 %v8422_v62, %v6721_v54 }
 0x988   : > { %v10032_v32 = vpop.permute.xlu0 %10031 }
 0x989   : > { %v10034_v11 = vunpack.i.h.bf16 %v10032_v32  ;;  %v10033_v21 = vunpack.i.l.bf16 %v10032_v32  ;;  %v6730_v12 = vmax.f32 %v6729_v5, 0.0  ;;  %v11578_v32 = vmov 1983009808  }
 0x98a   : > { %v6395_v60 = vunpack.c.l.s4 %v11578_v32 }
 0x98b   : > { %v6119_v38 = vsel %vm14261_vm14, %v5487_v17, %v10033_v21  ;;  %v6120_v25 = vsel %vm14262_vm12, %v5488_v18, %v10034_v11  ;;  %v6731_v2 = vpack.c.bf16 %v6730_v12, %v6730_v12  ;;  %v13834_v21 = vshrl.u32 %v6397_v35, 7 }
 0x98c   : > { %v6125_v31 = vpack.c.bf16 %v6120_v25, %v6119_v38  ;;  %v6396_v11 = vunpack.c.0.s8 %v6395_v60  ;;  %vm7830_vm14 = vcmask 1044484   ;;  %vm7832_vm12 = vcmask 1045509  }
 0x98e   : > { %8580 = vmatprep.mubr.msk.bf16.mxu0 %vm14263_vm13, %v6125_v31  ;;  %v13837_v17 = vsub.s32 %v6396_v11, %v13834_v21  ;;  %vm7834_vm13 = vcmask 1046534  }
 0x98f   : > { %8581 = vmatmul.mubr.msk.bf16.gmra.mrb[12].mxu0 %vm14264_vm11, %v6126_v34  ;;  %vm7836_vm11 = vcmask 1047559  }
 0x990   : > { %8614 = vmatprep.mubr.msk.bf16.mxu0 %vm11577_vm9, %v14207_v9 }
 0xa57   : > { %v8578_v43 = vpop.f32.mrb[8].mxu0 }
 0xa58   : > { %v6271_v56 = vmul.f32 %v8578_v43, %v8383_v63  ;;  %v6231_v40 = vpop.f32.mrb[9].mxu0 }
 0xa59   : > { %v6269_v24 = vmul.f32 %v8383_v63, %v6231_v40  ;;  %v8579_v47 = vpop.f32.mrb[10].mxu0 }
 0xa5a   : > { %v6286_v53 = vadd.f32 %v8384_v7, %v6271_v56  ;;  %v6272_v57 = vmul.f32 %v8579_v47, %v8383_v63  ;;  %v6234_v45 = vpop.f32.mrb[11].mxu0 }
 0xa5b   : > { %v6284_v29 = vadd.f32 %v8384_v7, %v6269_v24  ;;  %v6270_v59 = vmul.f32 %v8383_v63, %v6234_v45 }
 0xa5c   : > { %v6287_v20 = vadd.f32 %v8384_v7, %v6272_v57  ;;  %v6294_v37 = vmax.f32 %v6286_v53, 0.0 }
 0xa5d   : > { %v6285_v34 = vadd.f32 %v8384_v7, %v6270_v59  ;;  %v6292_v61 = vmax.f32 %v6284_v29, 0.0 }
 0xa5e   : > { %v6295_v48 = vmax.f32 %v6287_v20, 0.0 }
 0xa5f   : > { %v6293_v1 = vmax.f32 %v6285_v34, 0.0 }
 0xa60   : > { %v6301_v42 = vpack.c.bf16 %v6295_v48, %v6294_v37 }
 0xa61   : > { %v6300_v52 = vpack.c.bf16 %v6293_v1, %v6292_v61 }
 0xa62   : > { %v8582_v0 = vpop.f32.mrb[12].mxu0 }
 0xa63   : > { %v6275_v55 = vmul.f32 %v8582_v0, %v8383_v63  ;;  %v6247_v50 = vpop.f32.mrb[13].mxu0  ;;  %8586 = vmatprep.mubr.msk.bf16.mxu1 %vm2827_vm4, %v6300_v52 }
 0xa64   : > { %v6273_v13 = vmul.f32 %v8383_v63, %v6247_v50  ;;  %v8583_v23 = vpop.f32.mrb[14].mxu0  ;;  %8587 = vmatmul.mubr.msk.bf16.vlgmr.msra.gmra.mrb[24].mxu1 %vm2827_vm4, %v6301_v42 }
 0xa65   : > { %v6290_v30 = vadd.f32 %v8384_v7, %v6275_v55  ;;  %v6276_v49 = vmul.f32 %v8583_v23, %v8383_v63  ;;  %v6250_v22 = vpop.f32.mrb[15].mxu0  ;;  %8595 = vmatpush3.bf16.msra.mxu1 %v10487_v44 }
 0xa66   : > { %v6288_v3 = vadd.f32 %v8384_v7, %v6273_v13  ;;  %v6274_v58 = vmul.f32 %v8383_v63, %v6250_v22 }
 0xa67   : > { %v6291_v8 = vadd.f32 %v8384_v7, %v6276_v49  ;;  %v6298_v39 = vmax.f32 %v6290_v30, 0.0 }
 0xa68   : > { %v6289_v27 = vadd.f32 %v8384_v7, %v6274_v58  ;;  %v6296_v15 = vmax.f32 %v6288_v3, 0.0 }
 0xa69   : > { %v6299_v16 = vmax.f32 %v6291_v8, 0.0 }
 0xa6a   : > { %v6297_v36 = vmax.f32 %v6289_v27, 0.0 }
 0xa6b   : > { %v6303_v10 = vpack.c.bf16 %v6299_v16, %v6298_v39 }
 0xa6c   : > { %v6302_v33 = vpack.c.bf16 %v6297_v36, %v6296_v15 }
 0xa6e   : > { %8590 = vmatprep.mubr.msk.bf16.mxu1 %vm2827_vm4, %v6302_v33 }
 0xa6f   : > { %8591 = vmatmul.mubr.msk.bf16.gmra.mrb[28].mxu1 %vm2827_vm4, %v6303_v10 }
 0xa70   : > { %8596 = vmatprep.mubr.msk.bf16.mxu1 %vm11577_vm9, %v14207_v9 }
 0xa77   : > { %8597 = vmatmul.mubr.msk.bf16.vlgmr.msra.gmra.mrb[32].mxu1 %vm2853_vm6, %v6731_v2 }
 0xb37   : > { %v8588_v18 = vpop.f32.mrb[24].mxu1 }
 0xb38   : > { %v6363_v38 = vadd.f32 %v8588_v18, %v13188_v46  ;;  %v6354_v25 = vpop.f32.mrb[25].mxu1 }
 0xb39   : > { %v6355_v31 = vadd.f32 %v6354_v25, %v13191_v14  ;;  %v8589_v63 = vpop.f32.mrb[26].mxu1 }
 0xb3a   : > { %v6427_v43 = vcombine.high %v6363_v38, %v6363_v38  ;;  %v6434_v7 = vrot.slane %v6363_v38, %v13837_v17  ;;  %v6366_v56 = vadd.f32 %v8589_v63, %v13194_v26  ;;  %v6357_v40 = vpop.f32.mrb[27].mxu1 }
 0xb3b   : > { %v6393_v24 = vcombine.high %v6355_v31, %v6355_v31  ;;  %v6400_v47 = vrot.slane %v6355_v31, %v13837_v17  ;;  %v6358_v53 = vadd.f32 %v6357_v40, %v13197_v28 }
 0xb3c   : > { %v6441_v57 = vrot.slane %v6427_v43, %v13837_v17  ;;  %v6442_v45 = vcombine.high %v6434_v7, %v6434_v7  ;;  %v8397_v29 = vrot.slane %v6434_v7, 9  ;;  %v6444_v46 = vcombine.high %v6366_v56, %v6366_v56 }
 0xb3d   : > { %v6407_v59 = vrot.slane %v6393_v24, %v13837_v17  ;;  %v6408_v14 = vcombine.high %v6400_v47, %v6400_v47  ;;  %v8389_v20 = vrot.slane %v6400_v47, 9  ;;  %v6451_v34 = vrot.slane %v6366_v56, %v13837_v17 }
 0xb3e   : > { %v6443_v37 = vcombine.high %v6441_v57, %v6441_v57  ;;  %v8398_v48 = vrot.slane %v6442_v45, 9  ;;  %v8399_v26 = vrot.slane %v6441_v57, 9  ;;  %v6665_v61 = vmax.f32 %v6434_v7, %v8397_v29 }
 0xb3f   : > { %v6409_v1 = vcombine.high %v6407_v59, %v6407_v59  ;;  %v8390_v42 = vrot.slane %v6408_v14, 9  ;;  %v8391_v52 = vrot.slane %v6407_v59, 9  ;;  %v6657_v44 = vmax.f32 %v6400_v47, %v8389_v20 }
 0xb40   : > { %v8400_v28 = vrot.slane %v6443_v37, 9  ;;  %v6666_v0 = vmax.f32 %v6442_v45, %v8398_v48  ;;  %v6667_v55 = vmax.f32 %v6441_v57, %v8399_v26  ;;  %v6458_v50 = vrot.slane %v6444_v46, %v13837_v17 }
 0xb41   : > { %v8392_v13 = vrot.slane %v6409_v1, 9  ;;  %v6658_v23 = vmax.f32 %v6408_v14, %v8390_v42  ;;  %v6659_v19 = vmax.f32 %v6407_v59, %v8391_v52  ;;  %v6459_v6 = vcombine.high %v6451_v34, %v6451_v34 }
 0xb42   : > { %v6668_v30 = vmax.f32 %v6443_v37, %v8400_v28  ;;  %v6693_v49 = vmax.f32 %v6665_v61, %v6667_v55  ;;  %v6460_v22 = vcombine.high %v6458_v50, %v6458_v50  ;;  %v8401_v3 = vrot.slane %v6451_v34, 9  ;;  %v8592_v58 = vpop.f32.mrb[28].mxu1 }
 0xb43   : > { %v6660_v8 = vmax.f32 %v6409_v1, %v8392_v13  ;;  %v6689_v54 = vmax.f32 %v6657_v44, %v6659_v19  ;;  %v8402_v27 = vrot.slane %v6459_v6, 9  ;;  %v8403_v62 = vrot.slane %v6458_v50, 9  ;;  %v6370_v39 = vpop.f32.mrb[29].mxu1 }
 0xb44   : > { %v6694_v16 = vmax.f32 %v6666_v0, %v6668_v30  ;;  %v8404_v15 = vrot.slane %v6460_v22, 9  ;;  %v6410_v36 = vcombine.high %v6358_v53, %v6358_v53  ;;  %v13849_v10 = vpop.f32.mrb[30].mxu1  ;;  %v6669_v12 = vmax.f32 %v6451_v34, %v8401_v3 }
 0xb45   : > { %v6690_v5 = vmax.f32 %v6658_v23, %v6660_v8  ;;  %v13851_v33 = vmax.f32 %v6689_v54, %v6693_v49  ;;  %v6671_v2 = vmax.f32 %v6458_v50, %v8403_v62  ;;  %v6373_v32 = vpop.f32.mrb[31].mxu1  ;;  %v6417_v11 = vrot.slane %v6358_v53, %v13837_v17 }
 0xb46   : > { %v6672_v60 = vmax.f32 %v6460_v22, %v8404_v15  ;;  %v6424_v18 = vrot.slane %v6410_v36, %v13837_v17  ;;  %v6379_v38 = vadd.f32 %v8592_v58, %v13200_v41  ;;  %v6670_v31 = vmax.f32 %v6459_v6, %v8402_v27 }
 0xb47   : > { %v13856_v25 = vmax.f32 %v6690_v5, %v6694_v16  ;;  %v6371_v63 = vadd.f32 %v6370_v39, %v13203_v4  ;;  %v6695_v43 = vmax.f32 %v6669_v12, %v6671_v2  ;;  %v6425_v7 = vcombine.high %v6417_v11, %v6417_v11  ;;  %v8425_v16 = vld [vmem:[#allocation39] ss:$0 sm:$0xff] }
 0xb48   : > { %v6426_v56 = vcombine.high %v6424_v18, %v6424_v18  ;;  %v8393_v40 = vrot.slane %v6417_v11, 9  ;;  %v6696_v24 = vmax.f32 %v6670_v31, %v6672_v60  ;;  %v8395_v47 = vrot.slane %v6424_v18, 9  ;;  %v8426_v31 = vld [vmem:[#allocation41] ss:$0 sm:$0xff] }
 0xb49   : > { %v6495_v57 = vcombine.high %v6379_v38, %v6379_v38  ;;  %v6502_v45 = vrot.slane %v6379_v38, %v13837_v17  ;;  %v8394_v29 = vrot.slane %v6425_v7, 9  ;;  %v6461_v59 = vcombine.high %v6371_v63, %v6371_v63 }
 0xb4a   : > { %v8396_v53 = vrot.slane %v6426_v56, 9  ;;  %v6661_v46 = vmax.f32 %v6417_v11, %v8393_v40  ;;  %v6777_v14 = vpop.f32.mrb[32].mxu1  ;;  %v6663_v41 = vmax.f32 %v6424_v18, %v8395_v47  ;;  %v6468_v61 = vrot.slane %v6371_v63, %v13837_v17  ;;  %v14266_v18 = vld [vmem:[#allocation91_spill] sm:$0xff] }
 0xb4b   : > { %v6509_v20 = vrot.slane %v6495_v57, %v13837_v17  ;;  %v6510_v34 = vcombine.high %v6502_v45, %v6502_v45  ;;  %v8413_v37 = vrot.slane %v6502_v45, 9  ;;  %v8598_v4 = vpop.f32.mrb[33].mxu1  ;;  %v6662_v48 = vmax.f32 %v6425_v7, %v8394_v29 }
 0xb4c   : > { %v6664_v26 = vmax.f32 %v6426_v56, %v8396_v53  ;;  %v6475_v1 = vrot.slane %v6461_v59, %v13837_v17  ;;  %v6780_v42 = vpop.f32.mrb[34].mxu1  ;;  %v6691_v52 = vmax.f32 %v6661_v46, %v6663_v41  ;;  %v13864_v50 = vsub.s32 0, %v13834_v21 }
 0xb4d   : > { %v6511_v44 = vcombine.high %v6509_v20, %v6509_v20  ;;  %v8414_v28 = vrot.slane %v6510_v34, 9  ;;  %v8415_v0 = vrot.slane %v6509_v20, 9  ;;  %v8599_v55 = vpop.f32.mrb[35].mxu1  ;;  %v6476_v23 = vcombine.high %v6468_v61, %v6468_v61 }
 0xb4e   : > { %v6692_v13 = vmax.f32 %v6662_v48, %v6664_v26  ;;  %v6477_v19 = vcombine.high %v6475_v1, %v6475_v1  ;;  %v13866_v6 = vmax.f32 %v6691_v52, %v6695_v43  ;;  %v6681_v49 = vmax.f32 %v6502_v45, %v8413_v37 }
 0xb4f   : > { %v8416_v30 = vrot.slane %v6511_v44, 9  ;;  %v6683_v22 = vmax.f32 %v6509_v20, %v8415_v0  ;;  %v8405_v58 = vrot.slane %v6468_v61, 9  ;;  %v8406_v8 = vrot.slane %v6476_v23, 9 }
 0xb50   : > { %v13868_v3 = vmax.f32 %v6692_v13, %v6696_v24  ;;  %v8407_v54 = vrot.slane %v6475_v1, 9  ;;  %v6682_v27 = vmax.f32 %v6510_v34, %v8414_v28  ;;  %v8408_v39 = vrot.slane %v6477_v19, 9 }
 0xb51   : > { %v6684_v62 = vmax.f32 %v6511_v44, %v8416_v30  ;;  %v6701_v15 = vmax.f32 %v6681_v49, %v6683_v22  ;;  %v6673_v36 = vmax.f32 %v6468_v61, %v8405_v58  ;;  %v6674_v5 = vmax.f32 %v6476_v23, %v8406_v8 }
 0xb52   : > { %v6675_v12 = vmax.f32 %v6475_v1, %v8407_v54  ;;  %v6676_v60 = vmax.f32 %v6477_v19, %v8408_v39  ;;  %v6382_v11 = vadd.f32 %v13849_v10, %v13206_v51  ;;  %v6374_v38 = vadd.f32 %v6373_v32, %v14266_v18 }
 0xb53   : > { %v6702_v2 = vmax.f32 %v6682_v27, %v6684_v62  ;;  %v7795_v63 = vrot.slane %v13851_v33, %v13864_v50  ;;  %v6790_v7 = vmul.f32 %v8425_v16, %v6777_v14  ;;  %v7799_v57 = vrot.slane %v13856_v25, %v13864_v50 }
 0xb54   : > { %v6697_v43 = vmax.f32 %v6673_v36, %v6675_v12  ;;  %v6698_v56 = vmax.f32 %v6674_v5, %v6676_v60  ;;  %v6512_v40 = vcombine.high %v6382_v11, %v6382_v11  ;;  %v6519_v24 = vrot.slane %v6382_v11, %v13837_v17  ;;  %v10559_v5 = vld.sshfl [vmem:[#allocation3 + $0x30] sm:$0xf pattern:$0x76325410] }
 0xb55   : > { %v6478_v47 = vcombine.high %v6374_v38, %v6374_v38  ;;  %v6485_v51 = vrot.slane %v6374_v38, %v13837_v17  ;;  %v6798_v10 = vadd.f32 %v8426_v31, %v6790_v7  ;;  %v7803_v46 = vrot.slane %v13866_v6, %v13864_v50  ;;  %v10563_v60 = vld.sshfl [vmem:[#allocation3 + $0x32] sm:$0xf pattern:$0x76325410] }
 0xb56   : > { %v6709_v45 = vmax.f32 %v6697_v43, %v6701_v15  ;;  %v13879_v32 = vmax.f32 %v6698_v56, %v6702_v2  ;;  %v6526_v29 = vrot.slane %v6512_v40, %v13837_v17  ;;  %v6527_v33 = vcombine.high %v6519_v24, %v6519_v24  ;;  %v10569_v43 = vld.sshfl [vmem:[#allocation3 + $0x35] sm:$0xf pattern:$0x76325410] }
 0xb57   : > { %v8417_v53 = vrot.slane %v6519_v24, 9  ;;  %v6492_v59 = vrot.slane %v6478_v47, %v13837_v17  ;;  %v6493_v14 = vcombine.high %v6485_v51, %v6485_v51  ;;  %v8409_v41 = vrot.slane %v6485_v51, 9  ;;  %v10567_v56 = vld.sshfl [vmem:[#allocation3 + $0x34] sm:$0xf pattern:$0x76325410] }
 0xb58   : > { %v7807_v25 = vrot.slane %v13868_v3, %v13864_v50  ;;  %v6528_v20 = vcombine.high %v6526_v29, %v6526_v29  ;;  %v8418_v34 = vrot.slane %v6527_v33, 9  ;;  %v8419_v37 = vrot.slane %v6526_v29, 9 }
 0xb59   : > { %v6685_v4 = vmax.f32 %v6519_v24, %v8417_v53  ;;  %v6494_v48 = vcombine.high %v6492_v59, %v6492_v59  ;;  %v8410_v26 = vrot.slane %v6493_v14, 9  ;;  %v8411_v61 = vrot.slane %v6492_v59, 9  ;;  %v10575_v53 = vld.sshfl [vmem:[#allocation3 + $0x39] sm:$0xf pattern:$0x76325410] }
 0xb5a   : > { %v8420_v1 = vrot.slane %v6528_v20, 9  ;;  %v6687_v42 = vmax.f32 %v6526_v29, %v8419_v37  ;;  %v6677_v52 = vmax.f32 %v6485_v51, %v8409_v41  ;;  %v6799_v44 = vmax.f32 %v6798_v10, 0.0  ;;  %v10571_v10 = vld.sshfl [vmem:[#allocation3 + $0x36] sm:$0xf pattern:$0x76325410] }
 0xb5b   : > { %v6686_v28 = vmax.f32 %v6527_v33, %v8418_v34  ;;  %v8412_v0 = vrot.slane %v6494_v48, 9  ;;  %v6679_v55 = vmax.f32 %v6492_v59, %v8411_v61  ;;  %v7825_v22 = vsel %vm7824_vm15, %v7799_v57, %v7795_v63  ;;  %v10573_v57 = vld.sshfl [vmem:[#allocation3 + $0x38] sm:$0xf pattern:$0x76325410] }
 0xb5c   : > { %v6688_v13 = vmax.f32 %v6528_v20, %v8420_v1  ;;  %v6703_v23 = vmax.f32 %v6685_v4, %v6687_v42  ;;  %v6801_v19 = vcombine.high %v6799_v44, %v6799_v44  ;;  %v6808_v6 = vrot.slane %v6799_v44, %v13837_v17  ;;  %v10580_v20 = vld.sshfl [vmem:[#allocation3 + $0x2] sm:$0xf pattern:$0x76325410] }
 0xb5d   : > { %v6680_v30 = vmax.f32 %v6494_v48, %v8412_v0  ;;  %v6699_v49 = vmax.f32 %v6677_v52, %v6679_v55  ;;  %v6678_v3 = vmax.f32 %v6493_v14, %v8410_v26  ;;  %v7827_v54 = vsel %vm7826_vm1, %v7803_v46, %v7825_v22  ;;  %v10578_v34 = vld.sshfl [vmem:[#allocation3 + $0x1] sm:$0xf pattern:$0x76325410] }
 0xb5e   : > { %v6815_v58 = vrot.slane %v6801_v19, %v13837_v17  ;;  %v6816_v8 = vcombine.high %v6808_v6, %v6808_v6  ;;  %6824 = vst.msk [vmem:[#allocation3 + $0x15] sm:$0x3] %vm6823_vm10, %v6808_v6  ;;  %v7811_v27 = vrot.slane %v6709_v45, %v13864_v50  ;;  %v6704_v39 = vmax.f32 %v6686_v28, %v6688_v13  ;;  %v10558_v17 = vld.sshfl [vmem:[#allocation3 + $0x31] sm:$0xf pattern:$0x76325410] }
 0xb5f   : > { %v13891_v62 = vmax.f32 %v6699_v49, %v6703_v23  ;;  %v6700_v16 = vmax.f32 %v6678_v3, %v6680_v30  ;;  %v7829_v36 = vsel %vm7828_vm2, %v7807_v25, %v7827_v54  ;;  %v10577_v25 = vld.sshfl [vmem:[#allocation3 + $0x3a] sm:$0xf pattern:$0x76325410]  ;;  %v7815_v23 = vrot.slane %v13879_v32, %v13864_v50 }
 0xb60   : > { %v6817_v15 = vcombine.high %v6815_v58, %v6815_v58  ;;  %6825 = vst.msk [vmem:[#allocation3 + $0x19] sm:$0x3] %vm6823_vm10, %v6816_v8  ;;  %6826 = vst.msk [vmem:[#allocation3 + $0x25] sm:$0x3] %vm6823_vm10, %v6815_v58  ;;  %v13898_v2 = vsel %vm7830_vm14, %v7811_v27, %v7829_v36  ;;  %vm14271_vm15 = vcmask 228352   ;;  %vm14272_vm1 = vcmask 261120  }
 0xb61   : > { %v13896_v12 = vmax.f32 %v6700_v16, %v6704_v39  ;;  %v10582_v61 = vld.sshfl [vmem:[#allocation3 + $0x4] sm:$0xf pattern:$0x76325410]  ;;  %v7819_v49 = vrot.slane %v13891_v62, %v13864_v50  ;;  %v7833_v32 = vsel %vm7832_vm12, %v7815_v23, %v13898_v2  ;;  %vm14273_vm2 = vcmask 293888   ;;  %vm14275_vm12 = vmmov %vm14271_vm15 }
 0xb62   : > { %6827 = vst.msk [vmem:[#allocation3 + $0x29] sm:$0x3] %vm6823_vm10, %v6817_v15  ;;  %v10584_v1 = vld.sshfl [vmem:[#allocation3 + $0x5] sm:$0xf pattern:$0x76325410] }
 0xb63   : > { %v10586_v0 = vld.sshfl [vmem:[#allocation3 + $0x6] sm:$0xf pattern:$0x76325410]  ;;  %v7823_v22 = vrot.slane %v13896_v12, %v13864_v50  ;;  %v7835_v16 = vsel %vm7834_vm13, %v7819_v49, %v7833_v32  ;;  %vm14270_vm10 = vcmask 1045504   ;;  %vm14274_vm14 = vcmask 326656   ;;  %vm14276_vm13 = vmmov %vm14272_vm1 }
 0xb64   : > { %v10588_v6 = vld.sshfl [vmem:[#allocation3 + $0x8] sm:$0xf pattern:$0x76325410] }
 0xb65   : > { %v10581_v4 = vld.sshfl [vmem:[#allocation3 + $0x12] sm:$0xf pattern:$0x76325410]  ;;  %v13920_v62 = vsel %vm7836_vm11, %v7823_v22, %v7835_v16  ;;  %vm14277_vm11 = vmmov %vm14273_vm2 }
 0xb66   : > { %v10579_v48 = vld.sshfl [vmem:[#allocation3 + $0x11] sm:$0xf pattern:$0x76325410]  ;;  %v7009_v19 = vcombine.low %v10580_v20, %v10581_v4 }
 0xb67   : > { %v10560_v11 = vld.sshfl [vmem:[#allocation3 + $0x21] sm:$0xf pattern:$0x76325410]  ;;  %v6985_v55 = vcombine.low %v10578_v34, %v10579_v48 }
 0xb68   : > { %v10561_v18 = vld.sshfl [vmem:[#allocation3 + $0x20] sm:$0xf pattern:$0x76325410]  ;;  %v7430_v7 = vcombine.low %v10560_v11, %v10558_v17 }
 0xb69   : > { %v10562_v38 = vld.sshfl [vmem:[#allocation3 + $0x22] sm:$0xf pattern:$0x76325410]  ;;  %v7406_v40 = vcombine.low %v10561_v18, %v10559_v5 }
 0xb6a   : > { %v10565_v31 = vld.sshfl [vmem:[#allocation3 + $0x1a] sm:$0xf pattern:$0x76325410]  ;;  %7431 = vrot.lane.b32.xlu0 %v7430_v7, %s11563_s22  ;;  %v7454_v29 = vcombine.low %v10562_v38, %v10563_v60 }
 0xb6b   : > { %v10564_v63 = vld.sshfl [vmem:[#allocation3 + $0x2a] sm:$0xf pattern:$0x76325410]  ;;  %7407 = vrot.lane.b32.xlu1 %v7406_v40, %s11561_s16 }
 0xb6c   : > { %v10568_v24 = vld.sshfl [vmem:[#allocation3 + $0x25] sm:$0xf pattern:$0x76325410]  ;;  %v7382_v45 = vcombine.low %v10565_v31, %v10564_v63 }
 0xb6d   : > { %v10566_v47 = vld.sshfl [vmem:[#allocation3 + $0x24] sm:$0xf pattern:$0x76325410]  ;;  %v7502_v14 = vcombine.low %v10568_v24, %v10569_v43 }
 0xb6e   : > { %v10570_v51 = vld.sshfl [vmem:[#allocation3 + $0x26] sm:$0xf pattern:$0x76325410]  ;;  %7383 = vrot.lane.b32.xlu0 %v7382_v45, %s11562_s3  ;;  %v7478_v46 = vcombine.low %v10566_v47, %v10567_v56 }
 0xb6f   : > { %v10572_v33 = vld.sshfl [vmem:[#allocation3 + $0x28] sm:$0xf pattern:$0x76325410]  ;;  %7455 = vrot.lane.b32.xlu1 %v7454_v29, %s11564_s13  ;;  %v7526_v37 = vcombine.low %v10570_v51, %v10571_v10 }
 0xb70   : > { %v10574_v59 = vld.sshfl [vmem:[#allocation3 + $0x29] sm:$0xf pattern:$0x76325410]  ;;  %v7550_v26 = vcombine.low %v10572_v33, %v10573_v57 }
 0xb71   : > { %v10576_v41 = vld.sshfl [vmem:[#allocation3 + $0x2a] sm:$0xf pattern:$0x76325410]  ;;  %v7574_v42 = vcombine.low %v10574_v59, %v10575_v53 }
 0xb72   : > { %7479 = vrot.lane.b32.xlu0 %v7478_v46, %s11565_s14  ;;  %v10585_v52 = vld.sshfl [vmem:[#allocation3 + $0x15] sm:$0xf pattern:$0x76325410]  ;;  %v7598_v28 = vcombine.low %v10576_v41, %v10577_v25 }
 0xb73   : > { %7503 = vrot.lane.b32.xlu1 %v7502_v14, %s11566_s2  ;;  %v10583_v44 = vld.sshfl [vmem:[#allocation3 + $0x14] sm:$0xf pattern:$0x76325410]  ;;  %v7057_v54 = vcombine.low %v10584_v1, %v10585_v52 }
 0xb74   : > { %v10587_v13 = vld.sshfl [vmem:[#allocation3 + $0x16] sm:$0xf pattern:$0x76325410]  ;;  %v7033_v3 = vcombine.low %v10582_v61, %v10583_v44 }
 0xb75   : > { %v10589_v30 = vld.sshfl [vmem:[#allocation3 + $0x18] sm:$0xf pattern:$0x76325410]  ;;  %v7081_v15 = vcombine.low %v10586_v0, %v10587_v13 }
 0xb76   : > { %7527 = vrot.lane.b32.xlu0 %v7526_v37, %s11567_s5  ;;  %v10590_v58 = vld.sshfl [vmem:[#allocation3 + $0x9] sm:$0xf pattern:$0x76325410]  ;;  %v7105_v36 = vcombine.low %v10588_v6, %v10589_v30 }
 0xb77   : > { %7551 = vrot.lane.b32.xlu1 %v7550_v26, %s11568_s9  ;;  %v10591_v8 = vld.sshfl [vmem:[#allocation3 + $0x19] sm:$0xf pattern:$0x76325410] }
 0xb78   : > { %v10592_v27 = vld.sshfl [vmem:[#allocation3 + $0xa] sm:$0xf pattern:$0x76325410]  ;;  %v7129_v2 = vcombine.low %v10590_v58, %v10591_v8 }
 0xb79   : > { %v10593_v39 = vld.sshfl [vmem:[#allocation3 + $0x1a] sm:$0xf pattern:$0x76325410] }
 0xb7a   : > { %7575 = vrot.lane.b32.xlu0 %v7574_v42, %s11569_s19  ;;  %v10594_v50 = vld.sshfl [vmem:[#allocation3 + $0x20] sm:$0xf pattern:$0x76325410]  ;;  %v7153_v11 = vcombine.low %v10592_v27, %v10593_v39 }
 0xb7b   : > { %7599 = vrot.lane.b32.xlu1 %v7598_v28, %s11570_s26  ;;  %v10595_v17 = vld.sshfl [vmem:[#allocation3 + $0x21] sm:$0xf pattern:$0x76325410] }
 0xb7c   : > { %v10596_v5 = vld.sshfl [vmem:[#allocation3 + $0x10] sm:$0xf pattern:$0x76325410] }
 0xb7d   : > { %v10597_v12 = vld.sshfl [vmem:[#allocation3 + $0x11] sm:$0xf pattern:$0x76325410]  ;;  %v7177_v63 = vcombine.low %v10596_v5, %v10594_v50 }
 0xb7e   : > { %6986 = vrot.lane.b32.xlu0 %v6985_v55, %s11562_s3  ;;  %v10598_v60 = vld.sshfl [vmem:[#allocation3 + $0x22] sm:$0xf pattern:$0x76325410]  ;;  %v7201_v7 = vcombine.low %v10597_v12, %v10595_v17  ;;  %s14268_s3 = smov 56  }
 0xb7f   : > { %7010 = vrot.lane.b32.xlu1 %v7009_v19, %s11561_s16  ;;  %s14267_s16 = sld [smem:[#allocation86_spill]]  ;;  %v10599_v18 = vld.sshfl [vmem:[#allocation3 + $0x24] sm:$0xf pattern:$0x76325410] }
 0xb80   : > { %v10600_v38 = vld.sshfl [vmem:[#allocation3 + $0x12] sm:$0xf pattern:$0x76325410] }
 0xb81   : > { %v10601_v31 = vld.sshfl [vmem:[#allocation3 + $0x14] sm:$0xf pattern:$0x76325410]  ;;  %v7225_v45 = vcombine.low %v10600_v38, %v10598_v60 }
 0xb82   : > { %7034 = vrot.lane.b32.xlu0 %v7033_v3, %s11563_s22  ;;  %v10602_v43 = vld.sshfl [vmem:[#allocation3 + $0x25] sm:$0xf pattern:$0x76325410]  ;;  %v7249_v10 = vcombine.low %v10601_v31, %v10599_v18  ;;  %s14269_s22 = smov 60  }
 0xb83   : > { %7058 = vrot.lane.b32.xlu1 %v7057_v54, %s11564_s13  ;;  %v10603_v56 = vld.sshfl [vmem:[#allocation3 + $0x26] sm:$0xf pattern:$0x76325410] }
 0xb84   : > { %v10604_v24 = vld.sshfl [vmem:[#allocation3 + $0x15] sm:$0xf pattern:$0x76325410] }
 0xb85   : > { %v10542_v40 = vld [vmem:[%s14267_s16] sm:$0xff]   ;;  %v10605_v47 = vld.sshfl [vmem:[#allocation3 + $0x16] sm:$0xf pattern:$0x76325410]  ;;  %v10543_v57 = vld [vmem:[%s14267_s16 + $0x8] sm:$0xff]   ;;  %v7273_v53 = vcombine.low %v10604_v24, %v10602_v43 }
 0xb86   : > { %7082 = vrot.lane.b32.xlu0 %v7081_v15, %s11565_s14  ;;  %8601 = vmatpush3.bf16.msra.mxu0 %v10542_v40  ;;  %v10606_v51 = vld.sshfl [vmem:[#allocation3 + $0x28] sm:$0xf pattern:$0x76325410]  ;;  %v10544_v33 = vld [vmem:[%s14267_s16 + $0x10] sm:$0xff]   ;;  %v7297_v46 = vcombine.low %v10605_v47, %v10603_v56  ;;  %v10545_v59 = vld [vmem:[%s14267_s16 + $0x18] sm:$0xff]  }
 0xb87   : > { %7106 = vrot.lane.b32.xlu1 %v7105_v36, %s11566_s2  ;;  %8602 = vmatprep.subr.bf16.mxu0 %v14207_v9  ;;  %v10607_v29 = vld.sshfl [vmem:[#allocation3 + $0x18] sm:$0xf pattern:$0x76325410]  ;;  %v10546_v41 = vld [vmem:[%s14267_s16 + $0x20] sm:$0xff]   ;;  %v10547_v25 = vld [vmem:[%s14267_s16 + $0x28] sm:$0xff]  }
 0xb88   : > { %v7321_v14 = vcombine.low %v10607_v29, %v10606_v51  ;;  %v10608_v20 = vld.sshfl [vmem:[#allocation3 + $0x29] sm:$0xf pattern:$0x76325410]  ;;  %v10548_v44 = vld [vmem:[%s14267_s16 + $0x30] sm:$0x3f]  }
 0xb89   : > { %v10609_v34 = vld.sshfl [vmem:[#allocation3 + $0x19] sm:$0xf pattern:$0x76325410]  ;;  %v7677_v23 = vsel %vm14270_vm10, %v10548_v44, 0  ;;  %vm14280_vm10 = vcmask 424960  }
 0xb8a   : > { %7130 = vrot.lane.b32.xlu0 %v7129_v2, %s11567_s5  ;;  %8603 = vmatpush3.bf16.msra.mxu0 %v10543_v57  ;;  %v7360_v48 = vcombine.low %v10609_v34, %v10608_v20  ;;  %v10610_v16 = vld.sshfl [vmem:[#allocation3] sm:$0xf pattern:$0x76325410]  ;;  %v7737_v34 = vld [vmem:[#allocation45] sm:$0x3] }
 0xb8b   : > { %7154 = vrot.lane.b32.xlu1 %v7153_v11, %s11568_s9  ;;  %8604 = vmatprep.subr.bf16.mxu0 %v14207_v9  ;;  %v10611_v15 = vld.sshfl [vmem:[#allocation3 + $0x10] sm:$0xf pattern:$0x76325410]  ;;  %s8331_s14 = sshll.u32 %s14296_s11, 1 }
 0xb8c   : > { %v6963_v17 = vcombine.low %v10610_v16, %v10611_v15 }
 0xb8e   : > { %7178 = vrot.lane.b32.xlu0 %v7177_v63, %s11569_s19  ;;  %8605 = vmatpush3.bf16.msra.mxu0 %v10544_v33 }
 0xb8f   : > { %7202 = vrot.lane.b32.xlu1 %v7201_v7, %s11570_s26  ;;  %8606 = vmatprep.subr.bf16.mxu0 %v14207_v9 }
 0xb92   : > { %7226 = vrot.lane.b32.xlu0 %v7225_v45, %s11571_s10  ;;  %8607 = vmatpush3.bf16.msra.mxu0 %v10545_v59 }
 0xb93   : > { %7250 = vrot.lane.b32.xlu1 %v7249_v10, %s11572_s28  ;;  %8608 = vmatprep.subr.bf16.mxu0 %v14207_v9 }
 0xb96   : > { %7274 = vrot.lane.b32.xlu0 %v7273_v53, %s14189_s8  ;;  %8609 = vmatpush3.bf16.msra.mxu0 %v10546_v41 }
 0xb97   : > { %7298 = vrot.lane.b32.xlu1 %v7297_v46, %s14268_s3  ;;  %8610 = vmatprep.subr.bf16.mxu0 %v14207_v9 }
 0xb9a   : > { %7322 = vrot.lane.b32.xlu0 %v7321_v14, %s14269_s22  ;;  %8611 = vmatpush3.bf16.msra.mxu0 %v10547_v25 }
 0xb9b   : > { %8612 = vmatprep.subr.bf16.mxu0 %v14207_v9 }
 0xb9e   : > { %8613 = vmatpush3.bf16.msra.mxu0 %v7677_v23 }
 0xb9f   : > { %8618 = vmatprep.subr.bf16.mxu0 %v14207_v9 }
 0xbdc   : > { %v7432_v37 = vpop.permute.xlu0 %7431 }
 0xbdd   : > { %v7408_v4 = vpop.permute.xlu1 %7407 }
 0xbe0   : > { %v7384_v26 = vpop.permute.xlu0 %7383 }
 0xbe1   : > { %v7456_v61 = vpop.permute.xlu1 %7455  ;;  %v7602_v1 = vsel %vm2827_vm4, %v7360_v48, %v7384_v26  ;;  %v8436_v26 = vld [vmem:[#allocation44] ss:$0 sm:$0xff] }
 0xbe2   : > { %v7603_v42 = vsel %vm1475_vm3, %v7602_v1, %v7408_v4  ;;  %v8435_v4 = vld [vmem:[#allocation42] ss:$0 sm:$0xff] }
 0xbe3   : > { %v7604_v52 = vsel %vm2844_vm5, %v7603_v42, %v7432_v37 }
 0xbe4   : > { %v7480_v28 = vpop.permute.xlu0 %7479  ;;  %v7605_v0 = vsel %vm2853_vm6, %v7604_v52, %v7456_v61 }
 0xbe5   : > { %v7504_v55 = vpop.permute.xlu1 %7503  ;;  %v7606_v13 = vsel %vm2862_vm7, %v7605_v0, %v7480_v28 }
 0xbe6   : > { %v7607_v6 = vsel %vm2871_vm8, %v7606_v13, %v7504_v55  ;;  %v10557_v13 = vld [vmem:[%s12257_s18] sm:$0xff]  ;;  %s11579_s18 = smov 96  }
 0xbe8   : > { %v7528_v19 = vpop.permute.xlu0 %7527 }
 0xbe9   : > { %v7552_v30 = vpop.permute.xlu1 %7551  ;;  %v7608_v49 = vsel %vm14271_vm15, %v7607_v6, %v7528_v19  ;;  %vm14283_vm15 = vcmask 523264  }
 0xbea   : > { %v7609_v3 = vsel %vm14272_vm1, %v7608_v49, %v7552_v30  ;;  %vm14284_vm1 = vcmask 883712  }
 0xbec   : > { %v7576_v22 = vpop.permute.xlu0 %7575 }
 0xbed   : > { %v7600_v58 = vpop.permute.xlu1 %7599  ;;  %v7610_v8 = vsel %vm14273_vm2, %v7609_v3, %v7576_v22  ;;  %vm14289_vm2 = vmmov %vm14283_vm15 }
 0xbee   : > { %v7611_v32 = vsel %vm14274_vm14, %v7610_v8, %v7600_v58 }
 0xbef   : > { %7613 = vrot.lane.b32.xlu1 %v7611_v32, %s14194_s7 }
 0xbf0   : > { %v6987_v54 = vpop.permute.xlu0 %6986 }
 0xbf1   : > { %v7011_v27 = vpop.permute.xlu1 %7010  ;;  %v7325_v5 = vsel %vm2827_vm4, %v6963_v17, %v6987_v54 }
 0xbf2   : > { %v7326_v60 = vsel %vm1475_vm3, %v7325_v5, %v7011_v27  ;;  %vm14278_vm3 = vmmov %vm14274_vm14 }
 0xbf3   : > { %vm14290_vm14 = vmmov %vm14289_vm2 }
 0xbf4   : > { %v7035_v39 = vpop.permute.xlu0 %7034 }
 0xbf5   : > { %v7059_v50 = vpop.permute.xlu1 %7058  ;;  %v7327_v11 = vsel %vm2844_vm5, %v7326_v60, %v7035_v39  ;;  %vm14279_vm5 = vcmask 359424   ;;  %v11580_v39 = vmov 1966171168  }
 0xbf6   : > { %v7328_v38 = vsel %vm2853_vm6, %v7327_v11, %v7059_v50  ;;  %v7882_v16 = vunpack.c.l.s4 %v11580_v39 }
 0xbf8   : > { %v7083_v36 = vpop.permute.xlu0 %7082 }
 0xbf9   : > { %v7107_v12 = vpop.permute.xlu1 %7106  ;;  %v7329_v63 = vsel %vm2862_vm7, %v7328_v38, %v7083_v36  ;;  %vm14281_vm7 = vcmask 457728   ;;  %v7883_v36 = vunpack.c.0.s8 %v7882_v16 }
 0xbfa   : > { %v7330_v43 = vsel %vm2871_vm8, %v7329_v63, %v7107_v12  ;;  %vm14282_vm8 = vcmask 490496  }
 0xbfc   : > { %v7131_v2 = vpop.permute.xlu0 %7130 }
 0xbfd   : > { %v7155_v18 = vpop.permute.xlu1 %7154  ;;  %v7331_v7 = vsel %vm14275_vm12, %v7330_v43, %v7131_v2  ;;  %vm7898_vm12 = vcmp.lt.s32.totalorder %v6397_v35, 256 }
 0xbfe   : > { %v7332_v24 = vsel %vm14276_vm13, %v7331_v7, %v7155_v18  ;;  %v7886_v18 = vsub.s32 %v7883_v36, %v13834_v21 }
 0xc00   : > { %v7179_v31 = vpop.permute.xlu0 %7178 }
 0xc01   : > { %v7203_v56 = vpop.permute.xlu1 %7202  ;;  %v7333_v47 = vsel %vm14277_vm11, %v7332_v24, %v7179_v31 }
 0xc02   : > { %v7334_v45 = vsel %vm14278_vm3, %v7333_v47, %v7203_v56 }
 0xc04   : > { %v7227_v40 = vpop.permute.xlu0 %7226 }
 0xc05   : > { %v7251_v57 = vpop.permute.xlu1 %7250  ;;  %v7335_v10 = vsel %vm14279_vm5, %v7334_v45, %v7227_v40 }
 0xc06   : > { %v7336_v29 = vsel %vm2925_vm0, %v7335_v10, %v7251_v57  ;;  %vm14285_vm0 = vcmask 1041408  }
 0xc07   : > { %v7742_v37 = vsel %vm14285_vm0, %v7737_v34, 0 }
 0xc08   : > { %v7275_v51 = vpop.permute.xlu0 %7274 }
 0xc09   : > { %v7337_v33 = vsel %vm14280_vm10, %v7336_v29, %v7275_v51  ;;  %v7299_v53 = vpop.permute.xlu1 %7298 }
 0xc0a   : > { %v7338_v59 = vsel %vm14281_vm7, %v7337_v33, %v7299_v53 }
 0xc0c   : > { %v7323_v46 = vpop.permute.xlu0 %7322 }
 0xc0d   : > { %v7339_v14 = vsel %vm14282_vm8, %v7338_v59, %v7323_v46 }
 0xc61   : > { %v7614_v41 = vpop.permute.xlu1 %7613 }
 0xc62   : > { %v7616_v25 = vsel %vm14283_vm15, %v7339_v14, %v7614_v41 }
 0xc63   : > { %v7617_v20 = vpack.c.bf16 %v7616_v25, %v7616_v25 }
 0xc65   : > { %8615 = vmatmul.mubr.msk.bf16.vlgmr.msra.gmra.mrb[16].mxu0 %vm14284_vm1, %v7617_v20 }
 0xc66   : > { %8620 = vmatprep.mubr.msk.bf16.mxu0 %vm11577_vm9, %v14207_v9  ;;  %8619 = vmatpush3.bf16.msra.mxu0 %v7742_v37 }
 0xd38   : > { %v7713_v48 = vpop.f32.mrb[16].mxu0 }
 0xd39   : > { %v7726_v61 = vmul.f32 %v8435_v4, %v7713_v48  ;;  %v8616_v1 = vpop.f32.mrb[17].mxu0 }
 0xd3a   : > { %v7716_v42 = vpop.f32.mrb[18].mxu0 }
 0xd3b   : > { %v7734_v52 = vadd.f32 %v8436_v26, %v7726_v61  ;;  %v8617_v44 = vpop.f32.mrb[19].mxu0 }
 0xd3d   : > { %v7735_v28 = vmax.f32 %v7734_v52, 0.0 }
 0xd3f   : > { %v7736_v0 = vpack.c.bf16 %v7735_v28, %v7735_v28 }
 0xd41   : > { %8621 = vmatmul.mubr.msk.bf16.vlgmr.msra.gmra.mrb[20].mxu0 %vm2827_vm4, %v7736_v0  ;;  %vm7873_vm4 = vcmask 785408  }
 0xe14   : > { %v7778_v55 = vpop.f32.mrb[20].mxu0 }
 0xe15   : > { %v7779_v9 = vadd.f32 %v10557_v13, %v7778_v55  ;;  %v8622_v23 = vpop.f32.mrb[21].mxu0 }
 0xe16   : > { %v7781_v19 = vpop.f32.mrb[22].mxu0 }
 0xe17   : > { %7840 = vrot.lane.b32.xlu0 %v7779_v9, %s11564_s13  ;;  %v8623_v6 = vpop.f32.mrb[23].mxu0  ;;  %s14286_s13 = sld [smem:[#allocation89_spill]] }
 0xe1d   : > { %s1368_s2 = scalar_lea.vmem %s14286_s13, %s8331_s14 }
 0xe89   : > { %v7841_v30 = vpop.permute.xlu0 %7840 }
 0xe8a   : > { %v7843_v49 = vsel %vm2853_vm6, %v13920_v62, %v7841_v30  ;;  %vm14287_vm6 = vmmov %vm14276_vm13 }
 0xe8b   : > { %v7859_v22 = vrot.slane %v7843_v49, 5  ;;  %v7845_v3 = vrot.slane %v7843_v49, 1  ;;  %v7863_v58 = vrot.slane %v7843_v49, 6  ;;  %v7849_v8 = vrot.slane %v7843_v49, 2  ;;  %vm14288_vm9 = vmmov %vm14287_vm6 }
 0xe8c   : > { %v7867_v32 = vrot.slane %v7843_v49, 7  ;;  %v7853_v54 = vrot.slane %v7843_v49, 3  ;;  %v7857_v17 = vrot.slane %v7843_v49, 4 }
 0xe8d   : > { %7860 = vrot.lane.b32.xlu0 %v7859_v22, %s11568_s9  ;;  %7846 = vrot.lane.b32.xlu1 %v7845_v3, %s11568_s9 }
 0xe91   : > { %7864 = vrot.lane.b32.xlu0 %v7863_v58, %s14194_s7  ;;  %7850 = vrot.lane.b32.xlu1 %v7849_v8, %s14194_s7 }
 0xe95   : > { %7868 = vrot.lane.b32.xlu0 %v7867_v32, %s11579_s18  ;;  %7854 = vrot.lane.b32.xlu1 %v7853_v54, %s11579_s18 }
 0xeff   : > { %v7861_v62 = vpop.permute.xlu0 %7860  ;;  %v7847_v27 = vpop.permute.xlu1 %7846 }
 0xf00   : > { %v7875_v5 = vsel %vm14287_vm6, %v7857_v17, %v7861_v62  ;;  %v7871_v12 = vsel %vm14288_vm9, %v7843_v49, %v7847_v27 }
 0xf03   : > { %v7865_v15 = vpop.permute.xlu0 %7864  ;;  %v7851_v50 = vpop.permute.xlu1 %7850 }
 0xf04   : > { %v7876_v2 = vsel %vm14289_vm2, %v7875_v5, %v7865_v15  ;;  %v7872_v60 = vsel %vm14290_vm14, %v7871_v12, %v7851_v50 }
 0xf07   : > { %v7869_v11 = vpop.permute.xlu0 %7868  ;;  %v7855_v38 = vpop.permute.xlu1 %7854 }
 0xf08   : > { %v7877_v31 = vsel %vm7873_vm4, %v7876_v2, %v7869_v11  ;;  %v7874_v63 = vsel %vm7873_vm4, %v7872_v60, %v7855_v38 }
 0xf09   : > { %v7880_v43 = vcombine.low %v7874_v63, %v7877_v31 }
 0xf0b   : > { %v7887_v7 = vrot.slane %v7880_v43, %v7886_v18 }
 0xf0d   : > { %v7894_v56 = vrot.slane %v7887_v7, %v7886_v18 }
 0xf0f   : > { %7900 = vst.msk [vmem:[%s1368_s2] sm:$0x3] %vm7898_vm12, %v7894_v56 }
 0xf10 PF: > { %p91_p12 = scmp.ge.s32.totalorder %s12168_s6, 4   ;;  %s14291_s28 = smov %s11486_s0 }
 0xf11   : > { %s14292_s0 = smov %s11490_s1  ;;  %s14293_s1 = smov %s12180_s17 }
 0xf12   : > { %s14294_s2 = smov %s12168_s6  ;;  %93 = sbr.rel (!%p91_p12) target bundleno = 82 (0x52), region = 353 }
 0xf19   :  { %7920 = vsyncpa [#allocation5], 1 }
 0xf1a   :  { %7922 = vsyncpa [#allocation5 + $0x1], 1 }
 0xf1b   :  { %7923 = vsyncpa [#allocation7], 1 }
 0xf1c   :  { %7925 = vsyncpa [#allocation7 + $0x1], 1 }
 0xf1d   :  { %7926 = vsyncpa [#allocation10], 1 }
 0xf1e   :  { %7927 = vsyncpa [#allocation13], 1 }
 0xf1f   :  { %7928 = vsyncpa [#allocation16], 1 }
 0xf20   :  { %7929 = vsyncpa [#allocation19], 1 }
 0xf21   :  { %7930 = vsyncpa [#allocation22], 1 }
 0xf22   :  { %7931 = vsyncpa [#allocation25], 1 }
 0xf23   :  { %7932 = vsyncpa [#allocation28], 1 }
 0xf24   :  { %7933 = vsyncpa [#allocation31], 1 }
 0xf25   :  { %7934 = vsyncpa [#allocation34], 1 }
 0xf26   :  { %7935 = vsyncpa [#allocation37], 1 }
 0xf27   :  { %7936 = vsyncpa [#allocation40], 1 }
 0xf28   :  { %7937 = vsyncpa [#allocation43], 1 }
 0xf29   :  { %7938 = vsyncpa [#allocation46], 1 }

</bundles_post_ra>
